<compile_context>
chip_gen: v6e
topology: v6e:2x2x1
jax: 0.10.0
libtpu: 0.0.40
codegen_flags: <defaults>
</compile_context>

<pallas_src>
import numpy as np

import jax
import jax.numpy as jnp
from jax.experimental import pallas as pl
from jax.experimental.pallas import tpu as pltpu

# ----------------------------- small config ---------------------------------
B = 2            # batch
G = 8            # number of groups (seq_len)
N = 16           # group_size (points per group)
TRANS_DIM = 32   # trans_dim (== encoder_dims so visible tokens feed the blocks)
ENC_DIMS = 32    # encoder_dims
DEPTH = 2
NUM_HEADS = 4
MLP_RATIO = 4
MASK_RATIO = 0.5
LN_EPS = 1e-5
BN_EPS = 1e-5

VMEM = pltpu.MemorySpace.VMEM


# ------------------------------- fused kernel --------------------------------
def fused_kernel(
    pts_ref, ctr_ref, gath_ref, bias_ref, hmask_ref, bones_ref,
    ew1_ref, eb1_ref, ebn1g_ref, ebn1b_ref, ew2_ref, eb2_ref,
    ew3g_ref, ew3l_ref, eb3_ref, ebn2g_ref, ebn2b_ref, ew4_ref, eb4_ref,
    pw1_ref, pb1_ref, pw2_ref, pb2_ref,
    ln1g_ref, ln1b_ref, wqkv_ref, wproj_ref, bproj_ref,
    ln2g_ref, ln2b_ref, wfc1_ref, bfc1_ref, wfc2_ref, bfc2_ref,
    ng_ref, nb_ref,
    o_ref,
    w3g_buf, w3l_buf, w4_buf, w_sem,
):
    f32 = jnp.float32
    bf16 = jnp.bfloat16

    # ---- overlap the large encoder weight DMAs (HBM -> VMEM) with early compute
    cp_w3g = pltpu.make_async_copy(ew3g_ref, w3g_buf, w_sem.at[0])
    cp_w3l = pltpu.make_async_copy(ew3l_ref, w3l_buf, w_sem.at[1])
    cp_w4 = pltpu.make_async_copy(ew4_ref, w4_buf, w_sem.at[2])
    cp_w3g.start()
    cp_w3l.start()
    cp_w4.start()

    def mad3(x3, w_ref, b_ref):
        # K=3 matmul as 3 broadcast multiply-adds on the VPU (MXU is ~2% utilized at K=3).
        w = w_ref[...]
        return (x3[:, 0:1] * w[0:1, :] + x3[:, 1:2] * w[1:2, :]
                + x3[:, 2:3] * w[2:3, :] + b_ref[...])

    def batchnorm(h, g_ref, b_ref):
        # Training-mode batch statistics (fresh nn.BatchNorm1d), biased variance.
        # Single pass: var = E[x^2] - E[x]^2, all accumulation in f32.
        inv_n = 1.0 / h.shape[0]
        mu = jnp.sum(h, axis=0, keepdims=True) * inv_n
        msq = jnp.sum(h * h, axis=0, keepdims=True) * inv_n
        var = msq - mu * mu
        return (h - mu) * jax.lax.rsqrt(var + BN_EPS) * g_ref[...] + b_ref[...]

    def layernorm(v, g, b):
        mu = jnp.mean(v, axis=-1, keepdims=True)
        var = jnp.mean((v - mu) ** 2, axis=-1, keepdims=True)
        return (v - mu) * jax.lax.rsqrt(var + LN_EPS) * g + b

    # ----------------------- Encoder (all B*G groups at once) -----------------
    pts = pts_ref[...]                                           # (B*G*N, 3) channels-last
    h = mad3(pts, ew1_ref, eb1_ref)                              # Conv1d(3,128) -> (BGN,128)
    h = jnp.maximum(batchnorm(h, ebn1g_ref, ebn1b_ref), 0.0)     # BN + ReLU
    h = jnp.dot(h.astype(bf16), ew2_ref[...],
                preferred_element_type=f32) + eb2_ref[...]       # Conv1d(128,256) -> (BGN,256)

    h3 = h.reshape(B * G, N, 256)
    gmax = jnp.max(h3, axis=1)                                   # per-group max -> (BG,256)

    # concat([broadcast(gmax), h], -1) @ W3  ==  h @ W3[256:] + broadcast(gmax @ W3[:256])
    cp_w3g.wait()
    cp_w3l.wait()
    glob = jnp.dot(gmax.astype(bf16), w3g_buf[...],
                   preferred_element_type=f32) + eb3_ref[...]    # (BG, 512)
    loc = jnp.dot(h.astype(bf16), w3l_buf[...],
                  preferred_element_type=f32)                    # (BGN, 512)
    h = (loc.reshape(B * G, N, 512) + glob[:, None, :]).reshape(B * G * N, 512)
    h = jnp.maximum(batchnorm(h, ebn2g_ref, ebn2b_ref), 0.0)     # BN + ReLU
    cp_w4.wait()
    h = jnp.dot(h.astype(bf16), w4_buf[...],
                preferred_element_type=f32) + eb4_ref[...]       # Conv1d(512,ENC) -> (BGN,ENC)
    tokens = jnp.max(h.reshape(B * G, N, ENC_DIMS), axis=1)      # (BG, ENC)

    # ---------- visible-token / center gather via block-diag one-hot matmul ---
    gath = gath_ref[...]                                         # (B*M, B*G)
    x = jnp.dot(gath, tokens, preferred_element_type=f32)        # x_vis  (BM, D)
    ctr_vis = jnp.dot(gath, ctr_ref[...], preferred_element_type=f32)   # (BM, 3)

    # ------------------------- positional embedding ---------------------------
    ph = mad3(ctr_vis, pw1_ref, pb1_ref)                         # Linear(3,128)
    # TODO(synk): nn.GELU default is exact erf-GELU; tanh approximation used for
    # guaranteed Mosaic lowering (~1e-3 deviation).
    ph = jax.nn.gelu(ph, approximate=True)
    pos = jnp.dot(ph.astype(bf16), pw2_ref[...],
                  preferred_element_type=f32) + pb2_ref[...]     # (BM, D)

    # -------------------- transformer blocks (Mlp lives here) -----------------
    bias_full = bias_ref[...]        # (BM, H*BM)  batch-block-diag bias, tiled over heads
    head_mask = hmask_ref[...]       # (H*BM, D)   head-block selection mask
    blk_ones = bones_ref[...]        # (H*BM, H*BM) same-head-block indicator
    depth = wqkv_ref.shape[0]
    for d in range(depth):
        xin = x + pos                                            # TransformerEncoder: block(x + pos)
        hh = layernorm(xin, ln1g_ref[d], ln1b_ref[d])
        # attention scale is pre-folded into the q columns of wqkv (qkv_bias=False)
        qkv = jnp.dot(hh.astype(bf16), wqkv_ref[d],
                      preferred_element_type=f32)                # (BM, 3D)
        q = qkv[:, :TRANS_DIM]
        k = qkv[:, TRANS_DIM:2 * TRANS_DIM]
        v = qkv[:, 2 * TRANS_DIM:]
        # Stack all heads along the sublane axis: row h*BM+i of k_blk/v_blk carries
        # token i's features of head h only (other features zeroed by head_mask).
        k_blk = jnp.concatenate([k] * NUM_HEADS, axis=0) * head_mask   # (H*BM, D)
        v_blk = jnp.concatenate([v] * NUM_HEADS, axis=0) * head_mask   # (H*BM, D)
        # one fused score matmul for all heads ("NT" contraction, no explicit transpose)
        s = jax.lax.dot_general(q, k_blk, (((1,), (1,)), ((), ())),
                                preferred_element_type=f32) + bias_full   # (BM, H*BM)
        # shared per-row shift; cancels inside each head block's softmax
        s = s - jnp.max(s, axis=-1, keepdims=True)
        e = jnp.exp(s)
        denom = jnp.dot(e, blk_ones, preferred_element_type=f32)  # per-head sums, broadcast
        probs = e * pl.reciprocal(denom, approx=True)
        attn = jnp.dot(probs, v_blk, preferred_element_type=f32)  # (BM, D), heads already merged
        attn = jnp.dot(attn.astype(bf16), wproj_ref[d],
                       preferred_element_type=f32) + bproj_ref[d]
        xin = xin + attn
        # --- Mlp: fc1 -> GELU -> (drop=identity) -> fc2 -> (drop=identity) ---
        hh2 = layernorm(xin, ln2g_ref[d], ln2b_ref[d])
        m = jnp.dot(hh2.astype(bf16), wfc1_ref[d],
                    preferred_element_type=f32) + bfc1_ref[d]
        # TODO(synk): tanh-GELU approximation of nn.GELU (exact erf).
        m = jax.nn.gelu(m, approximate=True)
        m = jnp.dot(m.astype(bf16), wfc2_ref[d],
                    preferred_element_type=f32) + bfc2_ref[d]
        x = xin + m

    # ------------------------------ final LayerNorm ---------------------------
    o_ref[...] = layernorm(x, ng_ref[...], nb_ref[...])


# ------------------------------ wrapper -------------------------------------
def mask_transformer_forward(p, neighborhood, center, vis_idx):
    bb, gg, nn_, _ = neighborhood.shape
    m_len = vis_idx.shape[1]
    bm = bb * m_len
    hd = TRANS_DIM // NUM_HEADS

    pts_flat = neighborhood.reshape(bb * gg * nn_, 3)
    ctr_flat = center.reshape(bb * gg, 3)

    # Block-diagonal one-hot gather: row (b*M+m) selects token (b*G + vis_idx[b,m]).
    oh = jax.nn.one_hot(vis_idx, gg, dtype=jnp.float32)                 # (B, M, G)
    eye_b = jnp.eye(bb, dtype=jnp.float32)                              # (B, B)
    gath = (eye_b[:, None, :, None] * oh[:, :, None, :]).reshape(bm, bb * gg)

    # Batch-block-diagonal additive attention bias, tiled across the head blocks
    # of the fused (BM, H*BM) score matrix.
    rb = jnp.arange(bm) // m_len
    bias = jnp.where(rb[:, None] == rb[None, :], 0.0, -1e9).astype(jnp.float32)
    bias_full = jnp.tile(bias, (1, NUM_HEADS))                          # (BM, H*BM)

    # Head-block mask: row h*BM+i of the stacked K/V carries head h's features only.
    row_head = jnp.arange(NUM_HEADS * bm) // bm
    col_head = jnp.arange(TRANS_DIM) // hd
    head_mask = (row_head[:, None] == col_head[None, :]).astype(jnp.float32)   # (H*BM, D)

    # Same-head-block indicator (used to broadcast per-head softmax denominators).
    blk = jnp.arange(NUM_HEADS * bm) // bm
    block_ones = (blk[:, None] == blk[None, :]).astype(jnp.float32)     # (H*BM, H*BM)

    stack = lambda key: jnp.stack([blkp[key] for blkp in p["blocks"]])

    vm = pl.BlockSpec(memory_space=VMEM)
    hbm = pl.BlockSpec(memory_space=pl.ANY)   # large weights: DMA'd manually in-kernel

    args_and_specs = [
        (pts_flat, vm), (ctr_flat, vm), (gath, vm), (bias_full, vm),
        (head_mask, vm), (block_ones, vm),
        (p["enc_w1"], vm), (p["enc_b1"], vm), (p["enc_bn1_g"], vm), (p["enc_bn1_b"], vm),
        (p["enc_w2"], vm), (p["enc_b2"], vm),
        (p["enc_w3_g"], hbm), (p["enc_w3_l"], hbm), (p["enc_b3"], vm),
        (p["enc_bn2_g"], vm), (p["enc_bn2_b"], vm),
        (p["enc_w4"], hbm), (p["enc_b4"], vm),
        (p["pos_w1"], vm), (p["pos_b1"], vm), (p["pos_w2"], vm), (p["pos_b2"], vm),
        (stack("ln1_g"), vm), (stack("ln1_b"), vm), (stack("wqkv"), vm),
        (stack("wproj"), vm), (stack("bproj"), vm),
        (stack("ln2_g"), vm), (stack("ln2_b"), vm), (stack("wfc1"), vm), (stack("bfc1"), vm),
        (stack("wfc2"), vm), (stack("bfc2"), vm),
        (p["norm_g"], vm), (p["norm_b"], vm),
    ]
    args = [a for a, _ in args_and_specs]
    in_specs = [s for _, s in args_and_specs]

    out = pl.pallas_call(
        fused_kernel,
        out_shape=jax.ShapeDtypeStruct((bm, TRANS_DIM), jnp.float32),
        in_specs=in_specs,
        out_specs=pl.BlockSpec(memory_space=VMEM),
        scratch_shapes=[
            pltpu.VMEM((256, 512), jnp.bfloat16),   # second_conv weight, global half
            pltpu.VMEM((256, 512), jnp.bfloat16),   # second_conv weight, local half
            pltpu.VMEM((512, ENC_DIMS), jnp.bfloat16),  # second_conv[3] weight
            pltpu.SemaphoreType.DMA((3,)),
        ],
    )(*args)
    return out.reshape(bb, m_len, TRANS_DIM)


# --------------------------- deterministic params ----------------------------
def trunc_normal(key, shape, std=0.02):
    return (std * jax.random.truncated_normal(key, -2.0, 2.0, shape)).astype(jnp.float32)


def init_params(key):
    keys = list(jax.random.split(key, 64))
    ki = iter(keys)
    hid = int(TRANS_DIM * MLP_RATIO)
    hd = TRANS_DIM // NUM_HEADS

    # Encoder.second_conv[0] weight generated as the full (512,512) and split:
    # rows 0:256 act on the broadcast global-max features, rows 256:512 on the
    # per-point features (matches concat([global, local]) channel order).
    w3_full = trunc_normal(next(ki), (512, 512))

    p = {
        # Encoder.first_conv : Conv1d(3,128), BN(128), ReLU, Conv1d(128,256)
        "enc_w1": trunc_normal(next(ki), (3, 128)),
        "enc_b1": jnp.zeros((1, 128), jnp.float32),
        "enc_bn1_g": jnp.ones((1, 128), jnp.float32),
        "enc_bn1_b": jnp.zeros((1, 128), jnp.float32),
        "enc_w2": trunc_normal(next(ki), (128, 256)).astype(jnp.bfloat16),
        "enc_b2": jnp.zeros((1, 256), jnp.float32),
        # Encoder.second_conv : Conv1d(512,512), BN(512), ReLU, Conv1d(512,ENC_DIMS)
        "enc_w3_g": w3_full[:256].astype(jnp.bfloat16),
        "enc_w3_l": w3_full[256:].astype(jnp.bfloat16),
        "enc_b3": jnp.zeros((1, 512), jnp.float32),
        "enc_bn2_g": jnp.ones((1, 512), jnp.float32),
        "enc_bn2_b": jnp.zeros((1, 512), jnp.float32),
        "enc_w4": trunc_normal(next(ki), (512, ENC_DIMS)).astype(jnp.bfloat16),
        "enc_b4": jnp.zeros((1, ENC_DIMS), jnp.float32),
        # pos_embed : Linear(3,128), GELU, Linear(128, trans_dim)
        "pos_w1": trunc_normal(next(ki), (3, 128)),
        "pos_b1": jnp.zeros((1, 128), jnp.float32),
        "pos_w2": trunc_normal(next(ki), (128, TRANS_DIM)).astype(jnp.bfloat16),
        "pos_b2": jnp.zeros((1, TRANS_DIM), jnp.float32),
        # final LayerNorm
        "norm_g": jnp.ones((1, TRANS_DIM), jnp.float32),
        "norm_b": jnp.zeros((1, TRANS_DIM), jnp.float32),
    }
    blocks = []
    for _ in range(DEPTH):
        # qkv_bias=False; fold the attention scale (hd**-0.5) into the q columns
        # of wqkv once at init (host side), then store bf16 at rest.
        wqkv = trunc_normal(next(ki), (TRANS_DIM, 3 * TRANS_DIM))
        wqkv = wqkv.at[:, :TRANS_DIM].multiply(hd ** -0.5)
        blocks.append(dict(
            ln1_g=jnp.ones((1, TRANS_DIM), jnp.float32),
            ln1_b=jnp.zeros((1, TRANS_DIM), jnp.float32),
            wqkv=wqkv.astype(jnp.bfloat16),
            wproj=trunc_normal(next(ki), (TRANS_DIM, TRANS_DIM)).astype(jnp.bfloat16),
            bproj=jnp.zeros((1, TRANS_DIM), jnp.float32),
            ln2_g=jnp.ones((1, TRANS_DIM), jnp.float32),
            ln2_b=jnp.zeros((1, TRANS_DIM), jnp.float32),
            wfc1=trunc_normal(next(ki), (TRANS_DIM, hid)).astype(jnp.bfloat16),
            bfc1=jnp.zeros((1, hid), jnp.float32),
            wfc2=trunc_normal(next(ki), (hid, TRANS_DIM)).astype(jnp.bfloat16),
            bfc2=jnp.zeros((1, TRANS_DIM), jnp.float32),
        ))
    p["blocks"] = blocks
    return p


# --------------------------------- main ---------------------------------------
if __name__ == "__main__":
    key = jax.random.PRNGKey(0)
    k_params, k_nbhd, k_center = jax.random.split(key, 3)

    params = init_params(k_params)

    neighborhood = jax.random.normal(k_nbhd, (B, G, N, 3), dtype=jnp.float32)
    center = jax.random.normal(k_center, (B, G, 3), dtype=jnp.float32)

    # bool_masked_pos with exactly mask_ratio*G masked per sample (required for the
    # `[~mask].reshape(B, -1, C)` in the reference to be well-defined).
    n_mask = int(MASK_RATIO * G)
    rng = np.random.RandomState(0)
    bool_masked_pos = np.zeros((B, G), dtype=bool)
    for b in range(B):
        bool_masked_pos[b, rng.permutation(G)[:n_mask]] = True
    vis_idx = np.stack([np.nonzero(~bool_masked_pos[b])[0] for b in range(B)])  # (B, M)
    vis_idx = jnp.asarray(vis_idx, dtype=jnp.int32)

    out = mask_transformer_forward(params, neighborhood, center, vis_idx)
    out = jax.block_until_ready(out)

    expected_m = G - n_mask
    assert out.shape == (B, expected_m, TRANS_DIM), out.shape
    assert bool(jnp.all(jnp.isfinite(out)))
    print("KERNEL_OK")
</pallas_src>

<mosaic_0001>
module attributes {stable_mosaic.version = 11 : i64} {
  func.func @fused_kernel(%arg0: memref<256x3xf32, #tpu.memory_space<vmem>>, %arg1: memref<16x3xf32, #tpu.memory_space<vmem>>, %arg2: memref<8x16xf32, #tpu.memory_space<vmem>>, %arg3: memref<8x32xf32, #tpu.memory_space<vmem>>, %arg4: memref<32x32xf32, #tpu.memory_space<vmem>>, %arg5: memref<32x32xf32, #tpu.memory_space<vmem>>, %arg6: memref<3x128xf32, #tpu.memory_space<vmem>>, %arg7: memref<1x128xf32, #tpu.memory_space<vmem>>, %arg8: memref<1x128xf32, #tpu.memory_space<vmem>>, %arg9: memref<1x128xf32, #tpu.memory_space<vmem>>, %arg10: memref<128x256xbf16, #tpu.memory_space<vmem>>, %arg11: memref<1x256xf32, #tpu.memory_space<vmem>>, %arg12: memref<256x512xbf16, #tpu.memory_space<any>>, %arg13: memref<256x512xbf16, #tpu.memory_space<any>>, %arg14: memref<1x512xf32, #tpu.memory_space<vmem>>, %arg15: memref<1x512xf32, #tpu.memory_space<vmem>>, %arg16: memref<1x512xf32, #tpu.memory_space<vmem>>, %arg17: memref<512x32xbf16, #tpu.memory_space<any>>, %arg18: memref<1x32xf32, #tpu.memory_space<vmem>>, %arg19: memref<3x128xf32, #tpu.memory_space<vmem>>, %arg20: memref<1x128xf32, #tpu.memory_space<vmem>>, %arg21: memref<128x32xbf16, #tpu.memory_space<vmem>>, %arg22: memref<1x32xf32, #tpu.memory_space<vmem>>, %arg23: memref<2x1x32xf32, #tpu.memory_space<vmem>>, %arg24: memref<2x1x32xf32, #tpu.memory_space<vmem>>, %arg25: memref<2x32x96xbf16, #tpu.memory_space<vmem>>, %arg26: memref<2x32x32xbf16, #tpu.memory_space<vmem>>, %arg27: memref<2x1x32xf32, #tpu.memory_space<vmem>>, %arg28: memref<2x1x32xf32, #tpu.memory_space<vmem>>, %arg29: memref<2x1x32xf32, #tpu.memory_space<vmem>>, %arg30: memref<2x32x128xbf16, #tpu.memory_space<vmem>>, %arg31: memref<2x1x128xf32, #tpu.memory_space<vmem>>, %arg32: memref<2x128x32xbf16, #tpu.memory_space<vmem>>, %arg33: memref<2x1x32xf32, #tpu.memory_space<vmem>>, %arg34: memref<1x32xf32, #tpu.memory_space<vmem>>, %arg35: memref<1x32xf32, #tpu.memory_space<vmem>>, %arg36: memref<8x32xf32, #tpu.memory_space<vmem>>, %arg37: memref<256x512xbf16, #tpu.memory_space<vmem>>, %arg38: memref<256x512xbf16, #tpu.memory_space<vmem>>, %arg39: memref<512x32xbf16, #tpu.memory_space<vmem>>, %arg40: memref<3x!tpu.dma_semaphore, #tpu.memory_space<semaphore_mem>>) attributes {dimension_semantics = [], scalar_prefetch = 0 : i64, scratch_operands = 4 : i64, tpu.core_type = #tpu.core_type<tc>} {
    %c0_i32 = arith.constant 0 : i32
    %0 = tpu.memref_slice %arg40[%c0_i32] : memref<3x!tpu.dma_semaphore, #tpu.memory_space<semaphore_mem>> -> memref<1x!tpu.dma_semaphore, #tpu.memory_space<semaphore_mem>>
    %1 = tpu.memref_squeeze %0 : memref<1x!tpu.dma_semaphore, #tpu.memory_space<semaphore_mem>> -> memref<!tpu.dma_semaphore, #tpu.memory_space<semaphore_mem>>
    tpu.enqueue_dma source(%arg12 : memref<256x512xbf16, #tpu.memory_space<any>>) target(%arg37 : memref<256x512xbf16, #tpu.memory_space<vmem>>) target_semaphore(%1 : memref<!tpu.dma_semaphore, #tpu.memory_space<semaphore_mem>>)
    %c1_i32 = arith.constant 1 : i32
    %2 = tpu.memref_slice %arg40[%c1_i32] : memref<3x!tpu.dma_semaphore, #tpu.memory_space<semaphore_mem>> -> memref<1x!tpu.dma_semaphore, #tpu.memory_space<semaphore_mem>>
    %3 = tpu.memref_squeeze %2 : memref<1x!tpu.dma_semaphore, #tpu.memory_space<semaphore_mem>> -> memref<!tpu.dma_semaphore, #tpu.memory_space<semaphore_mem>>
    tpu.enqueue_dma source(%arg13 : memref<256x512xbf16, #tpu.memory_space<any>>) target(%arg38 : memref<256x512xbf16, #tpu.memory_space<vmem>>) target_semaphore(%3 : memref<!tpu.dma_semaphore, #tpu.memory_space<semaphore_mem>>)
    %c2_i32 = arith.constant 2 : i32
    %4 = tpu.memref_slice %arg40[%c2_i32] : memref<3x!tpu.dma_semaphore, #tpu.memory_space<semaphore_mem>> -> memref<1x!tpu.dma_semaphore, #tpu.memory_space<semaphore_mem>>
    %5 = tpu.memref_squeeze %4 : memref<1x!tpu.dma_semaphore, #tpu.memory_space<semaphore_mem>> -> memref<!tpu.dma_semaphore, #tpu.memory_space<semaphore_mem>>
    tpu.enqueue_dma source(%arg17 : memref<512x32xbf16, #tpu.memory_space<any>>) target(%arg39 : memref<512x32xbf16, #tpu.memory_space<vmem>>) target_semaphore(%5 : memref<!tpu.dma_semaphore, #tpu.memory_space<semaphore_mem>>)
    %c0 = arith.constant 0 : index
    %c0_0 = arith.constant 0 : index
    %6 = vector.load %arg0[%c0, %c0_0] : memref<256x3xf32, #tpu.memory_space<vmem>>, vector<256x3xf32>
    %c0_1 = arith.constant 0 : index
    %c0_2 = arith.constant 0 : index
    %7 = vector.load %arg6[%c0_1, %c0_2] : memref<3x128xf32, #tpu.memory_space<vmem>>, vector<3x128xf32>
    %8 = vector.extract_strided_slice %6 {offsets = [0, 0], sizes = [256, 1], strides = [1, 1]} : vector<256x3xf32> to vector<256x1xf32>
    %9 = vector.extract_strided_slice %7 {offsets = [0, 0], sizes = [1, 128], strides = [1, 1]} : vector<3x128xf32> to vector<1x128xf32>
    %10 = vector.broadcast %8 : vector<256x1xf32> to vector<256x128xf32>
    %11 = vector.broadcast %9 : vector<1x128xf32> to vector<256x128xf32>
    %12 = arith.mulf %10, %11 : vector<256x128xf32>
    %13 = vector.extract_strided_slice %6 {offsets = [0, 1], sizes = [256, 1], strides = [1, 1]} : vector<256x3xf32> to vector<256x1xf32>
    %14 = vector.extract_strided_slice %7 {offsets = [1, 0], sizes = [1, 128], strides = [1, 1]} : vector<3x128xf32> to vector<1x128xf32>
    %15 = vector.broadcast %13 : vector<256x1xf32> to vector<256x128xf32>
    %16 = vector.broadcast %14 : vector<1x128xf32> to vector<256x128xf32>
    %17 = arith.mulf %15, %16 : vector<256x128xf32>
    %18 = arith.addf %12, %17 : vector<256x128xf32>
    %19 = vector.extract_strided_slice %6 {offsets = [0, 2], sizes = [256, 1], strides = [1, 1]} : vector<256x3xf32> to vector<256x1xf32>
    %20 = vector.extract_strided_slice %7 {offsets = [2, 0], sizes = [1, 128], strides = [1, 1]} : vector<3x128xf32> to vector<1x128xf32>
    %21 = vector.broadcast %19 : vector<256x1xf32> to vector<256x128xf32>
    %22 = vector.broadcast %20 : vector<1x128xf32> to vector<256x128xf32>
    %23 = arith.mulf %21, %22 : vector<256x128xf32>
    %24 = arith.addf %18, %23 : vector<256x128xf32>
    %c0_3 = arith.constant 0 : index
    %c0_4 = arith.constant 0 : index
    %25 = vector.load %arg7[%c0_3, %c0_4] : memref<1x128xf32, #tpu.memory_space<vmem>>, vector<1x128xf32>
    %26 = vector.broadcast %25 : vector<1x128xf32> to vector<256x128xf32>
    %27 = arith.addf %24, %26 : vector<256x128xf32>
    %cst = arith.constant dense<0.000000e+00> : vector<128xf32>
    %28 = vector.multi_reduction <add>, %27, %cst [0] : vector<256x128xf32> to vector<128xf32>
    %29 = vector.shape_cast %28 : vector<128xf32> to vector<1x128xf32>
    %cst_5 = arith.constant 3.906250e-03 : f32
    %30 = vector.broadcast %cst_5 : f32 to vector<1x128xf32>
    %31 = arith.mulf %29, %30 : vector<1x128xf32>
    %32 = arith.mulf %27, %27 : vector<256x128xf32>
    %cst_6 = arith.constant dense<0.000000e+00> : vector<128xf32>
    %33 = vector.multi_reduction <add>, %32, %cst_6 [0] : vector<256x128xf32> to vector<128xf32>
    %34 = vector.shape_cast %33 : vector<128xf32> to vector<1x128xf32>
    %cst_7 = arith.constant 3.906250e-03 : f32
    %35 = vector.broadcast %cst_7 : f32 to vector<1x128xf32>
    %36 = arith.mulf %34, %35 : vector<1x128xf32>
    %37 = arith.mulf %31, %31 : vector<1x128xf32>
    %38 = arith.subf %36, %37 : vector<1x128xf32>
    %39 = vector.broadcast %31 : vector<1x128xf32> to vector<256x128xf32>
    %40 = arith.subf %27, %39 : vector<256x128xf32>
    %cst_8 = arith.constant 9.99999974E-6 : f32
    %41 = vector.broadcast %cst_8 : f32 to vector<1x128xf32>
    %42 = arith.addf %38, %41 : vector<1x128xf32>
    %43 = math.rsqrt %42 : vector<1x128xf32>
    %44 = vector.broadcast %43 : vector<1x128xf32> to vector<256x128xf32>
    %45 = arith.mulf %40, %44 : vector<256x128xf32>
    %c0_9 = arith.constant 0 : index
    %c0_10 = arith.constant 0 : index
    %46 = vector.load %arg8[%c0_9, %c0_10] : memref<1x128xf32, #tpu.memory_space<vmem>>, vector<1x128xf32>
    %47 = vector.broadcast %46 : vector<1x128xf32> to vector<256x128xf32>
    %48 = arith.mulf %45, %47 : vector<256x128xf32>
    %c0_11 = arith.constant 0 : index
    %c0_12 = arith.constant 0 : index
    %49 = vector.load %arg9[%c0_11, %c0_12] : memref<1x128xf32, #tpu.memory_space<vmem>>, vector<1x128xf32>
    %50 = vector.broadcast %49 : vector<1x128xf32> to vector<256x128xf32>
    %51 = arith.addf %48, %50 : vector<256x128xf32>
    %cst_13 = arith.constant 0.000000e+00 : f32
    %52 = vector.broadcast %cst_13 : f32 to vector<256x128xf32>
    %53 = arith.maximumf %51, %52 : vector<256x128xf32>
    %54 = arith.truncf %53 : vector<256x128xf32> to vector<256x128xbf16>
    %c0_14 = arith.constant 0 : index
    %c0_15 = arith.constant 0 : index
    %55 = vector.load %arg10[%c0_14, %c0_15] : memref<128x256xbf16, #tpu.memory_space<vmem>>, vector<128x256xbf16>
    %cst_16 = arith.constant dense<0.000000e+00> : vector<256x256xf32>
    %56 = tpu.matmul %54, %55, %cst_16 {dimension_numbers = #tpu.dot_dimension_numbers<[1], [0], [0], [1], [0, 0, 1, 1], [], []>} : vector<256x128xbf16>, vector<128x256xbf16>, vector<256x256xf32> -> vector<256x256xf32>
    %c0_17 = arith.constant 0 : index
    %c0_18 = arith.constant 0 : index
    %57 = vector.load %arg11[%c0_17, %c0_18] : memref<1x256xf32, #tpu.memory_space<vmem>>, vector<1x256xf32>
    %58 = vector.broadcast %57 : vector<1x256xf32> to vector<256x256xf32>
    %59 = arith.addf %56, %58 : vector<256x256xf32>
    %60 = vector.shape_cast %59 : vector<256x256xf32> to vector<16x16x256xf32>
    %cst_19 = arith.constant dense<0xFF800000> : vector<16x256xf32>
    %61 = vector.multi_reduction <maximumf>, %60, %cst_19 [1] : vector<16x16x256xf32> to vector<16x256xf32>
    %c0_i32_20 = arith.constant 0 : i32
    %62 = tpu.memref_slice %arg40[%c0_i32_20] : memref<3x!tpu.dma_semaphore, #tpu.memory_space<semaphore_mem>> -> memref<1x!tpu.dma_semaphore, #tpu.memory_space<semaphore_mem>>
    %63 = tpu.memref_squeeze %62 : memref<1x!tpu.dma_semaphore, #tpu.memory_space<semaphore_mem>> -> memref<!tpu.dma_semaphore, #tpu.memory_space<semaphore_mem>>
    tpu.wait_dma2 semaphore(%63 : memref<!tpu.dma_semaphore, #tpu.memory_space<semaphore_mem>>) src(%arg12 : memref<256x512xbf16, #tpu.memory_space<any>>) dst(%arg37 : memref<256x512xbf16, #tpu.memory_space<vmem>>)
    %c1_i32_21 = arith.constant 1 : i32
    %64 = tpu.memref_slice %arg40[%c1_i32_21] : memref<3x!tpu.dma_semaphore, #tpu.memory_space<semaphore_mem>> -> memref<1x!tpu.dma_semaphore, #tpu.memory_space<semaphore_mem>>
    %65 = tpu.memref_squeeze %64 : memref<1x!tpu.dma_semaphore, #tpu.memory_space<semaphore_mem>> -> memref<!tpu.dma_semaphore, #tpu.memory_space<semaphore_mem>>
    tpu.wait_dma2 semaphore(%65 : memref<!tpu.dma_semaphore, #tpu.memory_space<semaphore_mem>>) src(%arg13 : memref<256x512xbf16, #tpu.memory_space<any>>) dst(%arg38 : memref<256x512xbf16, #tpu.memory_space<vmem>>)
    %66 = arith.truncf %61 : vector<16x256xf32> to vector<16x256xbf16>
    %c0_22 = arith.constant 0 : index
    %c0_23 = arith.constant 0 : index
    %67 = vector.load %arg37[%c0_22, %c0_23] : memref<256x512xbf16, #tpu.memory_space<vmem>>, vector<256x512xbf16>
    %cst_24 = arith.constant dense<0.000000e+00> : vector<16x512xf32>
    %68 = tpu.matmul %66, %67, %cst_24 {dimension_numbers = #tpu.dot_dimension_numbers<[1], [0], [0], [1], [0, 0, 1, 1], [], []>} : vector<16x256xbf16>, vector<256x512xbf16>, vector<16x512xf32> -> vector<16x512xf32>
    %c0_25 = arith.constant 0 : index
    %c0_26 = arith.constant 0 : index
    %69 = vector.load %arg14[%c0_25, %c0_26] : memref<1x512xf32, #tpu.memory_space<vmem>>, vector<1x512xf32>
    %70 = vector.broadcast %69 : vector<1x512xf32> to vector<16x512xf32>
    %71 = arith.addf %68, %70 : vector<16x512xf32>
    %72 = arith.truncf %59 : vector<256x256xf32> to vector<256x256xbf16>
    %c0_27 = arith.constant 0 : index
    %c0_28 = arith.constant 0 : index
    %73 = vector.load %arg38[%c0_27, %c0_28] : memref<256x512xbf16, #tpu.memory_space<vmem>>, vector<256x512xbf16>
    %cst_29 = arith.constant dense<0.000000e+00> : vector<256x512xf32>
    %74 = tpu.matmul %72, %73, %cst_29 {dimension_numbers = #tpu.dot_dimension_numbers<[1], [0], [0], [1], [0, 0, 1, 1], [], []>} : vector<256x256xbf16>, vector<256x512xbf16>, vector<256x512xf32> -> vector<256x512xf32>
    %75 = vector.shape_cast %74 : vector<256x512xf32> to vector<16x16x512xf32>
    %76 = vector.shape_cast %71 : vector<16x512xf32> to vector<16x1x512xf32>
    %77 = vector.broadcast %76 : vector<16x1x512xf32> to vector<16x16x512xf32>
    %78 = arith.addf %75, %77 : vector<16x16x512xf32>
    %79 = vector.shape_cast %78 : vector<16x16x512xf32> to vector<256x512xf32>
    %cst_30 = arith.constant dense<0.000000e+00> : vector<512xf32>
    %80 = vector.multi_reduction <add>, %79, %cst_30 [0] : vector<256x512xf32> to vector<512xf32>
    %81 = vector.shape_cast %80 : vector<512xf32> to vector<1x512xf32>
    %cst_31 = arith.constant 3.906250e-03 : f32
    %82 = vector.broadcast %cst_31 : f32 to vector<1x512xf32>
    %83 = arith.mulf %81, %82 : vector<1x512xf32>
    %84 = arith.mulf %79, %79 : vector<256x512xf32>
    %cst_32 = arith.constant dense<0.000000e+00> : vector<512xf32>
    %85 = vector.multi_reduction <add>, %84, %cst_32 [0] : vector<256x512xf32> to vector<512xf32>
    %86 = vector.shape_cast %85 : vector<512xf32> to vector<1x512xf32>
    %cst_33 = arith.constant 3.906250e-03 : f32
    %87 = vector.broadcast %cst_33 : f32 to vector<1x512xf32>
    %88 = arith.mulf %86, %87 : vector<1x512xf32>
    %89 = arith.mulf %83, %83 : vector<1x512xf32>
    %90 = arith.subf %88, %89 : vector<1x512xf32>
    %91 = vector.broadcast %83 : vector<1x512xf32> to vector<256x512xf32>
    %92 = arith.subf %79, %91 : vector<256x512xf32>
    %cst_34 = arith.constant 9.99999974E-6 : f32
    %93 = vector.broadcast %cst_34 : f32 to vector<1x512xf32>
    %94 = arith.addf %90, %93 : vector<1x512xf32>
    %95 = math.rsqrt %94 : vector<1x512xf32>
    %96 = vector.broadcast %95 : vector<1x512xf32> to vector<256x512xf32>
    %97 = arith.mulf %92, %96 : vector<256x512xf32>
    %c0_35 = arith.constant 0 : index
    %c0_36 = arith.constant 0 : index
    %98 = vector.load %arg15[%c0_35, %c0_36] : memref<1x512xf32, #tpu.memory_space<vmem>>, vector<1x512xf32>
    %99 = vector.broadcast %98 : vector<1x512xf32> to vector<256x512xf32>
    %100 = arith.mulf %97, %99 : vector<256x512xf32>
    %c0_37 = arith.constant 0 : index
    %c0_38 = arith.constant 0 : index
    %101 = vector.load %arg16[%c0_37, %c0_38] : memref<1x512xf32, #tpu.memory_space<vmem>>, vector<1x512xf32>
    %102 = vector.broadcast %101 : vector<1x512xf32> to vector<256x512xf32>
    %103 = arith.addf %100, %102 : vector<256x512xf32>
    %cst_39 = arith.constant 0.000000e+00 : f32
    %104 = vector.broadcast %cst_39 : f32 to vector<256x512xf32>
    %105 = arith.maximumf %103, %104 : vector<256x512xf32>
    %c2_i32_40 = arith.constant 2 : i32
    %106 = tpu.memref_slice %arg40[%c2_i32_40] : memref<3x!tpu.dma_semaphore, #tpu.memory_space<semaphore_mem>> -> memref<1x!tpu.dma_semaphore, #tpu.memory_space<semaphore_mem>>
    %107 = tpu.memref_squeeze %106 : memref<1x!tpu.dma_semaphore, #tpu.memory_space<semaphore_mem>> -> memref<!tpu.dma_semaphore, #tpu.memory_space<semaphore_mem>>
    tpu.wait_dma2 semaphore(%107 : memref<!tpu.dma_semaphore, #tpu.memory_space<semaphore_mem>>) src(%arg17 : memref<512x32xbf16, #tpu.memory_space<any>>) dst(%arg39 : memref<512x32xbf16, #tpu.memory_space<vmem>>)
    %108 = arith.truncf %105 : vector<256x512xf32> to vector<256x512xbf16>
    %c0_41 = arith.constant 0 : index
    %c0_42 = arith.constant 0 : index
    %109 = vector.load %arg39[%c0_41, %c0_42] : memref<512x32xbf16, #tpu.memory_space<vmem>>, vector<512x32xbf16>
    %cst_43 = arith.constant dense<0.000000e+00> : vector<256x32xf32>
    %110 = tpu.matmul %108, %109, %cst_43 {dimension_numbers = #tpu.dot_dimension_numbers<[1], [0], [0], [1], [0, 0, 1, 1], [], []>} : vector<256x512xbf16>, vector<512x32xbf16>, vector<256x32xf32> -> vector<256x32xf32>
    %c0_44 = arith.constant 0 : index
    %c0_45 = arith.constant 0 : index
    %111 = vector.load %arg18[%c0_44, %c0_45] : memref<1x32xf32, #tpu.memory_space<vmem>>, vector<1x32xf32>
    %112 = vector.broadcast %111 : vector<1x32xf32> to vector<256x32xf32>
    %113 = arith.addf %110, %112 : vector<256x32xf32>
    %114 = vector.shape_cast %113 : vector<256x32xf32> to vector<16x16x32xf32>
    %cst_46 = arith.constant dense<0xFF800000> : vector<16x32xf32>
    %115 = vector.multi_reduction <maximumf>, %114, %cst_46 [1] : vector<16x16x32xf32> to vector<16x32xf32>
    %c0_47 = arith.constant 0 : index
    %c0_48 = arith.constant 0 : index
    %116 = vector.load %arg2[%c0_47, %c0_48] : memref<8x16xf32, #tpu.memory_space<vmem>>, vector<8x16xf32>
    %cst_49 = arith.constant dense<0.000000e+00> : vector<8x32xf32>
    %117 = tpu.matmul %116, %115, %cst_49 {dimension_numbers = #tpu.dot_dimension_numbers<[1], [0], [0], [1], [0, 0, 1, 1], [], []>} : vector<8x16xf32>, vector<16x32xf32>, vector<8x32xf32> -> vector<8x32xf32>
    %c0_50 = arith.constant 0 : index
    %c0_51 = arith.constant 0 : index
    %118 = vector.load %arg1[%c0_50, %c0_51] : memref<16x3xf32, #tpu.memory_space<vmem>>, vector<16x3xf32>
    %cst_52 = arith.constant dense<0.000000e+00> : vector<8x3xf32>
    %119 = tpu.matmul %116, %118, %cst_52 {dimension_numbers = #tpu.dot_dimension_numbers<[1], [0], [0], [1], [0, 0, 1, 1], [], []>} : vector<8x16xf32>, vector<16x3xf32>, vector<8x3xf32> -> vector<8x3xf32>
    %c0_53 = arith.constant 0 : index
    %c0_54 = arith.constant 0 : index
    %120 = vector.load %arg19[%c0_53, %c0_54] : memref<3x128xf32, #tpu.memory_space<vmem>>, vector<3x128xf32>
    %121 = vector.extract_strided_slice %119 {offsets = [0, 0], sizes = [8, 1], strides = [1, 1]} : vector<8x3xf32> to vector<8x1xf32>
    %122 = vector.extract_strided_slice %120 {offsets = [0, 0], sizes = [1, 128], strides = [1, 1]} : vector<3x128xf32> to vector<1x128xf32>
    %123 = vector.broadcast %121 : vector<8x1xf32> to vector<8x128xf32>
    %124 = vector.broadcast %122 : vector<1x128xf32> to vector<8x128xf32>
    %125 = arith.mulf %123, %124 : vector<8x128xf32>
    %126 = vector.extract_strided_slice %119 {offsets = [0, 1], sizes = [8, 1], strides = [1, 1]} : vector<8x3xf32> to vector<8x1xf32>
    %127 = vector.extract_strided_slice %120 {offsets = [1, 0], sizes = [1, 128], strides = [1, 1]} : vector<3x128xf32> to vector<1x128xf32>
    %128 = vector.broadcast %126 : vector<8x1xf32> to vector<8x128xf32>
    %129 = vector.broadcast %127 : vector<1x128xf32> to vector<8x128xf32>
    %130 = arith.mulf %128, %129 : vector<8x128xf32>
    %131 = arith.addf %125, %130 : vector<8x128xf32>
    %132 = vector.extract_strided_slice %119 {offsets = [0, 2], sizes = [8, 1], strides = [1, 1]} : vector<8x3xf32> to vector<8x1xf32>
    %133 = vector.extract_strided_slice %120 {offsets = [2, 0], sizes = [1, 128], strides = [1, 1]} : vector<3x128xf32> to vector<1x128xf32>
    %134 = vector.broadcast %132 : vector<8x1xf32> to vector<8x128xf32>
    %135 = vector.broadcast %133 : vector<1x128xf32> to vector<8x128xf32>
    %136 = arith.mulf %134, %135 : vector<8x128xf32>
    %137 = arith.addf %131, %136 : vector<8x128xf32>
    %c0_55 = arith.constant 0 : index
    %c0_56 = arith.constant 0 : index
    %138 = vector.load %arg20[%c0_55, %c0_56] : memref<1x128xf32, #tpu.memory_space<vmem>>, vector<1x128xf32>
    %139 = vector.broadcast %138 : vector<1x128xf32> to vector<8x128xf32>
    %140 = arith.addf %137, %139 : vector<8x128xf32>
    %141 = arith.mulf %140, %140 : vector<8x128xf32>
    %142 = arith.mulf %140, %141 : vector<8x128xf32>
    %cst_57 = arith.constant 4.471500e-02 : f32
    %143 = vector.broadcast %cst_57 : f32 to vector<8x128xf32>
    %144 = arith.mulf %143, %142 : vector<8x128xf32>
    %145 = arith.addf %140, %144 : vector<8x128xf32>
    %cst_58 = arith.constant 0.797884583 : f32
    %146 = vector.broadcast %cst_58 : f32 to vector<8x128xf32>
    %147 = arith.mulf %146, %145 : vector<8x128xf32>
    %148 = math.tanh %147 : vector<8x128xf32>
    %cst_59 = arith.constant 1.000000e+00 : f32
    %149 = vector.broadcast %cst_59 : f32 to vector<8x128xf32>
    %150 = arith.addf %149, %148 : vector<8x128xf32>
    %cst_60 = arith.constant 5.000000e-01 : f32
    %151 = vector.broadcast %cst_60 : f32 to vector<8x128xf32>
    %152 = arith.mulf %151, %150 : vector<8x128xf32>
    %153 = arith.mulf %140, %152 : vector<8x128xf32>
    %154 = arith.truncf %153 : vector<8x128xf32> to vector<8x128xbf16>
    %c0_61 = arith.constant 0 : index
    %c0_62 = arith.constant 0 : index
    %155 = vector.load %arg21[%c0_61, %c0_62] : memref<128x32xbf16, #tpu.memory_space<vmem>>, vector<128x32xbf16>
    %cst_63 = arith.constant dense<0.000000e+00> : vector<8x32xf32>
    %156 = tpu.matmul %154, %155, %cst_63 {dimension_numbers = #tpu.dot_dimension_numbers<[1], [0], [0], [1], [0, 0, 1, 1], [], []>} : vector<8x128xbf16>, vector<128x32xbf16>, vector<8x32xf32> -> vector<8x32xf32>
    %c0_64 = arith.constant 0 : index
    %c0_65 = arith.constant 0 : index
    %157 = vector.load %arg22[%c0_64, %c0_65] : memref<1x32xf32, #tpu.memory_space<vmem>>, vector<1x32xf32>
    %158 = vector.broadcast %157 : vector<1x32xf32> to vector<8x32xf32>
    %159 = arith.addf %156, %158 : vector<8x32xf32>
    %c0_66 = arith.constant 0 : index
    %c0_67 = arith.constant 0 : index
    %160 = vector.load %arg3[%c0_66, %c0_67] : memref<8x32xf32, #tpu.memory_space<vmem>>, vector<8x32xf32>
    %c0_68 = arith.constant 0 : index
    %c0_69 = arith.constant 0 : index
    %161 = vector.load %arg4[%c0_68, %c0_69] : memref<32x32xf32, #tpu.memory_space<vmem>>, vector<32x32xf32>
    %c0_70 = arith.constant 0 : index
    %c0_71 = arith.constant 0 : index
    %162 = vector.load %arg5[%c0_70, %c0_71] : memref<32x32xf32, #tpu.memory_space<vmem>>, vector<32x32xf32>
    %163 = arith.addf %117, %159 : vector<8x32xf32>
    %c0_72 = arith.constant 0 : index
    %c0_73 = arith.constant 0 : index
    %c0_74 = arith.constant 0 : index
    %164 = vector.load %arg23[%c0_72, %c0_73, %c0_74] : memref<2x1x32xf32, #tpu.memory_space<vmem>>, vector<1x1x32xf32>
    %165 = vector.shape_cast %164 : vector<1x1x32xf32> to vector<1x32xf32>
    %c0_75 = arith.constant 0 : index
    %c0_76 = arith.constant 0 : index
    %c0_77 = arith.constant 0 : index
    %166 = vector.load %arg24[%c0_75, %c0_76, %c0_77] : memref<2x1x32xf32, #tpu.memory_space<vmem>>, vector<1x1x32xf32>
    %167 = vector.shape_cast %166 : vector<1x1x32xf32> to vector<1x32xf32>
    %cst_78 = arith.constant dense<0.000000e+00> : vector<8xf32>
    %168 = vector.multi_reduction <add>, %163, %cst_78 [1] : vector<8x32xf32> to vector<8xf32>
    %169 = vector.shape_cast %168 : vector<8xf32> to vector<8x1xf32>
    %cst_79 = arith.constant 3.200000e+01 : f32
    %170 = vector.broadcast %cst_79 : f32 to vector<8x1xf32>
    %171 = arith.divf %169, %170 : vector<8x1xf32>
    %172 = vector.broadcast %171 : vector<8x1xf32> to vector<8x32xf32>
    %173 = arith.subf %163, %172 : vector<8x32xf32>
    %174 = arith.mulf %173, %173 : vector<8x32xf32>
    %cst_80 = arith.constant dense<0.000000e+00> : vector<8xf32>
    %175 = vector.multi_reduction <add>, %174, %cst_80 [1] : vector<8x32xf32> to vector<8xf32>
    %176 = vector.shape_cast %175 : vector<8xf32> to vector<8x1xf32>
    %cst_81 = arith.constant 3.200000e+01 : f32
    %177 = vector.broadcast %cst_81 : f32 to vector<8x1xf32>
    %178 = arith.divf %176, %177 : vector<8x1xf32>
    %179 = vector.broadcast %171 : vector<8x1xf32> to vector<8x32xf32>
    %180 = arith.subf %163, %179 : vector<8x32xf32>
    %cst_82 = arith.constant 9.99999974E-6 : f32
    %181 = vector.broadcast %cst_82 : f32 to vector<8x1xf32>
    %182 = arith.addf %178, %181 : vector<8x1xf32>
    %183 = math.rsqrt %182 : vector<8x1xf32>
    %184 = vector.broadcast %183 : vector<8x1xf32> to vector<8x32xf32>
    %185 = arith.mulf %180, %184 : vector<8x32xf32>
    %186 = vector.broadcast %165 : vector<1x32xf32> to vector<8x32xf32>
    %187 = arith.mulf %185, %186 : vector<8x32xf32>
    %188 = vector.broadcast %167 : vector<1x32xf32> to vector<8x32xf32>
    %189 = arith.addf %187, %188 : vector<8x32xf32>
    %190 = arith.truncf %189 : vector<8x32xf32> to vector<8x32xbf16>
    %c0_83 = arith.constant 0 : index
    %c0_84 = arith.constant 0 : index
    %c0_85 = arith.constant 0 : index
    %191 = vector.load %arg25[%c0_83, %c0_84, %c0_85] : memref<2x32x96xbf16, #tpu.memory_space<vmem>>, vector<1x32x96xbf16>
    %192 = vector.shape_cast %191 : vector<1x32x96xbf16> to vector<32x96xbf16>
    %cst_86 = arith.constant dense<0.000000e+00> : vector<8x96xf32>
    %193 = tpu.matmul %190, %192, %cst_86 {dimension_numbers = #tpu.dot_dimension_numbers<[1], [0], [0], [1], [0, 0, 1, 1], [], []>} : vector<8x32xbf16>, vector<32x96xbf16>, vector<8x96xf32> -> vector<8x96xf32>
    %194 = vector.extract_strided_slice %193 {offsets = [0, 0], sizes = [8, 32], strides = [1, 1]} : vector<8x96xf32> to vector<8x32xf32>
    %195 = vector.extract_strided_slice %193 {offsets = [0, 32], sizes = [8, 32], strides = [1, 1]} : vector<8x96xf32> to vector<8x32xf32>
    %196 = vector.extract_strided_slice %193 {offsets = [0, 64], sizes = [8, 32], strides = [1, 1]} : vector<8x96xf32> to vector<8x32xf32>
    %197 = tpu.concatenate %195, %195, %195, %195 in 0 : vector<8x32xf32>, vector<8x32xf32>, vector<8x32xf32>, vector<8x32xf32> -> vector<32x32xf32>
    %198 = arith.mulf %197, %161 : vector<32x32xf32>
    %199 = tpu.concatenate %196, %196, %196, %196 in 0 : vector<8x32xf32>, vector<8x32xf32>, vector<8x32xf32>, vector<8x32xf32> -> vector<32x32xf32>
    %200 = arith.mulf %199, %161 : vector<32x32xf32>
    %cst_87 = arith.constant dense<0.000000e+00> : vector<8x32xf32>
    %201 = tpu.matmul %194, %198, %cst_87 {dimension_numbers = #tpu.dot_dimension_numbers<[1], [1], [0], [0], [0, 0, 1, 0], [], []>} : vector<8x32xf32>, vector<32x32xf32>, vector<8x32xf32> -> vector<8x32xf32>
    %202 = arith.addf %201, %160 : vector<8x32xf32>
    %cst_88 = arith.constant dense<0xFF800000> : vector<8xf32>
    %203 = vector.multi_reduction <maximumf>, %202, %cst_88 [1] : vector<8x32xf32> to vector<8xf32>
    %204 = vector.shape_cast %203 : vector<8xf32> to vector<8x1xf32>
    %205 = vector.broadcast %204 : vector<8x1xf32> to vector<8x32xf32>
    %206 = arith.subf %202, %205 : vector<8x32xf32>
    %207 = math.exp %206 : vector<8x32xf32>
    %cst_89 = arith.constant dense<0.000000e+00> : vector<8x32xf32>
    %208 = tpu.matmul %207, %162, %cst_89 {dimension_numbers = #tpu.dot_dimension_numbers<[1], [0], [0], [1], [0, 0, 1, 1], [], []>} : vector<8x32xf32>, vector<32x32xf32>, vector<8x32xf32> -> vector<8x32xf32>
    %209 = tpu.reciprocal %208 {approx = true} : vector<8x32xf32> -> vector<8x32xf32>
    %210 = arith.mulf %207, %209 : vector<8x32xf32>
    %cst_90 = arith.constant dense<0.000000e+00> : vector<8x32xf32>
    %211 = tpu.matmul %210, %200, %cst_90 {dimension_numbers = #tpu.dot_dimension_numbers<[1], [0], [0], [1], [0, 0, 1, 1], [], []>} : vector<8x32xf32>, vector<32x32xf32>, vector<8x32xf32> -> vector<8x32xf32>
    %212 = arith.truncf %211 : vector<8x32xf32> to vector<8x32xbf16>
    %c0_91 = arith.constant 0 : index
    %c0_92 = arith.constant 0 : index
    %c0_93 = arith.constant 0 : index
    %213 = vector.load %arg26[%c0_91, %c0_92, %c0_93] : memref<2x32x32xbf16, #tpu.memory_space<vmem>>, vector<1x32x32xbf16>
    %214 = vector.shape_cast %213 : vector<1x32x32xbf16> to vector<32x32xbf16>
    %cst_94 = arith.constant dense<0.000000e+00> : vector<8x32xf32>
    %215 = tpu.matmul %212, %214, %cst_94 {dimension_numbers = #tpu.dot_dimension_numbers<[1], [0], [0], [1], [0, 0, 1, 1], [], []>} : vector<8x32xbf16>, vector<32x32xbf16>, vector<8x32xf32> -> vector<8x32xf32>
    %c0_95 = arith.constant 0 : index
    %c0_96 = arith.constant 0 : index
    %c0_97 = arith.constant 0 : index
    %216 = vector.load %arg27[%c0_95, %c0_96, %c0_97] : memref<2x1x32xf32, #tpu.memory_space<vmem>>, vector<1x1x32xf32>
    %217 = vector.shape_cast %216 : vector<1x1x32xf32> to vector<1x32xf32>
    %218 = vector.broadcast %217 : vector<1x32xf32> to vector<8x32xf32>
    %219 = arith.addf %215, %218 : vector<8x32xf32>
    %220 = arith.addf %163, %219 : vector<8x32xf32>
    %c0_98 = arith.constant 0 : index
    %c0_99 = arith.constant 0 : index
    %c0_100 = arith.constant 0 : index
    %221 = vector.load %arg28[%c0_98, %c0_99, %c0_100] : memref<2x1x32xf32, #tpu.memory_space<vmem>>, vector<1x1x32xf32>
    %222 = vector.shape_cast %221 : vector<1x1x32xf32> to vector<1x32xf32>
    %c0_101 = arith.constant 0 : index
    %c0_102 = arith.constant 0 : index
    %c0_103 = arith.constant 0 : index
    %223 = vector.load %arg29[%c0_101, %c0_102, %c0_103] : memref<2x1x32xf32, #tpu.memory_space<vmem>>, vector<1x1x32xf32>
    %224 = vector.shape_cast %223 : vector<1x1x32xf32> to vector<1x32xf32>
    %cst_104 = arith.constant dense<0.000000e+00> : vector<8xf32>
    %225 = vector.multi_reduction <add>, %220, %cst_104 [1] : vector<8x32xf32> to vector<8xf32>
    %226 = vector.shape_cast %225 : vector<8xf32> to vector<8x1xf32>
    %cst_105 = arith.constant 3.200000e+01 : f32
    %227 = vector.broadcast %cst_105 : f32 to vector<8x1xf32>
    %228 = arith.divf %226, %227 : vector<8x1xf32>
    %229 = vector.broadcast %228 : vector<8x1xf32> to vector<8x32xf32>
    %230 = arith.subf %220, %229 : vector<8x32xf32>
    %231 = arith.mulf %230, %230 : vector<8x32xf32>
    %cst_106 = arith.constant dense<0.000000e+00> : vector<8xf32>
    %232 = vector.multi_reduction <add>, %231, %cst_106 [1] : vector<8x32xf32> to vector<8xf32>
    %233 = vector.shape_cast %232 : vector<8xf32> to vector<8x1xf32>
    %cst_107 = arith.constant 3.200000e+01 : f32
    %234 = vector.broadcast %cst_107 : f32 to vector<8x1xf32>
    %235 = arith.divf %233, %234 : vector<8x1xf32>
    %236 = vector.broadcast %228 : vector<8x1xf32> to vector<8x32xf32>
    %237 = arith.subf %220, %236 : vector<8x32xf32>
    %cst_108 = arith.constant 9.99999974E-6 : f32
    %238 = vector.broadcast %cst_108 : f32 to vector<8x1xf32>
    %239 = arith.addf %235, %238 : vector<8x1xf32>
    %240 = math.rsqrt %239 : vector<8x1xf32>
    %241 = vector.broadcast %240 : vector<8x1xf32> to vector<8x32xf32>
    %242 = arith.mulf %237, %241 : vector<8x32xf32>
    %243 = vector.broadcast %222 : vector<1x32xf32> to vector<8x32xf32>
    %244 = arith.mulf %242, %243 : vector<8x32xf32>
    %245 = vector.broadcast %224 : vector<1x32xf32> to vector<8x32xf32>
    %246 = arith.addf %244, %245 : vector<8x32xf32>
    %247 = arith.truncf %246 : vector<8x32xf32> to vector<8x32xbf16>
    %c0_109 = arith.constant 0 : index
    %c0_110 = arith.constant 0 : index
    %c0_111 = arith.constant 0 : index
    %248 = vector.load %arg30[%c0_109, %c0_110, %c0_111] : memref<2x32x128xbf16, #tpu.memory_space<vmem>>, vector<1x32x128xbf16>
    %249 = vector.shape_cast %248 : vector<1x32x128xbf16> to vector<32x128xbf16>
    %cst_112 = arith.constant dense<0.000000e+00> : vector<8x128xf32>
    %250 = tpu.matmul %247, %249, %cst_112 {dimension_numbers = #tpu.dot_dimension_numbers<[1], [0], [0], [1], [0, 0, 1, 1], [], []>} : vector<8x32xbf16>, vector<32x128xbf16>, vector<8x128xf32> -> vector<8x128xf32>
    %c0_113 = arith.constant 0 : index
    %c0_114 = arith.constant 0 : index
    %c0_115 = arith.constant 0 : index
    %251 = vector.load %arg31[%c0_113, %c0_114, %c0_115] : memref<2x1x128xf32, #tpu.memory_space<vmem>>, vector<1x1x128xf32>
    %252 = vector.shape_cast %251 : vector<1x1x128xf32> to vector<1x128xf32>
    %253 = vector.broadcast %252 : vector<1x128xf32> to vector<8x128xf32>
    %254 = arith.addf %250, %253 : vector<8x128xf32>
    %255 = arith.mulf %254, %254 : vector<8x128xf32>
    %256 = arith.mulf %254, %255 : vector<8x128xf32>
    %cst_116 = arith.constant 4.471500e-02 : f32
    %257 = vector.broadcast %cst_116 : f32 to vector<8x128xf32>
    %258 = arith.mulf %257, %256 : vector<8x128xf32>
    %259 = arith.addf %254, %258 : vector<8x128xf32>
    %cst_117 = arith.constant 0.797884583 : f32
    %260 = vector.broadcast %cst_117 : f32 to vector<8x128xf32>
    %261 = arith.mulf %260, %259 : vector<8x128xf32>
    %262 = math.tanh %261 : vector<8x128xf32>
    %cst_118 = arith.constant 1.000000e+00 : f32
    %263 = vector.broadcast %cst_118 : f32 to vector<8x128xf32>
    %264 = arith.addf %263, %262 : vector<8x128xf32>
    %cst_119 = arith.constant 5.000000e-01 : f32
    %265 = vector.broadcast %cst_119 : f32 to vector<8x128xf32>
    %266 = arith.mulf %265, %264 : vector<8x128xf32>
    %267 = arith.mulf %254, %266 : vector<8x128xf32>
    %268 = arith.truncf %267 : vector<8x128xf32> to vector<8x128xbf16>
    %c0_120 = arith.constant 0 : index
    %c0_121 = arith.constant 0 : index
    %c0_122 = arith.constant 0 : index
    %269 = vector.load %arg32[%c0_120, %c0_121, %c0_122] : memref<2x128x32xbf16, #tpu.memory_space<vmem>>, vector<1x128x32xbf16>
    %270 = vector.shape_cast %269 : vector<1x128x32xbf16> to vector<128x32xbf16>
    %cst_123 = arith.constant dense<0.000000e+00> : vector<8x32xf32>
    %271 = tpu.matmul %268, %270, %cst_123 {dimension_numbers = #tpu.dot_dimension_numbers<[1], [0], [0], [1], [0, 0, 1, 1], [], []>} : vector<8x128xbf16>, vector<128x32xbf16>, vector<8x32xf32> -> vector<8x32xf32>
    %c0_124 = arith.constant 0 : index
    %c0_125 = arith.constant 0 : index
    %c0_126 = arith.constant 0 : index
    %272 = vector.load %arg33[%c0_124, %c0_125, %c0_126] : memref<2x1x32xf32, #tpu.memory_space<vmem>>, vector<1x1x32xf32>
    %273 = vector.shape_cast %272 : vector<1x1x32xf32> to vector<1x32xf32>
    %274 = vector.broadcast %273 : vector<1x32xf32> to vector<8x32xf32>
    %275 = arith.addf %271, %274 : vector<8x32xf32>
    %276 = arith.addf %220, %275 : vector<8x32xf32>
    %277 = arith.addf %276, %159 : vector<8x32xf32>
    %c1 = arith.constant 1 : index
    %c0_127 = arith.constant 0 : index
    %c0_128 = arith.constant 0 : index
    %278 = vector.load %arg23[%c1, %c0_127, %c0_128] : memref<2x1x32xf32, #tpu.memory_space<vmem>>, vector<1x1x32xf32>
    %279 = vector.shape_cast %278 : vector<1x1x32xf32> to vector<1x32xf32>
    %c1_129 = arith.constant 1 : index
    %c0_130 = arith.constant 0 : index
    %c0_131 = arith.constant 0 : index
    %280 = vector.load %arg24[%c1_129, %c0_130, %c0_131] : memref<2x1x32xf32, #tpu.memory_space<vmem>>, vector<1x1x32xf32>
    %281 = vector.shape_cast %280 : vector<1x1x32xf32> to vector<1x32xf32>
    %cst_132 = arith.constant dense<0.000000e+00> : vector<8xf32>
    %282 = vector.multi_reduction <add>, %277, %cst_132 [1] : vector<8x32xf32> to vector<8xf32>
    %283 = vector.shape_cast %282 : vector<8xf32> to vector<8x1xf32>
    %cst_133 = arith.constant 3.200000e+01 : f32
    %284 = vector.broadcast %cst_133 : f32 to vector<8x1xf32>
    %285 = arith.divf %283, %284 : vector<8x1xf32>
    %286 = vector.broadcast %285 : vector<8x1xf32> to vector<8x32xf32>
    %287 = arith.subf %277, %286 : vector<8x32xf32>
    %288 = arith.mulf %287, %287 : vector<8x32xf32>
    %cst_134 = arith.constant dense<0.000000e+00> : vector<8xf32>
    %289 = vector.multi_reduction <add>, %288, %cst_134 [1] : vector<8x32xf32> to vector<8xf32>
    %290 = vector.shape_cast %289 : vector<8xf32> to vector<8x1xf32>
    %cst_135 = arith.constant 3.200000e+01 : f32
    %291 = vector.broadcast %cst_135 : f32 to vector<8x1xf32>
    %292 = arith.divf %290, %291 : vector<8x1xf32>
    %293 = vector.broadcast %285 : vector<8x1xf32> to vector<8x32xf32>
    %294 = arith.subf %277, %293 : vector<8x32xf32>
    %cst_136 = arith.constant 9.99999974E-6 : f32
    %295 = vector.broadcast %cst_136 : f32 to vector<8x1xf32>
    %296 = arith.addf %292, %295 : vector<8x1xf32>
    %297 = math.rsqrt %296 : vector<8x1xf32>
    %298 = vector.broadcast %297 : vector<8x1xf32> to vector<8x32xf32>
    %299 = arith.mulf %294, %298 : vector<8x32xf32>
    %300 = vector.broadcast %279 : vector<1x32xf32> to vector<8x32xf32>
    %301 = arith.mulf %299, %300 : vector<8x32xf32>
    %302 = vector.broadcast %281 : vector<1x32xf32> to vector<8x32xf32>
    %303 = arith.addf %301, %302 : vector<8x32xf32>
    %304 = arith.truncf %303 : vector<8x32xf32> to vector<8x32xbf16>
    %c1_137 = arith.constant 1 : index
    %c0_138 = arith.constant 0 : index
    %c0_139 = arith.constant 0 : index
    %305 = vector.load %arg25[%c1_137, %c0_138, %c0_139] : memref<2x32x96xbf16, #tpu.memory_space<vmem>>, vector<1x32x96xbf16>
    %306 = vector.shape_cast %305 : vector<1x32x96xbf16> to vector<32x96xbf16>
    %cst_140 = arith.constant dense<0.000000e+00> : vector<8x96xf32>
    %307 = tpu.matmul %304, %306, %cst_140 {dimension_numbers = #tpu.dot_dimension_numbers<[1], [0], [0], [1], [0, 0, 1, 1], [], []>} : vector<8x32xbf16>, vector<32x96xbf16>, vector<8x96xf32> -> vector<8x96xf32>
    %308 = vector.extract_strided_slice %307 {offsets = [0, 0], sizes = [8, 32], strides = [1, 1]} : vector<8x96xf32> to vector<8x32xf32>
    %309 = vector.extract_strided_slice %307 {offsets = [0, 32], sizes = [8, 32], strides = [1, 1]} : vector<8x96xf32> to vector<8x32xf32>
    %310 = vector.extract_strided_slice %307 {offsets = [0, 64], sizes = [8, 32], strides = [1, 1]} : vector<8x96xf32> to vector<8x32xf32>
    %311 = tpu.concatenate %309, %309, %309, %309 in 0 : vector<8x32xf32>, vector<8x32xf32>, vector<8x32xf32>, vector<8x32xf32> -> vector<32x32xf32>
    %312 = arith.mulf %311, %161 : vector<32x32xf32>
    %313 = tpu.concatenate %310, %310, %310, %310 in 0 : vector<8x32xf32>, vector<8x32xf32>, vector<8x32xf32>, vector<8x32xf32> -> vector<32x32xf32>
    %314 = arith.mulf %313, %161 : vector<32x32xf32>
    %cst_141 = arith.constant dense<0.000000e+00> : vector<8x32xf32>
    %315 = tpu.matmul %308, %312, %cst_141 {dimension_numbers = #tpu.dot_dimension_numbers<[1], [1], [0], [0], [0, 0, 1, 0], [], []>} : vector<8x32xf32>, vector<32x32xf32>, vector<8x32xf32> -> vector<8x32xf32>
    %316 = arith.addf %315, %160 : vector<8x32xf32>
    %cst_142 = arith.constant dense<0xFF800000> : vector<8xf32>
    %317 = vector.multi_reduction <maximumf>, %316, %cst_142 [1] : vector<8x32xf32> to vector<8xf32>
    %318 = vector.shape_cast %317 : vector<8xf32> to vector<8x1xf32>
    %319 = vector.broadcast %318 : vector<8x1xf32> to vector<8x32xf32>
    %320 = arith.subf %316, %319 : vector<8x32xf32>
    %321 = math.exp %320 : vector<8x32xf32>
    %cst_143 = arith.constant dense<0.000000e+00> : vector<8x32xf32>
    %322 = tpu.matmul %321, %162, %cst_143 {dimension_numbers = #tpu.dot_dimension_numbers<[1], [0], [0], [1], [0, 0, 1, 1], [], []>} : vector<8x32xf32>, vector<32x32xf32>, vector<8x32xf32> -> vector<8x32xf32>
    %323 = tpu.reciprocal %322 {approx = true} : vector<8x32xf32> -> vector<8x32xf32>
    %324 = arith.mulf %321, %323 : vector<8x32xf32>
    %cst_144 = arith.constant dense<0.000000e+00> : vector<8x32xf32>
    %325 = tpu.matmul %324, %314, %cst_144 {dimension_numbers = #tpu.dot_dimension_numbers<[1], [0], [0], [1], [0, 0, 1, 1], [], []>} : vector<8x32xf32>, vector<32x32xf32>, vector<8x32xf32> -> vector<8x32xf32>
    %326 = arith.truncf %325 : vector<8x32xf32> to vector<8x32xbf16>
    %c1_145 = arith.constant 1 : index
    %c0_146 = arith.constant 0 : index
    %c0_147 = arith.constant 0 : index
    %327 = vector.load %arg26[%c1_145, %c0_146, %c0_147] : memref<2x32x32xbf16, #tpu.memory_space<vmem>>, vector<1x32x32xbf16>
    %328 = vector.shape_cast %327 : vector<1x32x32xbf16> to vector<32x32xbf16>
    %cst_148 = arith.constant dense<0.000000e+00> : vector<8x32xf32>
    %329 = tpu.matmul %326, %328, %cst_148 {dimension_numbers = #tpu.dot_dimension_numbers<[1], [0], [0], [1], [0, 0, 1, 1], [], []>} : vector<8x32xbf16>, vector<32x32xbf16>, vector<8x32xf32> -> vector<8x32xf32>
    %c1_149 = arith.constant 1 : index
    %c0_150 = arith.constant 0 : index
    %c0_151 = arith.constant 0 : index
    %330 = vector.load %arg27[%c1_149, %c0_150, %c0_151] : memref<2x1x32xf32, #tpu.memory_space<vmem>>, vector<1x1x32xf32>
    %331 = vector.shape_cast %330 : vector<1x1x32xf32> to vector<1x32xf32>
    %332 = vector.broadcast %331 : vector<1x32xf32> to vector<8x32xf32>
    %333 = arith.addf %329, %332 : vector<8x32xf32>
    %334 = arith.addf %277, %333 : vector<8x32xf32>
    %c1_152 = arith.constant 1 : index
    %c0_153 = arith.constant 0 : index
    %c0_154 = arith.constant 0 : index
    %335 = vector.load %arg28[%c1_152, %c0_153, %c0_154] : memref<2x1x32xf32, #tpu.memory_space<vmem>>, vector<1x1x32xf32>
    %336 = vector.shape_cast %335 : vector<1x1x32xf32> to vector<1x32xf32>
    %c1_155 = arith.constant 1 : index
    %c0_156 = arith.constant 0 : index
    %c0_157 = arith.constant 0 : index
    %337 = vector.load %arg29[%c1_155, %c0_156, %c0_157] : memref<2x1x32xf32, #tpu.memory_space<vmem>>, vector<1x1x32xf32>
    %338 = vector.shape_cast %337 : vector<1x1x32xf32> to vector<1x32xf32>
    %cst_158 = arith.constant dense<0.000000e+00> : vector<8xf32>
    %339 = vector.multi_reduction <add>, %334, %cst_158 [1] : vector<8x32xf32> to vector<8xf32>
    %340 = vector.shape_cast %339 : vector<8xf32> to vector<8x1xf32>
    %cst_159 = arith.constant 3.200000e+01 : f32
    %341 = vector.broadcast %cst_159 : f32 to vector<8x1xf32>
    %342 = arith.divf %340, %341 : vector<8x1xf32>
    %343 = vector.broadcast %342 : vector<8x1xf32> to vector<8x32xf32>
    %344 = arith.subf %334, %343 : vector<8x32xf32>
    %345 = arith.mulf %344, %344 : vector<8x32xf32>
    %cst_160 = arith.constant dense<0.000000e+00> : vector<8xf32>
    %346 = vector.multi_reduction <add>, %345, %cst_160 [1] : vector<8x32xf32> to vector<8xf32>
    %347 = vector.shape_cast %346 : vector<8xf32> to vector<8x1xf32>
    %cst_161 = arith.constant 3.200000e+01 : f32
    %348 = vector.broadcast %cst_161 : f32 to vector<8x1xf32>
    %349 = arith.divf %347, %348 : vector<8x1xf32>
    %350 = vector.broadcast %342 : vector<8x1xf32> to vector<8x32xf32>
    %351 = arith.subf %334, %350 : vector<8x32xf32>
    %cst_162 = arith.constant 9.99999974E-6 : f32
    %352 = vector.broadcast %cst_162 : f32 to vector<8x1xf32>
    %353 = arith.addf %349, %352 : vector<8x1xf32>
    %354 = math.rsqrt %353 : vector<8x1xf32>
    %355 = vector.broadcast %354 : vector<8x1xf32> to vector<8x32xf32>
    %356 = arith.mulf %351, %355 : vector<8x32xf32>
    %357 = vector.broadcast %336 : vector<1x32xf32> to vector<8x32xf32>
    %358 = arith.mulf %356, %357 : vector<8x32xf32>
    %359 = vector.broadcast %338 : vector<1x32xf32> to vector<8x32xf32>
    %360 = arith.addf %358, %359 : vector<8x32xf32>
    %361 = arith.truncf %360 : vector<8x32xf32> to vector<8x32xbf16>
    %c1_163 = arith.constant 1 : index
    %c0_164 = arith.constant 0 : index
    %c0_165 = arith.constant 0 : index
    %362 = vector.load %arg30[%c1_163, %c0_164, %c0_165] : memref<2x32x128xbf16, #tpu.memory_space<vmem>>, vector<1x32x128xbf16>
    %363 = vector.shape_cast %362 : vector<1x32x128xbf16> to vector<32x128xbf16>
    %cst_166 = arith.constant dense<0.000000e+00> : vector<8x128xf32>
    %364 = tpu.matmul %361, %363, %cst_166 {dimension_numbers = #tpu.dot_dimension_numbers<[1], [0], [0], [1], [0, 0, 1, 1], [], []>} : vector<8x32xbf16>, vector<32x128xbf16>, vector<8x128xf32> -> vector<8x128xf32>
    %c1_167 = arith.constant 1 : index
    %c0_168 = arith.constant 0 : index
    %c0_169 = arith.constant 0 : index
    %365 = vector.load %arg31[%c1_167, %c0_168, %c0_169] : memref<2x1x128xf32, #tpu.memory_space<vmem>>, vector<1x1x128xf32>
    %366 = vector.shape_cast %365 : vector<1x1x128xf32> to vector<1x128xf32>
    %367 = vector.broadcast %366 : vector<1x128xf32> to vector<8x128xf32>
    %368 = arith.addf %364, %367 : vector<8x128xf32>
    %369 = arith.mulf %368, %368 : vector<8x128xf32>
    %370 = arith.mulf %368, %369 : vector<8x128xf32>
    %cst_170 = arith.constant 4.471500e-02 : f32
    %371 = vector.broadcast %cst_170 : f32 to vector<8x128xf32>
    %372 = arith.mulf %371, %370 : vector<8x128xf32>
    %373 = arith.addf %368, %372 : vector<8x128xf32>
    %cst_171 = arith.constant 0.797884583 : f32
    %374 = vector.broadcast %cst_171 : f32 to vector<8x128xf32>
    %375 = arith.mulf %374, %373 : vector<8x128xf32>
    %376 = math.tanh %375 : vector<8x128xf32>
    %cst_172 = arith.constant 1.000000e+00 : f32
    %377 = vector.broadcast %cst_172 : f32 to vector<8x128xf32>
    %378 = arith.addf %377, %376 : vector<8x128xf32>
    %cst_173 = arith.constant 5.000000e-01 : f32
    %379 = vector.broadcast %cst_173 : f32 to vector<8x128xf32>
    %380 = arith.mulf %379, %378 : vector<8x128xf32>
    %381 = arith.mulf %368, %380 : vector<8x128xf32>
    %382 = arith.truncf %381 : vector<8x128xf32> to vector<8x128xbf16>
    %c1_174 = arith.constant 1 : index
    %c0_175 = arith.constant 0 : index
    %c0_176 = arith.constant 0 : index
    %383 = vector.load %arg32[%c1_174, %c0_175, %c0_176] : memref<2x128x32xbf16, #tpu.memory_space<vmem>>, vector<1x128x32xbf16>
    %384 = vector.shape_cast %383 : vector<1x128x32xbf16> to vector<128x32xbf16>
    %cst_177 = arith.constant dense<0.000000e+00> : vector<8x32xf32>
    %385 = tpu.matmul %382, %384, %cst_177 {dimension_numbers = #tpu.dot_dimension_numbers<[1], [0], [0], [1], [0, 0, 1, 1], [], []>} : vector<8x128xbf16>, vector<128x32xbf16>, vector<8x32xf32> -> vector<8x32xf32>
    %c1_178 = arith.constant 1 : index
    %c0_179 = arith.constant 0 : index
    %c0_180 = arith.constant 0 : index
    %386 = vector.load %arg33[%c1_178, %c0_179, %c0_180] : memref<2x1x32xf32, #tpu.memory_space<vmem>>, vector<1x1x32xf32>
    %387 = vector.shape_cast %386 : vector<1x1x32xf32> to vector<1x32xf32>
    %388 = vector.broadcast %387 : vector<1x32xf32> to vector<8x32xf32>
    %389 = arith.addf %385, %388 : vector<8x32xf32>
    %390 = arith.addf %334, %389 : vector<8x32xf32>
    %c0_181 = arith.constant 0 : index
    %c0_182 = arith.constant 0 : index
    %391 = vector.load %arg34[%c0_181, %c0_182] : memref<1x32xf32, #tpu.memory_space<vmem>>, vector<1x32xf32>
    %c0_183 = arith.constant 0 : index
    %c0_184 = arith.constant 0 : index
    %392 = vector.load %arg35[%c0_183, %c0_184] : memref<1x32xf32, #tpu.memory_space<vmem>>, vector<1x32xf32>
    %cst_185 = arith.constant dense<0.000000e+00> : vector<8xf32>
    %393 = vector.multi_reduction <add>, %390, %cst_185 [1] : vector<8x32xf32> to vector<8xf32>
    %394 = vector.shape_cast %393 : vector<8xf32> to vector<8x1xf32>
    %cst_186 = arith.constant 3.200000e+01 : f32
    %395 = vector.broadcast %cst_186 : f32 to vector<8x1xf32>
    %396 = arith.divf %394, %395 : vector<8x1xf32>
    %397 = vector.broadcast %396 : vector<8x1xf32> to vector<8x32xf32>
    %398 = arith.subf %390, %397 : vector<8x32xf32>
    %399 = arith.mulf %398, %398 : vector<8x32xf32>
    %cst_187 = arith.constant dense<0.000000e+00> : vector<8xf32>
    %400 = vector.multi_reduction <add>, %399, %cst_187 [1] : vector<8x32xf32> to vector<8xf32>
    %401 = vector.shape_cast %400 : vector<8xf32> to vector<8x1xf32>
    %cst_188 = arith.constant 3.200000e+01 : f32
    %402 = vector.broadcast %cst_188 : f32 to vector<8x1xf32>
    %403 = arith.divf %401, %402 : vector<8x1xf32>
    %404 = vector.broadcast %396 : vector<8x1xf32> to vector<8x32xf32>
    %405 = arith.subf %390, %404 : vector<8x32xf32>
    %cst_189 = arith.constant 9.99999974E-6 : f32
    %406 = vector.broadcast %cst_189 : f32 to vector<8x1xf32>
    %407 = arith.addf %403, %406 : vector<8x1xf32>
    %408 = math.rsqrt %407 : vector<8x1xf32>
    %409 = vector.broadcast %408 : vector<8x1xf32> to vector<8x32xf32>
    %410 = arith.mulf %405, %409 : vector<8x32xf32>
    %411 = vector.broadcast %391 : vector<1x32xf32> to vector<8x32xf32>
    %412 = arith.mulf %410, %411 : vector<8x32xf32>
    %413 = vector.broadcast %392 : vector<1x32xf32> to vector<8x32xf32>
    %414 = arith.addf %412, %413 : vector<8x32xf32>
    %c0_190 = arith.constant 0 : index
    %c0_191 = arith.constant 0 : index
    %415 = vector.load %arg36[%c0_190, %c0_191] : memref<8x32xf32, #tpu.memory_space<vmem>>, vector<8x32xf32>
    tpu.vector_store %arg36[%c0_190, %c0_191], %414 {strides = array<i32>} : memref<8x32xf32, #tpu.memory_space<vmem>>, vector<8x32xf32>,
    return
  }
}

</mosaic_0001>

<bundles_post_ra>
// kernel: tpu_custom_call.1
= control target key start
LH: loop header
LB: loop body
LE: loop exit
PB: predicated region body
PF: predicated region fallthrough
CT: control target
= control target key end

     0   :  { %s9569_s6 = smov 1   ;;  %s9570_s10 = smov 2   ;;  %s15100_s0 = inlined_call_operand.smem [shape: u32[37], index: -1, kind: input, shape index: {}] }
   0x1   :  { %s9647_s5 = sld [smem:[%s15100_s0]]   ;;  %s9571_s14 = smov 3  }
   0x2   :  { %s9652_s9 = sld [smem:[%s15100_s0 + %s9569_s6]]   ;;  %s9572_s18 = smov 4  }
   0x3   :  { %s9657_s13 = sld [smem:[%s15100_s0 + %s9570_s10]]   ;;  %s9573_s22 = smov 5  }
   0x4   :  { %s9662_s17 = sld [smem:[%s15100_s0 + %s9571_s14]]   ;;  %s9574_s26 = smov 6  }
   0x5   :  { %s9667_s21 = sld [smem:[%s15100_s0 + %s9572_s18]]   ;;  %s9575_s30 = smov 7  }
   0x6   :  { %s9672_s25 = sld [smem:[%s15100_s0 + %s9573_s22]]   ;;  %s9576_s4 = smov 8  }
   0x7   :  { %15525 = sst [smem:[#allocation61_spill]] %s9647_s5  ;;  %s9577_s10 = smov 9  }
   0x8   :  { %15526 = sst [smem:[#allocation62_spill]] %s9652_s9  ;;  %s9578_s15 = smov 10  }
   0x9   :  { %s9677_s29 = sld [smem:[%s15100_s0 + %s9574_s26]]   ;;  %s9579_s20 = smov 11  }
   0xa   :  { %s9682_s3 = sld [smem:[%s15100_s0 + %s9575_s30]]   ;;  %s9580_s26 = smov 12  }
   0xb   :  { %15527 = sst [smem:[#allocation63_spill]] %s9667_s21  ;;  %s9581_s1 = smov 13  }
   0xc   :  { %15528 = sst [smem:[#allocation64_spill]] %s9672_s25  ;;  %s9582_s7 = smov 14  }
   0xd   :  { %s9687_s8 = sld [smem:[%s15100_s0 + %s9576_s4]]   ;;  %s9584_s22 = smov 16  }
   0xe   :  { %s9692_s14 = sld [smem:[%s15100_s0 + %s9577_s10]]   ;;  %s9585_s28 = smov 17  }
   0xf   :  { %s9697_s19 = sld [smem:[%s15100_s0 + %s9578_s15]]   ;;  %s9583_s15 = smov 15  }
  0x10   :  { %s9702_s24 = sld [smem:[%s15100_s0 + %s9579_s20]]  }
  0x11   :  { %s9707_s30 = sld [smem:[%s15100_s0 + %s9580_s26]]  }
  0x12   :  { %s9712_s6 = sld [smem:[%s15100_s0 + %s9581_s1]]  }
  0x13   :  { %s9717_s12 = sld [smem:[%s15100_s0 + %s9582_s7]]   ;;  %s9586_s7 = smov 18  }
  0x14   :  { %s9722_s20 = sld [smem:[%s15100_s0 + %s9583_s15]]   ;;  %s9587_s15 = smov 19  }
  0x15   :  { %15529 = sst [smem:[#allocation65_spill]] %s9697_s19 }
  0x16   :  { %15530 = sst [smem:[#allocation66_spill]] %s9702_s24 }
  0x17   :  { %15531 = sst [smem:[#allocation67_spill]] %s9707_s30 }
  0x18   :  { %15532 = sst [smem:[#allocation68_spill]] %s9712_s6 }
  0x19   :  { %s9727_s27 = sld [smem:[%s15100_s0 + %s9584_s22]]   ;;  %s9588_s22 = smov 20  }
  0x1a   :  { %s9732_s4 = sld [smem:[%s15100_s0 + %s9585_s28]]   ;;  %s9589_s28 = smov 21  }
  0x1b   :  { %s9737_s25 = sld [smem:[%s15100_s0 + %s9586_s7]]   ;;  %s9590_s7 = smov 22  }
  0x1c   :  { %s9742_s21 = sld [smem:[%s15100_s0 + %s9587_s15]]   ;;  %s9591_s15 = smov 23  }
  0x1d   :  { %s9747_s9 = sld [smem:[%s15100_s0 + %s9588_s22]]   ;;  %s9592_s22 = smov 24  }
  0x1e   :  { %s9752_s24 = sld [smem:[%s15100_s0 + %s9589_s28]]   ;;  %s9593_s28 = smov 25  }
  0x1f   :  { %s9757_s19 = sld [smem:[%s15100_s0 + %s9590_s7]]   ;;  %s9594_s7 = smov 26  }
  0x20   :  { %15533 = sst [smem:[#allocation69_spill]] %s9732_s4 }
  0x21   :  { %s9762_s5 = sld [smem:[%s15100_s0 + %s9591_s15]]   ;;  %s9595_s15 = smov 27  }
  0x22   :  { %15534 = sst [smem:[#allocation70_spill]] %s9742_s21 }
  0x23   :  { %s9767_s6 = sld [smem:[%s15100_s0 + %s9592_s22]]   ;;  %s9596_s22 = smov 28  }
  0x24   :  { %15535 = sst [smem:[#allocation71_spill]] %s9752_s24 }
  0x25   :  { %15536 = sst [smem:[#allocation72_spill]] %s9757_s19 }
  0x26   :  { %s9772_s24 = sld [smem:[%s15100_s0 + %s9593_s28]]   ;;  %s9597_s28 = smov 29  }
  0x27   :  { %s9777_s4 = sld [smem:[%s15100_s0 + %s9594_s7]]   ;;  %s9598_s7 = smov 30  }
  0x28   :  { %s9782_s30 = sld [smem:[%s15100_s0 + %s9595_s15]]   ;;  %s9599_s15 = smov 31  }
  0x29   :  { %15537 = sst [smem:[#allocation73_spill]] %s9767_s6 }
  0x2a   :  { %s9787_s6 = sld [smem:[%s15100_s0 + %s9596_s22]]   ;;  %s9600_s22 = smov 32  }
  0x2b   :  { %s9802_s19 = sld [smem:[%s15100_s0 + %s9599_s15]]   ;;  %s9603_s15 = smov 35  }
  0x2c   :  { %15538 = sst [smem:[#allocation74_spill]] %s9772_s24 }
  0x2d   :  { %15539 = sst [smem:[#allocation75_spill]] %s9777_s4 }
  0x2e   :  { %s9792_s24 = sld [smem:[%s15100_s0 + %s9597_s28]]   ;;  %s9601_s28 = smov 33  }
  0x2f   :  { %s9797_s4 = sld [smem:[%s15100_s0 + %s9598_s7]]   ;;  %s9602_s7 = smov 34  }
  0x30   :  { %15540 = sst [smem:[#allocation76_spill]] %s9787_s6 }
  0x31   :  { %15542 = sst [smem:[#allocation78_spill]] %s9802_s19 }
  0x32   :  { %s9807_s6 = sld [smem:[%s15100_s0 + %s9600_s22]]   ;;  %s9604_s22 = smov 36  }
  0x33   :  { %s9812_s21 = sld [smem:[%s15100_s0 + %s9601_s28]]  }
  0x34   :  { %s9822_s19 = sld [smem:[%s15100_s0 + %s9603_s15]]  }
  0x35   :  { %15541 = sst [smem:[#allocation77_spill]] %s9797_s4 }
  0x36   :  { %s9817_s4 = sld [smem:[%s15100_s0 + %s9602_s7]]  }
  0x38   :  { %15543 = sst [smem:[#allocation79_spill]] %s9807_s6 }
  0x39   :  { %s9827_s6 = sld [smem:[%s15100_s0 + %s9604_s22]]  }
  0x3a   :  { %78 = vsyncpa [#allocation7], 0 }
  0x3b   :  { %79 = vsyncpa [#allocation10], 0 }
  0x3c   :  { %80 = vsyncpa [#allocation13], 0 }
  0x3d   :  { %81 = vsyncpa [#allocation16], 0 }
  0x3e   :  { %82 = vsyncpa [#allocation19], 0 }
  0x3f   :  { %83 = vsyncpa [#allocation22], 0 }
  0x40   :  { %84 = vsyncpa [#allocation25], 0 }
  0x41   :  { %85 = vsyncpa [#allocation28], 0 }
  0x42   :  { %86 = vsyncpa [#allocation31], 0 }
  0x43   :  { %87 = vsyncpa [#allocation34], 0 }
  0x44   :  { %88 = vsyncpa [#allocation37], 0 }
  0x45   :  { %89 = vsyncpa [#allocation8], 0  ;;  %s9605_s28 = smov [#allocation9]   ;;  %s9606_s2 = smov [#allocation12]  }
  0x46   :  { %s110_s1 = sshll.u32 %s9605_s28, 4  ;;  %s134_s7 = sshll.u32 %s9606_s2, 4  ;;  %s111_s1 = int_to_ptr.vmem [resolvable:$true] %s110_s1  ;;  %s135_s7 = int_to_ptr.vmem [resolvable:$true] %s134_s7 }
  0x47   :  { %s9087_s0 = scalar_lea.vmem %s111_s1, 128  ;;  %p9092_p1 = scmp.lt.s32.totalorder %s111_s1, %s111_s1 }
  0x48   :  { %p9088_p0 = scmp.ne.s32.totalorder %s111_s1, %s9087_s0  ;;  %p9093_p2 = scmp.lt.s32.totalorder %s9087_s0, %s9087_s0 }
  0x4a   :  { %p9094_p3 = por %p9093_p2, %p9092_p1 }
  0x4c   :  { %p9095_p4 = pnand %p9094_p3, %p9088_p0 }
  0x4e   :  { %9098 = shalt.err (!%p9095_p4)
}
  0x4f   :  { %113 = dma.hbm_to_vmem [thread:$0]  %s9662_s17, 128, %s111_s1, [#allocation10]  }
  0x50   :  { %s9107_s10 = scalar_lea.vmem %s135_s7, 16  ;;  %s9111_s11 = scalar_lea.vmem %s135_s7, 32 }
  0x51   :  { %p9108_p5 = scmp.ne.s32.totalorder %s135_s7, %s9107_s10  ;;  %p9112_p6 = scmp.lt.s32.totalorder %s135_s7, %s135_s7 }
  0x52   :  { %p9113_p7 = scmp.lt.s32.totalorder %s9111_s11, %s9107_s10 }
  0x54   :  { %p9114_p8 = por %p9113_p7, %p9112_p6 }
  0x56   :  { %p9115_p9 = pnand %p9114_p8, %p9108_p5 }
  0x58   :  { %9118 = shalt.err (!%p9115_p9)
}
  0x59   :  { %137 = dma.hbm_to_vmem [thread:$0]  %s9682_s3, 16, %s135_s7, [#allocation13]  }
  0x5a   :  { %s9607_s15 = smov [#allocation15]   ;;  %s9608_s18 = smov [#allocation18]  }
  0x5b   :  { %s154_s16 = sshll.u32 %s9607_s15, 4  ;;  %s178_s22 = sshll.u32 %s9608_s18, 4  ;;  %s155_s16 = int_to_ptr.vmem [resolvable:$true] %s154_s16  ;;  %s179_s22 = int_to_ptr.vmem [resolvable:$true] %s178_s22 }
  0x5c   :  { %s9127_s23 = scalar_lea.vmem %s155_s16, 16  ;;  %s9131_s26 = scalar_lea.vmem %s155_s16, 32 }
  0x5d   :  { %p9128_p10 = scmp.ne.s32.totalorder %s155_s16, %s9127_s23  ;;  %p9132_p11 = scmp.lt.s32.totalorder %s155_s16, %s155_s16 }
  0x5e   :  { %p9133_p12 = scmp.lt.s32.totalorder %s9131_s26, %s9127_s23 }
  0x60   :  { %p9134_p13 = por %p9133_p12, %p9132_p11 }
  0x62   :  { %p9135_p0 = pnand %p9134_p13, %p9128_p10 }
  0x64   :  { %9138 = shalt.err (!%p9135_p0)
}
  0x65   :  { %157 = dma.hbm_to_vmem [thread:$0]  %s9692_s14, 16, %s155_s16, [#allocation16]  }
  0x66   :  { %s9147_s17 = scalar_lea.vmem %s179_s22, 64  ;;  %p9152_p2 = scmp.lt.s32.totalorder %s179_s22, %s179_s22 }
  0x67   :  { %p9148_p1 = scmp.ne.s32.totalorder %s179_s22, %s9147_s17  ;;  %p9153_p3 = scmp.lt.s32.totalorder %s9147_s17, %s9147_s17 }
  0x69   :  { %p9154_p4 = por %p9153_p3, %p9152_p2 }
  0x6b   :  { %p9155_p5 = pnand %p9154_p4, %p9148_p1 }
  0x6d   :  { %9158 = shalt.err (!%p9155_p5)
}
  0x6e   :  { %181 = dma.hbm_to_vmem [thread:$0]  %s9722_s20, 64, %s179_s22, [#allocation19]  }
  0x6f   :  { %s9609_s3 = smov [#allocation21]   ;;  %s9610_s1 = smov [#allocation24]  }
  0x70   :  { %s198_s28 = sshll.u32 %s9609_s3, 4  ;;  %s218_s2 = sshll.u32 %s9610_s1, 4  ;;  %s199_s28 = int_to_ptr.vmem [resolvable:$true] %s198_s28  ;;  %s219_s2 = int_to_ptr.vmem [resolvable:$true] %s218_s2 }
  0x71   :  { %s9167_s7 = scalar_lea.vmem %s199_s28, 16  ;;  %s9171_s0 = scalar_lea.vmem %s199_s28, 32 }
  0x72   :  { %p9168_p6 = scmp.ne.s32.totalorder %s199_s28, %s9167_s7  ;;  %p9172_p7 = scmp.lt.s32.totalorder %s199_s28, %s199_s28 }
  0x73   :  { %p9173_p8 = scmp.lt.s32.totalorder %s9171_s0, %s9167_s7 }
  0x75   :  { %p9174_p9 = por %p9173_p8, %p9172_p7 }
  0x77   :  { %p9175_p10 = pnand %p9174_p9, %p9168_p6 }
  0x79   :  { %9178 = shalt.err (!%p9175_p10)
}
  0x7a   :  { %201 = dma.hbm_to_vmem [thread:$0]  %s9737_s25, 16, %s199_s28, [#allocation22]  }
  0x7b   :  { %s9187_s14 = scalar_lea.vmem %s219_s2, 16  ;;  %s9191_s10 = scalar_lea.vmem %s219_s2, 32 }
  0x7c   :  { %p9188_p11 = scmp.ne.s32.totalorder %s219_s2, %s9187_s14  ;;  %p9192_p12 = scmp.lt.s32.totalorder %s219_s2, %s219_s2 }
  0x7d   :  { %p9193_p13 = scmp.lt.s32.totalorder %s9191_s10, %s9187_s14 }
  0x7f   :  { %p9194_p0 = por %p9193_p13, %p9192_p12 }
  0x81   :  { %p9195_p1 = pnand %p9194_p0, %p9188_p11 }
  0x83   :  { %9198 = shalt.err (!%p9195_p1)
}
  0x84   :  { %221 = dma.hbm_to_vmem [thread:$0]  %s9747_s9, 16, %s219_s2, [#allocation25]  }
  0x85   :  { %s9611_s20 = smov [#allocation27]  }
  0x86   :  { %s239_s11 = sshll.u32 %s9611_s20, 4  ;;  %s240_s11 = int_to_ptr.vmem [resolvable:$true] %s239_s11 }
  0x87   :  { %s9207_s15 = scalar_lea.vmem %s240_s11, 32  ;;  %p9212_p3 = scmp.lt.s32.totalorder %s240_s11, %s240_s11 }
  0x88   :  { %p9208_p2 = scmp.ne.s32.totalorder %s240_s11, %s9207_s15  ;;  %p9213_p4 = scmp.lt.s32.totalorder %s9207_s15, %s9207_s15 }
  0x8a   :  { %p9214_p5 = por %p9213_p4, %p9212_p3 }
  0x8c   :  { %p9215_p6 = pnand %p9214_p5, %p9208_p2 }
  0x8e   :  { %9218 = shalt.err (!%p9215_p6)
}
  0x8f   :  { %s9612_s25 = smov 16   ;;  %s9613_s16 = smov 1  }
  0x90   :  { %245 = dma.hbm_to_vmem [thread:$0]  %s9762_s5, 32, %s240_s11, [#allocation28], %s9612_s25, %s9612_s25, %s9613_s16  }
  0x91   :  { %s9614_s18 = smov [#allocation30]   ;;  %s9615_s9 = smov [#allocation33]  }
  0x92   :  { %s267_s22 = sshll.u32 %s9614_s18, 4  ;;  %s291_s23 = sshll.u32 %s9615_s9, 4  ;;  %s268_s22 = int_to_ptr.vmem [resolvable:$true] %s267_s22  ;;  %s292_s23 = int_to_ptr.vmem [resolvable:$true] %s291_s23 }
  0x93   :  { %s9227_s26 = scalar_lea.vmem %s268_s22, 32  ;;  %p9232_p8 = scmp.lt.s32.totalorder %s268_s22, %s268_s22 }
  0x94   :  { %p9228_p7 = scmp.ne.s32.totalorder %s268_s22, %s9227_s26  ;;  %p9233_p9 = scmp.lt.s32.totalorder %s9227_s26, %s9227_s26 }
  0x96   :  { %p9234_p10 = por %p9233_p9, %p9232_p8 }
  0x98   :  { %p9235_p11 = pnand %p9234_p10, %p9228_p7 }
  0x9a   :  { %9238 = shalt.err (!%p9235_p11)
}
  0x9b   :  { %273 = dma.hbm_to_vmem [thread:$0]  %s9782_s30, 32, %s268_s22, [#allocation31], %s9612_s25, %s9612_s25, %s9613_s16  }
  0x9c   :  { %s9247_s17 = scalar_lea.vmem %s292_s23, 32  ;;  %p9252_p13 = scmp.lt.s32.totalorder %s292_s23, %s292_s23 }
  0x9d   :  { %p9248_p12 = scmp.ne.s32.totalorder %s292_s23, %s9247_s17  ;;  %p9253_p0 = scmp.lt.s32.totalorder %s9247_s17, %s9247_s17 }
  0x9f   :  { %p9254_p1 = por %p9253_p0, %p9252_p13 }
  0xa1   :  { %p9255_p2 = pnand %p9254_p1, %p9248_p12 }
  0xa3   :  { %9258 = shalt.err (!%p9255_p2)
}
  0xa4   :  { %297 = dma.hbm_to_vmem [thread:$0]  %s9792_s24, 32, %s292_s23, [#allocation34], %s9612_s25, %s9612_s25, %s9613_s16  }
  0xa5   :  { %s9616_s5 = smov [#allocation36]   ;;  %s9617_s28 = smov [#allocation6]  }
  0xa6   :  { %s319_s3 = sshll.u32 %s9616_s5, 4  ;;  %s100_s1 = sshll.u32 %s9617_s28, 4  ;;  %s320_s3 = int_to_ptr.vmem [resolvable:$true] %s319_s3  ;;  %s101_s1 = int_to_ptr.vmem [resolvable:$true] %s100_s1 }
  0xa7   :  { %s9267_s2 = scalar_lea.vmem %s320_s3, 32  ;;  %p9272_p4 = scmp.lt.s32.totalorder %s320_s3, %s320_s3 }
  0xa8   :  { %p9268_p3 = scmp.ne.s32.totalorder %s320_s3, %s9267_s2  ;;  %p9273_p5 = scmp.lt.s32.totalorder %s9267_s2, %s9267_s2 }
  0xaa   :  { %p9274_p6 = por %p9273_p5, %p9272_p4 }
  0xac   :  { %p9275_p7 = pnand %p9274_p6, %p9268_p3 }
  0xae   :  { %9278 = shalt.err (!%p9275_p7)
}
  0xaf   :  { %325 = dma.hbm_to_vmem [thread:$0]  %s9812_s21, 32, %s320_s3, [#allocation37], %s9612_s25, %s9612_s25, %s9613_s16  }
  0xb0   :  { %s9287_s30 = scalar_lea.vmem %s101_s1, 128  ;;  %p9292_p9 = scmp.lt.s32.totalorder %s101_s1, %s101_s1 }
  0xb1   :  { %p9288_p8 = scmp.ne.s32.totalorder %s101_s1, %s9287_s30  ;;  %p9293_p10 = scmp.lt.s32.totalorder %s9287_s30, %s9287_s30 }
  0xb3   :  { %p9294_p11 = por %p9293_p10, %p9292_p9 }
  0xb5   :  { %p9295_p12 = pnand %p9294_p11, %p9288_p8 }
  0xb7   :  { %9298 = shalt.err (!%p9295_p12)
}
  0xb8   :  { %103 = dma.hbm_to_vmem [thread:$0]  %s9657_s13, 128, %s101_s1, [#allocation7]  }
  0xb9   :  { %s9618_s24 = smov [#allocation11]   ;;  %s9619_s0 = smov [#allocation14]  }
  0xba   :  { %s124_s7 = sshll.u32 %s9618_s24, 4  ;;  %s144_s14 = sshll.u32 %s9619_s0, 4  ;;  %s125_s7 = int_to_ptr.vmem [resolvable:$true] %s124_s7  ;;  %s145_s14 = int_to_ptr.vmem [resolvable:$true] %s144_s14 }
  0xbb   :  { %s9307_s10 = scalar_lea.vmem %s125_s7, 64  ;;  %p9312_p0 = scmp.lt.s32.totalorder %s125_s7, %s125_s7 }
  0xbc   :  { %p9308_p13 = scmp.ne.s32.totalorder %s125_s7, %s9307_s10  ;;  %p9313_p1 = scmp.lt.s32.totalorder %s9307_s10, %s9307_s10 }
  0xbe   :  { %p9314_p2 = por %p9313_p1, %p9312_p0 }
  0xc0   :  { %p9315_p3 = pnand %p9314_p2, %p9308_p13 }
  0xc2   :  { %9318 = shalt.err (!%p9315_p3)
}
  0xc3   :  { %127 = dma.hbm_to_vmem [thread:$0]  %s9677_s29, 64, %s125_s7, [#allocation10]  }
  0xc4   :  { %s9327_s21 = scalar_lea.vmem %s145_s14, 16  ;;  %s9331_s20 = scalar_lea.vmem %s145_s14, 32 }
  0xc5   :  { %p9328_p4 = scmp.ne.s32.totalorder %s145_s14, %s9327_s21  ;;  %p9332_p5 = scmp.lt.s32.totalorder %s145_s14, %s145_s14 }
  0xc6   :  { %p9333_p6 = scmp.lt.s32.totalorder %s9331_s20, %s9327_s21 }
  0xc8   :  { %p9334_p7 = por %p9333_p6, %p9332_p5 }
  0xca   :  { %p9335_p8 = pnand %p9334_p7, %p9328_p4 }
  0xcc   :  { %9338 = shalt.err (!%p9335_p8)
}
  0xcd   :  { %147 = dma.hbm_to_vmem [thread:$0]  %s9687_s8, 16, %s145_s14, [#allocation13]  }
  0xce   :  { %s9620_s13 = smov [#allocation17]   ;;  %s9621_s15 = smov [#allocation20]  }
  0xcf   :  { %s168_s11 = sshll.u32 %s9620_s13, 4  ;;  %s188_s18 = sshll.u32 %s9621_s15, 4  ;;  %s169_s11 = int_to_ptr.vmem [resolvable:$true] %s168_s11  ;;  %s189_s18 = int_to_ptr.vmem [resolvable:$true] %s188_s18 }
  0xd0   :  { %s9347_s22 = scalar_lea.vmem %s169_s11, 64  ;;  %p9352_p10 = scmp.lt.s32.totalorder %s169_s11, %s169_s11 }
  0xd1   :  { %p9348_p9 = scmp.ne.s32.totalorder %s169_s11, %s9347_s22  ;;  %p9353_p11 = scmp.lt.s32.totalorder %s9347_s22, %s9347_s22 }
  0xd3   :  { %p9354_p12 = por %p9353_p11, %p9352_p10 }
  0xd5   :  { %p9355_p13 = pnand %p9354_p12, %p9348_p9 }
  0xd7   :  { %9358 = shalt.err (!%p9355_p13)
}
  0xd8   :  { %171 = dma.hbm_to_vmem [thread:$0]  %s9717_s12, 64, %s169_s11, [#allocation16]  }
  0xd9   :  { %s9367_s29 = scalar_lea.vmem %s189_s18, 64  ;;  %p9372_p1 = scmp.lt.s32.totalorder %s189_s18, %s189_s18 }
  0xda   :  { %p9368_p0 = scmp.ne.s32.totalorder %s189_s18, %s9367_s29  ;;  %p9373_p2 = scmp.lt.s32.totalorder %s9367_s29, %s9367_s29 }
  0xdc   :  { %p9374_p3 = por %p9373_p2, %p9372_p1 }
  0xde   :  { %p9375_p4 = pnand %p9374_p3, %p9368_p0 }
  0xe0   :  { %9378 = shalt.err (!%p9375_p4)
}
  0xe1   :  { %191 = dma.hbm_to_vmem [thread:$0]  %s9727_s27, 64, %s189_s18, [#allocation19]  }
  0xe2   :  { %s9622_s8 = smov [#allocation23]   ;;  %s9623_s23 = smov [#allocation26]  }
  0xe3   :  { %s208_s9 = sshll.u32 %s9622_s8, 4  ;;  %s230_s26 = sshll.u32 %s9623_s23, 4  ;;  %s209_s9 = int_to_ptr.vmem [resolvable:$true] %s208_s9  ;;  %s231_s26 = int_to_ptr.vmem [resolvable:$true] %s230_s26 }
  0xe4   :  { %s9387_s17 = scalar_lea.vmem %s209_s9, 64  ;;  %p9392_p6 = scmp.lt.s32.totalorder %s209_s9, %s209_s9 }
  0xe5   :  { %p9388_p5 = scmp.ne.s32.totalorder %s209_s9, %s9387_s17  ;;  %p9393_p7 = scmp.lt.s32.totalorder %s9387_s17, %s9387_s17 }
  0xe7   :  { %p9394_p8 = por %p9393_p7, %p9392_p6 }
  0xe9   :  { %p9395_p9 = pnand %p9394_p8, %p9388_p5 }
  0xeb   :  { %9398 = shalt.err (!%p9395_p9)
}
  0xec   :  { %s15544_s12 = sld [smem:[#allocation70_spill]]  ;;  %s9407_s5 = scalar_lea.vmem %s231_s26, 16 }
  0xed   :  { %p9408_p10 = scmp.ne.s32.totalorder %s231_s26, %s9407_s5  ;;  %s9411_s3 = scalar_lea.vmem %s231_s26, 32 }
  0xee   :  { %p9412_p11 = scmp.lt.s32.totalorder %s231_s26, %s231_s26  ;;  %p9413_p12 = scmp.lt.s32.totalorder %s9411_s3, %s9407_s5 }
  0xf0   :  { %p9414_p13 = por %p9413_p12, %p9412_p11 }
  0xf2   :  { %211 = dma.hbm_to_vmem [thread:$0]  %s15544_s12, 64, %s209_s9, [#allocation22]  }
  0xf3   :  { %p9415_p0 = pnand %p9414_p13, %p9408_p10 }
  0xf5   :  { %9418 = shalt.err (!%p9415_p0)
}
  0xf6   :  { %s15545_s27 = sld [smem:[#allocation72_spill]]  ;;  %s9624_s28 = smov [#allocation29]  }
  0xf7   :  { %s251_s1 = sshll.u32 %s9624_s28, 4  ;;  %s9625_s2 = smov [#allocation32]   ;;  %s252_s1 = int_to_ptr.vmem [resolvable:$true] %s251_s1 }
  0xf8   :  { %s279_s30 = sshll.u32 %s9625_s2, 4  ;;  %s9427_s24 = scalar_lea.vmem %s252_s1, 32  ;;  %s280_s30 = int_to_ptr.vmem [resolvable:$true] %s279_s30 }
  0xf9   :  { %p9428_p1 = scmp.ne.s32.totalorder %s252_s1, %s9427_s24  ;;  %p9432_p2 = scmp.lt.s32.totalorder %s252_s1, %s252_s1 }
  0xfa   :  { %p9433_p3 = scmp.lt.s32.totalorder %s9427_s24, %s9427_s24 }
  0xfc   :  { %233 = dma.hbm_to_vmem [thread:$0]  %s15545_s27, 16, %s231_s26, [#allocation25]  }
  0xfd   :  { %p9434_p4 = por %p9433_p3, %p9432_p2 }
  0xff   :  { %p9435_p5 = pnand %p9434_p4, %p9428_p1 }
 0x101   :  { %9438 = shalt.err (!%p9435_p5)
}
 0x102   :  { %s15546_s7 = sld [smem:[#allocation73_spill]]  ;;  %s9447_s0 = scalar_lea.vmem %s280_s30, 32 }
 0x103   :  { %p9448_p6 = scmp.ne.s32.totalorder %s280_s30, %s9447_s0  ;;  %p9452_p7 = scmp.lt.s32.totalorder %s280_s30, %s280_s30 }
 0x104   :  { %p9453_p8 = scmp.lt.s32.totalorder %s9447_s0, %s9447_s0 }
 0x106   :  { %p9454_p9 = por %p9453_p8, %p9452_p7 }
 0x108   :  { %257 = dma.hbm_to_vmem [thread:$0]  %s15546_s7, 32, %s252_s1, [#allocation28], %s9612_s25, %s9612_s25, %s9613_s16  }
 0x109   :  { %p9455_p10 = pnand %p9454_p9, %p9448_p6 }
 0x10b   :  { %9458 = shalt.err (!%p9455_p10)
}
 0x10c   :  { %s15547_s14 = sld [smem:[#allocation76_spill]]  ;;  %s9626_s10 = smov [#allocation35]  }
 0x10d   :  { %s305_s21 = sshll.u32 %s9626_s10, 4  ;;  %s9627_s20 = smov [#allocation38]   ;;  %s306_s21 = int_to_ptr.vmem [resolvable:$true] %s305_s21 }
 0x10e   :  { %s332_s13 = sshll.u32 %s9627_s20, 4  ;;  %s9467_s11 = scalar_lea.vmem %s306_s21, 32  ;;  %s333_s13 = int_to_ptr.vmem [resolvable:$true] %s332_s13 }
 0x10f   :  { %p9468_p11 = scmp.ne.s32.totalorder %s306_s21, %s9467_s11  ;;  %p9472_p12 = scmp.lt.s32.totalorder %s306_s21, %s306_s21 }
 0x110   :  { %p9473_p13 = scmp.lt.s32.totalorder %s9467_s11, %s9467_s11 }
 0x112   :  { %285 = dma.hbm_to_vmem [thread:$0]  %s15547_s14, 32, %s280_s30, [#allocation31], %s9612_s25, %s9612_s25, %s9613_s16  }
 0x113   :  { %p9474_p0 = por %p9473_p13, %p9472_p12 }
 0x115   :  { %p9475_p1 = pnand %p9474_p0, %p9468_p11 }
 0x117   :  { %9478 = shalt.err (!%p9475_p1)
}
 0x118   :  { %s15548_s15 = sld [smem:[#allocation78_spill]]  ;;  %s9487_s18 = scalar_lea.vmem %s333_s13, 16 }
 0x119   :  { %p9488_p2 = scmp.ne.s32.totalorder %s333_s13, %s9487_s18  ;;  %s9491_s22 = scalar_lea.vmem %s333_s13, 32 }
 0x11a   :  { %p9492_p3 = scmp.lt.s32.totalorder %s333_s13, %s333_s13  ;;  %p9493_p4 = scmp.lt.s32.totalorder %s9491_s22, %s9487_s18 }
 0x11c   :  { %p9494_p5 = por %p9493_p4, %p9492_p3 }
 0x11e   :  { %311 = dma.hbm_to_vmem [thread:$0]  %s15548_s15, 32, %s306_s21, [#allocation34], %s9612_s25, %s9612_s25, %s9613_s16  }
 0x11f   :  { %p9495_p6 = pnand %p9494_p5, %p9488_p2 }
 0x121   :  { %9498 = shalt.err (!%p9495_p6)
}
 0x122   :  { %335 = dma.hbm_to_vmem [thread:$0]  %s9817_s4, 16, %s333_s13, [#allocation37]  }
 0x123   :  { %9539 = dma.done.wait [#allocation7], 128  }
 0x124   :  { %9540 = vsyncadd [#allocation7], 4294967168 }
 0x125   :  { %9541 = dma.done.wait [#allocation10], 192  }
 0x126   :  { %9542 = vsyncadd [#allocation10], 4294967104 }
 0x127   :  { %9543 = dma.done.wait [#allocation13], 32  }
 0x128   :  { %9544 = vsyncadd [#allocation13], 4294967264 }
 0x129   :  { %9545 = dma.done.wait [#allocation16], 80  }
 0x12a   :  { %9546 = vsyncadd [#allocation16], 4294967216 }
 0x12b   :  { %9547 = dma.done.wait [#allocation19], 128  }
 0x12c   :  { %9548 = vsyncadd [#allocation19], 4294967168 }
 0x12d   :  { %9549 = dma.done.wait [#allocation22], 80  }
 0x12e   :  { %9550 = vsyncadd [#allocation22], 4294967216 }
 0x12f   :  { %9551 = dma.done.wait [#allocation25], 32  }
 0x130   :  { %9552 = vsyncadd [#allocation25], 4294967264 }
 0x131   :  { %9553 = dma.done.wait [#allocation28], 64  }
 0x132   :  { %9554 = vsyncadd [#allocation28], 4294967232 }
 0x133   :  { %9555 = dma.done.wait [#allocation31], 64  }
 0x134   :  { %9556 = vsyncadd [#allocation31], 4294967232 }
 0x135   :  { %9557 = dma.done.wait [#allocation34], 64  }
 0x136   :  { %9558 = vsyncadd [#allocation34], 4294967232 }
 0x137   :  { %9559 = dma.done.wait [#allocation37], 48  }
 0x138   :  { %9560 = vsyncadd [#allocation37], 4294967248  ;;  %s15549_s4 = sld [smem:[#allocation67_spill]] }
 0x13e   :  { %v9872_v0 = vld [vmem:[%s15549_s4] sm:$0xff]  ;;  %v9875_v1 = vld [vmem:[%s15549_s4 + $0x8] sm:$0xff]  ;;  %v9878_v2 = vld [vmem:[%s15549_s4 + $0x10] sm:$0xff] }
 0x13f   :  { %15550 = vst [vmem:[#allocation80_spill] sm:$0xff] %v9872_v0  ;;  %15551 = vst [vmem:[#allocation81_spill] sm:$0xff] %v9875_v1  ;;  %v9881_v3 = vld [vmem:[%s15549_s4 + $0x18] sm:$0xff]  ;;  %v9884_v4 = vld [vmem:[%s15549_s4 + $0x20] sm:$0xff] }
 0x140   :  { %15552 = vst [vmem:[#allocation82_spill] sm:$0xff] %v9878_v2  ;;  %15553 = vst [vmem:[#allocation83_spill] sm:$0xff] %v9881_v3  ;;  %v9887_v5 = vld [vmem:[%s15549_s4 + $0x28] sm:$0xff]  ;;  %v9890_v6 = vld [vmem:[%s15549_s4 + $0x30] sm:$0xff] }
 0x141   :  { %15554 = vst [vmem:[#allocation84_spill] sm:$0xff] %v9884_v4  ;;  %15555 = vst [vmem:[#allocation85_spill] sm:$0xff] %v9887_v5  ;;  %v9893_v7 = vld [vmem:[%s15549_s4 + $0x38] sm:$0xff]  ;;  %v9896_v8 = vld [vmem:[%s15549_s4 + $0x40] sm:$0xff] }
 0x142   :  { %15556 = vst [vmem:[#allocation86_spill] sm:$0xff] %v9890_v6  ;;  %15557 = vst [vmem:[#allocation87_spill] sm:$0xff] %v9893_v7  ;;  %v9899_v9 = vld [vmem:[%s15549_s4 + $0x48] sm:$0xff]  ;;  %v9902_v10 = vld [vmem:[%s15549_s4 + $0x50] sm:$0xff] }
 0x143   :  { %15558 = vst [vmem:[#allocation88_spill] sm:$0xff] %v9896_v8  ;;  %15559 = vst [vmem:[#allocation89_spill] sm:$0xff] %v9899_v9  ;;  %v9905_v11 = vld [vmem:[%s15549_s4 + $0x58] sm:$0xff]  ;;  %v9908_v12 = vld [vmem:[%s15549_s4 + $0x60] sm:$0xff] }
 0x144   :  { %15560 = vst [vmem:[#allocation90_spill] sm:$0xff] %v9902_v10  ;;  %15561 = vst [vmem:[#allocation91_spill] sm:$0xff] %v9905_v11  ;;  %v9911_v13 = vld [vmem:[%s15549_s4 + $0x68] sm:$0xff]  ;;  %v9914_v14 = vld [vmem:[%s15549_s4 + $0x70] sm:$0xff] }
 0x145   :  { %15562 = vst [vmem:[#allocation92_spill] sm:$0xff] %v9908_v12  ;;  %15563 = vst [vmem:[#allocation93_spill] sm:$0xff] %v9911_v13  ;;  %v9917_v15 = vld [vmem:[%s15549_s4 + $0x78] sm:$0xff]  ;;  %v9920_v16 = vld [vmem:[%s15549_s4 + $0x80] sm:$0xff] }
 0x146   :  { %15564 = vst [vmem:[#allocation94_spill] sm:$0xff] %v9914_v14  ;;  %15565 = vst [vmem:[#allocation95_spill] sm:$0xff] %v9917_v15  ;;  %v9923_v17 = vld [vmem:[%s15549_s4 + $0x88] sm:$0xff]  ;;  %v9926_v18 = vld [vmem:[%s15549_s4 + $0x90] sm:$0xff] }
 0x147   :  { %15566 = vst [vmem:[#allocation96_spill] sm:$0xff] %v9920_v16  ;;  %15567 = vst [vmem:[#allocation97_spill] sm:$0xff] %v9923_v17  ;;  %v9929_v19 = vld [vmem:[%s15549_s4 + $0x98] sm:$0xff]  ;;  %v9932_v20 = vld [vmem:[%s15549_s4 + $0xa0] sm:$0xff] }
 0x148   :  { %15568 = vst [vmem:[#allocation98_spill] sm:$0xff] %v9926_v18  ;;  %15569 = vst [vmem:[#allocation99_spill] sm:$0xff] %v9929_v19  ;;  %v9935_v21 = vld [vmem:[%s15549_s4 + $0xa8] sm:$0xff]  ;;  %v9938_v22 = vld [vmem:[%s15549_s4 + $0xb0] sm:$0xff] }
 0x149   :  { %15570 = vst [vmem:[#allocation100_spill] sm:$0xff] %v9932_v20  ;;  %15571 = vst [vmem:[#allocation101_spill] sm:$0xff] %v9935_v21  ;;  %v9941_v23 = vld [vmem:[%s15549_s4 + $0xb8] sm:$0xff]  ;;  %v9944_v24 = vld [vmem:[%s15549_s4 + $0xc0] sm:$0xff] }
 0x14a   :  { %15572 = vst [vmem:[#allocation102_spill] sm:$0xff] %v9938_v22  ;;  %15573 = vst [vmem:[#allocation103_spill] sm:$0xff] %v9941_v23  ;;  %v9947_v25 = vld [vmem:[%s15549_s4 + $0xc8] sm:$0xff]  ;;  %v9950_v26 = vld [vmem:[%s15549_s4 + $0xd0] sm:$0xff] }
 0x14b   :  { %15574 = vst [vmem:[#allocation104_spill] sm:$0xff] %v9944_v24  ;;  %15575 = vst [vmem:[#allocation105_spill] sm:$0xff] %v9947_v25  ;;  %v9953_v27 = vld [vmem:[%s15549_s4 + $0xd8] sm:$0xff]  ;;  %v9956_v28 = vld [vmem:[%s15549_s4 + $0xe0] sm:$0xff] }
 0x14c   :  { %15576 = vst [vmem:[#allocation106_spill] sm:$0xff] %v9950_v26  ;;  %15577 = vst [vmem:[#allocation107_spill] sm:$0xff] %v9953_v27  ;;  %v9959_v29 = vld [vmem:[%s15549_s4 + $0xe8] sm:$0xff]  ;;  %v9962_v30 = vld [vmem:[%s15549_s4 + $0xf0] sm:$0xff] }
 0x14d   :  { %15578 = vst [vmem:[#allocation108_spill] sm:$0xff] %v9956_v28  ;;  %15579 = vst [vmem:[#allocation109_spill] sm:$0xff] %v9959_v29  ;;  %v9965_v31 = vld [vmem:[%s15549_s4 + $0xf8] sm:$0xff]  ;;  %v9968_v32 = vld [vmem:[%s15549_s4 + $0x100] sm:$0xff] }
 0x14e   :  { %15580 = vst [vmem:[#allocation110_spill] sm:$0xff] %v9962_v30  ;;  %15581 = vst [vmem:[#allocation111_spill] sm:$0xff] %v9965_v31  ;;  %v9971_v33 = vld [vmem:[%s15549_s4 + $0x108] sm:$0xff]  ;;  %v9974_v34 = vld [vmem:[%s15549_s4 + $0x110] sm:$0xff] }
 0x14f   :  { %15582 = vst [vmem:[#allocation112_spill] sm:$0xff] %v9968_v32  ;;  %15583 = vst [vmem:[#allocation113_spill] sm:$0xff] %v9971_v33  ;;  %v9977_v35 = vld [vmem:[%s15549_s4 + $0x118] sm:$0xff]  ;;  %v9980_v36 = vld [vmem:[%s15549_s4 + $0x120] sm:$0xff] }
 0x150   :  { %15584 = vst [vmem:[#allocation114_spill] sm:$0xff] %v9974_v34  ;;  %15585 = vst [vmem:[#allocation115_spill] sm:$0xff] %v9977_v35  ;;  %v9983_v37 = vld [vmem:[%s15549_s4 + $0x128] sm:$0xff]  ;;  %v9986_v38 = vld [vmem:[%s15549_s4 + $0x130] sm:$0xff] }
 0x151   :  { %15586 = vst [vmem:[#allocation116_spill] sm:$0xff] %v9980_v36  ;;  %15587 = vst [vmem:[#allocation117_spill] sm:$0xff] %v9983_v37  ;;  %v9989_v39 = vld [vmem:[%s15549_s4 + $0x138] sm:$0xff]  ;;  %v9992_v40 = vld [vmem:[%s15549_s4 + $0x140] sm:$0xff] }
 0x152   :  { %15588 = vst [vmem:[#allocation118_spill] sm:$0xff] %v9986_v38  ;;  %15589 = vst [vmem:[#allocation119_spill] sm:$0xff] %v9989_v39  ;;  %v9995_v41 = vld [vmem:[%s15549_s4 + $0x148] sm:$0xff]  ;;  %v9998_v42 = vld [vmem:[%s15549_s4 + $0x150] sm:$0xff] }
 0x153   :  { %15590 = vst [vmem:[#allocation120_spill] sm:$0xff] %v9992_v40  ;;  %15591 = vst [vmem:[#allocation121_spill] sm:$0xff] %v9995_v41  ;;  %v10001_v43 = vld [vmem:[%s15549_s4 + $0x158] sm:$0xff]  ;;  %v10004_v44 = vld [vmem:[%s15549_s4 + $0x160] sm:$0xff] }
 0x154   :  { %15592 = vst [vmem:[#allocation122_spill] sm:$0xff] %v9998_v42  ;;  %15593 = vst [vmem:[#allocation123_spill] sm:$0xff] %v10001_v43  ;;  %v10007_v45 = vld [vmem:[%s15549_s4 + $0x168] sm:$0xff]  ;;  %v10010_v46 = vld [vmem:[%s15549_s4 + $0x170] sm:$0xff] }
 0x155   :  { %15594 = vst [vmem:[#allocation124_spill] sm:$0xff] %v10004_v44  ;;  %15595 = vst [vmem:[#allocation125_spill] sm:$0xff] %v10007_v45  ;;  %v10013_v47 = vld [vmem:[%s15549_s4 + $0x178] sm:$0xff]  ;;  %v10016_v48 = vld [vmem:[%s15549_s4 + $0x180] sm:$0xff] }
 0x156   :  { %15596 = vst [vmem:[#allocation126_spill] sm:$0xff] %v10010_v46  ;;  %15597 = vst [vmem:[#allocation127_spill] sm:$0xff] %v10013_v47  ;;  %v10019_v49 = vld [vmem:[%s15549_s4 + $0x188] sm:$0xff]  ;;  %v10022_v50 = vld [vmem:[%s15549_s4 + $0x190] sm:$0xff] }
 0x157   :  { %15598 = vst [vmem:[#allocation128_spill] sm:$0xff] %v10016_v48  ;;  %15599 = vst [vmem:[#allocation129_spill] sm:$0xff] %v10019_v49  ;;  %v10025_v51 = vld [vmem:[%s15549_s4 + $0x198] sm:$0xff]  ;;  %v10028_v52 = vld [vmem:[%s15549_s4 + $0x1a0] sm:$0xff] }
 0x158   :  { %15600 = vst [vmem:[#allocation130_spill] sm:$0xff] %v10022_v50  ;;  %15601 = vst [vmem:[#allocation131_spill] sm:$0xff] %v10025_v51  ;;  %v10031_v53 = vld [vmem:[%s15549_s4 + $0x1a8] sm:$0xff]  ;;  %v10034_v54 = vld [vmem:[%s15549_s4 + $0x1b0] sm:$0xff] }
 0x159   :  { %15602 = vst [vmem:[#allocation132_spill] sm:$0xff] %v10028_v52  ;;  %15603 = vst [vmem:[#allocation133_spill] sm:$0xff] %v10031_v53  ;;  %v10037_v55 = vld [vmem:[%s15549_s4 + $0x1b8] sm:$0xff]  ;;  %v10040_v56 = vld [vmem:[%s15549_s4 + $0x1c0] sm:$0xff] }
 0x15a   :  { %15604 = vst [vmem:[#allocation134_spill] sm:$0xff] %v10034_v54  ;;  %15605 = vst [vmem:[#allocation135_spill] sm:$0xff] %v10037_v55  ;;  %v10043_v57 = vld [vmem:[%s15549_s4 + $0x1c8] sm:$0xff]  ;;  %v10046_v58 = vld [vmem:[%s15549_s4 + $0x1d0] sm:$0xff] }
 0x15b   :  { %15606 = vst [vmem:[#allocation136_spill] sm:$0xff] %v10040_v56  ;;  %15607 = vst [vmem:[#allocation137_spill] sm:$0xff] %v10043_v57  ;;  %v10049_v59 = vld [vmem:[%s15549_s4 + $0x1d8] sm:$0xff]  ;;  %v10052_v60 = vld [vmem:[%s15549_s4 + $0x1e0] sm:$0xff] }
 0x15c   :  { %15608 = vst [vmem:[#allocation138_spill] sm:$0xff] %v10046_v58  ;;  %15609 = vst [vmem:[#allocation139_spill] sm:$0xff] %v10049_v59  ;;  %v10055_v61 = vld [vmem:[%s15549_s4 + $0x1e8] sm:$0xff]  ;;  %v10058_v62 = vld [vmem:[%s15549_s4 + $0x1f0] sm:$0xff] }
 0x15d   :  { %15610 = vst [vmem:[#allocation140_spill] sm:$0xff] %v10052_v60  ;;  %15611 = vst [vmem:[#allocation141_spill] sm:$0xff] %v10055_v61  ;;  %v10061_v63 = vld [vmem:[%s15549_s4 + $0x1f8] sm:$0xff] }
 0x15e   :  { %15612 = vst [vmem:[#allocation142_spill] sm:$0xff] %v10058_v62  ;;  %15613 = vst [vmem:[#allocation143_spill] sm:$0xff] %v10061_v63 }
 0x15f   :  { %570 = vsyncadd [#allocation5], 8192  ;;  %s15614_s25 = sld [smem:[#allocation69_spill]]  ;;  %s9628_s16 = smov [#allocation3]  }
 0x160   :  { %s579_s29 = sshll.u32 %s9628_s16, 4  ;;  %s580_s29 = int_to_ptr.vmem [resolvable:$true] %s579_s29 }
 0x161   :  { %s9507_s8 = scalar_lea.vmem %s580_s29, 8192  ;;  %p9512_p8 = scmp.lt.s32.totalorder %s580_s29, %s580_s29 }
 0x162   :  { %p9508_p7 = scmp.ne.s32.totalorder %s580_s29, %s9507_s8  ;;  %p9513_p9 = scmp.lt.s32.totalorder %s9507_s8, %s9507_s8 }
 0x164   :  { %p9514_p10 = por %p9513_p9, %p9512_p8 }
 0x165   :  { %v617_v33 = vld [vmem:[%s15614_s25] sm:$0xff]  ;;  %v619_v35 = vld [vmem:[%s15614_s25 + $0x8] sm:$0xff]  ;;  %v621_v37 = vld [vmem:[%s15614_s25 + $0x10] sm:$0xff] }
 0x166   :  { %618 = vst [vmem:[#allocation4] sm:$0xff] %v617_v33  ;;  %620 = vst [vmem:[#allocation4 + $0x8] sm:$0xff] %v619_v35  ;;  %v623_v39 = vld [vmem:[%s15614_s25 + $0x18] sm:$0xff]  ;;  %v625_v41 = vld [vmem:[%s15614_s25 + $0x20] sm:$0xff]  ;;  %p9515_p11 = pnand %p9514_p10, %p9508_p7 }
 0x167   :  { %622 = vst [vmem:[#allocation4 + $0x10] sm:$0xff] %v621_v37  ;;  %624 = vst [vmem:[#allocation4 + $0x18] sm:$0xff] %v623_v39  ;;  %v627_v43 = vld [vmem:[%s15614_s25 + $0x28] sm:$0xff]  ;;  %v629_v45 = vld [vmem:[%s15614_s25 + $0x30] sm:$0xff] }
 0x168   :  { %626 = vst [vmem:[#allocation4 + $0x20] sm:$0xff] %v625_v41  ;;  %v631_v47 = vld [vmem:[%s15614_s25 + $0x38] sm:$0xff] }
 0x169   :  { %9518 = shalt.err (!%p9515_p11)  }
 0x16a   :  { %s15615_s9 = sld [smem:[#allocation68_spill]]  ;;  %628 = vst [vmem:[#allocation4 + $0x28] sm:$0xff] %v627_v43  ;;  %630 = vst [vmem:[#allocation4 + $0x30] sm:$0xff] %v629_v45  ;;  %v633_v33 = vld [vmem:[%s15614_s25 + $0x40] sm:$0xff]  ;;  %v635_v35 = vld [vmem:[%s15614_s25 + $0x48] sm:$0xff]  ;;  %v15133_v53 = vmov 1  }
 0x16b   :  { %632 = vst [vmem:[#allocation4 + $0x38] sm:$0xff] %v631_v47  ;;  %v637_v37 = vld [vmem:[%s15614_s25 + $0x50] sm:$0xff]  ;;  %634 = vst [vmem:[#allocation4 + $0x40] sm:$0xff] %v633_v33  ;;  %v639_v39 = vld [vmem:[%s15614_s25 + $0x58] sm:$0xff]  ;;  %s15616_s23 = sld [smem:[#allocation61_spill]]  ;;  %8792 = vset.pattern.permute.xlu1 %v15133_v53 }
 0x16c   :  { %636 = vst [vmem:[#allocation4 + $0x48] sm:$0xff] %v635_v35  ;;  %638 = vst [vmem:[#allocation4 + $0x50] sm:$0xff] %v637_v37  ;;  %v641_v41 = vld [vmem:[%s15614_s25 + $0x60] sm:$0xff]  ;;  %v643_v49 = vld [vmem:[%s15614_s25 + $0x68] sm:$0xff] }
 0x16d   :  { %640 = vst [vmem:[#allocation4 + $0x58] sm:$0xff] %v639_v39  ;;  %642 = vst [vmem:[#allocation4 + $0x60] sm:$0xff] %v641_v41  ;;  %v645_v43 = vld [vmem:[%s15614_s25 + $0x70] sm:$0xff]  ;;  %v647_v45 = vld [vmem:[%s15614_s25 + $0x78] sm:$0xff] }
 0x16e   :  { %644 = vst [vmem:[#allocation4 + $0x68] sm:$0xff] %v643_v49  ;;  %v649_v47 = vld [vmem:[%s15614_s25 + $0x80] sm:$0xff]  ;;  %646 = vst [vmem:[#allocation4 + $0x70] sm:$0xff] %v645_v43  ;;  %v651_v33 = vld [vmem:[%s15614_s25 + $0x88] sm:$0xff] }
 0x16f   :  { %648 = vst [vmem:[#allocation4 + $0x78] sm:$0xff] %v647_v45  ;;  %650 = vst [vmem:[#allocation4 + $0x80] sm:$0xff] %v649_v47  ;;  %v653_v35 = vld [vmem:[%s15614_s25 + $0x90] sm:$0xff]  ;;  %v655_v37 = vld [vmem:[%s15614_s25 + $0x98] sm:$0xff] }
 0x170   :  { %582 = dma.hbm_to_vmem [thread:$0]  %s15615_s9, 8192, %s580_s29, [#allocation5 + $0x1]  ;;  %652 = vst [vmem:[#allocation4 + $0x88] sm:$0xff] %v651_v33  ;;  %654 = vst [vmem:[#allocation4 + $0x90] sm:$0xff] %v653_v35  ;;  %v657_v39 = vld [vmem:[%s15614_s25 + $0xa0] sm:$0xff]  ;;  %v659_v49 = vld [vmem:[%s15614_s25 + $0xa8] sm:$0xff] }
 0x171   :  { %656 = vst [vmem:[#allocation4 + $0x98] sm:$0xff] %v655_v37  ;;  %v661_v41 = vld [vmem:[%s15614_s25 + $0xb0] sm:$0xff]  ;;  %658 = vst [vmem:[#allocation4 + $0xa0] sm:$0xff] %v657_v39  ;;  %v663_v43 = vld [vmem:[%s15614_s25 + $0xb8] sm:$0xff] }
 0x172   :  { %660 = vst [vmem:[#allocation4 + $0xa8] sm:$0xff] %v659_v49  ;;  %662 = vst [vmem:[#allocation4 + $0xb0] sm:$0xff] %v661_v41  ;;  %v665_v45 = vld [vmem:[%s15614_s25 + $0xc0] sm:$0xff]  ;;  %v667_v47 = vld [vmem:[%s15614_s25 + $0xc8] sm:$0xff] }
 0x173   :  { %664 = vst [vmem:[#allocation4 + $0xb8] sm:$0xff] %v663_v43  ;;  %666 = vst [vmem:[#allocation4 + $0xc0] sm:$0xff] %v665_v45  ;;  %v669_v33 = vld [vmem:[%s15614_s25 + $0xd0] sm:$0xff]  ;;  %v671_v35 = vld [vmem:[%s15614_s25 + $0xd8] sm:$0xff]  ;;  %v15124_v43 = vmov 0  }
 0x174   :  { %668 = vst [vmem:[#allocation4 + $0xc8] sm:$0xff] %v667_v47  ;;  %v673_v51 = vld [vmem:[%s15614_s25 + $0xe0] sm:$0xff]  ;;  %670 = vst [vmem:[#allocation4 + $0xd0] sm:$0xff] %v669_v33  ;;  %v675_v37 = vld [vmem:[%s15614_s25 + $0xe8] sm:$0xff]  ;;  %8791 = vset.pattern.permute.xlu0 %v15124_v43  ;;  %1791 = vmatprep.mubr.bf16.mxu0 %v15124_v43 }
 0x175   :  { %672 = vst [vmem:[#allocation4 + $0xd8] sm:$0xff] %v671_v35  ;;  %674 = vst [vmem:[#allocation4 + $0xe0] sm:$0xff] %v673_v51  ;;  %v677_v39 = vld [vmem:[%s15614_s25 + $0xf0] sm:$0xff]  ;;  %v679_v49 = vld [vmem:[%s15614_s25 + $0xf8] sm:$0xff] }
 0x176   :  { %676 = vst [vmem:[#allocation4 + $0xe8] sm:$0xff] %v675_v37  ;;  %678 = vst [vmem:[#allocation4 + $0xf0] sm:$0xff] %v677_v39  ;;  %v689_v41 = vld [vmem:[%s15616_s23] sm:$0xff]  ;;  %v690_v45 = vld [vmem:[%s15616_s23 + $0x8] sm:$0xff] }
 0x177   :  { %680 = vst [vmem:[#allocation4 + $0xf8] sm:$0xff] %v679_v49  ;;  %919 = vperm.xlu1 %8792, %v689_v41   ;;  %724 = vperm.xlu0 %8791, %v689_v41   ;;  %v691_v51 = vld [vmem:[%s15616_s23 + $0x10] sm:$0xff]  ;;  %v694_v47 = vld [vmem:[%s15616_s23 + $0x28] sm:$0xff] }
 0x17b   :  { %923 = vperm.xlu1 %8792, %v690_v45   ;;  %729 = vperm.xlu0 %8791, %v690_v45  }
 0x17c   :  { %688 = vsyncadd [#allocation5 + $0x2], 4096  ;;  %v15128_v33 = vmov 2   ;;  %v695_v35 = vld [vmem:[%s15616_s23 + $0x30] sm:$0xff]  ;;  %v692_v37 = vld [vmem:[%s15616_s23 + $0x18] sm:$0xff]  ;;  %v15617_v57 = vmov 0   ;;  %v882_v13 = vlaneseq }
 0x17d   :  { %v693_v39 = vld [vmem:[%s15616_s23 + $0x20] sm:$0xff]  ;;  %v10112_v49 = vld [vmem:[%s15616_s23 + $0x50] sm:$0xff]  ;;  %v10137_v55 = vld [vmem:[%s15616_s23 + $0xa8] sm:$0xff]  ;;  %v15618_v61 = vmov 2   ;;  %v15619_v1 = vmov 1   ;;  %s15624_s26 = sld [smem:[#allocation65_spill]] }
 0x17e   :  { %v10147_v59 = vld [vmem:[%s15616_s23 + $0xd0] sm:$0xff]  ;;  %v698_v63 = vld [vmem:[%s15616_s23 + $0x48] sm:$0xff]  ;;  %v10174_v3 = vld [vmem:[%s15616_s23 + $0xb8] sm:$0xff]  ;;  %s15625_s17 = sld [smem:[#allocation66_spill]] }
 0x17f   :  { %927 = vperm.xlu1 %8792, %v691_v51   ;;  %734 = vperm.xlu0 %8791, %v691_v51   ;;  %v10184_v5 = vld [vmem:[%s15616_s23 + $0xe0] sm:$0xff]  ;;  %v10189_v7 = vld [vmem:[%s15616_s23 + $0xe8] sm:$0xff]  ;;  %v721_v21 = vld [vmem:[#allocation11] sm:$0x7] }
 0x180   :  { %v706_v29 = vld [vmem:[%s15616_s23 + $0x88] sm:$0xff]  ;;  %v716_v12 = vld [vmem:[%s15616_s23 + $0xd8] sm:$0xff] }
 0x183   :  { %8793 = vset.pattern.permute.xlu1 %v15128_v33  ;;  %749 = vperm.xlu0 %8791, %v694_v47  }
 0x184   :  { %1119 = vperm.xlu1 %8793, %v690_v45   ;;  %v10122_v45 = vld [vmem:[%s15616_s23 + $0x78] sm:$0xff] }
 0x187   :  { %754 = vperm.xlu0 %8791, %v695_v35  }
 0x188   :  { %8794 = vset.pattern.permute.xlu1 %v15124_v43 }
 0x189   :  { %739 = vperm.xlu1 %8794, %v692_v37  }
 0x18b   :  { %8800 = vset.pattern.permute.xlu0 %v15128_v33 }
 0x18c   :  { %1115 = vperm.xlu0 %8800, %v689_v41   ;;  %v10117_v41 = vld [vmem:[%s15616_s23 + $0x58] sm:$0xff] }
 0x18d   :  { %8795 = vset.pattern.permute.xlu1 %v15128_v33 }
 0x18e   :  { %1123 = vperm.xlu1 %8795, %v691_v51   ;;  %v10127_v51 = vld [vmem:[%s15616_s23 + $0x80] sm:$0xff] }
 0x190   :  { %1135 = vperm.xlu0 %8800, %v694_v47  }
 0x192   :  { %8796 = vset.pattern.permute.xlu1 %v15124_v43  ;;  %v10131_v43 = vld [vmem:[%s15616_s23 + $0xa0] sm:$0xff] }
 0x193   :  { %744 = vperm.xlu1 %8796, %v693_v39  }
 0x194   :  { %1139 = vperm.xlu0 %8800, %v695_v35  }
 0x197   :  { %8797 = vset.pattern.permute.xlu1 %v15128_v33 }
 0x198   :  { %1127 = vperm.xlu1 %8797, %v692_v37   ;;  %1155 = vperm.xlu0 %8800, %v10112_v49  }
 0x19c   :  { %8798 = vset.pattern.permute.xlu1 %v15133_v53  ;;  %1159 = vperm.xlu0 %8800, %v10117_v41  }
 0x19d   :  { %939 = vperm.xlu1 %8798, %v694_v47   ;;  %v696_v47 = vld [vmem:[%s15616_s23 + $0x38] sm:$0xff] }
 0x1a0   :  { %1175 = vperm.xlu0 %8800, %v10122_v45  }
 0x1a1   :  { %8799 = vset.pattern.permute.xlu1 %v15128_v33  ;;  %v10142_v33 = vld [vmem:[%s15616_s23 + $0xc8] sm:$0xff] }
 0x1a2   :  { %1131 = vperm.xlu1 %8799, %v693_v39  }
 0x1a4   :  { %1179 = vperm.xlu0 %8800, %v10127_v51  }
 0x1a6   :  { %8801 = vset.pattern.permute.xlu1 %v15133_v53 }
 0x1a7   :  { %943 = vperm.xlu1 %8801, %v695_v35   ;;  %v697_v35 = vld [vmem:[%s15616_s23 + $0x40] sm:$0xff] }
 0x1a8   :  { %1195 = vperm.xlu0 %8800, %v10131_v43  }
 0x1ab   :  { %8802 = vset.pattern.permute.xlu1 %v15617_v57 }
 0x1ac   :  { %759 = vperm.xlu1 %8802, %v696_v47   ;;  %1199 = vperm.xlu0 %8800, %v10137_v55  }
 0x1b0   :  { %8803 = vset.pattern.permute.xlu1 %v15133_v53  ;;  %1215 = vperm.xlu0 %8800, %v10142_v33  }
 0x1b1   :  { %947 = vperm.xlu1 %8803, %v696_v47  }
 0x1b4   :  { %1219 = vperm.xlu0 %8800, %v10147_v59  }
 0x1b5   :  { %8804 = vset.pattern.permute.xlu1 %v15617_v57 }
 0x1b6   :  { %764 = vperm.xlu1 %8804, %v697_v35  }
 0x1b8   :  { %8840 = vset.pattern.permute.xlu0 %v15133_v53  ;;  %v702_v53 = vld [vmem:[%s15616_s23 + $0x68] sm:$0xff] }
 0x1b9   :  { %931 = vperm.xlu0 %8840, %v692_v37   ;;  %v703_v37 = vld [vmem:[%s15616_s23 + $0x70] sm:$0xff] }
 0x1ba   :  { %8805 = vset.pattern.permute.xlu1 %v15618_v61 }
 0x1bb   :  { %1143 = vperm.xlu1 %8805, %v696_v47   ;;  %v10167_v47 = vld [vmem:[%s15616_s23 + $0x98] sm:$0xff] }
 0x1bd   :  { %935 = vperm.xlu0 %8840, %v693_v39   ;;  %v10163_v39 = vld [vmem:[%s15616_s23 + $0x90] sm:$0xff] }
 0x1bf   :  { %8806 = vset.pattern.permute.xlu1 %v15617_v57 }
 0x1c0   :  { %769 = vperm.xlu1 %8806, %v698_v63  }
 0x1c1   :  { %951 = vperm.xlu0 %8840, %v697_v35  }
 0x1c4   :  { %8807 = vset.pattern.permute.xlu1 %v15618_v61 }
 0x1c5   :  { %1147 = vperm.xlu1 %8807, %v697_v35   ;;  %955 = vperm.xlu0 %8840, %v698_v63   ;;  %v701_v35 = vld [vmem:[%s15616_s23 + $0x60] sm:$0xff] }
 0x1c9   :  { %8808 = vset.pattern.permute.xlu1 %v15619_v1  ;;  %971 = vperm.xlu0 %8840, %v702_v53  }
 0x1ca   :  { %959 = vperm.xlu1 %8808, %v10112_v49  }
 0x1cd   :  { %975 = vperm.xlu0 %8840, %v703_v37  }
 0x1ce   :  { %8809 = vset.pattern.permute.xlu1 %v15618_v61 }
 0x1cf   :  { %1151 = vperm.xlu1 %8809, %v698_v63   ;;  %v10179_v63 = vld [vmem:[%s15616_s23 + $0xc0] sm:$0xff] }
 0x1d1   :  { %991 = vperm.xlu0 %8840, %v10163_v39  }
 0x1d3   :  { %8810 = vset.pattern.permute.xlu1 %v15619_v1 }
 0x1d4   :  { %963 = vperm.xlu1 %8810, %v10117_v41  }
 0x1d5   :  { %995 = vperm.xlu0 %8840, %v10167_v47  }
 0x1d8   :  { %8811 = vset.pattern.permute.xlu1 %v15617_v57 }
 0x1d9   :  { %784 = vperm.xlu1 %8811, %v701_v35   ;;  %1011 = vperm.xlu0 %8840, %v10174_v3  }
 0x1dd   :  { %8812 = vset.pattern.permute.xlu1 %v15619_v1  ;;  %1015 = vperm.xlu0 %8840, %v10179_v63  }
 0x1de   :  { %967 = vperm.xlu1 %8812, %v701_v35  }
 0x1e1   :  { %1031 = vperm.xlu0 %8840, %v10184_v5  }
 0x1e2   :  { %8813 = vset.pattern.permute.xlu1 %v15617_v57 }
 0x1e3   :  { %789 = vperm.xlu1 %8813, %v702_v53  }
 0x1e5   :  { %1035 = vperm.xlu0 %8840, %v10189_v7  }
 0x1e7   :  { %8814 = vset.pattern.permute.xlu1 %v15618_v61 }
 0x1e8   :  { %1163 = vperm.xlu1 %8814, %v701_v35  }
 0x1e9   :  { %8844 = vset.pattern.permute.xlu0 %v15617_v57 }
 0x1ea   :  { %774 = vperm.xlu0 %8844, %v10112_v49   ;;  %v10206_v49 = vshrl.u32 %v882_v13, 7 }
 0x1ec   :  { %8815 = vset.pattern.permute.xlu1 %v15617_v57  ;;  %15620 = vst [vmem:[#allocation144_spill] sm:$0xff] %v10206_v49  ;;  %v10215_v17 = vsub.s32 1, %v10206_v49  ;;  %v10218_v19 = vsub.s32 0, %v10206_v49  ;;  %v10232_v27 = vsub.s32 2, %v10206_v49  ;;  %v10246_v49 = vld [vmem:[%s15616_s23 + $0xf0] sm:$0xff] }
 0x1ed   :  { %794 = vperm.xlu1 %8815, %v703_v37  }
 0x1ee   :  { %779 = vperm.xlu0 %8844, %v10117_v41   ;;  %15621 = vst [vmem:[#allocation145_spill] sm:$0xff] %v10215_v17  ;;  %15622 = vst [vmem:[#allocation146_spill] sm:$0xff] %v10218_v19  ;;  %v10224_v23 = vrot.slane %v721_v21, %v10215_v17  ;;  %v10227_v25 = vrot.slane %v721_v21, %v10218_v19  ;;  %v10242_v36 = vrot.slane %v721_v21, %v10232_v27 }
 0x1ef   :  { %15623 = vst [vmem:[#allocation147_spill] sm:$0xff] %v10232_v27  ;;  %v10256_v27 = vld [vmem:[%s15616_s23 + $0xf8] sm:$0xff] }
 0x1f1   :  { %8816 = vset.pattern.permute.xlu1 %v15618_v61 }
 0x1f2   :  { %1167 = vperm.xlu1 %8816, %v702_v53   ;;  %v920_v9 = vpop.permute.xlu1 %919  ;;  %v725_v11 = vpop.permute.xlu0 %724  ;;  %799 = vperm.xlu0 %8844, %v10122_v45  }
 0x1f3   :  { %v1050_v31 = vmul.f32 %v10224_v23, %v920_v9  ;;  %v886_v32 = vmul.f32 %v10227_v25, %v725_v11 }
 0x1f5   :  { %v1082_v38 = vadd.f32 %v1050_v31, %v886_v32 }
 0x1f6   :  { %8817 = vset.pattern.permute.xlu1 %v15619_v1  ;;  %v10200_v35 = vpop.permute.xlu1 %923  ;;  %v10202_v15 = vpop.permute.xlu0 %729  ;;  %804 = vperm.xlu0 %8844, %v10127_v51  }
 0x1f7   :  { %979 = vperm.xlu1 %8817, %v10122_v45  }
 0x1fa   :  { %v10208_v41 = vpop.permute.xlu1 %927  ;;  %v10210_v53 = vpop.permute.xlu0 %734  ;;  %824 = vperm.xlu0 %8844, %v10131_v43  }
 0x1fb   :  { %8818 = vset.pattern.permute.xlu1 %v15618_v61 }
 0x1fc   :  { %1171 = vperm.xlu1 %8818, %v703_v37  }
 0x1fe   :  { %v750_v45 = vpop.permute.xlu0 %749  ;;  %829 = vperm.xlu0 %8844, %v10137_v55  }
 0x1ff   :  { %v10221_v13 = vpop.permute.xlu1 %1119 }
 0x200   :  { %8819 = vset.pattern.permute.xlu1 %v15619_v1 }
 0x201   :  { %983 = vperm.xlu1 %8819, %v10127_v51  }
 0x202   :  { %v755_v37 = vpop.permute.xlu0 %754  ;;  %849 = vperm.xlu0 %8844, %v10142_v33  }
 0x204   :  { %v10238_v34 = vpop.permute.xlu1 %739 }
 0x205   :  { %8820 = vset.pattern.permute.xlu1 %v15617_v57 }
 0x206   :  { %809 = vperm.xlu1 %8820, %v706_v29   ;;  %854 = vperm.xlu0 %8844, %v10147_v59  }
 0x207   :  { %v1116_v51 = vpop.permute.xlu0 %1115 }
 0x208   :  { %v1246_v40 = vmul.f32 %v10242_v36, %v1116_v51 }
 0x209   :  { %v10249_v9 = vpop.permute.xlu1 %1123 }
 0x20a   :  { %v10251_v11 = vadd.f32 %v1246_v40, %v1082_v38  ;;  %8821 = vset.pattern.permute.xlu1 %v15619_v1  ;;  %874 = vperm.xlu0 %8844, %v10246_v49   ;;  %v891_v40 = vmul.f32 %v10227_v25, %v750_v45  ;;  %v892_v45 = vmul.f32 %v10227_v25, %v755_v37 }
 0x20b   :  { %987 = vperm.xlu1 %8821, %v706_v29   ;;  %v1136_v21 = vpop.permute.xlu0 %1135 }
 0x20c   :  { %v1251_v46 = vmul.f32 %v10242_v36, %v1136_v21 }
 0x20e   :  { %v10258_v42 = vpop.permute.xlu1 %744  ;;  %879 = vperm.xlu0 %8844, %v10256_v27  }
 0x20f   :  { %8822 = vset.pattern.permute.xlu1 %v15617_v57  ;;  %v1140_v31 = vpop.permute.xlu0 %1139 }
 0x210   :  { %814 = vperm.xlu1 %8822, %v10163_v39   ;;  %v1252_v21 = vmul.f32 %v10242_v36, %v1140_v31 }
 0x212   :  { %8849 = vset.pattern.permute.xlu0 %v15618_v61 }
 0x213   :  { %v10264_v32 = vpop.permute.xlu1 %1127  ;;  %v10266_v38 = vpop.permute.xlu0 %1155  ;;  %1235 = vperm.xlu0 %8849, %v10246_v49  }
 0x214   :  { %8823 = vset.pattern.permute.xlu1 %v15618_v61 }
 0x215   :  { %1183 = vperm.xlu1 %8823, %v706_v29  }
 0x217   :  { %v10271_v51 = vpop.permute.xlu0 %1159 }
 0x218   :  { %v940_v44 = vpop.permute.xlu1 %939  ;;  %v1257_v24 = vmul.f32 %v10242_v36, %v10271_v51 }
 0x219   :  { %v1055_v48 = vmul.f32 %v10224_v23, %v940_v44  ;;  %8824 = vset.pattern.permute.xlu1 %v15617_v57 }
 0x21a   :  { %819 = vperm.xlu1 %8824, %v10167_v47  }
 0x21b   :  { %v1087_v50 = vadd.f32 %v1055_v48, %v891_v40  ;;  %v10277_v52 = vpop.permute.xlu0 %1175 }
 0x21d   :  { %v10279_v54 = vadd.f32 %v1251_v46, %v1087_v50  ;;  %v10281_v56 = vpop.permute.xlu1 %1131 }
 0x21e   :  { %8825 = vset.pattern.permute.xlu1 %v15618_v61 }
 0x21f   :  { %1187 = vperm.xlu1 %8825, %v10163_v39   ;;  %v10285_v29 = vpop.permute.xlu0 %1179 }
 0x222   :  { %v944_v44 = vpop.permute.xlu1 %943 }
 0x223   :  { %v1056_v58 = vmul.f32 %v10224_v23, %v944_v44  ;;  %8826 = vset.pattern.permute.xlu1 %v15619_v1  ;;  %v10291_v48 = vpop.permute.xlu0 %1195 }
 0x224   :  { %999 = vperm.xlu1 %8826, %v10131_v43  }
 0x225   :  { %v1088_v46 = vadd.f32 %v1056_v58, %v892_v45  ;;  %v711_v45 = vld [vmem:[%s15616_s23 + $0xb0] sm:$0xff] }
 0x227   :  { %v10294_v50 = vadd.f32 %v1252_v21, %v1088_v46  ;;  %v760_v39 = vpop.permute.xlu1 %759  ;;  %v10296_v40 = vpop.permute.xlu0 %1199 }
 0x228   :  { %8827 = vset.pattern.permute.xlu1 %v15618_v61  ;;  %v893_v44 = vmul.f32 %v10227_v25, %v760_v39 }
 0x229   :  { %1191 = vperm.xlu1 %8827, %v10167_v47  }
 0x22b   :  { %v10300_v37 = vpop.permute.xlu0 %1215 }
 0x22c   :  { %v948_v31 = vpop.permute.xlu1 %947 }
 0x22d   :  { %v1057_v60 = vmul.f32 %v10224_v23, %v948_v31  ;;  %8828 = vset.pattern.permute.xlu1 %v15619_v1 }
 0x22e   :  { %1003 = vperm.xlu1 %8828, %v10137_v55  }
 0x22f   :  { %v1089_v58 = vadd.f32 %v1057_v60, %v893_v44  ;;  %v10306_v43 = vpop.permute.xlu0 %1219 }
 0x231   :  { %v765_v21 = vpop.permute.xlu1 %764 }
 0x232   :  { %8829 = vset.pattern.permute.xlu1 %v15617_v57  ;;  %v894_v0 = vmul.f32 %v10227_v25, %v765_v21 }
 0x233   :  { %834 = vperm.xlu1 %8829, %v711_v45  }
 0x234   :  { %v10310_v47 = vpop.permute.xlu0 %931 }
 0x236   :  { %v1144_v46 = vpop.permute.xlu1 %1143 }
 0x237   :  { %v1253_v62 = vmul.f32 %v10242_v36, %v1144_v46  ;;  %8830 = vset.pattern.permute.xlu1 %v15619_v1 }
 0x238   :  { %1007 = vperm.xlu1 %8830, %v711_v45   ;;  %v10314_v39 = vpop.permute.xlu0 %935 }
 0x239   :  { %v10316_v31 = vadd.f32 %v1253_v62, %v1089_v58 }
 0x23b   :  { %v770_v55 = vpop.permute.xlu1 %769 }
 0x23c   :  { %8831 = vset.pattern.permute.xlu1 %v15617_v57  ;;  %v952_v60 = vpop.permute.xlu0 %951  ;;  %v895_v21 = vmul.f32 %v10227_v25, %v770_v55 }
 0x23d   :  { %839 = vperm.xlu1 %8831, %v10174_v3   ;;  %v1058_v44 = vmul.f32 %v10224_v23, %v952_v60 }
 0x23f   :  { %v1090_v46 = vadd.f32 %v1058_v44, %v894_v0 }
 0x240   :  { %v1148_v2 = vpop.permute.xlu1 %1147  ;;  %v956_v4 = vpop.permute.xlu0 %955 }
 0x241   :  { %v1254_v6 = vmul.f32 %v10242_v36, %v1148_v2  ;;  %8832 = vset.pattern.permute.xlu1 %v15618_v61  ;;  %v1059_v10 = vmul.f32 %v10224_v23, %v956_v4 }
 0x242   :  { %1203 = vperm.xlu1 %8832, %v711_v45  }
 0x243   :  { %v10324_v62 = vadd.f32 %v1254_v6, %v1090_v46  ;;  %v1091_v44 = vadd.f32 %v1059_v10, %v895_v21 }
 0x244   :  { %v972_v58 = vpop.permute.xlu0 %971 }
 0x245   :  { %v960_v8 = vpop.permute.xlu1 %959 }
 0x246   :  { %8833 = vset.pattern.permute.xlu1 %v15617_v57 }
 0x247   :  { %844 = vperm.xlu1 %8833, %v10179_v63  }
 0x248   :  { %v10329_v60 = vpop.permute.xlu0 %975 }
 0x24a   :  { %v1152_v0 = vpop.permute.xlu1 %1151 }
 0x24b   :  { %v1255_v2 = vmul.f32 %v10242_v36, %v1152_v0  ;;  %8834 = vset.pattern.permute.xlu1 %v15618_v61 }
 0x24c   :  { %1207 = vperm.xlu1 %8834, %v10174_v3   ;;  %v10335_v6 = vpop.permute.xlu0 %991 }
 0x24d   :  { %v10337_v45 = vadd.f32 %v1255_v2, %v1091_v44 }
 0x24f   :  { %v964_v46 = vpop.permute.xlu1 %963 }
 0x250   :  { %8835 = vset.pattern.permute.xlu1 %v15619_v1  ;;  %v10340_v4 = vpop.permute.xlu0 %995  ;;  %v1061_v28 = vmul.f32 %v10224_v23, %v964_v46 }
 0x251   :  { %1019 = vperm.xlu1 %8835, %v10142_v33  }
 0x254   :  { %v785_v55 = vpop.permute.xlu1 %784  ;;  %v10343_v10 = vpop.permute.xlu0 %1011 }
 0x255   :  { %8836 = vset.pattern.permute.xlu1 %v15618_v61  ;;  %v898_v0 = vmul.f32 %v10227_v25, %v785_v55 }
 0x256   :  { %1211 = vperm.xlu1 %8836, %v10179_v63  }
 0x258   :  { %v10347_v3 = vpop.permute.xlu0 %1015 }
 0x259   :  { %v968_v21 = vpop.permute.xlu1 %967 }
 0x25a   :  { %v1062_v44 = vmul.f32 %v10224_v23, %v968_v21  ;;  %8837 = vset.pattern.permute.xlu1 %v15619_v1  ;;  %v1060_v21 = vmul.f32 %v10224_v23, %v960_v8 }
 0x25b   :  { %1023 = vperm.xlu1 %8837, %v10147_v59   ;;  %v1256_v59 = vmul.f32 %v10242_v36, %v10266_v38 }
 0x25c   :  { %v1094_v2 = vadd.f32 %v1062_v44, %v898_v0  ;;  %v10353_v33 = vpop.permute.xlu0 %1031 }
 0x25e   :  { %v790_v14 = vpop.permute.xlu1 %789 }
 0x25f   :  { %8838 = vset.pattern.permute.xlu1 %v15617_v57  ;;  %v899_v38 = vmul.f32 %v10227_v25, %v790_v14 }
 0x260   :  { %859 = vperm.xlu1 %8838, %v716_v12   ;;  %v10357_v63 = vpop.permute.xlu0 %1035 }
 0x263   :  { %v1164_v16 = vpop.permute.xlu1 %1163 }
 0x264   :  { %v1258_v18 = vmul.f32 %v10242_v36, %v1164_v16  ;;  %8839 = vset.pattern.permute.xlu1 %v15619_v1  ;;  %v1063_v16 = vmul.f32 %v10224_v23, %v972_v58 }
 0x265   :  { %1027 = vperm.xlu1 %8839, %v716_v12   ;;  %v775_v55 = vpop.permute.xlu0 %774 }
 0x266   :  { %v10364_v0 = vadd.f32 %v1258_v18, %v1094_v2  ;;  %v896_v44 = vmul.f32 %v10227_v25, %v775_v55  ;;  %v1095_v55 = vadd.f32 %v1063_v16, %v899_v38 }
 0x268   :  { %v1092_v20 = vadd.f32 %v1060_v21, %v896_v44  ;;  %v795_v22 = vpop.permute.xlu1 %794 }
 0x269   :  { %8841 = vset.pattern.permute.xlu1 %v15617_v57  ;;  %v780_v26 = vpop.permute.xlu0 %779 }
 0x26a   :  { %v10373_v30 = vadd.f32 %v1256_v59, %v1092_v20  ;;  %v897_v8 = vmul.f32 %v10227_v25, %v780_v26  ;;  %864 = vperm.xlu1 %8841, %v10184_v5   ;;  %v1261_v26 = vmul.f32 %v10242_v36, %v10277_v52  ;;  %v900_v59 = vmul.f32 %v10227_v25, %v795_v22 }
 0x26c   :  { %v1093_v18 = vadd.f32 %v1061_v28, %v897_v8 }
 0x26d   :  { %v1168_v2 = vpop.permute.xlu1 %1167  ;;  %v800_v58 = vpop.permute.xlu0 %799 }
 0x26e   :  { %v10377_v21 = vadd.f32 %v1257_v24, %v1093_v18  ;;  %v1259_v51 = vmul.f32 %v10242_v36, %v1168_v2  ;;  %8842 = vset.pattern.permute.xlu1 %v15618_v61  ;;  %v901_v14 = vmul.f32 %v10227_v25, %v800_v58  ;;  %v1064_v24 = vmul.f32 %v10224_v23, %v10329_v60 }
 0x26f   :  { %1223 = vperm.xlu1 %8842, %v716_v12  }
 0x270   :  { %v10381_v46 = vadd.f32 %v1259_v51, %v1095_v55  ;;  %v1096_v38 = vadd.f32 %v1064_v24, %v900_v59  ;;  %v1262_v55 = vmul.f32 %v10242_v36, %v10285_v29 }
 0x271   :  { %v805_v52 = vpop.permute.xlu0 %804 }
 0x272   :  { %v980_v20 = vpop.permute.xlu1 %979  ;;  %v902_v60 = vmul.f32 %v10227_v25, %v805_v52  ;;  %v8853_v52 = vld [vmem:[%s15624_s26 + $0x70] ss:$8 sps:$4 sm:$0xff]  }
 0x273   :  { %v1065_v28 = vmul.f32 %v10224_v23, %v980_v20  ;;  %8843 = vset.pattern.permute.xlu1 %v15617_v57 }
 0x274   :  { %869 = vperm.xlu1 %8843, %v10189_v7  }
 0x275   :  { %v1097_v12 = vadd.f32 %v1065_v28, %v901_v14 }
 0x277   :  { %v10392_v44 = vadd.f32 %v1261_v26, %v1097_v12  ;;  %v1172_v16 = vpop.permute.xlu1 %1171 }
 0x278   :  { %v1260_v8 = vmul.f32 %v10242_v36, %v1172_v16  ;;  %8845 = vset.pattern.permute.xlu1 %v15618_v61 }
 0x279   :  { %1227 = vperm.xlu1 %8845, %v10184_v5  }
 0x27a   :  { %v10397_v18 = vadd.f32 %v1260_v8, %v1096_v38  ;;  %v8851_v8 = vld [vmem:[%s15624_s26 + $0x74] ss:$8 sps:$4 sm:$0xff]  }
 0x27b   :  { %1759 = vmatprep.subr.bf16.mxu0 %v8851_v8  ;;  %v889_v8 = vmul.f32 %v10227_v25, %v10238_v34  ;;  %v8865_v34 = vld [vmem:[%s15624_s26 + $0x30] ss:$8 sps:$4 sm:$0xff]  }
 0x27c   :  { %v984_v2 = vpop.permute.xlu1 %983  ;;  %1760 = vmatpush1.bf16.msra.mxu0 %v8853_v52 }
 0x27d   :  { %v1066_v22 = vmul.f32 %v10224_v23, %v984_v2  ;;  %8846 = vset.pattern.permute.xlu1 %v15619_v1  ;;  %v8857_v2 = vld [vmem:[%s15624_s26 + $0x54] ss:$8 sps:$4 sm:$0xff]  }
 0x27e   :  { %1039 = vperm.xlu1 %8846, %v10246_v49  }
 0x27f   :  { %v1098_v51 = vadd.f32 %v1066_v22, %v902_v60  ;;  %v8856_v60 = vld [vmem:[%s15624_s26 + $0x60] ss:$8 sps:$4 sm:$0xff]  }
 0x281   :  { %v10405_v58 = vadd.f32 %v1262_v55, %v1098_v51  ;;  %v810_v14 = vpop.permute.xlu1 %809  ;;  %v8859_v55 = vld [vmem:[%s15624_s26 + $0x50] ss:$8 sps:$4 sm:$0xff]   ;;  %v1051_v51 = vmul.f32 %v10224_v23, %v10200_v35  ;;  %v8862_v35 = vld [vmem:[%s15624_s26 + $0x40] ss:$8 sps:$4 sm:$0xff]  }
 0x282   :  { %8847 = vset.pattern.permute.xlu1 %v15618_v61  ;;  %v903_v20 = vmul.f32 %v10227_v25, %v810_v14  ;;  %v887_v14 = vmul.f32 %v10227_v25, %v10202_v15 }
 0x283   :  { %1231 = vperm.xlu1 %8847, %v10189_v7  }
 0x284   :  { %v1083_v15 = vadd.f32 %v1051_v51, %v887_v14  ;;  %v1249_v51 = vmul.f32 %v10242_v36, %v10264_v32 }
 0x286   :  { %v988_v5 = vpop.permute.xlu1 %987 }
 0x287   :  { %v1067_v26 = vmul.f32 %v10224_v23, %v988_v5  ;;  %8848 = vset.pattern.permute.xlu1 %v15619_v1  ;;  %v8860_v5 = vld [vmem:[%s15624_s26 + $0x44] ss:$8 sps:$4 sm:$0xff]  }
 0x288   :  { %1043 = vperm.xlu1 %8848, %v10256_v27  }
 0x289   :  { %v1099_v49 = vadd.f32 %v1067_v26, %v903_v20  ;;  %v1052_v20 = vmul.f32 %v10224_v23, %v10208_v41  ;;  %v888_v26 = vmul.f32 %v10227_v25, %v10210_v53  ;;  %v1248_v41 = vmul.f32 %v10242_v36, %v10249_v9 }
 0x28a   :  { %v1054_v53 = vmul.f32 %v10224_v23, %v10314_v39 }
 0x28b   :  { %v10413_v29 = vpop.permute.xlu1 %814  ;;  %v1084_v52 = vadd.f32 %v1052_v20, %v888_v26  ;;  %v1250_v20 = vmul.f32 %v10242_v36, %v10281_v56 }
 0x28c   :  { %8850 = vset.pattern.permute.xlu1 %v15618_v61 }
 0x28d   :  { %1239 = vperm.xlu1 %8850, %v10256_v27   ;;  %v8854_v27 = vld [vmem:[%s15624_s26 + $0x64] ss:$8 sps:$4 sm:$0xff]   ;;  %v1280_v39 = vadd.f32 %v1248_v41, %v1084_v52 }
 0x28e   :  { %1761 = vmatprep.subr.bf16.mxu0 %v8854_v27  ;;  %v890_v27 = vmul.f32 %v10227_v25, %v10258_v42  ;;  %v8866_v42 = vld [vmem:[%s15624_s26 + $0x24] ss:$8 sps:$4 sm:$0xff]  }
 0x28f   :  { %1762 = vmatpush1.bf16.msra.mxu0 %v8856_v60 }
 0x290   :  { %v1184_v7 = vpop.permute.xlu1 %1183  ;;  %1763 = vmatprep.subr.bf16.mxu0 %v8857_v2  ;;  %v10461_v2 = vld [vmem:[#allocation12] ss:$0 sm:$0xff]  ;;  %v1086_v14 = vadd.f32 %v1054_v53, %v890_v27  ;;  %v8871_v53 = vld [vmem:[%s15624_s26 + $0x10] ss:$8 sps:$4 sm:$0xff]   ;;  %v8872_v27 = vld [vmem:[%s15624_s26 + $0x4] ss:$8 sps:$4 sm:$0xff]  }
 0x291   :  { %v1263_v28 = vmul.f32 %v10242_v36, %v1184_v7  ;;  %v1053_v7 = vmul.f32 %v10224_v23, %v10310_v47  ;;  %v10468_v9 = vadd.f32 %v10461_v2, %v10251_v11 }
 0x292   :  { %v1282_v32 = vadd.f32 %v1250_v20, %v1086_v14 }
 0x293   :  { %v10418_v24 = vadd.f32 %v1263_v28, %v1099_v49  ;;  %v1247_v49 = vmul.f32 %v10242_v36, %v10221_v13  ;;  %1764 = vmatpush1.bf16.msra.mxu0 %v8859_v55  ;;  %v8863_v13 = vld [vmem:[%s15624_s26 + $0x34] ss:$8 sps:$4 sm:$0xff]   ;;  %v1085_v60 = vadd.f32 %v1053_v7, %v889_v8  ;;  %v1387_v11 = vmul.f32 %v10468_v9, %v10468_v9 }
 0x294   :  { %1765 = vmatprep.subr.bf16.mxu0 %v8860_v5  ;;  %v10482_v7 = vadd.f32 %v10461_v2, %v1280_v39 }
 0x295   :  { %v10420_v59 = vpop.permute.xlu1 %819  ;;  %v1279_v47 = vadd.f32 %v1247_v49, %v1083_v15  ;;  %v1281_v26 = vadd.f32 %v1249_v51, %v1085_v60  ;;  %v8868_v49 = vld [vmem:[%s15624_s26 + $0x20] ss:$8 sps:$4 sm:$0xff]   ;;  %v8869_v15 = vld [vmem:[%s15624_s26 + $0x14] ss:$8 sps:$4 sm:$0xff]  }
 0x296   :  { %v1389_v52 = vmul.f32 %v10482_v7, %v10482_v7  ;;  %v8874_v51 = vld [vmem:[%s15624_s26] ss:$8 sps:$4 sm:$0xff]  }
 0x297   :  { %1766 = vmatpush1.bf16.msra.mxu0 %v8862_v35  ;;  %v10474_v5 = vadd.f32 %v10461_v2, %v1279_v47  ;;  %v10490_v56 = vadd.f32 %v10461_v2, %v1281_v26  ;;  %v10498_v47 = vadd.f32 %v10461_v2, %v1282_v32  ;;  %v10512_v26 = vadd.f32 %v10461_v2, %v10279_v54 }
 0x298   :  { %1767 = vmatprep.subr.bf16.mxu0 %v8863_v13 }
 0x299   :  { %v1388_v8 = vmul.f32 %v10474_v5, %v10474_v5  ;;  %v1349_v41 = vadd.f32 %v10474_v5, %v10468_v9 }
 0x29a   :  { %v10422_v12 = vpop.permute.xlu1 %1187 }
 0x29b   :  { %1768 = vmatpush1.bf16.msra.mxu0 %v8865_v34  ;;  %v1419_v13 = vadd.f32 %v1388_v8, %v1387_v11  ;;  %v1390_v34 = vmul.f32 %v10490_v56, %v10490_v56  ;;  %v1350_v39 = vadd.f32 %v1349_v41, %v10482_v7  ;;  %v1392_v8 = vmul.f32 %v10512_v26, %v10512_v26 }
 0x29c   :  { %1769 = vmatprep.subr.bf16.mxu0 %v8866_v42  ;;  %v1391_v42 = vmul.f32 %v10498_v47, %v10498_v47  ;;  %v10521_v41 = vadd.f32 %v10461_v2, %v10294_v50 }
 0x29d   :  { %v1420_v14 = vadd.f32 %v1419_v13, %v1389_v52  ;;  %v1351_v20 = vadd.f32 %v1350_v39, %v10490_v56 }
 0x29e   :  { %v1393_v52 = vmul.f32 %v10521_v41, %v10521_v41 }
 0x29f   :  { %v10424_v16 = vpop.permute.xlu1 %999  ;;  %1770 = vmatpush1.bf16.msra.mxu0 %v8868_v49  ;;  %v1421_v49 = vadd.f32 %v1420_v14, %v1390_v34  ;;  %v1352_v32 = vadd.f32 %v1351_v20, %v10498_v47  ;;  %v10539_v14 = vadd.f32 %v10461_v2, %v10324_v62 }
 0x2a0   :  { %1771 = vmatprep.subr.bf16.mxu0 %v8869_v15  ;;  %v1070_v19 = vmul.f32 %v10224_v23, %v10424_v16 }
 0x2a1   :  { %v1422_v15 = vadd.f32 %v1421_v49, %v1391_v42  ;;  %v10543_v42 = vadd.f32 %v10461_v2, %v10337_v45  ;;  %v10548_v49 = vadd.f32 %v10461_v2, %v10373_v30 }
 0x2a3   :  { %1772 = vmatpush1.bf16.msra.mxu0 %v8871_v53  ;;  %v1353_v53 = vadd.f32 %v1352_v32, %v10512_v26  ;;  %v1423_v54 = vadd.f32 %v1422_v15, %v1392_v8  ;;  %v1395_v15 = vmul.f32 %v10539_v14, %v10539_v14  ;;  %v1396_v62 = vmul.f32 %v10543_v42, %v10543_v42 }
 0x2a4   :  { %v10426_v38 = vpop.permute.xlu1 %1191  ;;  %1773 = vmatprep.subr.bf16.mxu0 %v8872_v27  ;;  %v10530_v27 = vadd.f32 %v10461_v2, %v10316_v31  ;;  %v10558_v8 = vadd.f32 %v10461_v2, %v10377_v21  ;;  %v10571_v21 = vadd.f32 %v10461_v2, %v10364_v0  ;;  %v10586_v0 = vadd.f32 %v10461_v2, %v10397_v18 }
 0x2a5   :  { %v1354_v34 = vadd.f32 %v1353_v53, %v10521_v41  ;;  %v1424_v39 = vadd.f32 %v1423_v54, %v1393_v52  ;;  %v1397_v54 = vmul.f32 %v10548_v49, %v10548_v49 }
 0x2a6   :  { %v1394_v50 = vmul.f32 %v10530_v27, %v10530_v27 }
 0x2a7   :  { %1774 = vmatpush1.bf16.msra.mxu0 %v8874_v51  ;;  %v1355_v20 = vadd.f32 %v1354_v34, %v10530_v27  ;;  %v1398_v34 = vmul.f32 %v10558_v8, %v10558_v8 }
 0x2a8   :  { %v1425_v31 = vadd.f32 %v1424_v39, %v1394_v50 }
 0x2a9   :  { %v10433_v22 = vpop.permute.xlu1 %1003  ;;  %v1356_v45 = vadd.f32 %v1355_v20, %v10539_v14 }
 0x2aa   :  { %v1426_v53 = vadd.f32 %v1425_v31, %v1395_v15  ;;  %v1068_v15 = vmul.f32 %v10224_v23, %v10335_v6 }
 0x2ab   :  { %v1357_v30 = vadd.f32 %v1356_v45, %v10543_v42 }
 0x2ac   :  { %v1427_v52 = vadd.f32 %v1426_v53, %v1396_v62  ;;  %v1399_v62 = vmul.f32 %v10571_v21, %v10571_v21  ;;  %v10582_v53 = vadd.f32 %v10461_v2, %v10381_v46  ;;  %v905_v46 = vmul.f32 %v10227_v25, %v10420_v59 }
 0x2ad   :  { %v1358_v50 = vadd.f32 %v1357_v30, %v10548_v49  ;;  %v10609_v59 = vadd.f32 %v10461_v2, %v10392_v44  ;;  %v10623_v44 = vadd.f32 %v10461_v2, %v10418_v24 }
 0x2ae   :  { %v10449_v28 = vpop.permute.xlu1 %834  ;;  %v1428_v1 = vadd.f32 %v1427_v52, %v1397_v54  ;;  %v904_v54 = vmul.f32 %v10227_v25, %v10413_v29  ;;  %v1264_v52 = vmul.f32 %v10242_v36, %v10422_v12  ;;  %v1400_v18 = vmul.f32 %v10582_v53, %v10582_v53 }
 0x2af   :  { %v1359_v20 = vadd.f32 %v1358_v50, %v10558_v8  ;;  %v1401_v50 = vmul.f32 %v10586_v0, %v10586_v0 }
 0x2b0   :  { %v1429_v31 = vadd.f32 %v1428_v1, %v1398_v34  ;;  %v825_v1 = vpop.permute.xlu0 %824  ;;  %v1069_v34 = vmul.f32 %v10224_v23, %v10340_v4  ;;  %v1100_v29 = vadd.f32 %v1068_v15, %v904_v54  ;;  %v1265_v4 = vmul.f32 %v10242_v36, %v10426_v38 }
 0x2b1   :  { %v1360_v30 = vadd.f32 %v1359_v20, %v10571_v21  ;;  %v906_v12 = vmul.f32 %v10227_v25, %v825_v1  ;;  %v1071_v1 = vmul.f32 %v10224_v23, %v10433_v22 }
 0x2b2   :  { %v1430_v6 = vadd.f32 %v1429_v31, %v1399_v62  ;;  %v10613_v62 = vadd.f32 %v10461_v2, %v10405_v58  ;;  %v1296_v15 = vadd.f32 %v1264_v52, %v1100_v29  ;;  %v1101_v54 = vadd.f32 %v1069_v34, %v905_v46 }
 0x2b3   :  { %v10463_v55 = vpop.permute.xlu1 %1007  ;;  %v1361_v20 = vadd.f32 %v1360_v30, %v10582_v53  ;;  %v1402_v52 = vmul.f32 %v10609_v59, %v10609_v59  ;;  %v1102_v34 = vadd.f32 %v1070_v19, %v906_v12 }
 0x2b4   :  { %v830_v61 = vpop.permute.xlu0 %829  ;;  %v1431_v31 = vadd.f32 %v1430_v6, %v1400_v18  ;;  %v1297_v18 = vadd.f32 %v1265_v4, %v1101_v54  ;;  %v1403_v16 = vmul.f32 %v10613_v62, %v10613_v62  ;;  %v10632_v22 = vadd.f32 %v10461_v2, %v1296_v15 }
 0x2b5   :  { %v907_v30 = vmul.f32 %v10227_v25, %v830_v61  ;;  %v1362_v38 = vadd.f32 %v1361_v20, %v10586_v0  ;;  %v1266_v61 = vmul.f32 %v10242_v36, %v10291_v48  ;;  %v1072_v24 = vmul.f32 %v10224_v23, %v10463_v55 }
 0x2b6   :  { %v1432_v6 = vadd.f32 %v1431_v31, %v1401_v50  ;;  %v1267_v50 = vmul.f32 %v10242_v36, %v10296_v40  ;;  %v1404_v4 = vmul.f32 %v10623_v44, %v10623_v44  ;;  %v10644_v31 = vadd.f32 %v10461_v2, %v1297_v18 }
 0x2b7   :  { %v1103_v46 = vadd.f32 %v1071_v1, %v907_v30  ;;  %v1363_v29 = vadd.f32 %v1362_v38, %v10609_v59  ;;  %v908_v48 = vmul.f32 %v10227_v25, %v10449_v28  ;;  %v1073_v40 = vmul.f32 %v10224_v23, %v10343_v10 }
 0x2b8   :  { %v10484_v35 = vpop.permute.xlu1 %839  ;;  %v1433_v20 = vadd.f32 %v1432_v6, %v1402_v52  ;;  %v1405_v54 = vmul.f32 %v10632_v22, %v10632_v22  ;;  %v850_v1 = vpop.permute.xlu0 %849  ;;  %v1298_v38 = vadd.f32 %v1266_v61, %v1102_v34  ;;  %v1406_v52 = vmul.f32 %v10644_v31, %v10644_v31 }
 0x2b9   :  { %v909_v19 = vmul.f32 %v10227_v25, %v10484_v35  ;;  %v1364_v12 = vadd.f32 %v1363_v29, %v10613_v62  ;;  %v1299_v6 = vadd.f32 %v1267_v50, %v1103_v46  ;;  %v1104_v28 = vadd.f32 %v1072_v24, %v908_v48 }
 0x2ba   :  { %v1434_v15 = vadd.f32 %v1433_v20, %v1403_v16  ;;  %v1074_v20 = vmul.f32 %v10224_v23, %v10347_v3  ;;  %v911_v34 = vmul.f32 %v10227_v25, %v850_v1 }
 0x2bb   :  { %v1365_v18 = vadd.f32 %v1364_v12, %v10623_v44  ;;  %v1105_v16 = vadd.f32 %v1073_v40, %v909_v19  ;;  %v10674_v50 = vadd.f32 %v10461_v2, %v1299_v6  ;;  %v1271_v6 = vmul.f32 %v10242_v36, %v10300_v37 }
 0x2bc   :  { %v1435_v10 = vadd.f32 %v1434_v15, %v1404_v4  ;;  %v855_v46 = vpop.permute.xlu0 %854 }
 0x2bd   :  { %v10501_v60 = vpop.permute.xlu1 %1203  ;;  %v1366_v61 = vadd.f32 %v1365_v18, %v10632_v22 }
 0x2be   :  { %v1268_v55 = vmul.f32 %v10242_v36, %v10501_v60  ;;  %v1436_v24 = vadd.f32 %v1435_v10, %v1405_v54  ;;  %v1272_v10 = vmul.f32 %v10242_v36, %v10306_v43  ;;  %v1078_v43 = vmul.f32 %v10224_v23, %v10353_v33 }
 0x2c0   :  { %v1300_v29 = vadd.f32 %v1268_v55, %v1104_v28  ;;  %v912_v55 = vmul.f32 %v10227_v25, %v855_v46  ;;  %v1437_v12 = vadd.f32 %v1436_v24, %v1406_v52 }
 0x2c2   :  { %v10514_v11 = vpop.permute.xlu1 %844  ;;  %v10683_v15 = vadd.f32 %v10461_v2, %v1300_v29 }
 0x2c3   :  { %v910_v60 = vmul.f32 %v10227_v25, %v10514_v11  ;;  %v10671_v11 = vadd.f32 %v10461_v2, %v1298_v38  ;;  %v1408_v38 = vmul.f32 %v10674_v50, %v10674_v50 }
 0x2c4   :  { %v1409_v29 = vmul.f32 %v10683_v15, %v10683_v15 }
 0x2c5   :  { %v1106_v19 = vadd.f32 %v1074_v20, %v910_v60  ;;  %v1407_v1 = vmul.f32 %v10671_v11, %v10671_v11 }
 0x2c7   :  { %v10524_v13 = vpop.permute.xlu1 %1207 }
 0x2c8   :  { %v1269_v35 = vmul.f32 %v10242_v36, %v10524_v13 }
 0x2ca   :  { %v1301_v4 = vadd.f32 %v1269_v35, %v1105_v16  ;;  %v875_v35 = vpop.permute.xlu0 %874  ;;  %v1438_v16 = vadd.f32 %v1437_v12, %v1407_v1 }
 0x2cc   :  { %v10533_v51 = vpop.permute.xlu1 %1019 }
 0x2cd   :  { %v1075_v3 = vmul.f32 %v10224_v23, %v10533_v51  ;;  %v10690_v51 = vadd.f32 %v10461_v2, %v1301_v4 }
 0x2cf   :  { %v1410_v46 = vmul.f32 %v10690_v51, %v10690_v51 }
 0x2d1   :  { %v10550_v32 = vpop.permute.xlu1 %1211 }
 0x2d2   :  { %v1270_v13 = vmul.f32 %v10242_v36, %v10550_v32  ;;  %v1367_v32 = vadd.f32 %v1366_v61, %v10644_v31 }
 0x2d4   :  { %v1302_v54 = vadd.f32 %v1270_v13, %v1106_v19  ;;  %v1368_v52 = vadd.f32 %v1367_v32, %v10671_v11  ;;  %v1439_v13 = vadd.f32 %v1438_v16, %v1408_v38 }
 0x2d6   :  { %v10566_v39 = vpop.permute.xlu1 %1023  ;;  %v10702_v20 = vadd.f32 %v10461_v2, %v1302_v54 }
 0x2d7   :  { %v1076_v40 = vmul.f32 %v10224_v23, %v10566_v39  ;;  %v1107_v39 = vadd.f32 %v1075_v3, %v911_v34  ;;  %v1369_v34 = vadd.f32 %v1368_v52, %v10674_v50 }
 0x2d9   :  { %v1108_v28 = vadd.f32 %v1076_v40, %v912_v55  ;;  %v1303_v24 = vadd.f32 %v1271_v6, %v1107_v39  ;;  %v880_v40 = vpop.permute.xlu0 %879 }
 0x2db   :  { %v10576_v45 = vpop.permute.xlu1 %859  ;;  %v1304_v4 = vadd.f32 %v1272_v10, %v1108_v28  ;;  %v10721_v38 = vadd.f32 %v10461_v2, %v1303_v24  ;;  %v1079_v28 = vmul.f32 %v10224_v23, %v10357_v63 }
 0x2dc   :  { %v913_v37 = vmul.f32 %v10227_v25, %v10576_v45  ;;  %v1370_v45 = vadd.f32 %v1369_v34, %v10683_v15 }
 0x2dd   :  { %v10724_v6 = vadd.f32 %v10461_v2, %v1304_v4 }
 0x2de   :  { %v1371_v12 = vadd.f32 %v1370_v45, %v10690_v51 }
 0x2df   :  { %v1413_v63 = vmul.f32 %v10724_v6, %v10724_v6 }
 0x2e0   :  { %v10601_v17 = vpop.permute.xlu1 %1027 }
 0x2e1   :  { %v1077_v18 = vmul.f32 %v10224_v23, %v10601_v17 }
 0x2e3   :  { %v1109_v19 = vadd.f32 %v1077_v18, %v913_v37  ;;  %v1372_v18 = vadd.f32 %v1371_v12, %v10702_v20 }
 0x2e5   :  { %v10625_v58 = vpop.permute.xlu1 %864  ;;  %v1373_v34 = vadd.f32 %v1372_v18, %v10721_v38 }
 0x2e6   :  { %v914_v61 = vmul.f32 %v10227_v25, %v10625_v58  ;;  %v1440_v58 = vadd.f32 %v1439_v13, %v1409_v29  ;;  %v916_v29 = vmul.f32 %v10227_v25, %v875_v35 }
 0x2e8   :  { %v1110_v33 = vadd.f32 %v1078_v43, %v914_v61  ;;  %v1441_v1 = vadd.f32 %v1440_v58, %v1410_v46 }
 0x2ea   :  { %v1224_v30 = vpop.permute.xlu1 %1223 }
 0x2eb   :  { %v1273_v17 = vmul.f32 %v10242_v36, %v1224_v30  ;;  %v1411_v30 = vmul.f32 %v10702_v20, %v10702_v20 }
 0x2ed   :  { %v1305_v32 = vadd.f32 %v1273_v17, %v1109_v19  ;;  %v1442_v10 = vadd.f32 %v1441_v1, %v1411_v30  ;;  %v1412_v17 = vmul.f32 %v10721_v38, %v10721_v38  ;;  %v1374_v19 = vadd.f32 %v1373_v34, %v10724_v6 }
 0x2ef   :  { %v870_v48 = vpop.permute.xlu1 %869  ;;  %v10731_v52 = vadd.f32 %v10461_v2, %v1305_v32  ;;  %v1443_v4 = vadd.f32 %v1442_v10, %v1412_v17 }
 0x2f0   :  { %v915_v54 = vmul.f32 %v10227_v25, %v870_v48  ;;  %v1236_v48 = vpop.permute.xlu0 %1235 }
 0x2f1   :  { %v1276_v46 = vmul.f32 %v10242_v36, %v1236_v48  ;;  %v1414_v35 = vmul.f32 %v10731_v52, %v10731_v52  ;;  %v1375_v30 = vadd.f32 %v1374_v19, %v10731_v52 }
 0x2f2   :  { %v1111_v37 = vadd.f32 %v1079_v28, %v915_v54  ;;  %v917_v54 = vmul.f32 %v10227_v25, %v880_v40 }
 0x2f4   :  { %v1228_v60 = vpop.permute.xlu1 %1227 }
 0x2f5   :  { %v1274_v3 = vmul.f32 %v10242_v36, %v1228_v60 }
 0x2f7   :  { %v1306_v39 = vadd.f32 %v1274_v3, %v1110_v33 }
 0x2f9   :  { %v1040_v55 = vpop.permute.xlu1 %1039  ;;  %v10740_v43 = vadd.f32 %v10461_v2, %v1306_v39 }
 0x2fa   :  { %v1080_v60 = vmul.f32 %v10224_v23, %v1040_v55  ;;  %v1444_v55 = vadd.f32 %v1443_v4, %v1413_v63 }
 0x2fb   :  { %v1415_v58 = vmul.f32 %v10740_v43, %v10740_v43  ;;  %v1376_v1 = vadd.f32 %v1375_v30, %v10740_v43 }
 0x2fc   :  { %v1112_v13 = vadd.f32 %v1080_v60, %v916_v29  ;;  %v1445_v12 = vadd.f32 %v1444_v55, %v1414_v35 }
 0x2fe   :  { %v1232_v16 = vpop.permute.xlu1 %1231  ;;  %v1308_v33 = vadd.f32 %v1276_v46, %v1112_v13  ;;  %v1446_v28 = vadd.f32 %v1445_v12, %v1415_v58 }
 0x2ff   :  { %v1275_v61 = vmul.f32 %v10242_v36, %v1232_v16 }
 0x300   :  { %v10759_v60 = vadd.f32 %v10461_v2, %v1308_v33 }
 0x301   :  { %v1307_v24 = vadd.f32 %v1275_v61, %v1111_v37 }
 0x302   :  { %v1417_v25 = vmul.f32 %v10759_v60, %v10759_v60 }
 0x303   :  { %v10748_v3 = vadd.f32 %v10461_v2, %v1307_v24  ;;  %v1044_v45 = vpop.permute.xlu1 %1043 }
 0x304   :  { %v1081_v32 = vmul.f32 %v10224_v23, %v1044_v45 }
 0x305   :  { %v1416_v39 = vmul.f32 %v10748_v3, %v10748_v3  ;;  %v1377_v10 = vadd.f32 %v1376_v1, %v10748_v3 }
 0x306   :  { %v1113_v48 = vadd.f32 %v1081_v32, %v917_v54 }
 0x307   :  { %v1447_v29 = vadd.f32 %v1446_v28, %v1416_v39  ;;  %v1378_v37 = vadd.f32 %v1377_v10, %v10759_v60 }
 0x308   :  { %v1240_v18 = vpop.permute.xlu1 %1239 }
 0x309   :  { %v1277_v16 = vmul.f32 %v10242_v36, %v1240_v18  ;;  %v1448_v63 = vadd.f32 %v1447_v29, %v1417_v25 }
 0x30b   :  { %v1309_v23 = vadd.f32 %v1277_v16, %v1113_v48 }
 0x30d   :  { %v10766_v40 = vadd.f32 %v10461_v2, %v1309_v23 }
 0x30f   :  { %v1379_v61 = vadd.f32 %v1378_v37, %v10766_v40  ;;  %v1418_v17 = vmul.f32 %v10766_v40, %v10766_v40 }
 0x311   :  { %v1380_v34 = vrot.slane %v1379_v61, 4  ;;  %v1449_v13 = vadd.f32 %v1448_v63, %v1418_v17  ;;  %v10804_v63 = vld [vmem:[#allocation14] ss:$0 sm:$0xff] }
 0x313   :  { %v1381_v46 = vadd.f32 %v1380_v34, %v1379_v61  ;;  %v1450_v36 = vrot.slane %v1449_v13, 4 }
 0x315   :  { %v1382_v24 = vrot.slane %v1381_v46, 2  ;;  %v1451_v4 = vadd.f32 %v1450_v36, %v1449_v13 }
 0x317   :  { %v1383_v35 = vadd.f32 %v1382_v24, %v1381_v46  ;;  %v1452_v19 = vrot.slane %v1451_v4, 2 }
 0x319   :  { %v1384_v45 = vrot.slane %v1383_v35, 1  ;;  %v1453_v55 = vadd.f32 %v1452_v19, %v1451_v4 }
 0x31b   :  { %v1385_v2 = vadd.f32 %v1384_v45, %v1383_v35  ;;  %v1454_v58 = vrot.slane %v1453_v55, 1 }
 0x31d   :  { %v10772_v30 = vmul.f32 0.00390625, %v1385_v2  ;;  %v1455_v33 = vadd.f32 %v1454_v58, %v1453_v55 }
 0x31f   :  { %v1456_v32 = vmul.f32 0.00390625, %v1455_v33  ;;  %v1457_v12 = vmul.f32 %v10772_v30, %v10772_v30  ;;  %v1490_v54 = vsub.f32 %v10766_v40, %v10772_v30  ;;  %v1486_v28 = vsub.f32 %v10731_v52, %v10772_v30 }
 0x320   :  { %v1487_v18 = vsub.f32 %v10740_v43, %v10772_v30  ;;  %v1488_v10 = vsub.f32 %v10748_v3, %v10772_v30  ;;  %v1489_v48 = vsub.f32 %v10759_v60, %v10772_v30  ;;  %v1459_v16 = vsub.f32 %v10468_v9, %v10772_v30 }
 0x321   :  { %v1458_v1 = vsub.f32 %v1456_v32, %v1457_v12  ;;  %v1460_v29 = vsub.f32 %v10474_v5, %v10772_v30  ;;  %v1461_v23 = vsub.f32 %v10482_v7, %v10772_v30  ;;  %v1462_v25 = vsub.f32 %v10490_v56, %v10772_v30 }
 0x322   :  { %v1463_v61 = vsub.f32 %v10498_v47, %v10772_v30  ;;  %v1464_v17 = vsub.f32 %v10512_v26, %v10772_v30  ;;  %v1465_v9 = vsub.f32 %v10521_v41, %v10772_v30  ;;  %v1466_v5 = vsub.f32 %v10530_v27, %v10772_v30  ;;  %v10810_v47 = vld [vmem:[#allocation15] ss:$0 sm:$0xff] }
 0x323   :  { %v1491_v39 = vadd.f32 1e-05, %v1458_v1  ;;  %v1467_v32 = vsub.f32 %v10539_v14, %v10772_v30  ;;  %v1468_v12 = vsub.f32 %v10543_v42, %v10772_v30  ;;  %v1469_v1 = vsub.f32 %v10548_v49, %v10772_v30 }
 0x324   :  { %v1474_v42 = vsub.f32 %v10609_v59, %v10772_v30  ;;  %v1479_v59 = vsub.f32 %v10671_v11, %v10772_v30 }
 0x325   :  { %8875 = vrsqrt.f32 %v1491_v39 }
 0x332   :  { %v10794_v37 = vpop.eup %8875 }
 0x333   :  { %v1493_v7 = vmul.f32 %v10794_v37, %v1459_v16  ;;  %v1494_v56 = vmul.f32 %v10794_v37, %v1460_v29  ;;  %v1495_v34 = vmul.f32 %v10794_v37, %v1461_v23  ;;  %v1496_v13 = vmul.f32 %v10794_v37, %v1462_v25 }
 0x334   :  { %v1497_v26 = vmul.f32 %v10794_v37, %v1463_v61  ;;  %v1498_v46 = vmul.f32 %v10794_v37, %v1464_v17  ;;  %v1499_v41 = vmul.f32 %v10794_v37, %v1465_v9  ;;  %v1500_v27 = vmul.f32 %v10794_v37, %v1466_v5 }
 0x335   :  { %v1532_v36 = vmul.f32 %v10804_v63, %v1493_v7  ;;  %v1533_v24 = vmul.f32 %v10804_v63, %v1494_v56  ;;  %v1534_v4 = vmul.f32 %v10804_v63, %v1495_v34  ;;  %v1535_v35 = vmul.f32 %v10804_v63, %v1496_v13 }
 0x336   :  { %v1536_v19 = vmul.f32 %v10804_v63, %v1497_v26  ;;  %v1537_v45 = vmul.f32 %v10804_v63, %v1498_v46  ;;  %v1538_v58 = vmul.f32 %v10804_v63, %v1499_v41  ;;  %v1539_v33 = vmul.f32 %v10804_v63, %v1500_v27 }
 0x337   :  { %v1571_v55 = vadd.f32 %v10810_v47, %v1532_v36  ;;  %v1572_v2 = vadd.f32 %v10810_v47, %v1533_v24  ;;  %v1573_v29 = vadd.f32 %v10810_v47, %v1534_v4  ;;  %v1574_v23 = vadd.f32 %v10810_v47, %v1535_v35 }
 0x338   :  { %v1470_v25 = vsub.f32 %v10558_v8, %v10772_v30  ;;  %v1473_v61 = vsub.f32 %v10586_v0, %v10772_v30  ;;  %v1575_v14 = vadd.f32 %v10810_v47, %v1536_v19  ;;  %v1576_v17 = vadd.f32 %v10810_v47, %v1537_v45 }
 0x339   :  { %v1603_v39 = vmax.f32 %v1571_v55, 0.0  ;;  %v1604_v16 = vmax.f32 %v1572_v2, 0.0  ;;  %v1577_v9 = vadd.f32 %v10810_v47, %v1538_v58  ;;  %v1578_v5 = vadd.f32 %v10810_v47, %v1539_v33 }
 0x33a   :  { %v1475_v7 = vsub.f32 %v10613_v62, %v10772_v30  ;;  %v1476_v8 = vsub.f32 %v10623_v44, %v10772_v30  ;;  %v1477_v0 = vsub.f32 %v10632_v22, %v10772_v30  ;;  %v1478_v56 = vsub.f32 %v10644_v31, %v10772_v30 }
 0x33b   :  { %v1635_v49 = vpack.c.bf16 %v1604_v16, %v1603_v39  ;;  %v1605_v34 = vmax.f32 %v1573_v29, 0.0  ;;  %v1606_v13 = vmax.f32 %v1574_v23, 0.0  ;;  %v1501_v26 = vmul.f32 %v10794_v37, %v1467_v32 }
 0x33c   :  { %v1607_v62 = vmax.f32 %v1575_v14, 0.0  ;;  %v1608_v46 = vmax.f32 %v1576_v17, 0.0  ;;  %v1507_v44 = vmul.f32 %v10794_v37, %v1473_v61  ;;  %v1508_v41 = vmul.f32 %v10794_v37, %v1474_v42 }
 0x33d   :  { %1792 = vmatmul.mubr.bf16.vlgmr.msra.gmra.mxu0 %v1635_v49  ;;  %v1480_v22 = vsub.f32 %v10674_v50, %v10772_v30  ;;  %v1481_v31 = vsub.f32 %v10683_v15, %v10772_v30  ;;  %v1609_v11 = vmax.f32 %v1577_v9, 0.0  ;;  %v1610_v27 = vmax.f32 %v1578_v5, 0.0 }
 0x33e   :  { %1801 = vmatprep.mubr.bf16.mxu0 %v15617_v57  ;;  %v1482_v36 = vsub.f32 %v10690_v51, %v10772_v30  ;;  %v1502_v24 = vmul.f32 %v10794_v37, %v1468_v12  ;;  %v1546_v4 = vmul.f32 %v10804_v63, %v1507_v44  ;;  %v1547_v35 = vmul.f32 %v10804_v63, %v1508_v41 }
 0x33f   :  { %v1483_v19 = vsub.f32 %v10702_v20, %v10772_v30  ;;  %v1484_v50 = vsub.f32 %v10721_v38, %v10772_v30  ;;  %v1485_v15 = vsub.f32 %v10724_v6, %v10772_v30  ;;  %v1540_v45 = vmul.f32 %v10804_v63, %v1501_v26 }
 0x340   :  { %v1636_v55 = vpack.c.bf16 %v1606_v13, %v1605_v34  ;;  %v1637_v2 = vpack.c.bf16 %v1608_v46, %v1607_v62  ;;  %v1585_v51 = vadd.f32 %v10810_v47, %v1546_v4  ;;  %v1586_v58 = vadd.f32 %v10810_v47, %v1547_v35 }
 0x341   :  { %v10876_v33 = vpack.c.bf16 %v1610_v27, %v1609_v11  ;;  %v10879_v32 = vmul.f32 %v10794_v37, %v1469_v1  ;;  %v10882_v20 = vmul.f32 %v10794_v37, %v1470_v25  ;;  %v1509_v38 = vmul.f32 %v10794_v37, %v1475_v7 }
 0x342   :  { %v10886_v6 = vmul.f32 %v10804_v63, %v1502_v24  ;;  %v1617_v12 = vmax.f32 %v1585_v51, 0.0  ;;  %v1618_v39 = vmax.f32 %v1586_v58, 0.0  ;;  %v1510_v16 = vmul.f32 %v10794_v37, %v1476_v8 }
 0x343   :  { %v10890_v29 = vadd.f32 %v10810_v47, %v1540_v45  ;;  %v1548_v23 = vmul.f32 %v10804_v63, %v1509_v38  ;;  %v1511_v1 = vmul.f32 %v10794_v37, %v1477_v0  ;;  %v1512_v25 = vmul.f32 %v10794_v37, %v1478_v56 }
 0x344   :  { %v10896_v61 = vpack.c.bf16 %v1618_v39, %v1617_v12  ;;  %v1549_v14 = vmul.f32 %v10804_v63, %v1510_v16  ;;  %v1513_v17 = vmul.f32 %v10794_v37, %v1479_v59  ;;  %v1514_v42 = vmul.f32 %v10794_v37, %v1480_v22 }
 0x345   :  { %1802 = vmatmul.mubr.bf16.gmra.mxu0 %v1636_v55  ;;  %v1587_v49 = vadd.f32 %v10810_v47, %v1548_v23  ;;  %v1550_v9 = vmul.f32 %v10804_v63, %v1511_v1  ;;  %v1551_v5 = vmul.f32 %v10804_v63, %v1512_v25  ;;  %v1515_v7 = vmul.f32 %v10794_v37, %v1481_v31 }
 0x346   :  { %1811 = vmatprep.mubr.bf16.mxu0 %v15617_v57  ;;  %v1588_v8 = vadd.f32 %v10810_v47, %v1549_v14  ;;  %v1552_v0 = vmul.f32 %v10804_v63, %v1513_v17  ;;  %v1553_v56 = vmul.f32 %v10804_v63, %v1514_v42  ;;  %v1516_v34 = vmul.f32 %v10794_v37, %v1482_v36 }
 0x347   :  { %v1619_v13 = vmax.f32 %v1587_v49, 0.0  ;;  %v1589_v59 = vadd.f32 %v10810_v47, %v1550_v9  ;;  %v1590_v26 = vadd.f32 %v10810_v47, %v1551_v5  ;;  %v1554_v62 = vmul.f32 %v10804_v63, %v1515_v7 }
 0x348   :  { %v1620_v46 = vmax.f32 %v1588_v8, 0.0  ;;  %v1591_v44 = vadd.f32 %v10810_v47, %v1552_v0  ;;  %v1592_v41 = vadd.f32 %v10810_v47, %v1553_v56  ;;  %v1555_v22 = vmul.f32 %v10804_v63, %v1516_v34 }
 0x349   :  { %v1621_v31 = vmax.f32 %v1589_v59, 0.0  ;;  %v1622_v11 = vmax.f32 %v1590_v26, 0.0  ;;  %v1593_v27 = vadd.f32 %v10810_v47, %v1554_v62  ;;  %v1517_v36 = vmul.f32 %v10794_v37, %v1483_v19 }
 0x34a   :  { %v10917_v24 = vpack.c.bf16 %v1620_v46, %v1619_v13  ;;  %v1623_v4 = vmax.f32 %v1591_v44, 0.0  ;;  %v1624_v35 = vmax.f32 %v1592_v41, 0.0  ;;  %v1594_v45 = vadd.f32 %v10810_v47, %v1555_v22 }
 0x34b   :  { %v10920_v55 = vpack.c.bf16 %v1622_v11, %v1621_v31  ;;  %v1625_v51 = vmax.f32 %v1593_v27, 0.0  ;;  %v1518_v58 = vmul.f32 %v10794_v37, %v1484_v50  ;;  %v1556_v38 = vmul.f32 %v10804_v63, %v1517_v36 }
 0x34c   :  { %v10925_v12 = vpack.c.bf16 %v1624_v35, %v1623_v4  ;;  %v1626_v39 = vmax.f32 %v1594_v45, 0.0  ;;  %v1519_v19 = vmul.f32 %v10794_v37, %v1485_v15  ;;  %v1520_v16 = vmul.f32 %v10794_v37, %v1486_v28 }
 0x34d   :  { %1812 = vmatmul.mubr.bf16.gmra.mxu0 %v1637_v2  ;;  %v1557_v2 = vmul.f32 %v10804_v63, %v1518_v58  ;;  %v1595_v23 = vadd.f32 %v10810_v47, %v1556_v38  ;;  %v1521_v50 = vmul.f32 %v10794_v37, %v1487_v18  ;;  %v1522_v1 = vmul.f32 %v10794_v37, %v1488_v10 }
 0x34e   :  { %1821 = vmatprep.mubr.bf16.mxu0 %v15617_v57  ;;  %v10942_v15 = vpack.c.bf16 %v1626_v39, %v1625_v51  ;;  %v1558_v52 = vmul.f32 %v10804_v63, %v1519_v19  ;;  %v1559_v28 = vmul.f32 %v10804_v63, %v1520_v16  ;;  %v1523_v25 = vmul.f32 %v10794_v37, %v1489_v48 }
 0x34f   :  { %v1596_v43 = vadd.f32 %v10810_v47, %v1557_v2  ;;  %v1627_v14 = vmax.f32 %v1595_v23, 0.0  ;;  %v1560_v18 = vmul.f32 %v10804_v63, %v1521_v50  ;;  %v1561_v3 = vmul.f32 %v10804_v63, %v1522_v1 }
 0x350   :  { %v1597_v10 = vadd.f32 %v10810_v47, %v1558_v52  ;;  %v1598_v17 = vadd.f32 %v10810_v47, %v1559_v28  ;;  %v1524_v42 = vmul.f32 %v10794_v37, %v1490_v54  ;;  %v1562_v60 = vmul.f32 %v10804_v63, %v1523_v25 }
 0x351   :  { %v1580_v48 = vadd.f32 %v10810_v47, %v10886_v6  ;;  %v1628_v49 = vmax.f32 %v1596_v43, 0.0  ;;  %v1599_v9 = vadd.f32 %v10810_v47, %v1560_v18  ;;  %v1600_v5 = vadd.f32 %v10810_v47, %v1561_v3 }
 0x352   :  { %v1629_v7 = vmax.f32 %v1597_v10, 0.0  ;;  %v1630_v8 = vmax.f32 %v1598_v17, 0.0  ;;  %v1563_v0 = vmul.f32 %v10804_v63, %v1524_v42  ;;  %v1601_v56 = vadd.f32 %v10810_v47, %v1562_v60 }
 0x353   :  { %v1647_v40 = vpack.c.bf16 %v1628_v49, %v1627_v14  ;;  %v1631_v54 = vmax.f32 %v1599_v9, 0.0  ;;  %v1632_v34 = vmax.f32 %v1600_v5, 0.0  ;;  %v1542_v6 = vmul.f32 %v10804_v63, %v10879_v32 }
 0x354   :  { %v1648_v13 = vpack.c.bf16 %v1630_v8, %v1629_v7  ;;  %v1602_v59 = vadd.f32 %v10810_v47, %v1563_v0  ;;  %v1633_v26 = vmax.f32 %v1601_v56, 0.0  ;;  %v1611_v62 = vmax.f32 %v10890_v29, 0.0 }
 0x355   :  { %1822 = vmatmul.mubr.bf16.gmra.mxu0 %v10876_v33  ;;  %v1612_v46 = vmax.f32 %v1580_v48, 0.0  ;;  %v1543_v44 = vmul.f32 %v10804_v63, %v10882_v20  ;;  %v1649_v41 = vpack.c.bf16 %v1632_v34, %v1631_v54  ;;  %v1471_v33 = vsub.f32 %v10571_v21, %v10772_v30 }
 0x356   :  { %1831 = vmatprep.mubr.bf16.mxu0 %v15617_v57  ;;  %v1634_v22 = vmax.f32 %v1602_v59, 0.0  ;;  %v1472_v31 = vsub.f32 %v10582_v53, %v10772_v30  ;;  %v1581_v36 = vadd.f32 %v10810_v47, %v1542_v6 }
 0x357   :  { %v1505_v32 = vmul.f32 %v10794_v37, %v1471_v33  ;;  %v1639_v27 = vpack.c.bf16 %v1612_v46, %v1611_v62  ;;  %v1582_v29 = vadd.f32 %v10810_v47, %v1543_v44 }
 0x358   :  { %v1650_v11 = vpack.c.bf16 %v1634_v22, %v1633_v26  ;;  %v1506_v4 = vmul.f32 %v10794_v37, %v1472_v31  ;;  %v1613_v20 = vmax.f32 %v1581_v36, 0.0 }
 0x359   :  { %v1614_v35 = vmax.f32 %v1582_v29, 0.0  ;;  %v1544_v21 = vmul.f32 %v10804_v63, %v1505_v32 }
 0x35a   :  { %v1545_v45 = vmul.f32 %v10804_v63, %v1506_v4  ;;  %v1667_v63 = vld [vmem:[%s15625_s17] sm:$0x3] }
 0x35b   :  { %v1640_v53 = vpack.c.bf16 %v1614_v35, %v1613_v20  ;;  %v1583_v30 = vadd.f32 %v10810_v47, %v1544_v21 }
 0x35c   :  { %v1584_v51 = vadd.f32 %v10810_v47, %v1545_v45 }
 0x35d   :  { %1832 = vmatmul.mubr.bf16.gmra.mxu0 %v1639_v27  ;;  %v1615_v58 = vmax.f32 %v1583_v30, 0.0 }
 0x35e   :  { %1841 = vmatprep.mubr.bf16.mxu0 %v15617_v57  ;;  %v1616_v38 = vmax.f32 %v1584_v51, 0.0 }
 0x360   :  { %v1641_v37 = vpack.c.bf16 %v1616_v38, %v1615_v58 }
 0x365   :  { %1842 = vmatmul.mubr.bf16.gmra.mxu0 %v1640_v53 }
 0x366   :  { %1851 = vmatprep.mubr.bf16.mxu0 %v15617_v57 }
 0x36d   :  { %1852 = vmatmul.mubr.bf16.gmra.mxu0 %v1641_v37 }
 0x36e   :  { %1861 = vmatprep.mubr.bf16.mxu0 %v15617_v57 }
 0x375   :  { %1862 = vmatmul.mubr.bf16.gmra.mxu0 %v10896_v61  ;;  %v15626_v61 = vld [vmem:[#allocation146_spill] sm:$0xff] }
 0x376   :  { %1871 = vmatprep.mubr.bf16.mxu0 %v15617_v57 }
 0x37d   :  { %1872 = vmatmul.mubr.bf16.gmra.mxu0 %v10917_v24  ;;  %v11004_v24 = vrot.slane %v1667_v63, %v15626_v61 }
 0x37e   :  { %1881 = vmatprep.mubr.bf16.mxu0 %v15617_v57 }
 0x385   :  { %1882 = vmatmul.mubr.bf16.gmra.mxu0 %v10920_v55 }
 0x386   :  { %1891 = vmatprep.mubr.bf16.mxu0 %v15617_v57 }
 0x38d   :  { %1892 = vmatmul.mubr.bf16.gmra.mxu0 %v10925_v12  ;;  %v15627_v12 = vld [vmem:[#allocation145_spill] sm:$0xff] }
 0x38e   :  { %1901 = vmatprep.mubr.bf16.mxu0 %v15617_v57  ;;  %v11007_v39 = vrot.slane %v1667_v63, %v15627_v12 }
 0x395   :  { %1902 = vmatmul.mubr.bf16.gmra.mxu0 %v10942_v15 }
 0x396   :  { %1911 = vmatprep.mubr.bf16.mxu0 %v15617_v57 }
 0x39d   :  { %1912 = vmatmul.mubr.bf16.gmra.mxu0 %v1647_v40 }
 0x39e   :  { %1921 = vmatprep.mubr.bf16.mxu0 %v15617_v57 }
 0x3a5   :  { %1922 = vmatmul.mubr.bf16.gmra.mxu0 %v1648_v13 }
 0x3a6   :  { %1931 = vmatprep.mubr.bf16.mxu0 %v15617_v57 }
 0x3ad   :  { %1932 = vmatmul.mubr.bf16.gmra.mxu0 %v1649_v41 }
 0x3ae   :  { %1941 = vmatprep.mubr.bf16.mxu0 %v15617_v57 }
 0x3b5   :  { %1942 = vmatmul.mubr.bf16.gmra.mxu0 %v1650_v11 }
 0x3fd   :  { %v1793_v47 = vpop.f32.mrf.mxu0 }
 0x3fe   :  { %v11010_v16 = vadd.f32 %v1793_v47, %v11004_v24 }
 0x3ff   :  { %v1795_v55 = vpop.f32.mrf.mxu0 }
 0x400   :  { %v11016_v50 = vadd.f32 %v1795_v55, %v11007_v39 }
 0x401   :  { %v1797_v19 = vpop.f32.mrf.mxu0 }
 0x402   :  { %v11013_v2 = vadd.f32 %v1797_v19, %v11004_v24 }
 0x403   :  { %v1799_v23 = vpop.f32.mrf.mxu0 }
 0x404   :  { %v1952_v1 = vmax.f32 %v11010_v16, %v11013_v2  ;;  %v11021_v15 = vadd.f32 %v1799_v23, %v11007_v39 }
 0x405   :  { %v1803_v52 = vpop.f32.mrf.mxu0 }
 0x406   :  { %v1953_v28 = vrot.slane %v1952_v1, 4  ;;  %v1959_v25 = vmax.f32 %v11016_v50, %v11021_v15  ;;  %v11026_v42 = vadd.f32 %v1803_v52, %v11004_v24 }
 0x407   :  { %v1805_v43 = vpop.f32.mrf.mxu0 }
 0x408   :  { %v1954_v14 = vmax.f32 %v1952_v1, %v1953_v28  ;;  %v1960_v18 = vrot.slane %v1959_v25, 4  ;;  %v11032_v48 = vadd.f32 %v1805_v43, %v11007_v39 }
 0x409   :  { %v1807_v3 = vpop.f32.mrf.mxu0 }
 0x40a   :  { %v1955_v10 = vrot.slane %v1954_v14, 2  ;;  %v1961_v17 = vmax.f32 %v1959_v25, %v1960_v18  ;;  %v11029_v60 = vadd.f32 %v1807_v3, %v11004_v24 }
 0x40b   :  { %v1809_v49 = vpop.f32.mrf.mxu0 }
 0x40c   :  { %v1956_v9 = vmax.f32 %v1954_v14, %v1955_v10  ;;  %v1962_v5 = vrot.slane %v1961_v17, 2  ;;  %v1966_v7 = vmax.f32 %v11026_v42, %v11029_v60  ;;  %v11037_v8 = vadd.f32 %v1809_v49, %v11007_v39 }
 0x40d   :  { %v1813_v0 = vpop.f32.mrf.mxu0 }
 0x40e   :  { %v1957_v56 = vrot.slane %v1956_v9, 1  ;;  %v1963_v40 = vmax.f32 %v1961_v17, %v1962_v5  ;;  %v1967_v54 = vrot.slane %v1966_v7, 4  ;;  %v1973_v34 = vmax.f32 %v11032_v48, %v11037_v8 }
 0x40f   :  { %v1815_v6 = vpop.f32.mrf.mxu0  ;;  %v11044_v46 = vadd.f32 %v1813_v0, %v11004_v24 }
 0x410   :  { %v11041_v13 = vmax.f32 %v1956_v9, %v1957_v56  ;;  %v1964_v59 = vrot.slane %v1963_v40, 1  ;;  %v1968_v26 = vmax.f32 %v1966_v7, %v1967_v54  ;;  %v1974_v62 = vrot.slane %v1973_v34, 4 }
 0x411   :  { %15628 = vst [vmem:[#allocation148_spill] sm:$0xff] %v11044_v46  ;;  %v1817_v44 = vpop.f32.mrf.mxu0  ;;  %v11052_v32 = vadd.f32 %v1815_v6, %v11007_v39 }
 0x412   :  { %v11046_v41 = vmax.f32 %v1963_v40, %v1964_v59  ;;  %v1969_v33 = vrot.slane %v1968_v26, 2  ;;  %v1975_v22 = vmax.f32 %v1973_v34, %v1974_v62  ;;  %v11049_v31 = vadd.f32 %v1817_v44, %v11004_v24 }
 0x413   :  { %v1819_v11 = vpop.f32.mrf.mxu0 }
 0x414   :  { %15629 = vst [vmem:[#allocation149_spill] sm:$0xff] %v11049_v31  ;;  %v1970_v27 = vmax.f32 %v1968_v26, %v1969_v33  ;;  %v1976_v36 = vrot.slane %v1975_v22, 2  ;;  %v1980_v29 = vmax.f32 %v11044_v46, %v11049_v31  ;;  %v11057_v4 = vadd.f32 %v1819_v11, %v11007_v39 }
 0x415   :  { %v1823_v20 = vpop.f32.mrf.mxu0 }
 0x416   :  { %15630 = vst [vmem:[#allocation150_spill] sm:$0xff] %v11057_v4  ;;  %v1971_v35 = vrot.slane %v1970_v27, 1  ;;  %v1977_v21 = vmax.f32 %v1975_v22, %v1976_v36  ;;  %v1981_v45 = vrot.slane %v1980_v29, 4  ;;  %v1987_v53 = vmax.f32 %v11052_v32, %v11057_v4 }
 0x417   :  { %v1825_v30 = vpop.f32.mrf.mxu0  ;;  %v11064_v63 = vadd.f32 %v1823_v20, %v11004_v24 }
 0x418   :  { %v11061_v51 = vmax.f32 %v1970_v27, %v1971_v35  ;;  %v1978_v58 = vrot.slane %v1977_v21, 1  ;;  %v1982_v38 = vmax.f32 %v1980_v29, %v1981_v45  ;;  %v1988_v37 = vrot.slane %v1987_v53, 4 }
 0x419   :  { %15631 = vst [vmem:[#allocation151_spill] sm:$0xff] %v11064_v63  ;;  %v1827_v47 = vpop.f32.mrf.mxu0  ;;  %v11072_v52 = vadd.f32 %v1825_v30, %v11007_v39 }
 0x41a   :  { %v11066_v55 = vmax.f32 %v1977_v21, %v1978_v58  ;;  %v1983_v19 = vrot.slane %v1982_v38, 2  ;;  %v1989_v23 = vmax.f32 %v1987_v53, %v1988_v37  ;;  %v11069_v1 = vadd.f32 %v1827_v47, %v11004_v24 }
 0x41b   :  { %15633 = vst [vmem:[#allocation153_spill] sm:$0xff] %v11072_v52  ;;  %v1829_v28 = vpop.f32.mrf.mxu0 }
 0x41c   :  { %15632 = vst [vmem:[#allocation152_spill] sm:$0xff] %v11069_v1  ;;  %v1984_v25 = vmax.f32 %v1982_v38, %v1983_v19  ;;  %v1990_v43 = vrot.slane %v1989_v23, 2  ;;  %v1994_v14 = vmax.f32 %v11064_v63, %v11069_v1  ;;  %v11077_v18 = vadd.f32 %v1829_v28, %v11007_v39 }
 0x41d   :  { %v1833_v3 = vpop.f32.mrf.mxu0 }
 0x41e   :  { %15634 = vst [vmem:[#allocation154_spill] sm:$0xff] %v11077_v18  ;;  %v1985_v10 = vrot.slane %v1984_v25, 1  ;;  %v1991_v17 = vmax.f32 %v1989_v23, %v1990_v43  ;;  %v1995_v49 = vrot.slane %v1994_v14, 4  ;;  %v2001_v9 = vmax.f32 %v11072_v52, %v11077_v18 }
 0x41f   :  { %v1835_v5 = vpop.f32.mrf.mxu0  ;;  %v11084_v54 = vadd.f32 %v1833_v3, %v11004_v24 }
 0x420   :  { %v11081_v7 = vmax.f32 %v1984_v25, %v1985_v10  ;;  %v1992_v0 = vrot.slane %v1991_v17, 1  ;;  %v1996_v56 = vmax.f32 %v1994_v14, %v1995_v49  ;;  %v2002_v40 = vrot.slane %v2001_v9, 4 }
 0x421   :  { %15635 = vst [vmem:[#allocation155_spill] sm:$0xff] %v11084_v54  ;;  %v1837_v34 = vpop.f32.mrf.mxu0  ;;  %v11092_v44 = vadd.f32 %v1835_v5, %v11007_v39 }
 0x422   :  { %v11086_v6 = vmax.f32 %v1991_v17, %v1992_v0  ;;  %v1997_v59 = vrot.slane %v1996_v56, 2  ;;  %v2003_v26 = vmax.f32 %v2001_v9, %v2002_v40  ;;  %v11089_v62 = vadd.f32 %v1837_v34, %v11004_v24 }
 0x423   :  { %15637 = vst [vmem:[#allocation157_spill] sm:$0xff] %v11092_v44  ;;  %v1839_v33 = vpop.f32.mrf.mxu0 }
 0x424   :  { %15636 = vst [vmem:[#allocation156_spill] sm:$0xff] %v11089_v62  ;;  %v1998_v22 = vmax.f32 %v1996_v56, %v1997_v59  ;;  %v2004_v11 = vrot.slane %v2003_v26, 2  ;;  %v2008_v27 = vmax.f32 %v11084_v54, %v11089_v62  ;;  %v11097_v36 = vadd.f32 %v1839_v33, %v11007_v39 }
 0x425   :  { %v1843_v29 = vpop.f32.mrf.mxu0 }
 0x426   :  { %15638 = vst [vmem:[#allocation158_spill] sm:$0xff] %v11097_v36  ;;  %v1999_v20 = vrot.slane %v1998_v22, 1  ;;  %v2005_v35 = vmax.f32 %v2003_v26, %v2004_v11  ;;  %v2009_v21 = vrot.slane %v2008_v27, 4  ;;  %v2015_v45 = vmax.f32 %v11092_v44, %v11097_v36 }
 0x427   :  { %v1845_v53 = vpop.f32.mrf.mxu0  ;;  %v11104_v47 = vadd.f32 %v1843_v29, %v11004_v24 }
 0x428   :  { %v11101_v30 = vmax.f32 %v1998_v22, %v1999_v20  ;;  %v2006_v58 = vrot.slane %v2005_v35, 1  ;;  %v2010_v38 = vmax.f32 %v2008_v27, %v2009_v21  ;;  %v2016_v37 = vrot.slane %v2015_v45, 4 }
 0x429   :  { %15639 = vst [vmem:[#allocation159_spill] sm:$0xff] %v11104_v47  ;;  %v1847_v19 = vpop.f32.mrf.mxu0  ;;  %v11112_v14 = vadd.f32 %v1845_v53, %v11007_v39 }
 0x42a   :  { %v11106_v23 = vmax.f32 %v2005_v35, %v2006_v58  ;;  %v2011_v28 = vrot.slane %v2010_v38, 2  ;;  %v2017_v25 = vmax.f32 %v2015_v45, %v2016_v37  ;;  %v11109_v43 = vadd.f32 %v1847_v19, %v11004_v24 }
 0x42b   :  { %15641 = vst [vmem:[#allocation161_spill] sm:$0xff] %v11112_v14  ;;  %v1849_v3 = vpop.f32.mrf.mxu0 }
 0x42c   :  { %15640 = vst [vmem:[#allocation160_spill] sm:$0xff] %v11109_v43  ;;  %v2012_v10 = vmax.f32 %v2010_v38, %v2011_v28  ;;  %v2018_v17 = vrot.slane %v2017_v25, 2  ;;  %v2022_v49 = vmax.f32 %v11104_v47, %v11109_v43  ;;  %v11117_v9 = vadd.f32 %v1849_v3, %v11007_v39 }
 0x42d   :  { %v1853_v5 = vpop.f32.mrf.mxu0 }
 0x42e   :  { %15642 = vst [vmem:[#allocation162_spill] sm:$0xff] %v11117_v9  ;;  %v2013_v0 = vrot.slane %v2012_v10, 1  ;;  %v2019_v56 = vmax.f32 %v2017_v25, %v2018_v17  ;;  %v2023_v40 = vrot.slane %v2022_v49, 4  ;;  %v2029_v34 = vmax.f32 %v11112_v14, %v11117_v9 }
 0x42f   :  { %v1855_v59 = vpop.f32.mrf.mxu0  ;;  %v11124_v27 = vadd.f32 %v1853_v5, %v11004_v24 }
 0x430   :  { %v11121_v26 = vmax.f32 %v2012_v10, %v2013_v0  ;;  %v2020_v33 = vrot.slane %v2019_v56, 1  ;;  %v2024_v22 = vmax.f32 %v2022_v49, %v2023_v40  ;;  %v2030_v11 = vrot.slane %v2029_v34, 4 }
 0x431   :  { %15643 = vst [vmem:[#allocation163_spill] sm:$0xff] %v11124_v27  ;;  %v1857_v29 = vpop.f32.mrf.mxu0  ;;  %v11132_v53 = vadd.f32 %v1855_v59, %v11007_v39 }
 0x432   :  { %v11126_v20 = vmax.f32 %v2019_v56, %v2020_v33  ;;  %v2025_v35 = vrot.slane %v2024_v22, 2  ;;  %v2031_v21 = vmax.f32 %v2029_v34, %v2030_v11  ;;  %v11129_v45 = vadd.f32 %v1857_v29, %v11004_v24 }
 0x433   :  { %15645 = vst [vmem:[#allocation165_spill] sm:$0xff] %v11132_v53  ;;  %v1859_v58 = vpop.f32.mrf.mxu0 }
 0x434   :  { %15644 = vst [vmem:[#allocation164_spill] sm:$0xff] %v11129_v45  ;;  %v2026_v38 = vmax.f32 %v2024_v22, %v2025_v35  ;;  %v2032_v37 = vrot.slane %v2031_v21, 2  ;;  %v2036_v19 = vmax.f32 %v11124_v27, %v11129_v45  ;;  %v11137_v28 = vadd.f32 %v1859_v58, %v11007_v39 }
 0x435   :  { %v1863_v25 = vpop.f32.mrf.mxu0 }
 0x436   :  { %15646 = vst [vmem:[#allocation166_spill] sm:$0xff] %v11137_v28  ;;  %v2027_v3 = vrot.slane %v2026_v38, 1  ;;  %v2033_v10 = vmax.f32 %v2031_v21, %v2032_v37  ;;  %v2037_v17 = vrot.slane %v2036_v19, 4  ;;  %v2043_v49 = vmax.f32 %v11132_v53, %v11137_v28 }
 0x437   :  { %v1865_v5 = vpop.f32.mrf.mxu0  ;;  %v11144_v59 = vadd.f32 %v1863_v25, %v11004_v24 }
 0x438   :  { %v11141_v0 = vmax.f32 %v2026_v38, %v2027_v3  ;;  %v2034_v56 = vrot.slane %v2033_v10, 1  ;;  %v2038_v40 = vmax.f32 %v2036_v19, %v2037_v17  ;;  %v2044_v34 = vrot.slane %v2043_v49, 4 }
 0x439   :  { %15647 = vst [vmem:[#allocation167_spill] sm:$0xff] %v11144_v59  ;;  %v1867_v33 = vpop.f32.mrf.mxu0  ;;  %v11152_v21 = vadd.f32 %v1865_v5, %v11007_v39 }
 0x43a   :  { %v11146_v22 = vmax.f32 %v2033_v10, %v2034_v56  ;;  %v2039_v11 = vrot.slane %v2038_v40, 2  ;;  %v2045_v29 = vmax.f32 %v2043_v49, %v2044_v34  ;;  %v11149_v35 = vadd.f32 %v1867_v33, %v11004_v24 }
 0x43b   :  { %15649 = vst [vmem:[#allocation169_spill] sm:$0xff] %v11152_v21  ;;  %v1869_v58 = vpop.f32.mrf.mxu0 }
 0x43c   :  { %15648 = vst [vmem:[#allocation168_spill] sm:$0xff] %v11149_v35  ;;  %v2040_v38 = vmax.f32 %v2038_v40, %v2039_v11  ;;  %v2046_v37 = vrot.slane %v2045_v29, 2  ;;  %v2050_v19 = vmax.f32 %v11144_v59, %v11149_v35  ;;  %v11157_v25 = vadd.f32 %v1869_v58, %v11007_v39 }
 0x43d   :  { %v1873_v3 = vpop.f32.mrf.mxu0 }
 0x43e   :  { %15650 = vst [vmem:[#allocation170_spill] sm:$0xff] %v11157_v25  ;;  %v2041_v10 = vrot.slane %v2040_v38, 1  ;;  %v2047_v17 = vmax.f32 %v2045_v29, %v2046_v37  ;;  %v2051_v56 = vrot.slane %v2050_v19, 4  ;;  %v2057_v49 = vmax.f32 %v11152_v21, %v11157_v25 }
 0x43f   :  { %v1875_v34 = vpop.f32.mrf.mxu0  ;;  %v11164_v11 = vadd.f32 %v1873_v3, %v11004_v24 }
 0x440   :  { %v11161_v33 = vmax.f32 %v2040_v38, %v2041_v10  ;;  %v2048_v5 = vrot.slane %v2047_v17, 1  ;;  %v2052_v57 = vmax.f32 %v2050_v19, %v2051_v56  ;;  %v2058_v40 = vrot.slane %v2057_v49, 4 }
 0x441   :  { %15651 = vst [vmem:[#allocation171_spill] sm:$0xff] %v11164_v11  ;;  %v1877_v12 = vpop.f32.mrf.mxu0  ;;  %v11172_v37 = vadd.f32 %v1875_v34, %v11007_v39 }
 0x442   :  { %v11166_v61 = vmax.f32 %v2047_v17, %v2048_v5  ;;  %v2053_v58 = vrot.slane %v2052_v57, 2  ;;  %v2059_v35 = vmax.f32 %v2057_v49, %v2058_v40  ;;  %v11169_v29 = vadd.f32 %v1877_v12, %v11004_v24 }
 0x443   :  { %15653 = vst [vmem:[#allocation173_spill] sm:$0xff] %v11172_v37  ;;  %v1879_v59 = vpop.f32.mrf.mxu0 }
 0x444   :  { %15652 = vst [vmem:[#allocation172_spill] sm:$0xff] %v11169_v29  ;;  %v2054_v38 = vmax.f32 %v2052_v57, %v2053_v58  ;;  %v2060_v10 = vrot.slane %v2059_v35, 2  ;;  %v2064_v19 = vmax.f32 %v11164_v11, %v11169_v29  ;;  %v11177_v3 = vadd.f32 %v1879_v59, %v11007_v39 }
 0x445   :  { %v1883_v56 = vpop.f32.mrf.mxu0 }
 0x446   :  { %15654 = vst [vmem:[#allocation174_spill] sm:$0xff] %v11177_v3  ;;  %v2055_v17 = vrot.slane %v2054_v38, 1  ;;  %v2061_v5 = vmax.f32 %v2059_v35, %v2060_v10  ;;  %v2065_v25 = vrot.slane %v2064_v19, 4  ;;  %v2071_v12 = vmax.f32 %v11172_v37, %v11177_v3 }
 0x447   :  { %v1885_v49 = vpop.f32.mrf.mxu0  ;;  %v11184_v58 = vadd.f32 %v1883_v56, %v11004_v24 }
 0x448   :  { %v11181_v40 = vmax.f32 %v2054_v38, %v2055_v17  ;;  %v2062_v34 = vrot.slane %v2061_v5, 1  ;;  %v2066_v21 = vmax.f32 %v2064_v19, %v2065_v25  ;;  %v2072_v57 = vrot.slane %v2071_v12, 4 }
 0x449   :  { %15655 = vst [vmem:[#allocation175_spill] sm:$0xff] %v11184_v58  ;;  %v1887_v29 = vpop.f32.mrf.mxu0  ;;  %v11192_v10 = vadd.f32 %v1885_v49, %v11007_v39 }
 0x44a   :  { %v11186_v11 = vmax.f32 %v2061_v5, %v2062_v34  ;;  %v2067_v59 = vrot.slane %v2066_v21, 2  ;;  %v2073_v45 = vmax.f32 %v2071_v12, %v2072_v57  ;;  %v11189_v35 = vadd.f32 %v1887_v29, %v11004_v24 }
 0x44b   :  { %15657 = vst [vmem:[#allocation177_spill] sm:$0xff] %v11192_v10  ;;  %v1889_v3 = vpop.f32.mrf.mxu0 }
 0x44c   :  { %15656 = vst [vmem:[#allocation176_spill] sm:$0xff] %v11189_v35  ;;  %v2068_v38 = vmax.f32 %v2066_v21, %v2067_v59  ;;  %v2074_v17 = vrot.slane %v2073_v45, 2  ;;  %v2078_v25 = vmax.f32 %v11184_v58, %v11189_v35  ;;  %v11197_v19 = vadd.f32 %v1889_v3, %v11007_v39 }
 0x44d   :  { %v1893_v56 = vpop.f32.mrf.mxu0 }
 0x44e   :  { %15658 = vst [vmem:[#allocation178_spill] sm:$0xff] %v11197_v19  ;;  %v2069_v5 = vrot.slane %v2068_v38, 1  ;;  %v2075_v34 = vmax.f32 %v2073_v45, %v2074_v17  ;;  %v2079_v37 = vrot.slane %v2078_v25, 4  ;;  %v2085_v29 = vmax.f32 %v11192_v10, %v11197_v19 }
 0x44f   :  { %v1895_v12 = vpop.f32.mrf.mxu0  ;;  %v11204_v59 = vadd.f32 %v1893_v56, %v11004_v24 }
 0x450   :  { %v11201_v57 = vmax.f32 %v2068_v38, %v2069_v5  ;;  %v2076_v49 = vrot.slane %v2075_v34, 1  ;;  %v2080_v27 = vmax.f32 %v2078_v25, %v2079_v37  ;;  %v2086_v21 = vrot.slane %v2085_v29, 4 }
 0x451   :  { %15659 = vst [vmem:[#allocation179_spill] sm:$0xff] %v11204_v59  ;;  %v1897_v35 = vpop.f32.mrf.mxu0  ;;  %v11212_v17 = vadd.f32 %v1895_v12, %v11007_v39 }
 0x452   :  { %v11206_v58 = vmax.f32 %v2075_v34, %v2076_v49  ;;  %v2081_v3 = vrot.slane %v2080_v27, 2  ;;  %v2087_v28 = vmax.f32 %v2085_v29, %v2086_v21  ;;  %v11209_v45 = vadd.f32 %v1897_v35, %v11004_v24 }
 0x453   :  { %15661 = vst [vmem:[#allocation181_spill] sm:$0xff] %v11212_v17  ;;  %v1899_v19 = vpop.f32.mrf.mxu0 }
 0x454   :  { %15660 = vst [vmem:[#allocation180_spill] sm:$0xff] %v11209_v45  ;;  %v2082_v38 = vmax.f32 %v2080_v27, %v2081_v3  ;;  %v2088_v5 = vrot.slane %v2087_v28, 2  ;;  %v2092_v37 = vmax.f32 %v11204_v59, %v11209_v45  ;;  %v11217_v25 = vadd.f32 %v1899_v19, %v11007_v39 }
 0x455   :  { %v1903_v56 = vpop.f32.mrf.mxu0 }
 0x456   :  { %15662 = vst [vmem:[#allocation182_spill] sm:$0xff] %v11217_v25  ;;  %v2083_v34 = vrot.slane %v2082_v38, 1  ;;  %v2089_v49 = vmax.f32 %v2087_v28, %v2088_v5  ;;  %v2093_v10 = vrot.slane %v2092_v37, 4  ;;  %v2099_v35 = vmax.f32 %v11212_v17, %v11217_v25 }
 0x457   :  { %v1905_v29 = vpop.f32.mrf.mxu0  ;;  %v11224_v3 = vadd.f32 %v1903_v56, %v11004_v24 }
 0x458   :  { %v11221_v21 = vmax.f32 %v2082_v38, %v2083_v34  ;;  %v2090_v12 = vrot.slane %v2089_v49, 1  ;;  %v2094_v53 = vmax.f32 %v2092_v37, %v2093_v10  ;;  %v2100_v27 = vrot.slane %v2099_v35, 4 }
 0x459   :  { %15663 = vst [vmem:[#allocation183_spill] sm:$0xff] %v11224_v3  ;;  %v1907_v45 = vpop.f32.mrf.mxu0  ;;  %v11232_v5 = vadd.f32 %v1905_v29, %v11007_v39 }
 0x45a   :  { %v11226_v59 = vmax.f32 %v2089_v49, %v2090_v12  ;;  %v2095_v19 = vrot.slane %v2094_v53, 2  ;;  %v2101_v43 = vmax.f32 %v2099_v35, %v2100_v27  ;;  %v11229_v28 = vadd.f32 %v1907_v45, %v11004_v24 }
 0x45b   :  { %15665 = vst [vmem:[#allocation185_spill] sm:$0xff] %v11232_v5  ;;  %v1909_v25 = vpop.f32.mrf.mxu0 }
 0x45c   :  { %15664 = vst [vmem:[#allocation184_spill] sm:$0xff] %v11229_v28  ;;  %v2096_v38 = vmax.f32 %v2094_v53, %v2095_v19  ;;  %v2102_v34 = vrot.slane %v2101_v43, 2  ;;  %v2106_v10 = vmax.f32 %v11224_v3, %v11229_v28  ;;  %v11237_v37 = vadd.f32 %v1909_v25, %v11007_v39 }
 0x45d   :  { %v1913_v56 = vpop.f32.mrf.mxu0 }
 0x45e   :  { %15666 = vst [vmem:[#allocation186_spill] sm:$0xff] %v11237_v37  ;;  %v2097_v49 = vrot.slane %v2096_v38, 1  ;;  %v2103_v12 = vmax.f32 %v2101_v43, %v2102_v34  ;;  %v2107_v17 = vrot.slane %v2106_v10, 4  ;;  %v2113_v45 = vmax.f32 %v11232_v5, %v11237_v37 }
 0x45f   :  { %v1915_v35 = vpop.f32.mrf.mxu0  ;;  %v11244_v19 = vadd.f32 %v1913_v56, %v11004_v24 }
 0x460   :  { %v11241_v27 = vmax.f32 %v2096_v38, %v2097_v49  ;;  %v2104_v29 = vrot.slane %v2103_v12, 1  ;;  %v2108_v47 = vmax.f32 %v2106_v10, %v2107_v17  ;;  %v2114_v53 = vrot.slane %v2113_v45, 4 }
 0x461   :  { %15667 = vst [vmem:[#allocation187_spill] sm:$0xff] %v11244_v19  ;;  %v1917_v28 = vpop.f32.mrf.mxu0  ;;  %v11252_v34 = vadd.f32 %v1915_v35, %v11007_v39 }
 0x462   :  { %v11246_v3 = vmax.f32 %v2103_v12, %v2104_v29  ;;  %v2109_v25 = vrot.slane %v2108_v47, 2  ;;  %v2115_v9 = vmax.f32 %v2113_v45, %v2114_v53  ;;  %v11249_v43 = vadd.f32 %v1917_v28, %v11004_v24 }
 0x463   :  { %15669 = vst [vmem:[#allocation189_spill] sm:$0xff] %v11252_v34  ;;  %v1919_v37 = vpop.f32.mrf.mxu0 }
 0x464   :  { %15668 = vst [vmem:[#allocation188_spill] sm:$0xff] %v11249_v43  ;;  %v2110_v38 = vmax.f32 %v2108_v47, %v2109_v25  ;;  %v2116_v49 = vrot.slane %v2115_v9, 2  ;;  %v2120_v17 = vmax.f32 %v11244_v19, %v11249_v43  ;;  %v11257_v10 = vadd.f32 %v1919_v37, %v11007_v39 }
 0x465   :  { %v1923_v56 = vpop.f32.mrf.mxu0 }
 0x466   :  { %15670 = vst [vmem:[#allocation190_spill] sm:$0xff] %v11257_v10  ;;  %v2111_v12 = vrot.slane %v2110_v38, 1  ;;  %v2117_v29 = vmax.f32 %v2115_v9, %v2116_v49  ;;  %v2121_v5 = vrot.slane %v2120_v17, 4  ;;  %v2127_v28 = vmax.f32 %v11252_v34, %v11257_v10 }
 0x467   :  { %v1925_v45 = vpop.f32.mrf.mxu0  ;;  %v11264_v25 = vadd.f32 %v1923_v56, %v11004_v24 }
 0x468   :  { %v11261_v53 = vmax.f32 %v2110_v38, %v2111_v12  ;;  %v2118_v35 = vrot.slane %v2117_v29, 1  ;;  %v2122_v14 = vmax.f32 %v2120_v17, %v2121_v5  ;;  %v2128_v47 = vrot.slane %v2127_v28, 4 }
 0x469   :  { %15671 = vst [vmem:[#allocation191_spill] sm:$0xff] %v11264_v25  ;;  %v1927_v43 = vpop.f32.mrf.mxu0  ;;  %v11272_v49 = vadd.f32 %v1925_v45, %v11007_v39 }
 0x46a   :  { %v11266_v19 = vmax.f32 %v2117_v29, %v2118_v35  ;;  %v2123_v37 = vrot.slane %v2122_v14, 2  ;;  %v2129_v62 = vmax.f32 %v2127_v28, %v2128_v47  ;;  %v11269_v9 = vadd.f32 %v1927_v43, %v11004_v24 }
 0x46b   :  { %15673 = vst [vmem:[#allocation193_spill] sm:$0xff] %v11272_v49  ;;  %v1929_v10 = vpop.f32.mrf.mxu0 }
 0x46c   :  { %15672 = vst [vmem:[#allocation192_spill] sm:$0xff] %v11269_v9  ;;  %v2124_v38 = vmax.f32 %v2122_v14, %v2123_v37  ;;  %v2130_v12 = vrot.slane %v2129_v62, 2  ;;  %v2134_v5 = vmax.f32 %v11264_v25, %v11269_v9  ;;  %v11277_v17 = vadd.f32 %v1929_v10, %v11007_v39 }
 0x46d   :  { %v1933_v56 = vpop.f32.mrf.mxu0 }
 0x46e   :  { %15674 = vst [vmem:[#allocation194_spill] sm:$0xff] %v11277_v17  ;;  %v2125_v29 = vrot.slane %v2124_v38, 1  ;;  %v2131_v35 = vmax.f32 %v2129_v62, %v2130_v12  ;;  %v2135_v34 = vrot.slane %v2134_v5, 4  ;;  %v2141_v43 = vmax.f32 %v11272_v49, %v11277_v17 }
 0x46f   :  { %v1935_v28 = vpop.f32.mrf.mxu0  ;;  %v11284_v37 = vadd.f32 %v1933_v56, %v11004_v24 }
 0x470   :  { %v11281_v47 = vmax.f32 %v2124_v38, %v2125_v29  ;;  %v2132_v45 = vrot.slane %v2131_v35, 1  ;;  %v2136_v54 = vmax.f32 %v2134_v5, %v2135_v34  ;;  %v2142_v14 = vrot.slane %v2141_v43, 4 }
 0x471   :  { %15675 = vst [vmem:[#allocation195_spill] sm:$0xff] %v11284_v37  ;;  %v1937_v9 = vpop.f32.mrf.mxu0  ;;  %v11292_v12 = vadd.f32 %v1935_v28, %v11007_v39 }
 0x472   :  { %v11286_v25 = vmax.f32 %v2131_v35, %v2132_v45  ;;  %v2137_v10 = vrot.slane %v2136_v54, 2  ;;  %v2143_v36 = vmax.f32 %v2141_v43, %v2142_v14  ;;  %v11289_v62 = vadd.f32 %v1937_v9, %v11004_v24 }
 0x473   :  { %15677 = vst [vmem:[#allocation197_spill] sm:$0xff] %v11292_v12  ;;  %v1939_v17 = vpop.f32.mrf.mxu0 }
 0x474   :  { %15676 = vst [vmem:[#allocation196_spill] sm:$0xff] %v11289_v62  ;;  %v2138_v38 = vmax.f32 %v2136_v54, %v2137_v10  ;;  %v2144_v29 = vrot.slane %v2143_v36, 2  ;;  %v2148_v34 = vmax.f32 %v11284_v37, %v11289_v62  ;;  %v11297_v5 = vadd.f32 %v1939_v17, %v11007_v39 }
 0x475   :  { %v1943_v56 = vpop.f32.mrf.mxu0 }
 0x476   :  { %15678 = vst [vmem:[#allocation198_spill] sm:$0xff] %v11297_v5  ;;  %v2139_v35 = vrot.slane %v2138_v38, 1  ;;  %v2145_v45 = vmax.f32 %v2143_v36, %v2144_v29  ;;  %v2149_v49 = vrot.slane %v2148_v34, 4  ;;  %v2155_v9 = vmax.f32 %v11292_v12, %v11297_v5 }
 0x477   :  { %v1945_v43 = vpop.f32.mrf.mxu0  ;;  %v11304_v10 = vadd.f32 %v1943_v56, %v11004_v24 }
 0x478   :  { %v11301_v14 = vmax.f32 %v2138_v38, %v2139_v35  ;;  %v2146_v28 = vrot.slane %v2145_v45, 1  ;;  %v2150_v44 = vmax.f32 %v2148_v34, %v2149_v49  ;;  %v2156_v54 = vrot.slane %v2155_v9, 4 }
 0x479   :  { %15679 = vst [vmem:[#allocation199_spill] sm:$0xff] %v11304_v10  ;;  %v1947_v62 = vpop.f32.mrf.mxu0  ;;  %v11312_v29 = vadd.f32 %v1945_v43, %v11007_v39 }
 0x47a   :  { %v11306_v37 = vmax.f32 %v2145_v45, %v2146_v28  ;;  %v2151_v17 = vrot.slane %v2150_v44, 2  ;;  %v2157_v1 = vmax.f32 %v2155_v9, %v2156_v54  ;;  %v11309_v36 = vadd.f32 %v1947_v62, %v11004_v24 }
 0x47b   :  { %15681 = vst [vmem:[#allocation201_spill] sm:$0xff] %v11312_v29  ;;  %v1949_v5 = vpop.f32.mrf.mxu0 }
 0x47c   :  { %15680 = vst [vmem:[#allocation200_spill] sm:$0xff] %v11309_v36  ;;  %v2152_v38 = vmax.f32 %v2150_v44, %v2151_v17  ;;  %v2158_v35 = vrot.slane %v2157_v1, 2  ;;  %v2162_v49 = vmax.f32 %v11304_v10, %v11309_v36  ;;  %v11317_v34 = vadd.f32 %v1949_v5, %v11007_v39 }
 0x47e   :  { %15682 = vst [vmem:[#allocation202_spill] sm:$0xff] %v11317_v34  ;;  %v2153_v56 = vrot.slane %v2152_v38, 1  ;;  %v2159_v45 = vmax.f32 %v2157_v1, %v2158_v35  ;;  %v2163_v28 = vrot.slane %v2162_v49, 4  ;;  %v2169_v9 = vmax.f32 %v11312_v29, %v11317_v34 }
 0x480   :  { %v11321_v24 = vmax.f32 %v2152_v38, %v2153_v56  ;;  %v2160_v62 = vrot.slane %v2159_v45, 1  ;;  %v2164_v43 = vmax.f32 %v2162_v49, %v2163_v28  ;;  %v2170_v54 = vrot.slane %v2169_v9, 4 }
 0x482   :  { %v11323_v12 = vmax.f32 %v2159_v45, %v2160_v62  ;;  %v2165_v44 = vrot.slane %v2164_v43, 2  ;;  %v2171_v17 = vmax.f32 %v2169_v9, %v2170_v54 }
 0x484   :  { %v2166_v63 = vmax.f32 %v2164_v43, %v2165_v44  ;;  %v2172_v36 = vrot.slane %v2171_v17, 2 }
 0x486   :  { %v2167_v10 = vrot.slane %v2166_v63, 1  ;;  %v2173_v39 = vmax.f32 %v2171_v17, %v2172_v36 }
 0x488   :  { %v11325_v5 = vmax.f32 %v2166_v63, %v2167_v10  ;;  %v2174_v1 = vrot.slane %v2173_v39, 1 }
 0x48a   :  { %v11327_v35 = vmax.f32 %v2173_v39, %v2174_v1 }
 0x48b   :  { %9561 = dma.done.wait [#allocation5], 8192 }
 0x48c   :  { %9562 = vsyncadd [#allocation5], 4294959104 }
 0x48d   :  { %9563 = dma.done.wait [#allocation5 + $0x1], 8192 }
 0x48e   :  { %9564 = vsyncadd [#allocation5 + $0x1], 4294959104  ;;  %v15683_v38 = vld [vmem:[#allocation110_spill] sm:$0xff]  ;;  %v15684_v49 = vld [vmem:[#allocation108_spill] sm:$0xff]  ;;  %vm2364_vm0 = vcmask 1041409   ;;  %vm2366_vm1 = vcmask 1042434  }
 0x48f   :  { %v7989_v56 = vcombine.high %v15684_v49, %v15683_v38  ;;  %v7988_v45 = vcombine.low %v15684_v49, %v15683_v38  ;;  %v15685_v28 = vld [vmem:[#allocation106_spill] sm:$0xff]  ;;  %v15686_v9 = vld [vmem:[#allocation104_spill] sm:$0xff]  ;;  %v8877_v54 = vld [vmem:[#allocation3 + $0xe4] ss:$16 sps:$4 sm:$0xff]   ;;  %vm2368_vm2 = vcmask 1043459   ;;  %vm2370_vm3 = vcmask 1044484  }
 0x490   :  { %v7985_v62 = vcombine.high %v15686_v9, %v15685_v28  ;;  %v7984_v63 = vcombine.low %v15686_v9, %v15685_v28  ;;  %v15687_v10 = vld [vmem:[#allocation102_spill] sm:$0xff]  ;;  %v15688_v36 = vld [vmem:[#allocation100_spill] sm:$0xff]  ;;  %v8879_v28 = vld [vmem:[#allocation3 + $0xe0] ss:$16 sps:$4 sm:$0xff]   ;;  %3225 = vmatprep.subr.bf16.mxu0 %v8877_v54  ;;  %v2197_v54 = vpack.c.bf16 %v11186_v11, %v11186_v11  ;;  %vm2372_vm4 = vcmask 1045509  }
 0x491   :  { %2723 = vmatprep.subr.bf16.mxu1 %v7989_v56  ;;  %v7981_v43 = vcombine.high %v15688_v36, %v15687_v10  ;;  %v7980_v44 = vcombine.low %v15688_v36, %v15687_v10  ;;  %v15689_v17 = vld [vmem:[#allocation98_spill] sm:$0xff]  ;;  %v15690_v39 = vld [vmem:[#allocation96_spill] sm:$0xff]  ;;  %v2183_v36 = vpack.c.bf16 %v11046_v41, %v11046_v41  ;;  %v8880_v29 = vld [vmem:[#allocation3 + $0xc4] ss:$16 sps:$4 sm:$0xff]   ;;  %3226 = vmatpush1.bf16.msra.mxu0 %v8879_v28  ;;  %vm2374_vm5 = vcmask 1046534  }
 0x492   :  { %2724 = vmatpush1.bf16.msra.mxu1 %v7988_v45  ;;  %v7977_v1 = vcombine.high %v15690_v39, %v15689_v17  ;;  %v7976_v38 = vcombine.low %v15690_v39, %v15689_v17  ;;  %v15691_v49 = vld [vmem:[#allocation94_spill] sm:$0xff]  ;;  %v15692_v56 = vld [vmem:[#allocation92_spill] sm:$0xff]  ;;  %v2185_v17 = vpack.c.bf16 %v11066_v55, %v11066_v55  ;;  %v2189_v39 = vpack.c.bf16 %v11106_v23, %v11106_v23  ;;  %v8883_v23 = vld [vmem:[#allocation3 + $0xa4] ss:$16 sps:$4 sm:$0xff]  }
 0x493   :  { %2725 = vmatprep.subr.bf16.mxu1 %v7985_v62  ;;  %v7973_v45 = vcombine.high %v15692_v56, %v15691_v49  ;;  %v7972_v9 = vcombine.low %v15692_v56, %v15691_v49  ;;  %v15693_v62 = vld [vmem:[#allocation90_spill] sm:$0xff]  ;;  %v2191_v49 = vpack.c.bf16 %v11126_v20, %v11126_v20  ;;  %v8882_v56 = vld [vmem:[#allocation3 + $0xc0] ss:$16 sps:$4 sm:$0xff]   ;;  %v2193_v10 = vpack.c.bf16 %v11146_v22, %v11146_v22 }
 0x494   :  { %v2199_v41 = vpack.c.bf16 %v11206_v58, %v11206_v58  ;;  %v2201_v55 = vpack.c.bf16 %v11226_v59, %v11226_v59  ;;  %3227 = vmatprep.subr.bf16.mxu0 %v8880_v29  ;;  %v2195_v20 = vpack.c.bf16 %v11166_v61, %v11166_v61  ;;  %v2205_v22 = vpack.c.bf16 %v11266_v19, %v11266_v19  ;;  %v8885_v34 = vld [vmem:[#allocation3 + $0xa0] ss:$16 sps:$4 sm:$0xff]  }
 0x495   :  { %v2207_v58 = vpack.c.bf16 %v11286_v25, %v11286_v25  ;;  %v2209_v59 = vpack.c.bf16 %v11306_v37, %v11306_v37  ;;  %v2333_v29 = vunpack.c.l.b16 %v2183_v36  ;;  %v2213_v61 = vpack.c.bf16 %v11327_v35, %v11327_v35  ;;  %3228 = vmatpush1.bf16.msra.mxu0 %v8882_v56  ;;  %v8886_v25 = vld [vmem:[#allocation3 + $0x84] ss:$16 sps:$4 sm:$0xff]  }
 0x496   :  { %2726 = vmatpush1.bf16.msra.mxu1 %v7984_v63  ;;  %v15694_v63 = vld [vmem:[#allocation88_spill] sm:$0xff]  ;;  %v2339_v11 = vunpack.c.l.b16 %v2189_v39  ;;  %v2341_v19 = vunpack.c.l.b16 %v2191_v49  ;;  %v2351_v18 = vunpack.c.l.b16 %v2201_v55  ;;  %3229 = vmatprep.subr.bf16.mxu0 %v8883_v23  ;;  %v2343_v37 = vunpack.c.l.b16 %v2193_v10  ;;  %v8888_v39 = vld [vmem:[#allocation3 + $0x80] ss:$16 sps:$4 sm:$0xff]  }
 0x497   :  { %2727 = vmatprep.subr.bf16.mxu1 %v7981_v43  ;;  %v2187_v43 = vpack.c.bf16 %v11086_v6, %v11086_v6  ;;  %v2203_v6 = vpack.c.bf16 %v11246_v3, %v11246_v3  ;;  %v2211_v3 = vpack.c.bf16 %v11323_v12, %v11323_v12  ;;  %v2345_v31 = vunpack.c.l.b16 %v2195_v20  ;;  %v15697_v55 = vld [vmem:[#allocation84_spill] sm:$0xff] }
 0x498   :  { %v2347_v46 = vunpack.c.l.b16 %v2197_v54  ;;  %v2355_v12 = vunpack.c.l.b16 %v2205_v22  ;;  %v2357_v36 = vunpack.c.l.b16 %v2207_v58  ;;  %v2359_v4 = vunpack.c.l.b16 %v2209_v59  ;;  %v8891_v54 = vld [vmem:[#allocation3 + $0x60] ss:$16 sps:$4 sm:$0xff]  }
 0x499   :  { %v2337_v28 = vunpack.c.l.b16 %v2187_v43  ;;  %v2353_v52 = vunpack.c.l.b16 %v2203_v6  ;;  %v2361_v35 = vunpack.c.l.b16 %v2211_v3  ;;  %3230 = vmatpush1.bf16.msra.mxu0 %v8885_v34  ;;  %v15696_v34 = vld [vmem:[#allocation86_spill] sm:$0xff]  ;;  %vm2376_vm6 = vcmask 1047559  }
 0x49a   :  { %2728 = vmatpush1.bf16.msra.mxu1 %v7980_v44  ;;  %v2335_v44 = vunpack.c.l.b16 %v2185_v17  ;;  %3231 = vmatprep.subr.bf16.mxu0 %v8886_v25  ;;  %v7965_v6 = vcombine.high %v15697_v55, %v15696_v34  ;;  %v15698_v59 = vcombine.low %v15694_v63, %v15693_v62  ;;  %v7964_v3 = vcombine.low %v15697_v55, %v15696_v34 }
 0x49b   :  { %2729 = vmatprep.subr.bf16.mxu1 %v7977_v1  ;;  %v2349_v1 = vunpack.c.l.b16 %v2199_v41 }
 0x49c   :  { %v2378_v17 = vsel %vm2364_vm0, %v2335_v44, %v2333_v29  ;;  %v8892_v29 = vld [vmem:[#allocation3 + $0x44] ss:$16 sps:$4 sm:$0xff]  }
 0x49d   :  { %v2392_v43 = vsel %vm2364_vm0, %v2351_v18, %v2349_v1  ;;  %v2379_v10 = vsel %vm2366_vm1, %v2337_v28, %v2378_v17  ;;  %v15695_v18 = vcombine.high %v15694_v63, %v15693_v62  ;;  %3232 = vmatpush1.bf16.msra.mxu0 %v8888_v39  ;;  %v15700_v28 = vld [vmem:[#allocation80_spill] sm:$0xff]  ;;  %v8895_v63 = vld [vmem:[#allocation3 + $0x24] ss:$16 sps:$4 sm:$0xff]   ;;  %v11424_v39 = vpack.c.bf16 %v11021_v15, %v11016_v50 }
 0x49e   :  { %2730 = vmatpush1.bf16.msra.mxu1 %v7976_v38  ;;  %v2363_v38 = vunpack.c.l.b16 %v2213_v61  ;;  %v2393_v49 = vsel %vm2366_vm1, %v2353_v52, %v2392_v43  ;;  %v2380_v56 = vsel %vm2368_vm2, %v2339_v11, %v2379_v10  ;;  %v15702_v1 = vld [vmem:[#allocation140_spill] sm:$0xff]  ;;  %v2184_v10 = vpack.c.bf16 %v11061_v51, %v11061_v51  ;;  %v8901_v15 = vld [vmem:[#allocation3 + $0x1e4] ss:$16 sps:$4 sm:$0xff]  }
 0x49f   :  { %2731 = vmatprep.subr.bf16.mxu1 %v7973_v45  ;;  %v8889_v45 = vld [vmem:[#allocation3 + $0x64] ss:$16 sps:$4 sm:$0xff]   ;;  %v2394_v41 = vsel %vm2368_vm2, %v2355_v12, %v2393_v49  ;;  %v2381_v23 = vsel %vm2370_vm3, %v2341_v19, %v2380_v56  ;;  %v8894_v19 = vld [vmem:[#allocation3 + $0x40] ss:$16 sps:$4 sm:$0xff]   ;;  %v15704_v17 = vld [vmem:[#allocation136_spill] sm:$0xff]  ;;  %v2198_v49 = vpack.c.bf16 %v11201_v57, %v11201_v57  ;;  %3257 = vmatprep.mubr.bf16.mxu0 %v11424_v39 }
 0x4a0   :  { %v2395_v52 = vsel %vm2370_vm3, %v2357_v36, %v2394_v41  ;;  %3233 = vmatprep.subr.bf16.mxu0 %v8889_v45  ;;  %v8898_v36 = vld [vmem:[#allocation3 + $0x4] ss:$16 sps:$4 sm:$0xff]   ;;  %v2200_v45 = vpack.c.bf16 %v11221_v21, %v11221_v21  ;;  %v8900_v56 = vld [vmem:[#allocation3] ss:$16 sps:$4 sm:$0xff]   ;;  %v15706_v41 = vld [vmem:[#allocation132_spill] sm:$0xff]  ;;  %v2186_v57 = vpack.c.bf16 %v11081_v7, %v11081_v7  ;;  %v2202_v21 = vpack.c.bf16 %v11241_v27, %v11241_v27 }
 0x4a1   :  { %v2396_v20 = vsel %vm2372_vm4, %v2359_v4, %v2395_v52  ;;  %v15699_v4 = vld [vmem:[#allocation82_spill] sm:$0xff]  ;;  %3234 = vmatpush1.bf16.msra.mxu0 %v8891_v54  ;;  %v2334_v34 = vunpack.c.l.b16 %v2184_v10  ;;  %v2348_v55 = vunpack.c.l.b16 %v2198_v49  ;;  %v2204_v7 = vpack.c.bf16 %v11261_v53, %v11261_v53  ;;  %v15708_v54 = vld [vmem:[#allocation128_spill] sm:$0xff] }
 0x4a2   :  { %2732 = vmatpush1.bf16.msra.mxu1 %v7972_v9  ;;  %v2382_v9 = vsel %vm2372_vm4, %v2343_v37, %v2381_v23  ;;  %v2397_v58 = vsel %vm2374_vm5, %v2361_v35, %v2396_v20  ;;  %v7961_v11 = vcombine.high %v15700_v28, %v15699_v4  ;;  %3235 = vmatprep.subr.bf16.mxu0 %v8892_v29  ;;  %v8897_v37 = vld [vmem:[#allocation3 + $0x20] ss:$16 sps:$4 sm:$0xff]   ;;  %v15703_v35 = vld [vmem:[#allocation138_spill] sm:$0xff]  ;;  %v15712_v10 = vld [vmem:[#allocation120_spill] sm:$0xff] }
 0x4a3   :  { %2733 = vmatprep.subr.bf16.mxu1 %v15695_v18  ;;  %v2383_v22 = vsel %vm2374_vm5, %v2345_v31, %v2382_v9  ;;  %v2398_v44 = vsel %vm2376_vm6, %v2363_v38, %v2397_v58  ;;  %v7960_v62 = vcombine.low %v15700_v28, %v15699_v4  ;;  %v8017_v43 = vcombine.high %v15704_v17, %v15703_v35  ;;  %v8903_v23 = vld [vmem:[#allocation3 + $0x1e0] ss:$16 sps:$4 sm:$0xff]   ;;  %v8904_v9 = vld [vmem:[#allocation3 + $0x1c4] ss:$16 sps:$4 sm:$0xff]   ;;  %v15707_v27 = vld [vmem:[#allocation130_spill] sm:$0xff] }
 0x4a4   :  { %v2384_v61 = vsel %vm2376_vm6, %v2347_v46, %v2383_v22  ;;  %v15701_v46 = vld [vmem:[#allocation142_spill] sm:$0xff]  ;;  %v2182_v38 = vpack.c.bf16 %v11041_v13, %v11041_v13  ;;  %v8016_v50 = vcombine.low %v15704_v17, %v15703_v35  ;;  %v2188_v20 = vpack.c.bf16 %v11101_v30, %v11101_v30  ;;  %v8907_v4 = vld [vmem:[#allocation3 + $0x1a4] ss:$16 sps:$4 sm:$0xff]  }
 0x4a5   :  { %v11411_v31 = vpack.c.b16 %v2398_v44, %v2384_v61  ;;  %v8021_v25 = vcombine.high %v15702_v1, %v15701_v46  ;;  %3236 = vmatpush1.bf16.msra.mxu0 %v8894_v19  ;;  %v8020_v12 = vcombine.low %v15702_v1, %v15701_v46  ;;  %v15705_v13 = vld [vmem:[#allocation134_spill] sm:$0xff]  ;;  %v8009_v22 = vcombine.high %v15708_v54, %v15707_v27  ;;  %v8906_v61 = vld [vmem:[#allocation3 + $0x1c0] ss:$16 sps:$4 sm:$0xff]   ;;  %v8910_v35 = vld [vmem:[#allocation3 + $0x184] ss:$16 sps:$4 sm:$0xff]  }
 0x4a6   :  { %2734 = vmatpush1.bf16.msra.mxu1 %v15698_v59  ;;  %3237 = vmatprep.subr.bf16.mxu0 %v8895_v63  ;;  %v8013_v51 = vcombine.high %v15706_v41, %v15705_v13  ;;  %v2332_v18 = vunpack.c.l.b16 %v2182_v38  ;;  %v8012_v52 = vcombine.low %v15706_v41, %v15705_v13  ;;  %v2336_v58 = vunpack.c.l.b16 %v2186_v57  ;;  %v15709_v19 = vld [vmem:[#allocation126_spill] sm:$0xff]  ;;  %v8909_v46 = vld [vmem:[#allocation3 + $0x1a0] ss:$16 sps:$4 sm:$0xff]  }
 0x4a7   :  { %2735 = vmatprep.subr.bf16.mxu1 %v7965_v6  ;;  %2755 = vmatprep.mubr.bf16.mxu1 %v11411_v31  ;;  %v2350_v6 = vunpack.c.l.b16 %v2200_v45  ;;  %v2352_v59 = vunpack.c.l.b16 %v2202_v21  ;;  %v2190_v44 = vpack.c.bf16 %v11121_v26, %v11121_v26  ;;  %v2206_v30 = vpack.c.bf16 %v11281_v47, %v11281_v47  ;;  %v15711_v38 = vld [vmem:[#allocation122_spill] sm:$0xff]  ;;  %v15714_v21 = vld [vmem:[#allocation116_spill] sm:$0xff] }
 0x4a8   :  { %v8008_v53 = vcombine.low %v15708_v54, %v15707_v27  ;;  %v2338_v28 = vunpack.c.l.b16 %v2188_v20  ;;  %v2192_v47 = vpack.c.bf16 %v11141_v0, %v11141_v0  ;;  %v8001_v0 = vcombine.high %v15712_v10, %v15711_v38  ;;  %v15713_v57 = vld [vmem:[#allocation118_spill] sm:$0xff]  ;;  %v15716_v27 = vld [vmem:[#allocation112_spill] sm:$0xff] }
 0x4a9   :  { %3238 = vmatpush1.bf16.msra.mxu0 %v8897_v37  ;;  %v2385_v29 = vsel %vm2364_vm0, %v2350_v6, %v2348_v55  ;;  %v2340_v37 = vunpack.c.l.b16 %v2190_v44  ;;  %v2210_v49 = vpack.c.bf16 %v11321_v24, %v11321_v24  ;;  %v8000_v41 = vcombine.low %v15712_v10, %v15711_v38  ;;  %v8919_v44 = vld [vmem:[#allocation3 + $0x124] ss:$16 sps:$4 sm:$0xff]  }
 0x4aa   :  { %2736 = vmatpush1.bf16.msra.mxu1 %v7964_v3  ;;  %3239 = vmatprep.subr.bf16.mxu0 %v8898_v36  ;;  %v2365_v3 = vsel %vm2364_vm0, %v2334_v34, %v2332_v18  ;;  %v2386_v26 = vsel %vm2366_vm1, %v2352_v59, %v2385_v29  ;;  %v2342_v45 = vunpack.c.l.b16 %v2192_v47  ;;  %v2212_v24 = vpack.c.bf16 %v11325_v5, %v11325_v5  ;;  %v8918_v59 = vld [vmem:[#allocation3 + $0x140] ss:$16 sps:$4 sm:$0xff]  }
 0x4ab   :  { %2737 = vmatprep.subr.bf16.mxu1 %v7961_v11  ;;  %v2354_v11 = vunpack.c.l.b16 %v2204_v7  ;;  %v2367_v1 = vsel %vm2366_vm1, %v2336_v58, %v2365_v3  ;;  %v7997_v18 = vcombine.high %v15714_v21, %v15713_v57  ;;  %v2360_v55 = vunpack.c.l.b16 %v2210_v49  ;;  %v15715_v7 = vld [vmem:[#allocation114_spill] sm:$0xff]  ;;  %v15724_v38 = vld [vmem:[#allocation97_spill] sm:$0xff] }
 0x4ac   :  { %v2369_v17 = vsel %vm2368_vm2, %v2338_v28, %v2367_v1  ;;  %v2362_v5 = vunpack.c.l.b16 %v2212_v24  ;;  %v7993_v54 = vcombine.high %v15716_v27, %v15715_v7  ;;  %v7992_v3 = vcombine.low %v15716_v27, %v15715_v7  ;;  %v15735_v24 = vld [vmem:[#allocation154_spill] sm:$0xff]  ;;  %v15742_v7 = vld [vmem:[#allocation157_spill] sm:$0xff] }
 0x4ad   :  { %3240 = vmatpush1.bf16.msra.mxu0 %v8900_v56  ;;  %v15743_v27 = vld [vmem:[#allocation158_spill] sm:$0xff] }
 0x4ae   :  { %2738 = vmatpush1.bf16.msra.mxu1 %v7960_v62  ;;  %3241 = vmatprep.subr.bf16.mxu0 %v8901_v15  ;;  %v15710_v62 = vld [vmem:[#allocation124_spill] sm:$0xff]  ;;  %v2371_v15 = vsel %vm2370_vm3, %v2340_v37, %v2369_v17  ;;  %v15722_v37 = vld [vmem:[#allocation101_spill] sm:$0xff] }
 0x4af   :  { %2739 = vmatprep.subr.bf16.mxu1 %v8021_v25  ;;  %v8005_v63 = vcombine.high %v15710_v62, %v15709_v19  ;;  %v2208_v25 = vpack.c.bf16 %v11301_v14, %v11301_v14  ;;  %v8004_v36 = vcombine.low %v15710_v62, %v15709_v19  ;;  %v2194_v14 = vpack.c.bf16 %v11161_v33, %v11161_v33  ;;  %v8922_v62 = vld [vmem:[#allocation3 + $0x104] ss:$16 sps:$4 sm:$0xff]  }
 0x4b0   :  { %v2196_v33 = vpack.c.bf16 %v11181_v40, %v11181_v40  ;;  %v2373_v6 = vsel %vm2372_vm4, %v2342_v45, %v2371_v15  ;;  %v7996_v40 = vcombine.low %v15714_v21, %v15713_v57  ;;  %v15728_v45 = vld [vmem:[#allocation91_spill] sm:$0xff] }
 0x4b1   :  { %3242 = vmatpush2.bf16.msra.mxu0 %v8903_v23  ;;  %v2358_v56 = vunpack.c.l.b16 %v2208_v25  ;;  %v2344_v34 = vunpack.c.l.b16 %v2194_v14  ;;  %v15721_v25 = vld [vmem:[#allocation103_spill] sm:$0xff] }
 0x4b2   :  { %2740 = vmatpush2.bf16.msra.mxu1 %v8020_v12  ;;  %3243 = vmatprep.subr.bf16.mxu0 %v8904_v9  ;;  %v2356_v12 = vunpack.c.l.b16 %v2206_v30  ;;  %v8916_v9 = vld [vmem:[#allocation3 + $0x144] ss:$16 sps:$4 sm:$0xff]   ;;  %v2346_v20 = vunpack.c.l.b16 %v2196_v33  ;;  %v7982_v17 = vcombine.low %v15722_v37, %v15721_v25 }
 0x4b3   :  { %2741 = vmatprep.subr.bf16.mxu1 %v8017_v43  ;;  %v2387_v43 = vsel %vm2368_vm2, %v2354_v11, %v2386_v26  ;;  %v15717_v30 = vld [vmem:[#allocation111_spill] sm:$0xff]  ;;  %v15734_v33 = vld [vmem:[#allocation153_spill] sm:$0xff] }
 0x4b4   :  { %v2388_v13 = vsel %vm2370_vm3, %v2356_v12, %v2387_v43  ;;  %v8921_v11 = vld [vmem:[#allocation3 + $0x120] ss:$16 sps:$4 sm:$0xff]   ;;  %v7983_v12 = vcombine.high %v15722_v37, %v15721_v25  ;;  %v11555_v57 = vpack.c.bf16 %v15735_v24, %v15734_v33  ;;  %v15767_v33 = vld [vmem:[#allocation170_spill] sm:$0xff] }
 0x4b5   :  { %3244 = vmatpush2.bf16.msra.mxu0 %v8906_v61  ;;  %v2389_v23 = vsel %vm2372_vm4, %v2358_v56, %v2388_v13  ;;  %v8924_v26 = vld [vmem:[#allocation3 + $0x100] ss:$16 sps:$4 sm:$0xff]   ;;  %v15732_v13 = vld [vmem:[#allocation148_spill] sm:$0xff] }
 0x4b6   :  { %2742 = vmatpush2.bf16.msra.mxu1 %v8016_v50  ;;  %3245 = vmatprep.subr.bf16.mxu0 %v8907_v4  ;;  %v8912_v50 = vld [vmem:[#allocation3 + $0x180] ss:$16 sps:$4 sm:$0xff]   ;;  %v2390_v58 = vsel %vm2374_vm5, %v2360_v55, %v2389_v23 }
 0x4b7   :  { %2743 = vmatprep.subr.bf16.mxu1 %v8013_v51  ;;  %v8913_v51 = vld [vmem:[#allocation3 + $0x164] ss:$16 sps:$4 sm:$0xff]   ;;  %v2391_v61 = vsel %vm2376_vm6, %v2362_v5, %v2390_v58 }
 0x4b8   :  { %v15723_v43 = vld [vmem:[#allocation99_spill] sm:$0xff]  ;;  %v15729_v56 = vld [vmem:[#allocation89_spill] sm:$0xff] }
 0x4b9   :  { %3246 = vmatpush2.bf16.msra.mxu0 %v8909_v46  ;;  %v15720_v46 = vld [vmem:[#allocation105_spill] sm:$0xff]  ;;  %v7979_v10 = vcombine.high %v15724_v38, %v15723_v43  ;;  %v15738_v23 = vld [vmem:[#allocation143_spill] sm:$0xff] }
 0x4ba   :  { %2744 = vmatpush2.bf16.msra.mxu1 %v8012_v52  ;;  %3247 = vmatprep.subr.bf16.mxu0 %v8910_v35  ;;  %v8915_v52 = vld [vmem:[#allocation3 + $0x160] ss:$16 sps:$4 sm:$0xff]   ;;  %v11519_v35 = vpack.c.bf16 %v11037_v8, %v11032_v48 }
 0x4bb   :  { %2745 = vmatprep.subr.bf16.mxu1 %v8009_v22  ;;  %v2375_v22 = vsel %vm2374_vm5, %v2344_v34, %v2373_v6  ;;  %v15726_v48 = vld [vmem:[#allocation93_spill] sm:$0xff]  ;;  %v15744_v58 = vld [vmem:[#allocation139_spill] sm:$0xff] }
 0x4bc   :  { %v2377_v29 = vsel %vm2376_vm6, %v2346_v20, %v2375_v22  ;;  %v15737_v34 = vld [vmem:[#allocation81_spill] sm:$0xff]  ;;  %v15741_v20 = vld [vmem:[#allocation152_spill] sm:$0xff]  ;;  %v15754_v37 = vld [vmem:[#allocation127_spill] sm:$0xff] }
 0x4bd   :  { %3248 = vmatpush2.bf16.msra.mxu0 %v8912_v50  ;;  %v11501_v28 = vpack.c.b16 %v2391_v61, %v2377_v29  ;;  %v7971_v50 = vcombine.high %v15729_v56, %v15728_v45  ;;  %v15746_v61 = vld [vmem:[#allocation135_spill] sm:$0xff] }
 0x4be   :  { %2746 = vmatpush2.bf16.msra.mxu1 %v8008_v53  ;;  %3249 = vmatprep.subr.bf16.mxu0 %v8913_v51  ;;  %v15718_v53 = vld [vmem:[#allocation109_spill] sm:$0xff] }
 0x4bf   :  { %2747 = vmatprep.subr.bf16.mxu1 %v8005_v63  ;;  %v7991_v4 = vcombine.high %v15718_v53, %v15717_v30  ;;  %v7990_v19 = vcombine.low %v15718_v53, %v15717_v30  ;;  %v15719_v63 = vld [vmem:[#allocation107_spill] sm:$0xff] }
 0x4c0   :  { %v7987_v1 = vcombine.high %v15720_v46, %v15719_v63  ;;  %v7986_v47 = vcombine.low %v15720_v46, %v15719_v63  ;;  %v15748_v53 = vld [vmem:[#allocation155_spill] sm:$0xff] }
 0x4c1   :  { %3250 = vmatpush2.bf16.msra.mxu0 %v8915_v52  ;;  %v15739_v52 = vld [vmem:[#allocation141_spill] sm:$0xff] }
 0x4c2   :  { %2748 = vmatpush2.bf16.msra.mxu1 %v8004_v36  ;;  %3251 = vmatprep.subr.bf16.mxu0 %v8916_v9  ;;  %v11515_v36 = vpack.c.bf16 %v11013_v2, %v11010_v16  ;;  %v7978_v16 = vcombine.low %v15724_v38, %v15723_v43  ;;  %v15725_v2 = vld [vmem:[#allocation95_spill] sm:$0xff]  ;;  %v8022_v22 = vcombine.low %v15739_v52, %v15738_v23  ;;  %v15757_v38 = vld [vmem:[#allocation160_spill] sm:$0xff] }
 0x4c3   :  { %2749 = vmatprep.subr.bf16.mxu1 %v8001_v0  ;;  %v7975_v8 = vcombine.high %v15726_v48, %v15725_v2  ;;  %v15727_v0 = vld [vmem:[#allocation150_spill] sm:$0xff]  ;;  %v7974_v49 = vcombine.low %v15726_v48, %v15725_v2  ;;  %v15740_v9 = vld [vmem:[#allocation151_spill] sm:$0xff] }
 0x4c4   :  { %v11537_v14 = vpack.c.bf16 %v15727_v0, %v11052_v32  ;;  %v15731_v32 = vld [vmem:[#allocation85_spill] sm:$0xff]  ;;  %v11569_v5 = vpack.c.bf16 %v15741_v20, %v15740_v9  ;;  %v15756_v43 = vld [vmem:[#allocation159_spill] sm:$0xff]  ;;  %v15759_v2 = vld [vmem:[#allocation166_spill] sm:$0xff] }
 0x4c5   :  { %3252 = vmatpush2.bf16.msra.mxu0 %v8918_v59  ;;  %v15745_v59 = vld [vmem:[#allocation137_spill] sm:$0xff]  ;;  %v15760_v0 = vld [vmem:[#allocation123_spill] sm:$0xff] }
 0x4c6   :  { %2750 = vmatpush2.bf16.msra.mxu1 %v8000_v41  ;;  %3253 = vmatprep.subr.bf16.mxu0 %v8919_v44  ;;  %v15733_v41 = vld [vmem:[#allocation149_spill] sm:$0xff]  ;;  %v8018_v29 = vcombine.low %v15745_v59, %v15744_v58 }
 0x4c7   :  { %2751 = vmatprep.subr.bf16.mxu1 %v7997_v18  ;;  %v11551_v51 = vpack.c.bf16 %v15733_v41, %v15732_v13  ;;  %v15736_v18 = vld [vmem:[#allocation83_spill] sm:$0xff]  ;;  %v15747_v44 = vld [vmem:[#allocation133_spill] sm:$0xff] }
 0x4c8   :  { %v7963_v55 = vcombine.high %v15737_v34, %v15736_v18  ;;  %v7962_v6 = vcombine.low %v15737_v34, %v15736_v18  ;;  %v8015_v30 = vcombine.high %v15747_v44, %v15746_v61  ;;  %v8014_v46 = vcombine.low %v15747_v44, %v15746_v61  ;;  %v15766_v41 = vld [vmem:[#allocation169_spill] sm:$0xff]  ;;  %v15768_v18 = vld [vmem:[#allocation115_spill] sm:$0xff]  ;;  %v15775_v61 = vld [vmem:[#allocation172_spill] sm:$0xff] }
 0x4c9   :  { %3254 = vmatpush2.bf16.msra.mxu0 %v8921_v11  ;;  %v11627_v24 = vpack.c.bf16 %v15767_v33, %v15766_v41  ;;  %v15769_v34 = vld [vmem:[#allocation113_spill] sm:$0xff] }
 0x4ca   :  { %2752 = vmatpush2.bf16.msra.mxu1 %v7996_v40  ;;  %3255 = vmatprep.subr.bf16.mxu0 %v8922_v62  ;;  %v8023_v40 = vcombine.high %v15739_v52, %v15738_v23  ;;  %v15751_v62 = vld [vmem:[#allocation162_spill] sm:$0xff]  ;;  %v15770_v52 = vld [vmem:[#allocation167_spill] sm:$0xff]  ;;  %v15772_v20 = vld [vmem:[#allocation173_spill] sm:$0xff] }
 0x4cb   :  { %2753 = vmatprep.subr.bf16.mxu1 %v7993_v54  ;;  %v11573_v54 = vpack.c.bf16 %v15743_v27, %v15742_v7  ;;  %v8927_v23 = vld [vmem:[#allocation3 + $0xec] ss:$16 sps:$4 sm:$0xff]   ;;  %v15788_v33 = vld [vmem:[#allocation189_spill] sm:$0xff] }
 0x4cc   :  { %v15773_v7 = vld [vmem:[#allocation174_spill] sm:$0xff] }
 0x4cd   :  { %3256 = vmatpush2.bf16.msra.mxu0 %v8924_v26  ;;  %v15753_v26 = vld [vmem:[#allocation129_spill] sm:$0xff]  ;;  %v11643_v27 = vpack.c.bf16 %v15773_v7, %v15772_v20 }
 0x4ce   :  { %2754 = vmatpush2.bf16.msra.mxu1 %v7992_v3  ;;  %v8019_v3 = vcombine.high %v15745_v59, %v15744_v58  ;;  %v8930_v58 = vld [vmem:[#allocation3 + $0xcc] ss:$16 sps:$4 sm:$0xff]   ;;  %v8928_v59 = vld [vmem:[#allocation3 + $0xc8] ss:$16 sps:$4 sm:$0xff]   ;;  %v15792_v7 = vld [vmem:[#allocation193_spill] sm:$0xff] }
 0x4cf   :  { %2766 = vmatprep.subr.bf16.mxu1 %v7991_v4  ;;  %v15749_v4 = vld [vmem:[#allocation156_spill] sm:$0xff] }
 0x4d0   :  { %3258 = vmatmul.mubr.bf16.vlgmr.msra.gmra.mxu0 %v11515_v36  ;;  %v11587_v11 = vpack.c.bf16 %v15749_v4, %v15748_v53  ;;  %v15777_v53 = vld [vmem:[#allocation178_spill] sm:$0xff] }
 0x4d1   :  { %2756 = vmatmul.mubr.bf16.vlgmr.msra.gmra.mxu1 %v11501_v28  ;;  %3267 = vmatprep.mubr.bf16.mxu0 %v11519_v35 }
 0x4d2   :  { %2767 = vmatpush1.bf16.msra.mxu1 %v7990_v19  ;;  %2798 = vmatprep.mubr.bf16.mxu1 %v11411_v31  ;;  %v11533_v31 = vpack.c.bf16 %v11029_v60, %v11026_v42  ;;  %v7970_v42 = vcombine.low %v15729_v56, %v15728_v45  ;;  %v15730_v60 = vld [vmem:[#allocation87_spill] sm:$0xff]  ;;  %v15750_v19 = vld [vmem:[#allocation161_spill] sm:$0xff] }
 0x4d3   :  { %2768 = vmatprep.subr.bf16.mxu1 %v7987_v1  ;;  %v7967_v15 = vcombine.high %v15731_v32, %v15730_v60  ;;  %v7966_v21 = vcombine.low %v15731_v32, %v15730_v60  ;;  %v11591_v63 = vpack.c.bf16 %v15751_v62, %v15750_v19  ;;  %v15752_v1 = vld [vmem:[#allocation131_spill] sm:$0xff]  ;;  %v8931_v19 = vld [vmem:[#allocation3 + $0xa8] ss:$16 sps:$4 sm:$0xff]   ;;  %v8939_v62 = vld [vmem:[#allocation3 + $0x6c] ss:$16 sps:$4 sm:$0xff]  }
 0x4d4   :  { %v8010_v25 = vcombine.low %v15753_v26, %v15752_v1  ;;  %v15764_v32 = vld [vmem:[#allocation163_spill] sm:$0xff] }
 0x4d6   :  { %2769 = vmatpush1.bf16.msra.mxu1 %v7986_v47  ;;  %v8011_v47 = vcombine.high %v15753_v26, %v15752_v1  ;;  %v15779_v1 = vld [vmem:[#allocation176_spill] sm:$0xff] }
 0x4d7   :  { %2770 = vmatprep.subr.bf16.mxu1 %v7983_v12  ;;  %v15755_v12 = vld [vmem:[#allocation125_spill] sm:$0xff] }
 0x4d8   :  { %3268 = vmatmul.mubr.bf16.gmra.mxu0 %v11533_v31 }
 0x4d9   :  { %3277 = vmatprep.mubr.bf16.mxu0 %v11537_v14 }
 0x4da   :  { %2771 = vmatpush1.bf16.msra.mxu1 %v7982_v17  ;;  %v8007_v17 = vcombine.high %v15755_v12, %v15754_v37 }
 0x4db   :  { %2772 = vmatprep.subr.bf16.mxu1 %v7979_v10  ;;  %v11605_v10 = vpack.c.bf16 %v15757_v38, %v15756_v43  ;;  %v8940_v43 = vld [vmem:[#allocation3 + $0x48] ss:$16 sps:$4 sm:$0xff]   ;;  %v8945_v38 = vld [vmem:[#allocation3 + $0x2c] ss:$16 sps:$4 sm:$0xff]  }
 0x4de   :  { %2773 = vmatpush1.bf16.msra.mxu1 %v7978_v16  ;;  %v15758_v16 = vld [vmem:[#allocation165_spill] sm:$0xff] }
 0x4df   :  { %2774 = vmatprep.subr.bf16.mxu1 %v7975_v8  ;;  %v11609_v48 = vpack.c.bf16 %v15759_v2, %v15758_v16  ;;  %v8006_v8 = vcombine.low %v15755_v12, %v15754_v37  ;;  %v8937_v12 = vld [vmem:[#allocation3 + $0x68] ss:$16 sps:$4 sm:$0xff]   ;;  %v15782_v16 = vld [vmem:[#allocation179_spill] sm:$0xff] }
 0x4e0   :  { %3278 = vmatmul.mubr.bf16.gmra.mxu0 %v11551_v51  ;;  %v15783_v2 = vld [vmem:[#allocation180_spill] sm:$0xff] }
 0x4e1   :  { %3287 = vmatprep.mubr.bf16.mxu0 %v11555_v57 }
 0x4e2   :  { %2775 = vmatpush1.bf16.msra.mxu1 %v7974_v49  ;;  %v15761_v49 = vld [vmem:[#allocation121_spill] sm:$0xff] }
 0x4e3   :  { %2776 = vmatprep.subr.bf16.mxu1 %v7971_v50  ;;  %v8003_v45 = vcombine.high %v15761_v49, %v15760_v0  ;;  %v8002_v56 = vcombine.low %v15761_v49, %v15760_v0  ;;  %v15762_v50 = vld [vmem:[#allocation119_spill] sm:$0xff]  ;;  %v15784_v0 = vld [vmem:[#allocation185_spill] sm:$0xff]  ;;  %v15785_v49 = vld [vmem:[#allocation186_spill] sm:$0xff] }
 0x4e6   :  { %2777 = vmatpush1.bf16.msra.mxu1 %v7970_v42  ;;  %v15763_v42 = vld [vmem:[#allocation117_spill] sm:$0xff] }
 0x4e7   :  { %2778 = vmatprep.subr.bf16.mxu1 %v7967_v15  ;;  %v7999_v60 = vcombine.high %v15763_v42, %v15762_v50  ;;  %v15765_v15 = vld [vmem:[#allocation164_spill] sm:$0xff] }
 0x4e8   :  { %3288 = vmatmul.mubr.bf16.gmra.mxu0 %v11569_v5  ;;  %v11623_v13 = vpack.c.bf16 %v15765_v15, %v15764_v32  ;;  %v15786_v32 = vld [vmem:[#allocation183_spill] sm:$0xff]  ;;  %v15787_v15 = vld [vmem:[#allocation184_spill] sm:$0xff] }
 0x4e9   :  { %3297 = vmatprep.mubr.bf16.mxu0 %v11573_v54  ;;  %v11681_v41 = vpack.c.bf16 %v15787_v15, %v15786_v32 }
 0x4ea   :  { %2779 = vmatpush1.bf16.msra.mxu1 %v7966_v21  ;;  %v7998_v21 = vcombine.low %v15763_v42, %v15762_v50  ;;  %v8948_v50 = vld [vmem:[#allocation3 + $0xc] ss:$16 sps:$4 sm:$0xff]   ;;  %v8946_v42 = vld [vmem:[#allocation3 + $0x8] ss:$16 sps:$4 sm:$0xff]  }
 0x4eb   :  { %2780 = vmatprep.subr.bf16.mxu1 %v7963_v55  ;;  %v7995_v55 = vcombine.high %v15769_v34, %v15768_v18 }
 0x4ee   :  { %2781 = vmatpush1.bf16.msra.mxu1 %v7962_v6  ;;  %v7994_v6 = vcombine.low %v15769_v34, %v15768_v18  ;;  %v8949_v34 = vld [vmem:[#allocation3 + $0x1e8] ss:$16 sps:$4 sm:$0xff]  }
 0x4ef   :  { %2782 = vmatprep.subr.bf16.mxu1 %v8023_v40  ;;  %v15771_v40 = vld [vmem:[#allocation168_spill] sm:$0xff] }
 0x4f0   :  { %3298 = vmatmul.mubr.bf16.gmra.mxu0 %v11587_v11  ;;  %v11639_v9 = vpack.c.bf16 %v15771_v40, %v15770_v52  ;;  %v15790_v52 = vld [vmem:[#allocation187_spill] sm:$0xff]  ;;  %v15791_v40 = vld [vmem:[#allocation188_spill] sm:$0xff] }
 0x4f1   :  { %3307 = vmatprep.mubr.bf16.mxu0 %v11591_v63  ;;  %v11691_v20 = vpack.c.bf16 %v15791_v40, %v15790_v52 }
 0x4f2   :  { %2783 = vmatpush2.bf16.msra.mxu1 %v8022_v22  ;;  %v8925_v22 = vld [vmem:[#allocation3 + $0xe8] ss:$16 sps:$4 sm:$0xff]  }
 0x4f3   :  { %2784 = vmatprep.subr.bf16.mxu1 %v8019_v3  ;;  %v8933_v3 = vld [vmem:[#allocation3 + $0xac] ss:$16 sps:$4 sm:$0xff]  }
 0x4f6   :  { %2785 = vmatpush2.bf16.msra.mxu1 %v8018_v29  ;;  %v15774_v29 = vld [vmem:[#allocation171_spill] sm:$0xff] }
 0x4f7   :  { %2786 = vmatprep.subr.bf16.mxu1 %v8015_v30  ;;  %v11651_v44 = vpack.c.bf16 %v15775_v61, %v15774_v29  ;;  %v15776_v30 = vld [vmem:[#allocation177_spill] sm:$0xff]  ;;  %v8958_v29 = vld [vmem:[#allocation3 + $0x188] ss:$16 sps:$4 sm:$0xff]   ;;  %v8963_v61 = vld [vmem:[#allocation3 + $0x16c] ss:$16 sps:$4 sm:$0xff]  }
 0x4f8   :  { %3308 = vmatmul.mubr.bf16.gmra.mxu0 %v11605_v10  ;;  %v11655_v4 = vpack.c.bf16 %v15777_v53, %v15776_v30  ;;  %v15794_v30 = vld [vmem:[#allocation191_spill] sm:$0xff]  ;;  %v15795_v53 = vld [vmem:[#allocation192_spill] sm:$0xff] }
 0x4f9   :  { %3317 = vmatprep.mubr.bf16.mxu0 %v11609_v48 }
 0x4fa   :  { %2787 = vmatpush2.bf16.msra.mxu1 %v8014_v46  ;;  %v15778_v46 = vld [vmem:[#allocation175_spill] sm:$0xff] }
 0x4fb   :  { %2788 = vmatprep.subr.bf16.mxu1 %v8011_v47  ;;  %v11661_v26 = vpack.c.bf16 %v15779_v1, %v15778_v46  ;;  %v15780_v47 = vld [vmem:[#allocation181_spill] sm:$0xff]  ;;  %v8961_v46 = vld [vmem:[#allocation3 + $0x168] ss:$16 sps:$4 sm:$0xff]   ;;  %v8966_v1 = vld [vmem:[#allocation3 + $0x14c] ss:$16 sps:$4 sm:$0xff]  }
 0x4fe   :  { %2789 = vmatpush2.bf16.msra.mxu1 %v8010_v25  ;;  %v15781_v25 = vld [vmem:[#allocation182_spill] sm:$0xff] }
 0x4ff   :  { %2790 = vmatprep.subr.bf16.mxu1 %v8007_v17  ;;  %v11665_v37 = vpack.c.bf16 %v15781_v25, %v15780_v47  ;;  %v8942_v17 = vld [vmem:[#allocation3 + $0x4c] ss:$16 sps:$4 sm:$0xff]   ;;  %v8964_v47 = vld [vmem:[#allocation3 + $0x148] ss:$16 sps:$4 sm:$0xff]  }
 0x500   :  { %3318 = vmatmul.mubr.bf16.gmra.mxu0 %v11623_v13  ;;  %v8969_v25 = vld [vmem:[#allocation3 + $0x12c] ss:$16 sps:$4 sm:$0xff]  }
 0x501   :  { %3327 = vmatprep.mubr.bf16.mxu0 %v11627_v24 }
 0x502   :  { %2791 = vmatpush2.bf16.msra.mxu1 %v8006_v8  ;;  %v11671_v8 = vpack.c.bf16 %v15783_v2, %v15782_v16  ;;  %v15801_v16 = vld [vmem:[#allocation202_spill] sm:$0xff] }
 0x503   :  { %2792 = vmatprep.subr.bf16.mxu1 %v8003_v45  ;;  %v11675_v45 = vpack.c.bf16 %v15785_v49, %v15784_v0  ;;  %v8967_v0 = vld [vmem:[#allocation3 + $0x128] ss:$16 sps:$4 sm:$0xff]   ;;  %v8972_v49 = vld [vmem:[#allocation3 + $0x10c] ss:$16 sps:$4 sm:$0xff]  }
 0x506   :  { %2793 = vmatpush2.bf16.msra.mxu1 %v8002_v56  ;;  %v8943_v56 = vld [vmem:[#allocation3 + $0x28] ss:$16 sps:$4 sm:$0xff]  }
 0x507   :  { %2794 = vmatprep.subr.bf16.mxu1 %v7999_v60  ;;  %v8951_v60 = vld [vmem:[#allocation3 + $0x1ec] ss:$16 sps:$4 sm:$0xff]  }
 0x508   :  { %3328 = vmatmul.mubr.bf16.gmra.mxu0 %v11639_v9 }
 0x509   :  { %3337 = vmatprep.mubr.bf16.mxu0 %v11643_v27 }
 0x50a   :  { %2795 = vmatpush2.bf16.msra.mxu1 %v7998_v21  ;;  %v15789_v21 = vld [vmem:[#allocation190_spill] sm:$0xff] }
 0x50b   :  { %2796 = vmatprep.subr.bf16.mxu1 %v7995_v55  ;;  %v11685_v18 = vpack.c.bf16 %v15789_v21, %v15788_v33  ;;  %v8954_v55 = vld [vmem:[#allocation3 + $0x1cc] ss:$16 sps:$4 sm:$0xff]  }
 0x50e   :  { %2797 = vmatpush2.bf16.msra.mxu1 %v7994_v6  ;;  %v8952_v6 = vld [vmem:[#allocation3 + $0x1c8] ss:$16 sps:$4 sm:$0xff]  }
 0x50f   :  { %3418 = vmatprep.subr.bf16.mxu1 %v8927_v23  ;;  %v8957_v23 = vld [vmem:[#allocation3 + $0x1ac] ss:$16 sps:$4 sm:$0xff]  }
 0x510   :  { %3338 = vmatmul.mubr.bf16.gmra.mxu0 %v11651_v44 }
 0x511   :  { %2799 = vmatmul.mubr.bf16.vlgmr.msra.gmra.mxu1 %v11501_v28  ;;  %v8936_v28 = vld [vmem:[#allocation3 + $0x8c] ss:$16 sps:$4 sm:$0xff]   ;;  %3347 = vmatprep.mubr.bf16.mxu0 %v11655_v4 }
 0x512   :  { %3419 = vmatpush1.bf16.msra.mxu1 %v8925_v22  ;;  %3450 = vmatprep.mubr.bf16.mxu1 %v11424_v39  ;;  %v8934_v39 = vld [vmem:[#allocation3 + $0x88] ss:$16 sps:$4 sm:$0xff]  }
 0x513   :  { %3420 = vmatprep.subr.bf16.mxu1 %v8930_v58  ;;  %v15793_v22 = vld [vmem:[#allocation194_spill] sm:$0xff] }
 0x514   :  { %v11695_v58 = vpack.c.bf16 %v15793_v22, %v15792_v7 }
 0x516   :  { %3421 = vmatpush1.bf16.msra.mxu1 %v8928_v59  ;;  %v8955_v59 = vld [vmem:[#allocation3 + $0x1a8] ss:$16 sps:$4 sm:$0xff]  }
 0x517   :  { %3422 = vmatprep.subr.bf16.mxu1 %v8933_v3  ;;  %v8960_v3 = vld [vmem:[#allocation3 + $0x18c] ss:$16 sps:$4 sm:$0xff]  }
 0x518   :  { %3348 = vmatmul.mubr.bf16.gmra.mxu0 %v11661_v26 }
 0x519   :  { %3357 = vmatprep.mubr.bf16.mxu0 %v11665_v37 }
 0x51a   :  { %3423 = vmatpush1.bf16.msra.mxu1 %v8931_v19  ;;  %v11701_v19 = vpack.c.bf16 %v15795_v53, %v15794_v30  ;;  %v9632_v53 = vmov 1966171168  }
 0x51b   :  { %3424 = vmatprep.subr.bf16.mxu1 %v8936_v28  ;;  %v15796_v28 = vld [vmem:[#allocation197_spill] sm:$0xff] }
 0x51e   :  { %3425 = vmatpush1.bf16.msra.mxu1 %v8934_v39  ;;  %v15797_v39 = vld [vmem:[#allocation198_spill] sm:$0xff] }
 0x51f   :  { %3426 = vmatprep.subr.bf16.mxu1 %v8939_v62  ;;  %v11705_v62 = vpack.c.bf16 %v15797_v39, %v15796_v28  ;;  %v15806_v39 = vld [vmem:[#allocation144_spill] sm:$0xff] }
 0x520   :  { %3358 = vmatmul.mubr.bf16.gmra.mxu0 %v11671_v8 }
 0x521   :  { %3367 = vmatprep.mubr.bf16.mxu0 %v11675_v45 }
 0x522   :  { %3427 = vmatpush1.bf16.msra.mxu1 %v8937_v12  ;;  %v15798_v12 = vld [vmem:[#allocation195_spill] sm:$0xff] }
 0x523   :  { %3428 = vmatprep.subr.bf16.mxu1 %v8942_v17  ;;  %v15799_v17 = vld [vmem:[#allocation196_spill] sm:$0xff] }
 0x526   :  { %3429 = vmatpush1.bf16.msra.mxu1 %v8940_v43  ;;  %v11711_v43 = vpack.c.bf16 %v15799_v17, %v15798_v12 }
 0x527   :  { %3430 = vmatprep.subr.bf16.mxu1 %v8945_v38  ;;  %v15800_v38 = vld [vmem:[#allocation201_spill] sm:$0xff] }
 0x528   :  { %3368 = vmatmul.mubr.bf16.gmra.mxu0 %v11681_v41  ;;  %v11715_v2 = vpack.c.bf16 %v15801_v16, %v15800_v38 }
 0x529   :  { %3377 = vmatprep.mubr.bf16.mxu0 %v11685_v18 }
 0x52a   :  { %3431 = vmatpush1.bf16.msra.mxu1 %v8943_v56  ;;  %v8970_v56 = vld [vmem:[#allocation3 + $0x108] ss:$16 sps:$4 sm:$0xff]  }
 0x52b   :  { %3432 = vmatprep.subr.bf16.mxu1 %v8948_v50  ;;  %v15802_v50 = vld [vmem:[#allocation199_spill] sm:$0xff] }
 0x52e   :  { %3433 = vmatpush1.bf16.msra.mxu1 %v8946_v42  ;;  %v15803_v42 = vld [vmem:[#allocation200_spill] sm:$0xff] }
 0x52f   :  { %3434 = vmatprep.subr.bf16.mxu1 %v8951_v60  ;;  %v11721_v60 = vpack.c.bf16 %v15803_v42, %v15802_v50 }
 0x530   :  { %3378 = vmatmul.mubr.bf16.gmra.mxu0 %v11691_v20 }
 0x531   :  { %3387 = vmatprep.mubr.bf16.mxu0 %v11695_v58 }
 0x532   :  { %3435 = vmatpush2.bf16.msra.mxu1 %v8949_v34 }
 0x533   :  { %3436 = vmatprep.subr.bf16.mxu1 %v8954_v55 }
 0x536   :  { %3437 = vmatpush2.bf16.msra.mxu1 %v8952_v6 }
 0x537   :  { %3438 = vmatprep.subr.bf16.mxu1 %v8957_v23 }
 0x538   :  { %3388 = vmatmul.mubr.bf16.gmra.mxu0 %v11701_v19 }
 0x539   :  { %3397 = vmatprep.mubr.bf16.mxu0 %v11705_v62 }
 0x53a   :  { %3439 = vmatpush2.bf16.msra.mxu1 %v8955_v59 }
 0x53b   :  { %3440 = vmatprep.subr.bf16.mxu1 %v8960_v3 }
 0x53e   :  { %3441 = vmatpush2.bf16.msra.mxu1 %v8958_v29 }
 0x53f   :  { %3442 = vmatprep.subr.bf16.mxu1 %v8963_v61 }
 0x540   :  { %3398 = vmatmul.mubr.bf16.gmra.mxu0 %v11711_v43 }
 0x541   :  { %3407 = vmatprep.mubr.bf16.mxu0 %v11715_v2 }
 0x542   :  { %3443 = vmatpush2.bf16.msra.mxu1 %v8961_v46 }
 0x543   :  { %3444 = vmatprep.subr.bf16.mxu1 %v8966_v1  ;;  %v15808_v1 = vld [vmem:[#allocation147_spill] sm:$0xff] }
 0x546   :  { %3445 = vmatpush2.bf16.msra.mxu1 %v8964_v47 }
 0x547   :  { %3446 = vmatprep.subr.bf16.mxu1 %v8969_v25 }
 0x548   :  { %3408 = vmatmul.mubr.bf16.gmra.mxu0 %v11721_v60 }
 0x54a   :  { %3447 = vmatpush2.bf16.msra.mxu1 %v8967_v0 }
 0x54b   :  { %3448 = vmatprep.subr.bf16.mxu1 %v8972_v49 }
 0x54e   :  { %3449 = vmatpush2.bf16.msra.mxu1 %v8970_v56 }
 0x551   :  { %3451 = vmatmul.mubr.bf16.vlgmr.msra.gmra.mxu1 %v11515_v36  ;;  %v11740_v36 = vld [vmem:[#allocation17] sm:$0xf] }
 0x552   :  { %3460 = vmatprep.mubr.bf16.mxu1 %v11519_v35  ;;  %v15804_v35 = vld [vmem:[#allocation146_spill] sm:$0xff]  ;;  %v2291_v47 = vrot.slane %v11740_v36, %v15808_v1 }
 0x559   :  { %3461 = vmatmul.mubr.bf16.gmra.mxu1 %v11533_v31  ;;  %v2283_v31 = vrot.slane %v11740_v36, %v15804_v35 }
 0x55a   :  { %3470 = vmatprep.mubr.bf16.mxu1 %v11537_v14  ;;  %v15805_v14 = vld [vmem:[#allocation145_spill] sm:$0xff] }
 0x561   :  { %3471 = vmatmul.mubr.bf16.gmra.mxu1 %v11551_v51  ;;  %v2287_v51 = vrot.slane %v11740_v36, %v15805_v14 }
 0x562   :  { %3480 = vmatprep.mubr.bf16.mxu1 %v11555_v57 }
 0x569   :  { %3481 = vmatmul.mubr.bf16.gmra.mxu1 %v11569_v5 }
 0x56a   :  { %3490 = vmatprep.mubr.bf16.mxu1 %v11573_v54 }
 0x571   :  { %3491 = vmatmul.mubr.bf16.gmra.mxu1 %v11587_v11 }
 0x572   :  { %3500 = vmatprep.mubr.bf16.mxu1 %v11591_v63 }
 0x579   :  { %3501 = vmatmul.mubr.bf16.gmra.mxu1 %v11605_v10 }
 0x57a   :  { %3510 = vmatprep.mubr.bf16.mxu1 %v11609_v48 }
 0x581   :  { %3511 = vmatmul.mubr.bf16.gmra.mxu1 %v11623_v13 }
 0x582   :  { %3520 = vmatprep.mubr.bf16.mxu1 %v11627_v24 }
 0x589   :  { %3521 = vmatmul.mubr.bf16.gmra.mxu1 %v11639_v9 }
 0x58a   :  { %3530 = vmatprep.mubr.bf16.mxu1 %v11643_v27 }
 0x590   :  { %v11760_v27 = vpop.f32.mrf.mxu0 }
 0x591   :  { %v2757_v57 = vpop.f32.mrf.mxu1  ;;  %3531 = vmatmul.mubr.bf16.gmra.mxu1 %v11651_v44 }
 0x592   :  { %v11747_v5 = vadd.f32 %v2757_v57, %v2283_v31  ;;  %3540 = vmatprep.mubr.bf16.mxu1 %v11655_v4  ;;  %v11767_v32 = vpop.f32.mrf.mxu0 }
 0x593   :  { %v2759_v54 = vpop.f32.mrf.mxu1 }
 0x594   :  { %v11750_v11 = vadd.f32 %v2759_v54, %v2287_v51  ;;  %v11770_v15 = vpop.f32.mrf.mxu0 }
 0x595   :  { %v2761_v63 = vpop.f32.mrf.mxu1 }
 0x596   :  { %v3619_v10 = vcombine.low %v11747_v5, %v11750_v11  ;;  %v3620_v48 = vcombine.high %v11747_v5, %v11750_v11  ;;  %v11756_v24 = vadd.f32 %v2761_v63, %v2283_v31  ;;  %v11772_v33 = vpop.f32.mrf.mxu0 }
 0x597   :  { %v2763_v13 = vpop.f32.mrf.mxu1 }
 0x598   :  { %v11758_v9 = vadd.f32 %v2763_v13, %v2287_v51  ;;  %v11774_v21 = vpop.f32.mrf.mxu0 }
 0x599   :  { %3541 = vmatmul.mubr.bf16.gmra.mxu1 %v11661_v26 }
 0x59a   :  { %v3687_v44 = vcombine.low %v11756_v24, %v11758_v9  ;;  %v3688_v4 = vcombine.high %v11756_v24, %v11758_v9  ;;  %3550 = vmatprep.mubr.bf16.mxu1 %v11665_v37  ;;  %v11777_v34 = vpop.f32.mrf.mxu0 }
 0x59c   :  { %v11780_v26 = vpop.f32.mrf.mxu0 }
 0x59e   :  { %v11782_v55 = vpop.f32.mrf.mxu0 }
 0x5a0   :  { %v11784_v6 = vpop.f32.mrf.mxu0 }
 0x5a1   :  { %3551 = vmatmul.mubr.bf16.gmra.mxu1 %v11671_v8 }
 0x5a2   :  { %3560 = vmatprep.mubr.bf16.mxu1 %v11675_v45  ;;  %v11787_v37 = vpop.f32.mrf.mxu0 }
 0x5a4   :  { %v11790_v23 = vpop.f32.mrf.mxu0 }
 0x5a6   :  { %v11792_v52 = vpop.f32.mrf.mxu0 }
 0x5a8   :  { %v11794_v8 = vpop.f32.mrf.mxu0 }
 0x5a9   :  { %3561 = vmatmul.mubr.bf16.gmra.mxu1 %v11681_v41 }
 0x5aa   :  { %3570 = vmatprep.mubr.bf16.mxu1 %v11685_v18  ;;  %v11797_v45 = vpop.f32.mrf.mxu0 }
 0x5ac   :  { %v11800_v40 = vpop.f32.mrf.mxu0 }
 0x5ae   :  { %v11802_v7 = vpop.f32.mrf.mxu0 }
 0x5b0   :  { %v11804_v41 = vpop.f32.mrf.mxu0 }
 0x5b1   :  { %3571 = vmatmul.mubr.bf16.gmra.mxu1 %v11691_v20 }
 0x5b2   :  { %3580 = vmatprep.mubr.bf16.mxu1 %v11695_v58  ;;  %v11807_v18 = vpop.f32.mrf.mxu0 }
 0x5b4   :  { %v11810_v22 = vpop.f32.mrf.mxu0 }
 0x5b6   :  { %v11812_v59 = vpop.f32.mrf.mxu0 }
 0x5b8   :  { %v11814_v20 = vpop.f32.mrf.mxu0 }
 0x5b9   :  { %3581 = vmatmul.mubr.bf16.gmra.mxu1 %v11701_v19  ;;  %v3624_v19 = vunpack.c.l.s4 %v9632_v53 }
 0x5ba   :  { %3590 = vmatprep.mubr.bf16.mxu1 %v11705_v62  ;;  %v11817_v58 = vpop.f32.mrf.mxu0  ;;  %v11832_v62 = vsub.s32 3, %v15806_v39 }
 0x5bb   :  { %v3625_v25 = vunpack.c.0.s8 %v3624_v19 }
 0x5bc   :  { %v11820_v3 = vpop.f32.mrf.mxu0  ;;  %15807 = vst [vmem:[#allocation110_spill] sm:$0xff] %v11832_v62  ;;  %v2295_v17 = vrot.slane %v11740_v36, %v11832_v62 }
 0x5be   :  { %v11822_v29 = vpop.f32.mrf.mxu0 }
 0x5c0   :  { %v11824_v61 = vpop.f32.mrf.mxu0 }
 0x5c1   :  { %3591 = vmatmul.mubr.bf16.gmra.mxu1 %v11711_v43 }
 0x5c2   :  { %3600 = vmatprep.mubr.bf16.mxu1 %v11715_v2  ;;  %v11827_v30 = vpop.f32.mrf.mxu0  ;;  %v11845_v2 = vsub.s32 %v3625_v25, %v15806_v39 }
 0x5c4   :  { %v11829_v28 = vpop.f32.mrf.mxu0  ;;  %v3629_v36 = vrot.slane %v3619_v10, %v11845_v2  ;;  %v3636_v57 = vrot.slane %v3620_v48, %v11845_v2  ;;  %v11865_v10 = vld [vmem:[#allocation18] sm:$0xf]  ;;  %v11871_v5 = vrot.slane %v3687_v44, %v11845_v2 }
 0x5c5   :  { %15809 = vst [vmem:[#allocation108_spill] sm:$0xff] %v11865_v10  ;;  %v11901_v9 = vrot.slane %v11865_v10, %v15804_v35 }
 0x5c6   :  { %v11834_v46 = vpop.f32.mrf.mxu0 }
 0x5c7   :  { %15814 = vst [vmem:[#allocation98_spill] sm:$0xff] %v11901_v9 }
 0x5c8   :  { %v11838_v12 = vpop.f32.mrf.mxu0 }
 0x5c9   :  { %3601 = vmatmul.mubr.bf16.gmra.mxu1 %v11721_v60 }
 0x5ca   :  { %v11842_v16 = vpop.f32.mrf.mxu0 }
 0x5cc   :  { %v11847_v56 = vpop.f32.mrf.mxu0 }
 0x5ce   :  { %v11849_v31 = vpop.f32.mrf.mxu0 }
 0x5d0   :  { %v11861_v53 = vpop.f32.mrf.mxu0 }
 0x5d1   :  { %v2800_v43 = vpop.f32.mrf.mxu1 }
 0x5d2   :  { %v2801_v38 = vadd.f32 %v2800_v43, %v2291_v47 }
 0x5d3   :  { %v2802_v0 = vpop.f32.mrf.mxu1 }
 0x5d4   :  { %v2803_v49 = vadd.f32 %v2802_v0, %v2295_v17  ;;  %v11863_v0 = vpop.f32.mrf.mxu0 }
 0x5d5   :  { %v2804_v50 = vpop.f32.mrf.mxu1 }
 0x5d6   :  { %v3621_v42 = vcombine.low %v2801_v38, %v2803_v49  ;;  %v3622_v60 = vcombine.high %v2801_v38, %v2803_v49  ;;  %v2805_v19 = vadd.f32 %v2804_v50, %v2291_v47  ;;  %v11877_v47 = vrot.slane %v3688_v4, %v11845_v2 }
 0x5d7   :  { %v2806_v51 = vpop.f32.mrf.mxu1 }
 0x5d8   :  { %v3643_v54 = vrot.slane %v3621_v42, %v11845_v2  ;;  %v3650_v63 = vrot.slane %v3622_v60, %v11845_v2  ;;  %v2807_v13 = vadd.f32 %v2806_v51, %v2295_v17  ;;  %v11888_v42 = vpop.f32.mrf.mxu0 }
 0x5da   :  { %v3651_v39 = vcombine.low %v3629_v36, %v3643_v54  ;;  %v3652_v25 = vcombine.high %v3629_v36, %v3643_v54  ;;  %v3653_v43 = vcombine.low %v3636_v57, %v3650_v63  ;;  %v3654_v38 = vcombine.high %v3636_v57, %v3650_v63  ;;  %v11917_v54 = vpop.f32.mrf.mxu0 }
 0x5db   :  { %v3689_v11 = vcombine.low %v2805_v19, %v2807_v13  ;;  %v3690_v48 = vcombine.high %v2805_v19, %v2807_v13 }
 0x5dc   :  { %v11880_v17 = vrot.slane %v3651_v39, %v11845_v2  ;;  %v11883_v49 = vrot.slane %v3653_v43, %v11845_v2  ;;  %v11886_v50 = vrot.slane %v3652_v25, %v11845_v2  ;;  %v11891_v44 = vrot.slane %v3654_v38, %v11845_v2 }
 0x5dd   :  { %v11894_v60 = vrot.slane %v3689_v11, %v11845_v2  ;;  %v11897_v24 = vrot.slane %v3690_v48, %v11845_v2  ;;  %v11940_v48 = vpop.f32.mrf.mxu0 }
 0x5de   :  { %15810 = vst [vmem:[#allocation106_spill] sm:$0xff] %v11880_v17  ;;  %15811 = vst [vmem:[#allocation104_spill] sm:$0xff] %v11883_v49  ;;  %v11905_v4 = vcombine.high %v11880_v17, %v11880_v17  ;;  %v11909_v36 = vcombine.high %v11883_v49, %v11883_v49  ;;  %v11913_v51 = vcombine.high %v11886_v50, %v11886_v50 }
 0x5df   :  { %15812 = vst [vmem:[#allocation102_spill] sm:$0xff] %v11886_v50  ;;  %15813 = vst [vmem:[#allocation100_spill] sm:$0xff] %v11891_v44  ;;  %v3758_v57 = vrot.slane %v11880_v17, %v15804_v35  ;;  %v3762_v63 = vrot.slane %v11880_v17, %v15805_v14  ;;  %v3774_v13 = vrot.slane %v11886_v50, %v15804_v35 }
 0x5e0   :  { %15815 = vst [vmem:[#allocation96_spill] sm:$0xff] %v11905_v4  ;;  %15816 = vst [vmem:[#allocation94_spill] sm:$0xff] %v11909_v36  ;;  %v3778_v19 = vrot.slane %v11886_v50, %v15805_v14  ;;  %v11927_v39 = vrot.slane %v11883_v49, %v15804_v35  ;;  %v11931_v25 = vrot.slane %v11905_v4, %v15804_v35 }
 0x5e1   :  { %15817 = vst [vmem:[#allocation92_spill] sm:$0xff] %v11913_v51  ;;  %v3794_v43 = vrot.slane %v11905_v4, %v15805_v14  ;;  %v3826_v38 = vrot.slane %v11883_v49, %v15805_v14  ;;  %v11938_v11 = vadd.f32 %v3758_v57, %v11760_v27  ;;  %15819 = vst [vmem:[#allocation88_spill] sm:$0xff] %v11940_v48 }
 0x5e2   :  { %v11943_v9 = vadd.f32 %v3762_v63, %v11767_v32  ;;  %v11946_v50 = vadd.f32 %v3758_v57, %v11770_v15  ;;  %v11949_v10 = vadd.f32 %v3762_v63, %v11772_v33  ;;  %v11952_v62 = vadd.f32 %v3774_v13, %v11774_v21  ;;  %v11967_v15 = vpop.f32.mrf.mxu0 }
 0x5e3   :  { %15818 = vst [vmem:[#allocation90_spill] sm:$0xff] %v11938_v11  ;;  %v11955_v4 = vadd.f32 %v3778_v19, %v11777_v34  ;;  %v11958_v27 = vadd.f32 %v3774_v13, %v11780_v26  ;;  %v11961_v49 = vadd.f32 %v3778_v19, %v11782_v55  ;;  %v11965_v32 = vadd.f32 %v11931_v25, %v11784_v6 }
 0x5e4   :  { %15820 = vst [vmem:[#allocation86_spill] sm:$0xff] %v11943_v9  ;;  %15821 = vst [vmem:[#allocation84_spill] sm:$0xff] %v11946_v50  ;;  %v11971_v33 = vadd.f32 %v11927_v39, %v11804_v41  ;;  %v4203_v21 = vadd.f32 %v11946_v50, %v11938_v11  ;;  %v4240_v34 = vadd.f32 %v11949_v10, %v11943_v9  ;;  %v11987_v63 = vpop.f32.mrf.mxu0 }
 0x5e5   :  { %15822 = vst [vmem:[#allocation82_spill] sm:$0xff] %v11949_v10  ;;  %15823 = vst [vmem:[#allocation80_spill] sm:$0xff] %v11952_v62  ;;  %v4355_v26 = vmul.f32 %v11938_v11, %v11938_v11  ;;  %v4356_v55 = vmul.f32 %v11943_v9, %v11943_v9  ;;  %v4359_v6 = vmul.f32 %v11946_v50, %v11946_v50 }
 0x5e6   :  { %15824 = vst [vmem:[#allocation142_spill] sm:$0xff] %v11955_v4  ;;  %15825 = vst [vmem:[#allocation140_spill] sm:$0xff] %v11958_v27  ;;  %v4360_v57 = vmul.f32 %v11949_v10, %v11949_v10  ;;  %v4363_v41 = vmul.f32 %v11952_v62, %v11952_v62  ;;  %v4204_v13 = vadd.f32 %v4203_v21, %v11952_v62 }
 0x5e7   :  { %15826 = vst [vmem:[#allocation138_spill] sm:$0xff] %v11961_v49  ;;  %15827 = vst [vmem:[#allocation136_spill] sm:$0xff] %v11967_v15  ;;  %v4241_v19 = vadd.f32 %v4240_v34, %v11955_v4  ;;  %v4364_v11 = vmul.f32 %v11955_v4, %v11955_v4  ;;  %v4367_v9 = vmul.f32 %v11958_v27, %v11958_v27  ;;  %v12001_v15 = vpop.f32.mrf.mxu0 }
 0x5e8   :  { %15828 = vst [vmem:[#allocation134_spill] sm:$0xff] %v11987_v63  ;;  %v4368_v50 = vmul.f32 %v11961_v49, %v11961_v49  ;;  %v4483_v17 = vadd.f32 %v4359_v6, %v4355_v26  ;;  %v4520_v10 = vadd.f32 %v4360_v57, %v4356_v55  ;;  %v11999_v1 = vcombine.high %v11891_v44, %v11891_v44 }
 0x5e9   :  { %15830 = vst [vmem:[#allocation130_spill] sm:$0xff] %v12001_v15  ;;  %v4205_v21 = vadd.f32 %v4204_v13, %v11958_v27  ;;  %v3810_v34 = vrot.slane %v11913_v51, %v15805_v14  ;;  %v3842_v4 = vrot.slane %v11891_v44, %v15805_v14  ;;  %v3858_v62 = vrot.slane %v11909_v36, %v15805_v14  ;;  %v12017_v57 = vpop.f32.mrf.mxu0 }
 0x5ea   :  { %15829 = vst [vmem:[#allocation132_spill] sm:$0xff] %v11999_v1  ;;  %v4484_v63 = vadd.f32 %v4483_v17, %v4363_v41  ;;  %v4521_v26 = vadd.f32 %v4520_v10, %v4364_v11  ;;  %v12012_v55 = vrot.slane %v11999_v1, %v15805_v14  ;;  %v12015_v6 = vadd.f32 %v3794_v43, %v11787_v37 }
 0x5eb   :  { %15832 = vst [vmem:[#allocation126_spill] sm:$0xff] %v12017_v57  ;;  %v12020_v13 = vadd.f32 %v3794_v43, %v11792_v52  ;;  %v12023_v27 = vadd.f32 %v3810_v34, %v11797_v45  ;;  %v12026_v15 = vadd.f32 %v3810_v34, %v11802_v7  ;;  %v12029_v10 = vadd.f32 %v3826_v38, %v11807_v18  ;;  %v12042_v43 = vpop.f32.mrf.mxu0 }
 0x5ec   :  { %15831 = vst [vmem:[#allocation128_spill] sm:$0xff] %v12015_v6  ;;  %v12031_v17 = vadd.f32 %v4484_v63, %v4367_v9  ;;  %v12034_v11 = vadd.f32 %v3826_v38, %v11812_v59  ;;  %v12037_v37 = vadd.f32 %v3842_v4, %v11817_v58  ;;  %v12040_v52 = vadd.f32 %v3842_v4, %v11822_v29 }
 0x5ed   :  { %15833 = vst [vmem:[#allocation124_spill] sm:$0xff] %v12020_v13  ;;  %15834 = vst [vmem:[#allocation122_spill] sm:$0xff] %v12023_v27  ;;  %v12045_v45 = vadd.f32 %v3858_v62, %v11827_v30  ;;  %v12048_v7 = vadd.f32 %v3858_v62, %v11834_v46  ;;  %v12052_v18 = vadd.f32 %v12012_v55, %v11842_v16  ;;  %v12063_v62 = vpop.f32.mrf.mxu0 }
 0x5ee   :  { %15835 = vst [vmem:[#allocation120_spill] sm:$0xff] %v12026_v15  ;;  %15836 = vst [vmem:[#allocation118_spill] sm:$0xff] %v12029_v10  ;;  %v4242_v59 = vadd.f32 %v4241_v19, %v11961_v49  ;;  %v4372_v58 = vmul.f32 %v12015_v6, %v12015_v6  ;;  %v4376_v29 = vmul.f32 %v12020_v13, %v12020_v13 }
 0x5ef   :  { %15837 = vst [vmem:[#allocation116_spill] sm:$0xff] %v12034_v11  ;;  %15838 = vst [vmem:[#allocation114_spill] sm:$0xff] %v12037_v37  ;;  %v4380_v9 = vmul.f32 %v12023_v27, %v12023_v27  ;;  %v4384_v30 = vmul.f32 %v12026_v15, %v12026_v15  ;;  %v4388_v16 = vmul.f32 %v12029_v10, %v12029_v10 }
 0x5f0   :  { %15839 = vst [vmem:[#allocation112_spill] sm:$0xff] %v12040_v52  ;;  %15840 = vst [vmem:[#allocation111_spill] sm:$0xff] %v12042_v43  ;;  %v4243_v46 = vadd.f32 %v4242_v59, %v12015_v6  ;;  %v4392_v4 = vmul.f32 %v12034_v11, %v12034_v11  ;;  %v12072_v38 = vmul.f32 %v12037_v37, %v12037_v37  ;;  %v12090_v59 = vpop.f32.mrf.mxu0 }
 0x5f1   :  { %15841 = vst [vmem:[#allocation109_spill] sm:$0xff] %v12045_v45  ;;  %15842 = vst [vmem:[#allocation107_spill] sm:$0xff] %v12048_v7  ;;  %v12076_v41 = vmul.f32 %v12040_v52, %v12040_v52  ;;  %v12080_v63 = vmul.f32 %v12045_v45, %v12045_v45  ;;  %v12084_v19 = vmul.f32 %v12048_v7, %v12048_v7 }
 0x5f2   :  { %15843 = vst [vmem:[#allocation105_spill] sm:$0xff] %v12052_v18  ;;  %15844 = vst [vmem:[#allocation103_spill] sm:$0xff] %v12063_v62  ;;  %v12088_v34 = vmul.f32 %v12052_v18, %v12052_v18  ;;  %v4244_v6 = vadd.f32 %v4243_v46, %v12020_v13  ;;  %v4522_v49 = vadd.f32 %v4521_v26, %v4368_v50  ;;  %v12109_v50 = vpop.f32.mrf.mxu0 }
 0x5f3   :  { %v3806_v62 = vrot.slane %v11913_v51, %v15804_v35  ;;  %v3838_v43 = vrot.slane %v11891_v44, %v15804_v35  ;;  %v3854_v57 = vrot.slane %v11909_v36, %v15804_v35  ;;  %v3870_v48 = vrot.slane %v11999_v1, %v15804_v35 }
 0x5f4   :  { %15845 = vst [vmem:[#allocation101_spill] sm:$0xff] %v12088_v34  ;;  %v12103_v34 = vadd.f32 %v11931_v25, %v11790_v23  ;;  %v12107_v46 = vadd.f32 %v11927_v39, %v11810_v22  ;;  %v4245_v26 = vadd.f32 %v4244_v6, %v12023_v27  ;;  %v4523_v51 = vadd.f32 %v4522_v49, %v4372_v58  ;;  %v12130_v25 = vpop.f32.mrf.mxu0 }
 0x5f5   :  { %v12113_v44 = vadd.f32 %v3806_v62, %v11794_v8  ;;  %v12116_v36 = vadd.f32 %v3806_v62, %v11800_v40  ;;  %v12119_v1 = vadd.f32 %v3838_v43, %v11814_v20  ;;  %v12122_v23 = vadd.f32 %v3838_v43, %v11820_v3 }
 0x5f6   :  { %15846 = vst [vmem:[#allocation99_spill] sm:$0xff] %v12103_v34  ;;  %v12125_v22 = vadd.f32 %v3854_v57, %v11824_v61  ;;  %v12128_v39 = vadd.f32 %v3854_v57, %v11829_v28  ;;  %v4246_v8 = vadd.f32 %v4245_v26, %v12026_v15  ;;  %v4524_v49 = vadd.f32 %v4523_v51, %v4376_v29  ;;  %v12146_v57 = vpop.f32.mrf.mxu0 }
 0x5f7   :  { %15847 = vst [vmem:[#allocation97_spill] sm:$0xff] %v12113_v44  ;;  %v12134_v40 = vadd.f32 %v3870_v48, %v11838_v12  ;;  %v12137_v20 = vadd.f32 %v3870_v48, %v11847_v56  ;;  %v4206_v3 = vadd.f32 %v4205_v21, %v11965_v32  ;;  %v4371_v61 = vmul.f32 %v11965_v32, %v11965_v32 }
 0x5f8   :  { %v4375_v28 = vmul.f32 %v12103_v34, %v12103_v34  ;;  %v4379_v6 = vmul.f32 %v12113_v44, %v12113_v44  ;;  %v4247_v51 = vadd.f32 %v4246_v8, %v12029_v10  ;;  %v4525_v12 = vadd.f32 %v4524_v49, %v4380_v9  ;;  %v12162_v62 = vpop.f32.mrf.mxu0 }
 0x5f9   :  { %v4383_v56 = vmul.f32 %v12116_v36, %v12116_v36  ;;  %v4387_v48 = vmul.f32 %v11971_v33, %v11971_v33  ;;  %v4207_v21 = vadd.f32 %v4206_v3, %v12103_v34  ;;  %v4391_v43 = vmul.f32 %v12107_v46, %v12107_v46 }
 0x5fa   :  { %v4395_v58 = vmul.f32 %v12119_v1, %v12119_v1  ;;  %v12160_v29 = vmul.f32 %v12122_v23, %v12122_v23  ;;  %v4248_v9 = vadd.f32 %v4247_v51, %v12034_v11  ;;  %v4526_v26 = vadd.f32 %v4525_v12, %v4384_v30  ;;  %v12183_v51 = vpop.f32.mrf.mxu0 }
 0x5fb   :  { %v12167_v8 = vmul.f32 %v12125_v22, %v12125_v22  ;;  %v12171_v49 = vmul.f32 %v12128_v39, %v12128_v39  ;;  %v4208_v3 = vadd.f32 %v4207_v21, %v12113_v44  ;;  %v12176_v10 = vmul.f32 %v12134_v40, %v12134_v40 }
 0x5fc   :  { %v12180_v15 = vmul.f32 %v12137_v20, %v12137_v20  ;;  %v4486_v30 = vadd.f32 %v12031_v17, %v4371_v61  ;;  %v4249_v12 = vadd.f32 %v4248_v9, %v12037_v37  ;;  %v4527_v11 = vadd.f32 %v4526_v26, %v4388_v16  ;;  %v12195_v61 = vpop.f32.mrf.mxu0 }
 0x5fd   :  { %v3719_v27 = vcombine.low %v11871_v5, %v11894_v60  ;;  %v3720_v21 = vcombine.high %v11871_v5, %v11894_v60  ;;  %v4209_v13 = vadd.f32 %v4208_v3, %v12116_v36  ;;  %v3721_v34 = vcombine.low %v11877_v47, %v11897_v24 }
 0x5fe   :  { %v4487_v44 = vadd.f32 %v4486_v30, %v4375_v28  ;;  %v3722_v17 = vcombine.high %v11877_v47, %v11897_v24  ;;  %v4250_v9 = vadd.f32 %v4249_v12, %v12040_v52  ;;  %v4528_v16 = vadd.f32 %v4527_v11, %v4392_v4  ;;  %v12211_v47 = vpop.f32.mrf.mxu0 }
 0x5ff   :  { %v12199_v26 = vrot.slane %v3719_v27, %v11845_v2  ;;  %v12202_v37 = vrot.slane %v3720_v21, %v11845_v2  ;;  %v4210_v5 = vadd.f32 %v4209_v13, %v11971_v33  ;;  %v12206_v28 = vrot.slane %v3721_v34, %v11845_v2 }
 0x600   :  { %v4488_v60 = vadd.f32 %v4487_v44, %v4379_v6  ;;  %v12209_v3 = vrot.slane %v3722_v17, %v11845_v2  ;;  %v4251_v24 = vadd.f32 %v4250_v9, %v12045_v45  ;;  %v4529_v11 = vadd.f32 %v4528_v16, %v12072_v38  ;;  %v12226_v6 = vpop.f32.mrf.mxu0 }
 0x601   :  { %15848 = vst [vmem:[#allocation95_spill] sm:$0xff] %v12199_v26  ;;  %15849 = vst [vmem:[#allocation93_spill] sm:$0xff] %v12202_v37  ;;  %v12217_v27 = vadd.f32 %v12012_v55, %v11849_v31  ;;  %v3886_v13 = vrot.slane %v12199_v26, %v15804_v35  ;;  %v4211_v44 = vadd.f32 %v4210_v5, %v12107_v46 }
 0x602   :  { %15850 = vst [vmem:[#allocation150_spill] sm:$0xff] %v12206_v28  ;;  %15851 = vst [vmem:[#allocation91_spill] sm:$0xff] %v12209_v3  ;;  %v4489_v4 = vadd.f32 %v4488_v60, %v4383_v56  ;;  %v3890_v2 = vrot.slane %v12199_v26, %v15805_v14  ;;  %v3902_v34 = vrot.slane %v12202_v37, %v15804_v35  ;;  %v12242_v9 = vpop.f32.mrf.mxu0 }
 0x603   :  { %15852 = vst [vmem:[#allocation89_spill] sm:$0xff] %v12217_v27  ;;  %v4252_v38 = vadd.f32 %v4251_v24, %v12048_v7  ;;  %v4530_v30 = vadd.f32 %v4529_v11, %v12076_v41  ;;  %v4416_v31 = vmul.f32 %v12217_v27, %v12217_v27  ;;  %v12233_v55 = vadd.f32 %v3886_v13, %v11861_v53  ;;  %v15866_v7 = vld [vmem:[#allocation103_spill] sm:$0xff] }
 0x604   :  { %v4212_v56 = vadd.f32 %v4211_v44, %v12119_v1  ;;  %v4490_v12 = vadd.f32 %v4489_v4, %v4387_v48  ;;  %v12237_v21 = vadd.f32 %v3890_v2, %v11863_v0  ;;  %v12240_v17 = vadd.f32 %v3886_v13, %v11888_v42  ;;  %v12260_v24 = vpop.f32.mrf.mxu0  ;;  %v15855_v13 = vld [vmem:[#allocation88_spill] sm:$0xff] }
 0x605   :  { %v4253_v16 = vadd.f32 %v4252_v38, %v12052_v18  ;;  %v4531_v41 = vadd.f32 %v4530_v30, %v12080_v63  ;;  %v12248_v5 = vmul.f32 %v12233_v55, %v12233_v55  ;;  %v12251_v53 = vadd.f32 %v3890_v2, %v11917_v54  ;;  %v15856_v38 = vld [vmem:[#allocation134_spill] sm:$0xff] }
 0x606   :  { %15853 = vst [vmem:[#allocation87_spill] sm:$0xff] %v12237_v21  ;;  %v4213_v48 = vadd.f32 %v4212_v56, %v12122_v23  ;;  %v4491_v0 = vadd.f32 %v4490_v12, %v4391_v43  ;;  %v4420_v42 = vmul.f32 %v12237_v21, %v12237_v21  ;;  %v12258_v60 = vmul.f32 %v12240_v17, %v12240_v17  ;;  %v12275_v56 = vpop.f32.mrf.mxu0 }
 0x607   :  { %15854 = vst [vmem:[#allocation85_spill] sm:$0xff] %v12251_v53  ;;  %v4532_v63 = vadd.f32 %v4531_v41, %v12084_v19  ;;  %v4254_v11 = vadd.f32 %v4253_v16, %v12217_v27  ;;  %v4424_v54 = vmul.f32 %v12251_v53, %v12251_v53  ;;  %v12267_v44 = vadd.f32 %v3902_v34, %v15855_v13  ;;  %v15857_v19 = vld [vmem:[#allocation101_spill] sm:$0xff] }
 0x608   :  { %v4214_v43 = vadd.f32 %v4213_v48, %v12125_v22  ;;  %v4492_v4 = vadd.f32 %v4491_v0, %v4395_v58  ;;  %v3906_v2 = vrot.slane %v12202_v37, %v15805_v14  ;;  %v12273_v30 = vadd.f32 %v3902_v34, %v15856_v38  ;;  %v15859_v34 = vld [vmem:[#allocation136_spill] sm:$0xff] }
 0x609   :  { %v4533_v12 = vadd.f32 %v4532_v63, %v15857_v19  ;;  %v4255_v16 = vadd.f32 %v4254_v11, %v12237_v21  ;;  %v12281_v41 = vmul.f32 %v12267_v44, %v12267_v44  ;;  %v12285_v48 = vcombine.high %v12199_v26, %v12199_v26  ;;  %v12296_v11 = vpop.f32.mrf.mxu0  ;;  %v15861_v21 = vld [vmem:[#allocation130_spill] sm:$0xff] }
 0x60a   :  { %v4215_v58 = vadd.f32 %v4214_v43, %v12128_v39  ;;  %v4493_v0 = vadd.f32 %v4492_v4, %v12160_v29  ;;  %v12290_v13 = vadd.f32 %v3906_v2, %v15859_v34  ;;  %v12294_v63 = vmul.f32 %v12273_v30, %v12273_v30 }
 0x60b   :  { %15858 = vst [vmem:[#allocation148_spill] sm:$0xff] %v12285_v48  ;;  %v4534_v38 = vadd.f32 %v4533_v12, %v4416_v31  ;;  %v4256_v19 = vadd.f32 %v4255_v16, %v12251_v53  ;;  %v12300_v27 = vadd.f32 %v3906_v2, %v15861_v21  ;;  %v3918_v43 = vrot.slane %v12285_v48, %v15804_v35  ;;  %v15863_v2 = vld [vmem:[#allocation126_spill] sm:$0xff]  ;;  %v12316_v16 = vpop.f32.mrf.mxu0 }
 0x60c   :  { %15860 = vst [vmem:[#allocation149_spill] sm:$0xff] %v12290_v13  ;;  %v4216_v29 = vadd.f32 %v4215_v58, %v12134_v40  ;;  %v4494_v4 = vadd.f32 %v4493_v0, %v12167_v8  ;;  %v4428_v34 = vmul.f32 %v12290_v13, %v12290_v13  ;;  %v3922_v26 = vrot.slane %v12285_v48, %v15805_v14  ;;  %v15864_v0 = vld [vmem:[#allocation111_spill] sm:$0xff] }
 0x60d   :  { %15862 = vst [vmem:[#allocation153_spill] sm:$0xff] %v12300_v27  ;;  %v4535_v18 = vadd.f32 %v4534_v38, %v4420_v42  ;;  %v4257_v31 = vadd.f32 %v4256_v19, %v12290_v13  ;;  %v4432_v21 = vmul.f32 %v12300_v27, %v12300_v27  ;;  %v12314_v12 = vadd.f32 %v3918_v43, %v15863_v2 }
 0x60e   :  { %v4217_v58 = vadd.f32 %v4216_v29, %v12137_v20  ;;  %v4495_v8 = vadd.f32 %v4494_v4, %v12171_v49  ;;  %v12321_v53 = vadd.f32 %v3922_v26, %v15864_v0  ;;  %v12324_v48 = vadd.f32 %v3918_v43, %v15866_v7 }
 0x60f   :  { %v4536_v42 = vadd.f32 %v4535_v18, %v4424_v54  ;;  %v4258_v38 = vadd.f32 %v4257_v31, %v12300_v27  ;;  %v4435_v19 = vmul.f32 %v12314_v12, %v12314_v12  ;;  %v12330_v2 = vadd.f32 %v3922_v26, %v12090_v59  ;;  %v12345_v26 = vpop.f32.mrf.mxu0 }
 0x610   :  { %15865 = vst [vmem:[#allocation154_spill] sm:$0xff] %v12321_v53  ;;  %v4496_v13 = vadd.f32 %v4495_v8, %v12176_v10  ;;  %v4218_v29 = vadd.f32 %v4217_v58, %v12233_v55  ;;  %v4436_v49 = vmul.f32 %v12321_v53, %v12321_v53  ;;  %v4439_v7 = vmul.f32 %v12324_v48, %v12324_v48 }
 0x611   :  { %15867 = vst [vmem:[#allocation83_spill] sm:$0xff] %v12330_v2  ;;  %v4537_v43 = vadd.f32 %v4536_v42, %v4428_v34  ;;  %v4259_v18 = vadd.f32 %v4258_v38, %v12321_v53  ;;  %v4440_v54 = vmul.f32 %v12330_v2, %v12330_v2  ;;  %v12343_v59 = vcombine.high %v12202_v37, %v12202_v37 }
 0x612   :  { %v4497_v10 = vadd.f32 %v4496_v13, %v12180_v15  ;;  %v4219_v4 = vadd.f32 %v4218_v29, %v12240_v17  ;;  %v3950_v31 = vrot.slane %v12206_v28, %v15804_v35  ;;  %v3954_v34 = vrot.slane %v12206_v28, %v15805_v14 }
 0x613   :  { %15868 = vst [vmem:[#allocation81_spill] sm:$0xff] %v12343_v59  ;;  %v4538_v58 = vadd.f32 %v4537_v43, %v4432_v21  ;;  %v4260_v8 = vadd.f32 %v4259_v18, %v12330_v2  ;;  %v3934_v0 = vrot.slane %v12343_v59, %v15804_v35  ;;  %v3938_v42 = vrot.slane %v12343_v59, %v15805_v14  ;;  %v12375_v59 = vpop.f32.mrf.mxu0 }
 0x614   :  { %v4498_v38 = vadd.f32 %v4497_v10, %v12248_v5  ;;  %v4220_v15 = vadd.f32 %v4219_v4, %v12267_v44  ;;  %v12361_v13 = vadd.f32 %v3950_v31, %v12183_v51  ;;  %v12364_v29 = vadd.f32 %v3954_v34, %v12195_v61  ;;  %v12377_v5 = vpop.f32.mrf.mxu1 }
 0x615   :  { %v4539_v37 = vadd.f32 %v4538_v58, %v4436_v49  ;;  %v12367_v21 = vadd.f32 %v3934_v0, %v12109_v50  ;;  %v12370_v43 = vadd.f32 %v3938_v42, %v12130_v25  ;;  %v12373_v18 = vadd.f32 %v3934_v0, %v12146_v57 }
 0x616   :  { %15869 = vst [vmem:[#allocation143_spill] sm:$0xff] %v12361_v13  ;;  %15870 = vst [vmem:[#allocation141_spill] sm:$0xff] %v12364_v29  ;;  %v4499_v51 = vadd.f32 %v4498_v38, %v12258_v60  ;;  %v4221_v10 = vadd.f32 %v4220_v15, %v12273_v30  ;;  %v12382_v61 = vadd.f32 %v3938_v42, %v12162_v62  ;;  %v12393_v58 = vpop.f32.mrf.mxu1  ;;  %v3405_v15 = vpop.f32.mrf.mxu0 }
 0x617   :  { %15871 = vst [vmem:[#allocation151_spill] sm:$0xff] %v12367_v21  ;;  %15872 = vst [vmem:[#allocation152_spill] sm:$0xff] %v12370_v43  ;;  %v12386_v50 = vmul.f32 %v12361_v13, %v12361_v13  ;;  %v4540_v25 = vadd.f32 %v4539_v37, %v4440_v54  ;;  %v4443_v57 = vmul.f32 %v12367_v21, %v12367_v21 }
 0x618   :  { %15873 = vst [vmem:[#allocation157_spill] sm:$0xff] %v12373_v18  ;;  %15874 = vst [vmem:[#allocation158_spill] sm:$0xff] %v12382_v61  ;;  %v4261_v49 = vadd.f32 %v4260_v8, %v12370_v43  ;;  %v4444_v4 = vmul.f32 %v12370_v43, %v12370_v43  ;;  %v4500_v60 = vadd.f32 %v4499_v51, %v12281_v41  ;;  %v12407_v43 = vpop.f32.mrf.mxu1 }
 0x619   :  { %v4222_v62 = vadd.f32 %v4221_v10, %v12314_v12  ;;  %v4447_v0 = vmul.f32 %v12373_v18, %v12373_v18  ;;  %v4448_v37 = vmul.f32 %v12382_v61, %v12382_v61  ;;  %v4452_v8 = vmul.f32 %v12364_v29, %v12364_v29 }
 0x61a   :  { %v4541_v54 = vadd.f32 %v4540_v25, %v4444_v4  ;;  %v4262_v42 = vadd.f32 %v4261_v49, %v12382_v61  ;;  %v12405_v38 = vadd.f32 %v3950_v31, %v12211_v47  ;;  %v4501_v41 = vadd.f32 %v4500_v60, %v12294_v63  ;;  %v12421_v61 = vpop.f32.mrf.mxu1 }
 0x61b   :  { %v4223_v51 = vadd.f32 %v4222_v62, %v12324_v48  ;;  %v12412_v10 = vadd.f32 %v3954_v34, %v12226_v6  ;;  %v3966_v25 = vrot.slane %v12209_v3, %v15804_v35  ;;  %v3970_v31 = vrot.slane %v12209_v3, %v15805_v14 }
 0x61c   :  { %15875 = vst [vmem:[#allocation139_spill] sm:$0xff] %v12405_v38  ;;  %v4542_v49 = vadd.f32 %v4541_v54, %v4448_v37  ;;  %v4263_v4 = vadd.f32 %v4262_v42, %v12364_v29  ;;  %v4455_v47 = vmul.f32 %v12405_v38, %v12405_v38  ;;  %v4502_v63 = vadd.f32 %v4501_v41, %v4435_v19  ;;  %v3409_v29 = vpop.f32.mrf.mxu0  ;;  %v12436_v2 = vpop.f32.mrf.mxu1 }
 0x61d   :  { %15876 = vst [vmem:[#allocation137_spill] sm:$0xff] %v12412_v10  ;;  %v4224_v60 = vadd.f32 %v4223_v51, %v12367_v21  ;;  %v4456_v6 = vmul.f32 %v12412_v10, %v12412_v10  ;;  %v12427_v34 = vadd.f32 %v3966_v25, %v12242_v9  ;;  %v12431_v54 = vadd.f32 %v3970_v31, %v12260_v24 }
 0x61e   :  { %v4543_v62 = vadd.f32 %v4542_v49, %v4452_v8  ;;  %v4264_v37 = vadd.f32 %v4263_v4, %v12412_v10  ;;  %v12434_v42 = vadd.f32 %v3966_v25, %v12275_v56  ;;  %v4503_v19 = vadd.f32 %v4502_v63, %v4439_v7  ;;  %v12449_v25 = vpop.f32.mrf.mxu1 }
 0x61f   :  { %15877 = vst [vmem:[#allocation135_spill] sm:$0xff] %v12427_v34  ;;  %15878 = vst [vmem:[#allocation133_spill] sm:$0xff] %v12431_v54  ;;  %v4225_v41 = vadd.f32 %v4224_v60, %v12373_v18  ;;  %v4459_v51 = vmul.f32 %v12427_v34, %v12427_v34  ;;  %v12442_v9 = vadd.f32 %v3970_v31, %v12296_v11 }
 0x620   :  { %15879 = vst [vmem:[#allocation155_spill] sm:$0xff] %v12434_v42  ;;  %v4544_v8 = vadd.f32 %v4543_v62, %v4456_v6  ;;  %v4265_v49 = vadd.f32 %v4264_v37, %v12431_v54  ;;  %v4460_v24 = vmul.f32 %v12431_v54, %v12431_v54  ;;  %v4463_v56 = vmul.f32 %v12434_v42, %v12434_v42  ;;  %v15883_v62 = vld [vmem:[#allocation147_spill] sm:$0xff]  ;;  %v15884_v37 = vld [vmem:[#allocation106_spill] sm:$0xff] }
 0x621   :  { %15880 = vst [vmem:[#allocation156_spill] sm:$0xff] %v12442_v9  ;;  %v4504_v7 = vadd.f32 %v4503_v19, %v4443_v57  ;;  %v4226_v4 = vadd.f32 %v4225_v41, %v12361_v13  ;;  %v4464_v63 = vmul.f32 %v12442_v9, %v12442_v9  ;;  %v12456_v11 = vcombine.high %v12206_v28, %v12206_v28  ;;  %v3411_v57 = vpop.f32.mrf.mxu0  ;;  %v12465_v19 = vpop.f32.mrf.mxu1 }
 0x622   :  { %v4545_v31 = vadd.f32 %v4544_v8, %v4460_v24  ;;  %v4266_v60 = vadd.f32 %v4265_v49, %v12442_v9  ;;  %v12461_v6 = vcombine.high %v12209_v3, %v12209_v3  ;;  %v3766_v54 = vrot.slane %v15884_v37, %v15883_v62 }
 0x623   :  { %15881 = vst [vmem:[#allocation161_spill] sm:$0xff] %v12456_v11  ;;  %v4505_v41 = vadd.f32 %v4504_v7, %v4447_v0  ;;  %v4227_v10 = vadd.f32 %v4226_v4, %v12405_v38  ;;  %v3982_v28 = vrot.slane %v12456_v11, %v15804_v35  ;;  %v3986_v8 = vrot.slane %v12456_v11, %v15805_v14  ;;  %v12479_v53 = vpop.f32.mrf.mxu1  ;;  %v3413_v27 = vpop.f32.mrf.mxu0 }
 0x624   :  { %15882 = vst [vmem:[#allocation162_spill] sm:$0xff] %v12461_v6  ;;  %v4546_v49 = vadd.f32 %v4545_v31, %v4464_v63  ;;  %v3998_v24 = vrot.slane %v12461_v6, %v15804_v35  ;;  %v12475_v3 = vadd.f32 %v3766_v54, %v12377_v5  ;;  %v4002_v9 = vrot.slane %v12461_v6, %v15805_v14 }
 0x625   :  { %v4506_v0 = vadd.f32 %v4505_v41, %v12386_v50  ;;  %v4228_v7 = vadd.f32 %v4227_v10, %v12427_v34  ;;  %v12484_v4 = vadd.f32 %v3982_v28, %v12316_v16  ;;  %v12487_v63 = vadd.f32 %v3986_v8, %v12345_v26  ;;  %v12498_v50 = vpop.f32.mrf.mxu1  ;;  %v3415_v13 = vpop.f32.mrf.mxu0 }
 0x626   :  { %15885 = vst [vmem:[#allocation131_spill] sm:$0xff] %v12475_v3  ;;  %v12490_v31 = vadd.f32 %v3982_v28, %v12375_v59  ;;  %v12492_v5 = vadd.f32 %v3986_v8, %v3405_v15  ;;  %v12494_v11 = vadd.f32 %v3998_v24, %v3409_v29  ;;  %v4357_v6 = vmul.f32 %v12475_v3, %v12475_v3  ;;  %v5057_v28 = vld [vmem:[#allocation20] sm:$0xf] }
 0x627   :  { %15886 = vst [vmem:[#allocation129_spill] sm:$0xff] %v12484_v4  ;;  %15887 = vst [vmem:[#allocation127_spill] sm:$0xff] %v12487_v63  ;;  %v4507_v10 = vadd.f32 %v4506_v0, %v4455_v47  ;;  %v4229_v16 = vadd.f32 %v4228_v7, %v12434_v42  ;;  %v4467_v26 = vmul.f32 %v12484_v4, %v12484_v4  ;;  %v12512_v8 = vpop.f32.mrf.mxu1 }
 0x628   :  { %15888 = vst [vmem:[#allocation125_spill] sm:$0xff] %v12490_v31  ;;  %15889 = vst [vmem:[#allocation159_spill] sm:$0xff] %v12494_v11  ;;  %v4267_v41 = vadd.f32 %v4266_v60, %v12487_v63  ;;  %v4468_v59 = vmul.f32 %v12487_v63, %v12487_v63  ;;  %v4471_v29 = vmul.f32 %v12490_v31, %v12490_v31  ;;  %v15890_v63 = vld [vmem:[#allocation110_spill] sm:$0xff] }
 0x629   :  { %v4472_v15 = vmul.f32 %v12492_v5, %v12492_v5  ;;  %v4475_v47 = vmul.f32 %v12494_v11, %v12494_v11  ;;  %v4508_v0 = vadd.f32 %v4507_v10, %v4459_v51  ;;  %v4230_v7 = vadd.f32 %v4229_v16, %v12484_v4  ;;  %v12525_v18 = vpop.f32.mrf.mxu1 }
 0x62a   :  { %v4268_v60 = vadd.f32 %v4267_v41, %v12492_v5  ;;  %v12516_v45 = vadd.f32 %v4002_v9, %v3411_v57  ;;  %v4547_v52 = vadd.f32 %v4546_v49, %v4468_v59  ;;  %v3770_v42 = vrot.slane %v15884_v37, %v15890_v63 }
 0x62b   :  { %v12520_v34 = vadd.f32 %v3998_v24, %v3413_v27  ;;  %v12523_v38 = vrot.slane %v5057_v28, %v15804_v35  ;;  %v4509_v21 = vadd.f32 %v4508_v0, %v4463_v56  ;;  %v4231_v51 = vadd.f32 %v4230_v7, %v12490_v31  ;;  %v12539_v24 = vpop.f32.mrf.mxu1  ;;  %v15895_v0 = vld [vmem:[#allocation108_spill] sm:$0xff] }
 0x62c   :  { %v4269_v10 = vadd.f32 %v4268_v60, %v12516_v45  ;;  %v4476_v57 = vmul.f32 %v12516_v45, %v12516_v45  ;;  %v4548_v49 = vadd.f32 %v4547_v52, %v4472_v15  ;;  %v12532_v16 = vadd.f32 %v3770_v42, %v12393_v58 }
 0x62d   :  { %15891 = vst [vmem:[#allocation160_spill] sm:$0xff] %v12520_v34  ;;  %15892 = vst [vmem:[#allocation165_spill] sm:$0xff] %v12523_v38  ;;  %v4479_v27 = vmul.f32 %v12520_v34, %v12520_v34  ;;  %v12537_v37 = vadd.f32 %v3766_v54, %v12407_v43  ;;  %v4510_v56 = vadd.f32 %v4509_v21, %v4467_v26  ;;  %v12554_v54 = vpop.f32.mrf.mxu1 }
 0x62e   :  { %15893 = vst [vmem:[#allocation166_spill] sm:$0xff] %v12532_v16  ;;  %v4232_v41 = vadd.f32 %v4231_v51, %v12494_v11  ;;  %v12542_v59 = vadd.f32 %v4002_v9, %v3415_v13  ;;  %v12546_v7 = vrot.slane %v15895_v0, %v15805_v14  ;;  %v4549_v52 = vadd.f32 %v4548_v49, %v4476_v57  ;;  %v15899_v49 = vld [vmem:[#allocation102_spill] sm:$0xff]  ;;  %v15947_v11 = vld [vmem:[#allocation87_spill] sm:$0xff] }
 0x62f   :  { %15894 = vst [vmem:[#allocation123_spill] sm:$0xff] %v12537_v37  ;;  %v4358_v58 = vmul.f32 %v12532_v16, %v12532_v16  ;;  %v4277_v15 = vadd.f32 %v12537_v37, %v12475_v3  ;;  %v4361_v43 = vmul.f32 %v12537_v37, %v12537_v37  ;;  %v4511_v21 = vadd.f32 %v4510_v56, %v4471_v29  ;;  %v12568_v35 = vpop.f32.mrf.mxu1 }
 0x630   :  { %15896 = vst [vmem:[#allocation121_spill] sm:$0xff] %v12546_v7  ;;  %v4233_v13 = vadd.f32 %v4232_v41, %v12520_v34  ;;  %v4270_v9 = vadd.f32 %v4269_v10, %v12542_v59  ;;  %v4480_v26 = vmul.f32 %v12542_v59, %v12542_v59  ;;  %v12561_v51 = vrot.slane %v5057_v28, %v15805_v14 }
 0x631   :  { %v4557_v60 = vadd.f32 %v4361_v43, %v4357_v6  ;;  %v12564_v57 = vadd.f32 %v3770_v42, %v12421_v61  ;;  %v3782_v0 = vrot.slane %v15899_v49, %v15883_v62  ;;  %v4512_v29 = vadd.f32 %v4511_v21, %v4475_v47  ;;  %v12579_v42 = vpop.f32.mrf.mxu1 }
 0x632   :  { %15897 = vst [vmem:[#allocation119_spill] sm:$0xff] %v12561_v51  ;;  %v4234_v56 = vrot.slane %v4233_v13, 4  ;;  %v4271_v41 = vrot.slane %v4270_v9, 4  ;;  %v4550_v37 = vadd.f32 %v4549_v52, %v4480_v26  ;;  %v3786_v61 = vrot.slane %v15899_v49, %v15890_v63 }
 0x633   :  { %15898 = vst [vmem:[#allocation117_spill] sm:$0xff] %v12564_v57  ;;  %v4314_v10 = vadd.f32 %v12564_v57, %v12532_v16  ;;  %v4362_v6 = vmul.f32 %v12564_v57, %v12564_v57  ;;  %v12575_v28 = vadd.f32 %v3782_v0, %v12436_v2  ;;  %v4513_v14 = vadd.f32 %v4512_v29, %v4479_v27  ;;  %v12587_v2 = vpop.f32.mrf.mxu1 }
 0x634   :  { %v4235_v43 = vadd.f32 %v4234_v56, %v4233_v13  ;;  %v4272_v47 = vadd.f32 %v4271_v41, %v4270_v9  ;;  %v4551_v21 = vrot.slane %v4550_v37, 4  ;;  %v12585_v57 = vadd.f32 %v3786_v61, %v12449_v25 }
 0x635   :  { %15900 = vst [vmem:[#allocation163_spill] sm:$0xff] %v12575_v28  ;;  %v4594_v3 = vadd.f32 %v4362_v6, %v4358_v58  ;;  %v4278_v52 = vadd.f32 %v4277_v15, %v12575_v28  ;;  %v4365_v26 = vmul.f32 %v12575_v28, %v12575_v28  ;;  %v4514_v51 = vrot.slane %v4513_v14, 4  ;;  %v12595_v13 = vpop.f32.mrf.mxu1 }
 0x636   :  { %15901 = vst [vmem:[#allocation164_spill] sm:$0xff] %v12585_v57  ;;  %v4236_v16 = vrot.slane %v4235_v43, 2  ;;  %v4273_v49 = vrot.slane %v4272_v47, 2  ;;  %v4552_v7 = vadd.f32 %v4551_v21, %v4550_v37  ;;  %v4315_v27 = vadd.f32 %v4314_v10, %v12585_v57 }
 0x637   :  { %v4558_v38 = vadd.f32 %v4557_v60, %v4365_v26  ;;  %v4366_v58 = vmul.f32 %v12585_v57, %v12585_v57  ;;  %v12593_v15 = vadd.f32 %v3782_v0, %v12465_v19  ;;  %v4515_v25 = vadd.f32 %v4514_v51, %v4513_v14  ;;  %v12603_v10 = vpop.f32.mrf.mxu1 }
 0x638   :  { %v4237_v9 = vadd.f32 %v4236_v16, %v4235_v43  ;;  %v4274_v29 = vadd.f32 %v4273_v49, %v4272_v47  ;;  %v4553_v56 = vrot.slane %v4552_v7, 2  ;;  %v12601_v60 = vadd.f32 %v3786_v61, %v12479_v53  ;;  %15904 = vst [vmem:[#allocation115_spill] sm:$0xff] %v12603_v10  ;;  %v15905_v16 = vld [vmem:[#allocation96_spill] sm:$0xff] }
 0x639   :  { %15902 = vst [vmem:[#allocation169_spill] sm:$0xff] %v12593_v15  ;;  %v4595_v41 = vadd.f32 %v4594_v3, %v4366_v58  ;;  %v4279_v6 = vadd.f32 %v4278_v52, %v12593_v15  ;;  %v4369_v37 = vmul.f32 %v12593_v15, %v12593_v15  ;;  %v4516_v19 = vrot.slane %v4515_v25, 2  ;;  %v12614_v43 = vpop.f32.mrf.mxu1 }
 0x63a   :  { %15903 = vst [vmem:[#allocation170_spill] sm:$0xff] %v12601_v60  ;;  %v4238_v21 = vrot.slane %v4237_v9, 1  ;;  %v4275_v0 = vrot.slane %v4274_v29, 1  ;;  %v4554_v26 = vadd.f32 %v4553_v56, %v4552_v7  ;;  %v12608_v14 = vadd.f32 %v4315_v27, %v12601_v60  ;;  %15906 = vst [vmem:[#allocation113_spill] sm:$0xff] %v12614_v43 }
 0x63b   :  { %v12605_v57 = vadd.f32 %v4558_v38, %v4369_v37  ;;  %v4370_v3 = vmul.f32 %v12601_v60, %v12601_v60  ;;  %v3798_v51 = vrot.slane %v15905_v16, %v15883_v62  ;;  %v4517_v61 = vadd.f32 %v4516_v19, %v4515_v25  ;;  %v12628_v58 = vpop.f32.mrf.mxu1 }
 0x63c   :  { %v4239_v53 = vadd.f32 %v4238_v21, %v4237_v9  ;;  %v4276_v47 = vadd.f32 %v4275_v0, %v4274_v29  ;;  %v4555_v52 = vrot.slane %v4554_v26, 1  ;;  %v12623_v7 = vrot.slane %v15905_v16, %v15890_v63  ;;  %15909 = vst [vmem:[#allocation173_spill] sm:$0xff] %v12628_v58  ;;  %v15921_v16 = vld [vmem:[#allocation151_spill] sm:$0xff] }
 0x63d   :  { %v12616_v49 = vadd.f32 %v4595_v41, %v4370_v3  ;;  %v12619_v38 = vadd.f32 %v3798_v51, %v12498_v50  ;;  %v12626_v27 = vadd.f32 %v3798_v51, %v12525_v18  ;;  %v4518_v9 = vrot.slane %v4517_v61, 1  ;;  %v12649_v21 = vpop.f32.mrf.mxu1  ;;  %v15913_v3 = vld [vmem:[#allocation84_spill] sm:$0xff] }
 0x63e   :  { %v12630_v56 = vmul.f32 0.00390625, %v4239_v53  ;;  %v12632_v25 = vmul.f32 0.00390625, %v4276_v47  ;;  %v4556_v29 = vadd.f32 %v4555_v52, %v4554_v26  ;;  %v12643_v37 = vadd.f32 %v12623_v7, %v12512_v8  ;;  %15911 = vst [vmem:[#allocation171_spill] sm:$0xff] %v12649_v21  ;;  %v15914_v51 = vld [vmem:[#allocation80_spill] sm:$0xff]  ;;  %v15918_v26 = vld [vmem:[#allocation97_spill] sm:$0xff] }
 0x63f   :  { %15907 = vst [vmem:[#allocation167_spill] sm:$0xff] %v12619_v38  ;;  %15908 = vst [vmem:[#allocation168_spill] sm:$0xff] %v12626_v27  ;;  %v12635_v41 = vadd.f32 %v4279_v6, %v12619_v38  ;;  %v12639_v50 = vmul.f32 %v12619_v38, %v12619_v38  ;;  %v12647_v18 = vmul.f32 %v12626_v27, %v12626_v27  ;;  %v15912_v6 = vld [vmem:[#allocation90_spill] sm:$0xff]  ;;  %v15915_v53 = vld [vmem:[#allocation140_spill] sm:$0xff]  ;;  %v12665_v60 = vpop.f32.mrf.mxu1 }
 0x640   :  { %15910 = vst [vmem:[#allocation174_spill] sm:$0xff] %v12643_v37  ;;  %v4519_v19 = vadd.f32 %v4518_v9, %v4517_v61  ;;  %v4635_v0 = vmul.f32 %v12630_v56, %v12630_v56  ;;  %v15916_v61 = vld [vmem:[#allocation99_spill] sm:$0xff]  ;;  %15917 = vst [vmem:[#allocation172_spill] sm:$0xff] %v12665_v60  ;;  %v15922_v60 = vld [vmem:[#allocation157_spill] sm:$0xff]  ;;  %v4632_v21 = vmul.f32 0.00390625, %v4556_v29  ;;  %v4636_v58 = vmul.f32 %v12632_v25, %v12632_v25 }
 0x641   :  { %v12681_v28 = vpop.f32.mrf.mxu1  ;;  %v15958_v29 = vld [vmem:[#allocation133_spill] sm:$0xff]  ;;  %v4560_v4 = vadd.f32 %v12605_v57, %v12639_v50  ;;  %v4317_v52 = vadd.f32 %v12608_v14, %v12643_v37  ;;  %v4374_v9 = vmul.f32 %v12643_v37, %v12643_v37  ;;  %v15965_v50 = vld [vmem:[#allocation104_spill] sm:$0xff] }
 0x642   :  { %v4631_v38 = vmul.f32 0.00390625, %v4519_v19  ;;  %15919 = vst [vmem:[#allocation177_spill] sm:$0xff] %v12681_v28  ;;  %v15923_v28 = vld [vmem:[#allocation143_spill] sm:$0xff]  ;;  %v15953_v19 = vld [vmem:[#allocation152_spill] sm:$0xff]  ;;  %v12824_v37 = vrot.slane %v15965_v50, %v15883_v62 }
 0x643   :  { %v12818_v57 = vadd.f32 %v4560_v4, %v12647_v18 }
 0x644   :  { %v4639_v15 = vsub.f32 %v4631_v38, %v4635_v0  ;;  %v12697_v0 = vpop.f32.mrf.mxu1  ;;  %v4640_v38 = vsub.f32 %v4632_v21, %v4636_v58  ;;  %v15957_v21 = vld [vmem:[#allocation137_spill] sm:$0xff]  ;;  %15966 = vst [vmem:[#allocation183_spill] sm:$0xff] %v12824_v37 }
 0x645   :  { %15920 = vst [vmem:[#allocation178_spill] sm:$0xff] %v12697_v0  ;;  %v12811_v0 = vadd.f32 %v12623_v7, %v12539_v24 }
 0x646   :  { %v12715_v10 = vpop.f32.mrf.mxu1  ;;  %v4771_v47 = vadd.f32 1e-05, %v4639_v15  ;;  %v15933_v15 = vld [vmem:[#allocation128_spill] sm:$0xff] }
 0x647   :  { %15927 = vst [vmem:[#allocation175_spill] sm:$0xff] %v12715_v10  ;;  %15962 = vst [vmem:[#allocation185_spill] sm:$0xff] %v12811_v0  ;;  %v4318_v24 = vadd.f32 %v4317_v52, %v12811_v0  ;;  %v4378_v7 = vmul.f32 %v12811_v0, %v12811_v0 }
 0x648   :  { %v12729_v8 = vpop.f32.mrf.mxu1  ;;  %8973 = vrsqrt.f32 %v4771_v47  ;;  %v15956_v47 = vld [vmem:[#allocation141_spill] sm:$0xff] }
 0x649   :  { %15929 = vst [vmem:[#allocation176_spill] sm:$0xff] %v12729_v8  ;;  %v4772_v8 = vadd.f32 1e-05, %v4640_v38 }
 0x64a   :  { %v12743_v43 = vpop.f32.mrf.mxu1 }
 0x64b   :  { %15936 = vst [vmem:[#allocation181_spill] sm:$0xff] %v12743_v43  ;;  %v15959_v43 = vld [vmem:[#allocation156_spill] sm:$0xff]  ;;  %8975 = vrsqrt.f32 %v4772_v8 }
 0x64c   :  { %v12761_v34 = vpop.f32.mrf.mxu1 }
 0x64d   :  { %15945 = vst [vmem:[#allocation182_spill] sm:$0xff] %v12761_v34  ;;  %v15960_v34 = vld [vmem:[#allocation127_spill] sm:$0xff] }
 0x64e   :  { %v12779_v31 = vpop.f32.mrf.mxu1 }
 0x64f   :  { %15954 = vst [vmem:[#allocation179_spill] sm:$0xff] %v12779_v31  ;;  %v4281_v31 = vadd.f32 %v12635_v41, %v12626_v27  ;;  %v4597_v41 = vadd.f32 %v12616_v49, %v4374_v9  ;;  %v12846_v49 = vadd.f32 %v12824_v37, %v12595_v13 }
 0x650   :  { %v12797_v58 = vpop.f32.mrf.mxu1 }
 0x651   :  { %15961 = vst [vmem:[#allocation180_spill] sm:$0xff] %v12797_v58  ;;  %v15963_v58 = vld [vmem:[#allocation92_spill] sm:$0xff]  ;;  %15972 = vst [vmem:[#allocation193_spill] sm:$0xff] %v12846_v49  ;;  %v12848_v52 = vadd.f32 %v4597_v41, %v4378_v7 }
 0x652   :  { %v3814_v10 = vrot.slane %v15963_v58, %v15883_v62  ;;  %v12815_v38 = vpop.f32.mrf.mxu1  ;;  %v3818_v14 = vrot.slane %v15963_v58, %v15890_v63  ;;  %v16008_v62 = vld [vmem:[#allocation135_spill] sm:$0xff] }
 0x653   :  { %15964 = vst [vmem:[#allocation186_spill] sm:$0xff] %v12815_v38  ;;  %v15983_v38 = vsub.f32 %v11965_v32, %v12630_v56  ;;  %v15988_v32 = vsub.f32 %v12107_v46, %v12630_v56  ;;  %v15994_v46 = vsub.f32 %v12134_v40, %v12630_v56  ;;  %v15999_v40 = vsub.f32 %v12273_v30, %v12630_v56 }
 0x654   :  { %v12831_v27 = vadd.f32 %v3814_v10, %v12554_v54  ;;  %v12833_v8 = vpop.f32.mrf.mxu1  ;;  %v12836_v4 = vadd.f32 %v3818_v14, %v12568_v35  ;;  %v12839_v18 = vadd.f32 %v3814_v10, %v12579_v42  ;;  %v12842_v58 = vadd.f32 %v3818_v14, %v12587_v2 }
 0x655   :  { %15968 = vst [vmem:[#allocation189_spill] sm:$0xff] %v12833_v8  ;;  %v12859_v35 = vrot.slane %v15965_v50, %v15890_v63  ;;  %v8974_v2 = vpop.eup %8973  ;;  %v15978_v50 = vsub.f32 %v15912_v6, %v12630_v56  ;;  %v15984_v6 = vsub.f32 %v15916_v61, %v12630_v56  ;;  %v15989_v61 = vsub.f32 %v12119_v1, %v12630_v56 }
 0x656   :  { %15967 = vst [vmem:[#allocation184_spill] sm:$0xff] %v12831_v27  ;;  %15969 = vst [vmem:[#allocation190_spill] sm:$0xff] %v12836_v4  ;;  %v12851_v54 = vadd.f32 %v4281_v31, %v12831_v27  ;;  %v12855_v9 = vmul.f32 %v12831_v27, %v12831_v27  ;;  %v12861_v42 = vpop.f32.mrf.mxu1  ;;  %v12864_v10 = vadd.f32 %v4318_v24, %v12836_v4 }
 0x657   :  { %15970 = vst [vmem:[#allocation187_spill] sm:$0xff] %v12839_v18  ;;  %15971 = vst [vmem:[#allocation188_spill] sm:$0xff] %v12842_v58  ;;  %v12868_v13 = vmul.f32 %v12836_v4, %v12836_v4  ;;  %v12872_v31 = vmul.f32 %v12839_v18, %v12839_v18  ;;  %v12876_v14 = vmul.f32 %v12842_v58, %v12842_v58 }
 0x658   :  { %15973 = vst [vmem:[#allocation194_spill] sm:$0xff] %v12859_v35  ;;  %15974 = vst [vmem:[#allocation191_spill] sm:$0xff] %v12861_v42  ;;  %v4779_v41 = vmul.f32 %v8974_v2, %v15978_v50  ;;  %v15979_v24 = vsub.f32 %v15913_v3, %v12630_v56  ;;  %v15980_v4 = vsub.f32 %v15914_v51, %v12630_v56  ;;  %v12890_v8 = vpop.f32.mrf.mxu1 }
 0x659   :  { %15975 = vst [vmem:[#allocation192_spill] sm:$0xff] %v12864_v10  ;;  %15976 = vst [vmem:[#allocation197_spill] sm:$0xff] %v12872_v31  ;;  %v15981_v27 = vsub.f32 %v15915_v53, %v12630_v56  ;;  %v4795_v63 = vmul.f32 %v8974_v2, %v15983_v38  ;;  %v4799_v50 = vmul.f32 %v8974_v2, %v15984_v6 }
 0x65a   :  { %15977 = vst [vmem:[#allocation198_spill] sm:$0xff] %v12876_v14  ;;  %v4783_v7 = vmul.f32 %v8974_v2, %v15979_v24  ;;  %v4787_v0 = vmul.f32 %v8974_v2, %v15980_v4  ;;  %15982 = vst [vmem:[#allocation195_spill] sm:$0xff] %v12890_v8  ;;  %v15985_v3 = vsub.f32 %v15918_v26, %v12630_v56  ;;  %v12916_v8 = vpop.f32.mrf.mxu1  ;;  %v16010_v14 = vld [vmem:[#allocation155_spill] sm:$0xff] }
 0x65b   :  { %v4791_v42 = vmul.f32 %v8974_v2, %v15981_v27  ;;  %v15986_v51 = vsub.f32 %v12116_v36, %v12630_v56  ;;  %v15987_v27 = vsub.f32 %v11971_v33, %v12630_v56  ;;  %v4815_v38 = vmul.f32 %v8974_v2, %v15988_v32  ;;  %15991 = vst [vmem:[#allocation196_spill] sm:$0xff] %v12916_v8 }
 0x65c   :  { %v4803_v24 = vmul.f32 %v8974_v2, %v15985_v3  ;;  %v4819_v6 = vmul.f32 %v8974_v2, %v15989_v61  ;;  %v15990_v26 = vsub.f32 %v12122_v23, %v12630_v56  ;;  %v15992_v36 = vsub.f32 %v12125_v22, %v12630_v56  ;;  %v12942_v8 = vpop.f32.mrf.mxu1 }
 0x65d   :  { %v4807_v4 = vmul.f32 %v8974_v2, %v15986_v51  ;;  %v4811_v53 = vmul.f32 %v8974_v2, %v15987_v27  ;;  %v15993_v33 = vsub.f32 %v12128_v39, %v12630_v56  ;;  %v4835_v32 = vmul.f32 %v8974_v2, %v15994_v46  ;;  %16000 = vst [vmem:[#allocation201_spill] sm:$0xff] %v12942_v8  ;;  %v16006_v8 = vld [vmem:[#allocation139_spill] sm:$0xff] }
 0x65e   :  { %v4823_v3 = vmul.f32 %v8974_v2, %v15990_v26  ;;  %v4827_v51 = vmul.f32 %v8974_v2, %v15992_v36  ;;  %v15995_v1 = vsub.f32 %v12137_v20, %v12630_v56  ;;  %v15996_v23 = vsub.f32 %v12233_v55, %v12630_v56  ;;  %v12968_v31 = vpop.f32.mrf.mxu1 }
 0x65f   :  { %v4831_v27 = vmul.f32 %v8974_v2, %v15993_v33  ;;  %v15997_v22 = vsub.f32 %v12240_v17, %v12630_v56  ;;  %v15998_v39 = vsub.f32 %v12267_v44, %v12630_v56  ;;  %v4855_v46 = vmul.f32 %v8974_v2, %v15999_v40  ;;  %16012 = vst [vmem:[#allocation202_spill] sm:$0xff] %v12968_v31 }
 0x660   :  { %v4839_v61 = vmul.f32 %v8974_v2, %v15995_v1  ;;  %v4843_v26 = vmul.f32 %v8974_v2, %v15996_v23  ;;  %v16001_v20 = vsub.f32 %v12314_v12, %v12630_v56  ;;  %v16002_v55 = vsub.f32 %v12324_v48, %v12630_v56 }
 0x661   :  { %v4847_v36 = vmul.f32 %v8974_v2, %v15997_v22  ;;  %v4851_v33 = vmul.f32 %v8974_v2, %v15998_v39  ;;  %v16003_v17 = vsub.f32 %v15921_v16, %v12630_v56  ;;  %v16004_v44 = vsub.f32 %v15922_v60, %v12630_v56  ;;  %v16013_v60 = vld [vmem:[#allocation129_spill] sm:$0xff] }
 0x662   :  { %v4859_v1 = vmul.f32 %v8974_v2, %v16001_v20  ;;  %v4863_v23 = vmul.f32 %v8974_v2, %v16002_v55  ;;  %v16005_v30 = vsub.f32 %v15923_v28, %v12630_v56  ;;  %v16007_v12 = vsub.f32 %v16006_v8, %v12630_v56  ;;  %v16015_v28 = vld [vmem:[#allocation125_spill] sm:$0xff]  ;;  %v16017_v8 = vld [vmem:[#allocation159_spill] sm:$0xff] }
 0x663   :  { %v4867_v22 = vmul.f32 %v8974_v2, %v16003_v17  ;;  %v4871_v39 = vmul.f32 %v8974_v2, %v16004_v44  ;;  %v16009_v48 = vsub.f32 %v16008_v62, %v12630_v56  ;;  %v16011_v16 = vsub.f32 %v16010_v14, %v12630_v56  ;;  %v16019_v62 = vld [vmem:[#allocation160_spill] sm:$0xff]  ;;  %v12982_v14 = vpop.eup %8975 }
 0x664   :  { %v4875_v40 = vmul.f32 %v8974_v2, %v16005_v30  ;;  %v4879_v20 = vmul.f32 %v8974_v2, %v16007_v12  ;;  %v16014_v44 = vsub.f32 %v16013_v60, %v12630_v56  ;;  %v16016_v30 = vsub.f32 %v16015_v28, %v12630_v56  ;;  %v12988_v28 = vpop.f32.mrf.mxu1 }
 0x665   :  { %v4883_v55 = vmul.f32 %v8974_v2, %v16009_v48  ;;  %v4887_v17 = vmul.f32 %v8974_v2, %v16011_v16  ;;  %v16018_v12 = vsub.f32 %v16017_v8, %v12630_v56  ;;  %v16020_v48 = vsub.f32 %v16019_v62, %v12630_v56  ;;  %v16021_v16 = vld [vmem:[#allocation98_spill] sm:$0xff] }
 0x666   :  { %v4891_v37 = vmul.f32 %v8974_v2, %v16014_v44  ;;  %v4895_v35 = vmul.f32 %v8974_v2, %v16016_v30  ;;  %v4929_v31 = vmul.f32 %v16021_v16, %v4779_v41  ;;  %v4933_v58 = vmul.f32 %v16021_v16, %v4783_v7 }
 0x667   :  { %v4899_v49 = vmul.f32 %v8974_v2, %v16018_v12  ;;  %v4903_v10 = vmul.f32 %v8974_v2, %v16020_v48  ;;  %v4937_v60 = vmul.f32 %v16021_v16, %v4787_v0  ;;  %v4941_v44 = vmul.f32 %v16021_v16, %v4791_v42  ;;  %v13006_v48 = vpop.f32.mrf.mxu1 }
 0x668   :  { %v4945_v30 = vmul.f32 %v16021_v16, %v4795_v63  ;;  %v4949_v8 = vmul.f32 %v16021_v16, %v4799_v50  ;;  %v4953_v12 = vmul.f32 %v16021_v16, %v4803_v24  ;;  %v4957_v56 = vmul.f32 %v16021_v16, %v4807_v4  ;;  %16022 = vst [vmem:[#allocation199_spill] sm:$0xff] %v13006_v48  ;;  %v16023_v48 = vld [vmem:[#allocation165_spill] sm:$0xff] }
 0x669   :  { %v4961_v2 = vmul.f32 %v16021_v16, %v4811_v53  ;;  %v4965_v41 = vmul.f32 %v16021_v16, %v4815_v38  ;;  %v4969_v7 = vmul.f32 %v16021_v16, %v4819_v6  ;;  %v4973_v0 = vmul.f32 %v16021_v16, %v4823_v3 }
 0x66a   :  { %v4977_v42 = vmul.f32 %v16021_v16, %v4827_v51  ;;  %v4981_v62 = vmul.f32 %v16021_v16, %v4831_v27  ;;  %v4985_v63 = vmul.f32 %v16021_v16, %v4835_v32  ;;  %v4989_v50 = vmul.f32 %v16021_v16, %v4839_v61 }
 0x66b   :  { %v4993_v24 = vmul.f32 %v16021_v16, %v4843_v26  ;;  %v4997_v4 = vmul.f32 %v16021_v16, %v4847_v36  ;;  %v5001_v53 = vmul.f32 %v16021_v16, %v4851_v33  ;;  %v5005_v38 = vmul.f32 %v16021_v16, %v4855_v46 }
 0x66c   :  { %v5009_v6 = vmul.f32 %v16021_v16, %v4859_v1  ;;  %v5013_v3 = vmul.f32 %v16021_v16, %v4863_v23  ;;  %v5017_v51 = vmul.f32 %v16021_v16, %v4867_v22  ;;  %v5021_v27 = vmul.f32 %v16021_v16, %v4871_v39 }
 0x66d   :  { %v5025_v32 = vmul.f32 %v16021_v16, %v4875_v40  ;;  %v5029_v61 = vmul.f32 %v16021_v16, %v4879_v20  ;;  %v5033_v26 = vmul.f32 %v16021_v16, %v4883_v55  ;;  %v5037_v36 = vmul.f32 %v16021_v16, %v4887_v17  ;;  %v13032_v55 = vpop.f32.mrf.mxu1 }
 0x66e   :  { %v5041_v33 = vmul.f32 %v16021_v16, %v4891_v37  ;;  %v5045_v46 = vmul.f32 %v16021_v16, %v4895_v35  ;;  %v5049_v1 = vmul.f32 %v16021_v16, %v4899_v49  ;;  %v5053_v23 = vmul.f32 %v16021_v16, %v4903_v10 }
 0x66f   :  { %v13021_v22 = vadd.f32 %v16023_v48, %v4929_v31  ;;  %v13024_v39 = vadd.f32 %v16023_v48, %v4933_v58  ;;  %v13027_v40 = vadd.f32 %v16023_v48, %v4937_v60  ;;  %v13030_v20 = vadd.f32 %v16023_v48, %v4941_v44 }
 0x670   :  { %v13035_v37 = vadd.f32 %v16023_v48, %v4945_v30  ;;  %v13038_v49 = vadd.f32 %v16023_v48, %v4949_v8  ;;  %v13041_v35 = vadd.f32 %v16023_v48, %v4953_v12  ;;  %v13044_v58 = vadd.f32 %v16023_v48, %v4957_v56 }
 0x671   :  { %16024 = vst [vmem:[#allocation200_spill] sm:$0xff] %v13021_v22  ;;  %16025 = vst [vmem:[#allocation144_spill] sm:$0xff] %v13024_v39  ;;  %v13047_v10 = vadd.f32 %v16023_v48, %v4961_v2  ;;  %v13050_v31 = vadd.f32 %v16023_v48, %v4965_v41  ;;  %v13053_v17 = vadd.f32 %v16023_v48, %v4969_v7  ;;  %v13082_v7 = vpop.f32.mrf.mxu1 }
 0x672   :  { %16026 = vst [vmem:[#allocation88_spill] sm:$0xff] %v13027_v40  ;;  %16027 = vst [vmem:[#allocation134_spill] sm:$0xff] %v13030_v20  ;;  %v13056_v16 = vadd.f32 %v16023_v48, %v4973_v0  ;;  %v13059_v60 = vadd.f32 %v16023_v48, %v4977_v42  ;;  %v13062_v44 = vadd.f32 %v16023_v48, %v4981_v62  ;;  %v16185_v40 = vld [vmem:[#allocation93_spill] sm:$0xff] }
 0x673   :  { %16028 = vst [vmem:[#allocation101_spill] sm:$0xff] %v13035_v37  ;;  %16029 = vst [vmem:[#allocation136_spill] sm:$0xff] %v13038_v49  ;;  %v13065_v30 = vadd.f32 %v16023_v48, %v4985_v63  ;;  %v13068_v8 = vadd.f32 %v16023_v48, %v4989_v50  ;;  %v13071_v12 = vadd.f32 %v16023_v48, %v4993_v24  ;;  %v16144_v49 = vld [vmem:[#allocation188_spill] sm:$0xff] }
 0x674   :  { %16030 = vst [vmem:[#allocation130_spill] sm:$0xff] %v13041_v35  ;;  %16031 = vst [vmem:[#allocation126_spill] sm:$0xff] %v13044_v58  ;;  %v13074_v56 = vadd.f32 %v16023_v48, %v4997_v4  ;;  %v13077_v2 = vadd.f32 %v16023_v48, %v5001_v53  ;;  %v13080_v41 = vadd.f32 %v16023_v48, %v5005_v38  ;;  %v16111_v35 = vld [vmem:[#allocation119_spill] sm:$0xff] }
 0x675   :  { %16032 = vst [vmem:[#allocation111_spill] sm:$0xff] %v13047_v10  ;;  %16033 = vst [vmem:[#allocation103_spill] sm:$0xff] %v13050_v31  ;;  %v13085_v0 = vadd.f32 %v16023_v48, %v5009_v6  ;;  %v13088_v42 = vadd.f32 %v16023_v48, %v5013_v3  ;;  %v13091_v62 = vadd.f32 %v16023_v48, %v5017_v51 }
 0x676   :  { %16034 = vst [vmem:[#allocation106_spill] sm:$0xff] %v13053_v17  ;;  %16035 = vst [vmem:[#allocation108_spill] sm:$0xff] %v13056_v16  ;;  %v13094_v63 = vadd.f32 %v16023_v48, %v5021_v27  ;;  %v13097_v50 = vadd.f32 %v16023_v48, %v5025_v32  ;;  %v13100_v24 = vadd.f32 %v16023_v48, %v5029_v61  ;;  %v16063_v32 = vld [vmem:[#allocation138_spill] sm:$0xff]  ;;  %v16110_v17 = vld [vmem:[#allocation121_spill] sm:$0xff] }
 0x677   :  { %16036 = vst [vmem:[#allocation102_spill] sm:$0xff] %v13059_v60  ;;  %16037 = vst [vmem:[#allocation96_spill] sm:$0xff] %v13062_v44  ;;  %v13103_v4 = vadd.f32 %v16023_v48, %v5033_v26  ;;  %v13106_v53 = vadd.f32 %v16023_v48, %v5037_v36  ;;  %v13109_v38 = vadd.f32 %v16023_v48, %v5041_v33  ;;  %v13124_v36 = vpop.f32.mrf.mxu1 }
 0x678   :  { %16038 = vst [vmem:[#allocation90_spill] sm:$0xff] %v13065_v30  ;;  %16039 = vst [vmem:[#allocation84_spill] sm:$0xff] %v13068_v8  ;;  %v13112_v6 = vadd.f32 %v16023_v48, %v5045_v46  ;;  %v13115_v3 = vadd.f32 %v16023_v48, %v5049_v1  ;;  %v13118_v51 = vadd.f32 %v16023_v48, %v5053_v23  ;;  %v16059_v46 = vld [vmem:[#allocation82_spill] sm:$0xff]  ;;  %v16093_v8 = vld [vmem:[#allocation153_spill] sm:$0xff] }
 0x679   :  { %16040 = vst [vmem:[#allocation80_spill] sm:$0xff] %v13071_v12  ;;  %16041 = vst [vmem:[#allocation140_spill] sm:$0xff] %v13074_v56  ;;  %v13142_v31 = vpop.f32.mrf.mxu1  ;;  %v16060_v1 = vsub.f32 %v16059_v46, %v12632_v25  ;;  %v16064_v61 = vsub.f32 %v16063_v32, %v12632_v25  ;;  %v16066_v46 = vld [vmem:[#allocation124_spill] sm:$0xff]  ;;  %v16089_v56 = vld [vmem:[#allocation85_spill] sm:$0xff] }
 0x67a   :  { %16042 = vst [vmem:[#allocation99_spill] sm:$0xff] %v13077_v2  ;;  %16043 = vst [vmem:[#allocation97_spill] sm:$0xff] %v13080_v41  ;;  %v16070_v32 = vld [vmem:[#allocation120_spill] sm:$0xff]  ;;  %v16084_v41 = vld [vmem:[#allocation105_spill] sm:$0xff] }
 0x67b   :  { %16044 = vst [vmem:[#allocation151_spill] sm:$0xff] %v13082_v7  ;;  %16045 = vst [vmem:[#allocation157_spill] sm:$0xff] %v13085_v0  ;;  %v4784_v7 = vmul.f32 %v12982_v14, %v16060_v1  ;;  %v4792_v26 = vmul.f32 %v12982_v14, %v16064_v61  ;;  %v16067_v1 = vsub.f32 %v16066_v46, %v12632_v25  ;;  %v16082_v0 = vld [vmem:[#allocation107_spill] sm:$0xff]  ;;  %v16086_v2 = vld [vmem:[#allocation89_spill] sm:$0xff] }
 0x67c   :  { %16046 = vst [vmem:[#allocation143_spill] sm:$0xff] %v13088_v42  ;;  %16047 = vst [vmem:[#allocation128_spill] sm:$0xff] %v13091_v62  ;;  %v16057_v42 = vld [vmem:[#allocation86_spill] sm:$0xff]  ;;  %v16071_v61 = vsub.f32 %v16070_v32, %v12632_v25  ;;  %v16080_v62 = vld [vmem:[#allocation109_spill] sm:$0xff] }
 0x67d   :  { %16048 = vst [vmem:[#allocation87_spill] sm:$0xff] %v13094_v63  ;;  %16049 = vst [vmem:[#allocation152_spill] sm:$0xff] %v13097_v50  ;;  %v16058_v27 = vsub.f32 %v16057_v42, %v12632_v25  ;;  %v16065_v42 = vsub.f32 %v15933_v15, %v12632_v25  ;;  %v16076_v50 = vld [vmem:[#allocation114_spill] sm:$0xff]  ;;  %v16078_v63 = vld [vmem:[#allocation112_spill] sm:$0xff] }
 0x67e   :  { %16050 = vst [vmem:[#allocation141_spill] sm:$0xff] %v13100_v24  ;;  %16051 = vst [vmem:[#allocation137_spill] sm:$0xff] %v13103_v4  ;;  %v16061_v4 = vld [vmem:[#allocation142_spill] sm:$0xff]  ;;  %v16074_v24 = vld [vmem:[#allocation116_spill] sm:$0xff]  ;;  %v16079_v32 = vsub.f32 %v16078_v63, %v12632_v25  ;;  %v16087_v63 = vsub.f32 %v16086_v2, %v12632_v25  ;;  %v16094_v2 = vsub.f32 %v16093_v8, %v12632_v25 }
 0x67f   :  { %16052 = vst [vmem:[#allocation133_spill] sm:$0xff] %v13106_v53  ;;  %16053 = vst [vmem:[#allocation156_spill] sm:$0xff] %v13109_v38  ;;  %v4780_v33 = vmul.f32 %v12982_v14, %v16058_v27  ;;  %v16062_v48 = vsub.f32 %v16061_v4, %v12632_v25  ;;  %v4796_v27 = vmul.f32 %v12982_v14, %v16065_v42  ;;  %v16068_v4 = vld [vmem:[#allocation122_spill] sm:$0xff]  ;;  %v16091_v12 = vld [vmem:[#allocation149_spill] sm:$0xff] }
 0x680   :  { %16054 = vst [vmem:[#allocation127_spill] sm:$0xff] %v13112_v6  ;;  %16055 = vst [vmem:[#allocation92_spill] sm:$0xff] %v13115_v3  ;;  %v4800_v3 = vmul.f32 %v12982_v14, %v16067_v1  ;;  %v4808_v38 = vmul.f32 %v12982_v14, %v16071_v61  ;;  %v16072_v53 = vld [vmem:[#allocation118_spill] sm:$0xff]  ;;  %v16075_v46 = vsub.f32 %v16074_v24, %v12632_v25 }
 0x681   :  { %16056 = vst [vmem:[#allocation104_spill] sm:$0xff] %v13118_v51  ;;  %v4788_v23 = vmul.f32 %v12982_v14, %v16062_v48  ;;  %v13172_v51 = vpop.f32.mrf.mxu1  ;;  %v16069_v48 = vsub.f32 %v16068_v4, %v12632_v25  ;;  %v16073_v15 = vsub.f32 %v16072_v53, %v12632_v25  ;;  %v16077_v4 = vsub.f32 %v16076_v50, %v12632_v25  ;;  %v16100_v8 = vld [vmem:[#allocation158_spill] sm:$0xff] }
 0x682   :  { %v4816_v1 = vmul.f32 %v12982_v14, %v16075_v46  ;;  %v4824_v61 = vmul.f32 %v12982_v14, %v16079_v32  ;;  %v16081_v53 = vsub.f32 %v16080_v62, %v12632_v25  ;;  %v16083_v24 = vsub.f32 %v16082_v0, %v12632_v25 }
 0x683   :  { %v4804_v6 = vmul.f32 %v12982_v14, %v16069_v48  ;;  %v4812_v42 = vmul.f32 %v12982_v14, %v16073_v15  ;;  %v4820_v48 = vmul.f32 %v12982_v14, %v16077_v4  ;;  %v16085_v50 = vsub.f32 %v16084_v41, %v12632_v25  ;;  %v13238_v30 = vpop.f32.mrf.mxu1 }
 0x684   :  { %v4828_v15 = vmul.f32 %v12982_v14, %v16081_v53  ;;  %v4832_v46 = vmul.f32 %v12982_v14, %v16083_v24  ;;  %v4840_v32 = vmul.f32 %v12982_v14, %v16087_v63  ;;  %v16088_v62 = vsub.f32 %v15947_v11, %v12632_v25  ;;  %v16095_v11 = vld [vmem:[#allocation154_spill] sm:$0xff] }
 0x685   :  { %v4836_v4 = vmul.f32 %v12982_v14, %v16085_v50  ;;  %v16090_v0 = vsub.f32 %v16089_v56, %v12632_v25  ;;  %v16092_v41 = vsub.f32 %v16091_v12, %v12632_v25  ;;  %v4856_v63 = vmul.f32 %v12982_v14, %v16094_v2  ;;  %v16097_v56 = vld [vmem:[#allocation83_spill] sm:$0xff]  ;;  %v13292_v58 = vpop.f32.mrf.mxu1 }
 0x686   :  { %v4844_v53 = vmul.f32 %v12982_v14, %v16088_v62  ;;  %v16096_v62 = vsub.f32 %v16095_v11, %v12632_v25  ;;  %v16099_v12 = vsub.f32 %v15953_v19, %v12632_v25  ;;  %v16101_v2 = vsub.f32 %v16100_v8, %v12632_v25 }
 0x687   :  { %v4848_v24 = vmul.f32 %v12982_v14, %v16090_v0  ;;  %v4852_v50 = vmul.f32 %v12982_v14, %v16092_v41  ;;  %v16098_v0 = vsub.f32 %v16097_v56, %v12632_v25  ;;  %v16102_v11 = vsub.f32 %v15956_v47, %v12632_v25 }
 0x688   :  { %v4860_v44 = vmul.f32 %v12982_v14, %v16096_v62  ;;  %v4868_v41 = vmul.f32 %v12982_v14, %v16099_v12  ;;  %v4872_v16 = vmul.f32 %v12982_v14, %v16101_v2  ;;  %v16103_v56 = vsub.f32 %v15957_v21, %v12632_v25 }
 0x689   :  { %v4864_v60 = vmul.f32 %v12982_v14, %v16098_v0  ;;  %v4876_v62 = vmul.f32 %v12982_v14, %v16102_v11  ;;  %v16104_v19 = vsub.f32 %v15958_v29, %v12632_v25  ;;  %v16105_v8 = vsub.f32 %v15959_v43, %v12632_v25 }
 0x68a   :  { %v4880_v0 = vmul.f32 %v12982_v14, %v16103_v56  ;;  %v16106_v47 = vsub.f32 %v15960_v34, %v12632_v25  ;;  %v16107_v21 = vsub.f32 %v12492_v5, %v12632_v25  ;;  %v16108_v29 = vsub.f32 %v12516_v45, %v12632_v25 }
 0x68b   :  { %v4884_v12 = vmul.f32 %v12982_v14, %v16104_v19  ;;  %v4888_v2 = vmul.f32 %v12982_v14, %v16105_v8  ;;  %v16109_v43 = vsub.f32 %v12542_v59, %v12632_v25  ;;  %v4930_v10 = vmul.f32 %v16110_v17, %v4780_v33 }
 0x68c   :  { %v4892_v11 = vmul.f32 %v12982_v14, %v16106_v47  ;;  %v4896_v56 = vmul.f32 %v12982_v14, %v16107_v21  ;;  %v4900_v19 = vmul.f32 %v12982_v14, %v16108_v29  ;;  %v4934_v34 = vmul.f32 %v16110_v17, %v4784_v7 }
 0x68d   :  { %v4904_v8 = vmul.f32 %v12982_v14, %v16109_v43  ;;  %v4938_v47 = vmul.f32 %v16110_v17, %v4788_v23  ;;  %v4942_v5 = vmul.f32 %v16110_v17, %v4792_v26  ;;  %v4946_v21 = vmul.f32 %v16110_v17, %v4796_v27  ;;  %v13310_v43 = vpop.f32.mrf.mxu1 }
 0x68e   :  { %v4950_v45 = vmul.f32 %v16110_v17, %v4800_v3  ;;  %v4954_v29 = vmul.f32 %v16110_v17, %v4804_v6  ;;  %v4958_v59 = vmul.f32 %v16110_v17, %v4808_v38  ;;  %v4962_v25 = vmul.f32 %v16110_v17, %v4812_v42 }
 0x68f   :  { %v4966_v14 = vmul.f32 %v16110_v17, %v4816_v1  ;;  %v4970_v7 = vmul.f32 %v16110_v17, %v4820_v48  ;;  %v4974_v33 = vmul.f32 %v16110_v17, %v4824_v61  ;;  %v4978_v26 = vmul.f32 %v16110_v17, %v4828_v15 }
 0x690   :  { %v4982_v23 = vmul.f32 %v16110_v17, %v4832_v46  ;;  %v4986_v27 = vmul.f32 %v16110_v17, %v4836_v4  ;;  %v4990_v3 = vmul.f32 %v16110_v17, %v4840_v32  ;;  %v4994_v6 = vmul.f32 %v16110_v17, %v4844_v53 }
 0x691   :  { %v4998_v38 = vmul.f32 %v16110_v17, %v4848_v24  ;;  %v5002_v42 = vmul.f32 %v16110_v17, %v4852_v50  ;;  %v5006_v1 = vmul.f32 %v16110_v17, %v4856_v63  ;;  %v5010_v48 = vmul.f32 %v16110_v17, %v4860_v44 }
 0x692   :  { %v5014_v61 = vmul.f32 %v16110_v17, %v4864_v60  ;;  %v5018_v15 = vmul.f32 %v16110_v17, %v4868_v41  ;;  %v5022_v46 = vmul.f32 %v16110_v17, %v4872_v16  ;;  %v5026_v4 = vmul.f32 %v16110_v17, %v4876_v62 }
 0x693   :  { %v5030_v32 = vmul.f32 %v16110_v17, %v4880_v0  ;;  %v5034_v53 = vmul.f32 %v16110_v17, %v4884_v12  ;;  %v5038_v24 = vmul.f32 %v16110_v17, %v4888_v2  ;;  %v5042_v50 = vmul.f32 %v16110_v17, %v4892_v11  ;;  %v13336_v12 = vpop.f32.mrf.mxu1 }
 0x694   :  { %v5046_v63 = vmul.f32 %v16110_v17, %v4896_v56  ;;  %v5050_v44 = vmul.f32 %v16110_v17, %v4900_v19  ;;  %v5054_v60 = vmul.f32 %v16110_v17, %v4904_v8  ;;  %v13325_v41 = vadd.f32 %v16111_v35, %v4930_v10 }
 0x695   :  { %v13328_v16 = vadd.f32 %v16111_v35, %v4934_v34  ;;  %v13331_v62 = vadd.f32 %v16111_v35, %v4938_v47  ;;  %v13334_v0 = vadd.f32 %v16111_v35, %v4942_v5  ;;  %v13339_v2 = vadd.f32 %v16111_v35, %v4946_v21 }
 0x696   :  { %16112 = vst [vmem:[#allocation139_spill] sm:$0xff] %v13325_v41  ;;  %v13342_v11 = vadd.f32 %v16111_v35, %v4950_v45  ;;  %v13345_v10 = vadd.f32 %v16111_v35, %v4954_v29  ;;  %v13348_v17 = vadd.f32 %v16111_v35, %v4958_v59  ;;  %v13351_v56 = vadd.f32 %v16111_v35, %v4962_v25  ;;  %v16194_v41 = vld [vmem:[#allocation148_spill] sm:$0xff] }
 0x697   :  { %16113 = vst [vmem:[#allocation135_spill] sm:$0xff] %v13328_v16  ;;  %16114 = vst [vmem:[#allocation155_spill] sm:$0xff] %v13331_v62  ;;  %v13354_v19 = vadd.f32 %v16111_v35, %v4966_v14  ;;  %v13357_v8 = vadd.f32 %v16111_v35, %v4970_v7  ;;  %v13360_v34 = vadd.f32 %v16111_v35, %v4974_v33  ;;  %v13386_v7 = vpop.f32.mrf.mxu1 }
 0x698   :  { %16115 = vst [vmem:[#allocation129_spill] sm:$0xff] %v13334_v0  ;;  %16116 = vst [vmem:[#allocation125_spill] sm:$0xff] %v13339_v2  ;;  %v13363_v47 = vadd.f32 %v16111_v35, %v4978_v26  ;;  %v13366_v5 = vadd.f32 %v16111_v35, %v4982_v23  ;;  %v13369_v21 = vadd.f32 %v16111_v35, %v4986_v27  ;;  %v16184_v2 = vld [vmem:[#allocation196_spill] sm:$0xff] }
 0x699   :  { %16117 = vst [vmem:[#allocation159_spill] sm:$0xff] %v13342_v11  ;;  %16118 = vst [vmem:[#allocation160_spill] sm:$0xff] %v13345_v10  ;;  %v13372_v45 = vadd.f32 %v16111_v35, %v4990_v3  ;;  %v13375_v29 = vadd.f32 %v16111_v35, %v4994_v6  ;;  %v13378_v59 = vadd.f32 %v16111_v35, %v4998_v38 }
 0x69a   :  { %16119 = vst [vmem:[#allocation98_spill] sm:$0xff] %v13348_v17  ;;  %16120 = vst [vmem:[#allocation165_spill] sm:$0xff] %v13351_v56  ;;  %v13381_v25 = vadd.f32 %v16111_v35, %v5002_v42  ;;  %v13384_v14 = vadd.f32 %v16111_v35, %v5006_v1  ;;  %v13389_v33 = vadd.f32 %v16111_v35, %v5010_v48 }
 0x69b   :  { %16121 = vst [vmem:[#allocation86_spill] sm:$0xff] %v13354_v19  ;;  %16122 = vst [vmem:[#allocation82_spill] sm:$0xff] %v13357_v8  ;;  %v13392_v26 = vadd.f32 %v16111_v35, %v5014_v61  ;;  %v13395_v23 = vadd.f32 %v16111_v35, %v5018_v15  ;;  %v13398_v27 = vadd.f32 %v16111_v35, %v5022_v46 }
 0x69c   :  { %16123 = vst [vmem:[#allocation142_spill] sm:$0xff] %v13360_v34  ;;  %16124 = vst [vmem:[#allocation138_spill] sm:$0xff] %v13363_v47  ;;  %v13401_v3 = vadd.f32 %v16111_v35, %v5026_v4  ;;  %v13404_v6 = vadd.f32 %v16111_v35, %v5030_v32  ;;  %v13407_v38 = vadd.f32 %v16111_v35, %v5034_v53  ;;  %v16147_v32 = vld [vmem:[#allocation115_spill] sm:$0xff]  ;;  %v16173_v34 = vld [vmem:[#allocation182_spill] sm:$0xff] }
 0x69d   :  { %16125 = vst [vmem:[#allocation124_spill] sm:$0xff] %v13366_v5  ;;  %16126 = vst [vmem:[#allocation122_spill] sm:$0xff] %v13369_v21  ;;  %v13410_v42 = vadd.f32 %v16111_v35, %v5038_v24  ;;  %v13413_v1 = vadd.f32 %v16111_v35, %v5042_v50  ;;  %v13416_v48 = vadd.f32 %v16111_v35, %v5046_v63  ;;  %v13428_v24 = vpop.f32.mrf.mxu1  ;;  %v16145_v50 = vld [vmem:[#allocation192_spill] sm:$0xff] }
 0x69e   :  { %16127 = vst [vmem:[#allocation120_spill] sm:$0xff] %v13372_v45  ;;  %16128 = vst [vmem:[#allocation118_spill] sm:$0xff] %v13375_v29  ;;  %v13419_v61 = vadd.f32 %v16111_v35, %v5050_v44  ;;  %v13422_v15 = vadd.f32 %v16111_v35, %v5054_v60  ;;  %v4562_v46 = vadd.f32 %v12818_v57, %v12855_v9  ;;  %v16146_v60 = vld [vmem:[#allocation193_spill] sm:$0xff]  ;;  %v16151_v57 = vld [vmem:[#allocation183_spill] sm:$0xff] }
 0x69f   :  { %16129 = vst [vmem:[#allocation116_spill] sm:$0xff] %v13378_v59  ;;  %16130 = vst [vmem:[#allocation114_spill] sm:$0xff] %v13381_v25  ;;  %v13446_v19 = vpop.f32.mrf.mxu1  ;;  %v4599_v63 = vadd.f32 %v12848_v52, %v12868_v13  ;;  %v4283_v44 = vadd.f32 %v12851_v54, %v12839_v18  ;;  %v4320_v35 = vadd.f32 %v16145_v50, %v16144_v49  ;;  %v16153_v52 = vld [vmem:[#allocation173_spill] sm:$0xff]  ;;  %v16156_v50 = vld [vmem:[#allocation198_spill] sm:$0xff] }
 0x6a0   :  { %16131 = vst [vmem:[#allocation112_spill] sm:$0xff] %v13384_v14  ;;  %16132 = vst [vmem:[#allocation109_spill] sm:$0xff] %v13389_v33  ;;  %v4389_v4 = vmul.f32 %v16146_v60, %v16146_v60  ;;  %v16155_v54 = vld [vmem:[#allocation197_spill] sm:$0xff]  ;;  %v16164_v25 = vld [vmem:[#allocation94_spill] sm:$0xff] }
 0x6a1   :  { %16133 = vst [vmem:[#allocation107_spill] sm:$0xff] %v13392_v26  ;;  %16134 = vst [vmem:[#allocation105_spill] sm:$0xff] %v13395_v23  ;;  %v16162_v33 = vld [vmem:[#allocation177_spill] sm:$0xff]  ;;  %v16171_v21 = vld [vmem:[#allocation176_spill] sm:$0xff] }
 0x6a2   :  { %16135 = vst [vmem:[#allocation89_spill] sm:$0xff] %v13398_v27  ;;  %16136 = vst [vmem:[#allocation85_spill] sm:$0xff] %v13401_v3  ;;  %v16158_v3 = vld [vmem:[#allocation100_spill] sm:$0xff] }
 0x6a3   :  { %16137 = vst [vmem:[#allocation149_spill] sm:$0xff] %v13404_v6  ;;  %16138 = vst [vmem:[#allocation153_spill] sm:$0xff] %v13407_v38  ;;  %v4284_v38 = vadd.f32 %v4283_v44, %v16146_v60  ;;  %v16157_v6 = vld [vmem:[#allocation147_spill] sm:$0xff]  ;;  %v16161_v44 = vld [vmem:[#allocation110_spill] sm:$0xff] }
 0x6a4   :  { %16139 = vst [vmem:[#allocation154_spill] sm:$0xff] %v13410_v42  ;;  %16140 = vst [vmem:[#allocation83_spill] sm:$0xff] %v13413_v1  ;;  %v13468_v42 = vpop.f32.mrf.mxu1  ;;  %v4600_v1 = vadd.f32 %v4599_v63, %v16156_v50  ;;  %v3846_v27 = vrot.slane %v16158_v3, %v16157_v6  ;;  %v16159_v63 = vld [vmem:[#allocation171_spill] sm:$0xff]  ;;  %v3862_v59 = vrot.slane %v16164_v25, %v16157_v6 }
 0x6a5   :  { %16141 = vst [vmem:[#allocation158_spill] sm:$0xff] %v13416_v48  ;;  %16142 = vst [vmem:[#allocation121_spill] sm:$0xff] %v13419_v61  ;;  %v16148_v61 = vld [vmem:[#allocation194_spill] sm:$0xff]  ;;  %v4563_v48 = vadd.f32 %v4562_v46, %v16155_v54  ;;  %v3850_v54 = vrot.slane %v16158_v3, %v16161_v44  ;;  %v3910_v0 = vrot.slane %v16185_v40, %v16157_v6 }
 0x6a6   :  { %16143 = vst [vmem:[#allocation119_spill] sm:$0xff] %v13422_v15  ;;  %v13474_v53 = vadd.f32 %v16148_v61, %v16147_v32  ;;  %v16150_v15 = vld [vmem:[#allocation113_spill] sm:$0xff]  ;;  %v13482_v13 = vadd.f32 %v16148_v61, %v16153_v52  ;;  %v13498_v52 = vadd.f32 %v3846_v27, %v16159_v63  ;;  %v13502_v50 = vpop.f32.mrf.mxu1  ;;  %v13506_v14 = vadd.f32 %v3846_v27, %v16162_v33  ;;  %v16165_v63 = vld [vmem:[#allocation172_spill] sm:$0xff]  ;;  %v16169_v33 = vld [vmem:[#allocation175_spill] sm:$0xff] }
 0x6a7   :  { %v13478_v9 = vadd.f32 %v16151_v57, %v16150_v15  ;;  %v4564_v57 = vadd.f32 %v4563_v48, %v4389_v4  ;;  %v13514_v29 = vadd.f32 %v3850_v54, %v16165_v63  ;;  %v13522_v27 = vadd.f32 %v3862_v59, %v16169_v33 }
 0x6a8   :  { %16149 = vst [vmem:[#allocation192_spill] sm:$0xff] %v13474_v53  ;;  %16154 = vst [vmem:[#allocation194_spill] sm:$0xff] %v13482_v13  ;;  %v4321_v32 = vadd.f32 %v4320_v35, %v13474_v53  ;;  %v4390_v23 = vmul.f32 %v13474_v53, %v13474_v53  ;;  %v4394_v61 = vmul.f32 %v13482_v13, %v13482_v13  ;;  %v13528_v63 = vpop.f32.mrf.mxu1 }
 0x6a9   :  { %16152 = vst [vmem:[#allocation115_spill] sm:$0xff] %v13478_v9  ;;  %v4393_v15 = vmul.f32 %v13478_v9, %v13478_v9  ;;  %v4285_v46 = vadd.f32 %v4284_v38, %v13478_v9  ;;  %16160 = vst [vmem:[#allocation113_spill] sm:$0xff] %v13498_v52  ;;  %v4397_v4 = vmul.f32 %v13498_v52, %v13498_v52 }
 0x6aa   :  { %v4601_v35 = vadd.f32 %v4600_v1, %v4390_v23  ;;  %v4322_v26 = vadd.f32 %v4321_v32, %v13482_v13  ;;  %16163 = vst [vmem:[#allocation183_spill] sm:$0xff] %v13506_v14  ;;  %16166 = vst [vmem:[#allocation173_spill] sm:$0xff] %v13514_v29  ;;  %v4401_v23 = vmul.f32 %v13506_v14, %v13506_v14  ;;  %v16167_v1 = vld [vmem:[#allocation178_spill] sm:$0xff] }
 0x6ab   :  { %v4565_v48 = vadd.f32 %v4564_v57, %v4393_v15  ;;  %v4286_v38 = vadd.f32 %v4285_v46, %v13498_v52  ;;  %v13519_v32 = vadd.f32 %v3850_v54, %v16167_v1  ;;  %v4398_v57 = vmul.f32 %v13514_v29, %v13514_v29  ;;  %v16170_v1 = vld [vmem:[#allocation181_spill] sm:$0xff] }
 0x6ac   :  { %v4602_v3 = vadd.f32 %v4601_v35, %v4394_v61  ;;  %v4323_v15 = vadd.f32 %v4322_v26, %v13514_v29  ;;  %v4405_v54 = vmul.f32 %v13522_v27, %v13522_v27  ;;  %v3866_v35 = vrot.slane %v16164_v25, %v16161_v44  ;;  %v16175_v25 = vld [vmem:[#allocation132_spill] sm:$0xff] }
 0x6ad   :  { %16168 = vst [vmem:[#allocation197_spill] sm:$0xff] %v13519_v32  ;;  %v4566_v45 = vadd.f32 %v4565_v48, %v4397_v4  ;;  %v4287_v46 = vadd.f32 %v4286_v38, %v13506_v14  ;;  %v4402_v61 = vmul.f32 %v13519_v32, %v13519_v32  ;;  %v13537_v48 = vadd.f32 %v3862_v59, %v16170_v1 }
 0x6ae   :  { %v4603_v26 = vadd.f32 %v4602_v3, %v4398_v57  ;;  %v4324_v33 = vadd.f32 %v4323_v15, %v13519_v32  ;;  %v13542_v5 = vadd.f32 %v3866_v35, %v16171_v21  ;;  %v13547_v8 = vadd.f32 %v3866_v35, %v16173_v34  ;;  %v16176_v57 = vld [vmem:[#allocation179_spill] sm:$0xff] }
 0x6af   :  { %v4567_v4 = vadd.f32 %v4566_v45, %v4401_v23  ;;  %v4288_v38 = vadd.f32 %v4287_v46, %v13522_v27  ;;  %v4409_v47 = vmul.f32 %v13537_v48, %v13537_v48  ;;  %v3878_v56 = vrot.slane %v16175_v25, %v16157_v6  ;;  %v13554_v23 = vpop.f32.mrf.mxu1 }
 0x6b0   :  { %16172 = vst [vmem:[#allocation198_spill] sm:$0xff] %v13542_v5  ;;  %16174 = vst [vmem:[#allocation100_spill] sm:$0xff] %v13547_v8  ;;  %v4604_v59 = vadd.f32 %v4603_v26, %v4402_v61  ;;  %v3882_v3 = vrot.slane %v16175_v25, %v16161_v44  ;;  %v4325_v21 = vadd.f32 %v4324_v33, %v13542_v5  ;;  %v16179_v26 = vld [vmem:[#allocation186_spill] sm:$0xff] }
 0x6b1   :  { %v4568_v1 = vadd.f32 %v4567_v4, %v4405_v54  ;;  %v4289_v45 = vadd.f32 %v4288_v38, %v13537_v48  ;;  %v4406_v15 = vmul.f32 %v13542_v5, %v13542_v5  ;;  %v4410_v34 = vmul.f32 %v13547_v8, %v13547_v8  ;;  %v16177_v54 = vld [vmem:[#allocation180_spill] sm:$0xff]  ;;  %v16180_v38 = vld [vmem:[#allocation189_spill] sm:$0xff] }
 0x6b2   :  { %v13562_v46 = vadd.f32 %v3878_v56, %v16176_v57  ;;  %v13565_v35 = vadd.f32 %v3882_v3, %v16177_v54  ;;  %v13568_v4 = vadd.f32 %v3878_v56, %v16179_v26  ;;  %v13571_v25 = vadd.f32 %v3882_v3, %v16180_v38  ;;  %v16182_v3 = vld [vmem:[#allocation95_spill] sm:$0xff] }
 0x6b3   :  { %v4569_v61 = vadd.f32 %v4568_v1, %v4409_v47  ;;  %v4605_v33 = vadd.f32 %v4604_v59, %v4406_v15  ;;  %v4326_v17 = vadd.f32 %v4325_v21, %v13547_v8  ;;  %v3894_v57 = vrot.slane %v16182_v3, %v16157_v6  ;;  %v13585_v59 = vpop.f32.mrf.mxu1  ;;  %v16183_v26 = vld [vmem:[#allocation191_spill] sm:$0xff] }
 0x6b4   :  { %16178 = vst [vmem:[#allocation171_spill] sm:$0xff] %v13565_v35  ;;  %16181 = vst [vmem:[#allocation110_spill] sm:$0xff] %v13571_v25  ;;  %v4290_v10 = vadd.f32 %v4289_v45, %v13562_v46  ;;  %v4413_v37 = vmul.f32 %v13562_v46, %v13562_v46  ;;  %v4414_v47 = vmul.f32 %v13565_v35, %v13565_v35 }
 0x6b5   :  { %v4417_v1 = vmul.f32 %v13568_v4, %v13568_v4  ;;  %v4418_v56 = vmul.f32 %v13571_v25, %v13571_v25  ;;  %v4606_v21 = vadd.f32 %v4605_v33, %v4410_v34  ;;  %v4327_v45 = vadd.f32 %v4326_v17, %v13565_v35 }
 0x6b6   :  { %v4570_v15 = vadd.f32 %v4569_v61, %v4413_v37  ;;  %v4291_v54 = vadd.f32 %v4290_v10, %v13568_v4  ;;  %v13590_v38 = vadd.f32 %v3894_v57, %v16183_v26  ;;  %v3898_v11 = vrot.slane %v16182_v3, %v16161_v44  ;;  %v16186_v61 = vld [vmem:[#allocation195_spill] sm:$0xff]  ;;  %v13610_v3 = vpop.f32.mrf.mxu1 }
 0x6b7   :  { %v13595_v20 = vadd.f32 %v3894_v57, %v16184_v2  ;;  %v4607_v62 = vadd.f32 %v4606_v21, %v4414_v47  ;;  %v4328_v37 = vadd.f32 %v4327_v45, %v13571_v25  ;;  %v3914_v17 = vrot.slane %v16185_v40, %v16161_v44  ;;  %v16190_v21 = vld [vmem:[#allocation202_spill] sm:$0xff] }
 0x6b8   :  { %v4571_v39 = vadd.f32 %v4570_v15, %v4417_v1  ;;  %v4292_v10 = vadd.f32 %v4291_v54, %v13590_v38  ;;  %v4421_v34 = vmul.f32 %v13590_v38, %v13590_v38  ;;  %v13606_v33 = vadd.f32 %v3898_v11, %v16186_v61  ;;  %v16188_v1 = vld [vmem:[#allocation201_spill] sm:$0xff]  ;;  %v13636_v22 = vpop.f32.mrf.mxu1 }
 0x6b9   :  { %v4425_v2 = vmul.f32 %v13595_v20, %v13595_v20  ;;  %v4608_v47 = vadd.f32 %v4607_v62, %v4418_v56  ;;  %v13613_v57 = vadd.f32 %v3898_v11, %v16188_v1  ;;  %v13616_v15 = vadd.f32 %v3910_v0, %v16190_v21  ;;  %v16192_v1 = vld [vmem:[#allocation199_spill] sm:$0xff] }
 0x6ba   :  { %16187 = vst [vmem:[#allocation177_spill] sm:$0xff] %v13606_v33  ;;  %v13619_v40 = vadd.f32 %v3914_v17, %v12988_v28  ;;  %v4572_v45 = vadd.f32 %v4571_v39, %v4421_v34  ;;  %v4329_v54 = vadd.f32 %v4328_v37, %v13606_v33  ;;  %v4422_v26 = vmul.f32 %v13606_v33, %v13606_v33 }
 0x6bb   :  { %16189 = vst [vmem:[#allocation94_spill] sm:$0xff] %v13613_v57  ;;  %v4293_v61 = vadd.f32 %v4292_v10, %v13595_v20  ;;  %v4426_v62 = vmul.f32 %v13613_v57, %v13613_v57  ;;  %v4429_v11 = vmul.f32 %v13616_v15, %v13616_v15  ;;  %v13632_v28 = vadd.f32 %v3910_v0, %v16192_v1 }
 0x6bc   :  { %16191 = vst [vmem:[#allocation172_spill] sm:$0xff] %v13619_v40  ;;  %v4430_v56 = vmul.f32 %v13619_v40, %v13619_v40  ;;  %v4609_v39 = vadd.f32 %v4608_v47, %v4422_v26  ;;  %v4573_v34 = vadd.f32 %v4572_v45, %v4425_v2  ;;  %v4330_v37 = vadd.f32 %v4329_v54, %v13613_v57 }
 0x6bd   :  { %v4294_v21 = vadd.f32 %v4293_v61, %v13616_v15  ;;  %v4433_v10 = vmul.f32 %v13632_v28, %v13632_v28  ;;  %v13641_v16 = vadd.f32 %v3914_v17, %v13032_v55  ;;  %v3926_v25 = vrot.slane %v16194_v41, %v16157_v6  ;;  %v16195_v61 = vld [vmem:[#allocation151_spill] sm:$0xff] }
 0x6be   :  { %v3930_v0 = vrot.slane %v16194_v41, %v16161_v44  ;;  %v4610_v47 = vadd.f32 %v4609_v39, %v4426_v62  ;;  %v4574_v2 = vadd.f32 %v4573_v34, %v4429_v11  ;;  %v4331_v45 = vadd.f32 %v4330_v37, %v13619_v40  ;;  %v13664_v39 = vpop.f32.mrf.mxu1 }
 0x6bf   :  { %16193 = vst [vmem:[#allocation178_spill] sm:$0xff] %v13641_v16  ;;  %v4295_v54 = vadd.f32 %v4294_v21, %v13632_v28  ;;  %v4434_v26 = vmul.f32 %v13641_v16, %v13641_v16  ;;  %v13652_v1 = vadd.f32 %v3926_v25, %v16195_v61  ;;  %v13658_v17 = vadd.f32 %v3926_v25, %v13142_v31  ;;  %v16198_v21 = vld [vmem:[#allocation81_spill] sm:$0xff] }
 0x6c0   :  { %v13655_v55 = vadd.f32 %v3930_v0, %v13124_v36  ;;  %v4611_v35 = vadd.f32 %v4610_v47, %v4430_v56  ;;  %v4575_v41 = vadd.f32 %v4574_v2, %v4433_v10  ;;  %v4332_v62 = vadd.f32 %v4331_v45, %v13641_v16  ;;  %v16199_v45 = vld [vmem:[#allocation150_spill] sm:$0xff]  ;;  %v3598_v8 = vpop.f32.mrf.mxu1 }
 0x6c1   :  { %v13662_v11 = vadd.f32 %v3930_v0, %v13172_v51  ;;  %v4296_v34 = vadd.f32 %v4295_v54, %v13652_v1  ;;  %v4437_v37 = vmul.f32 %v13652_v1, %v13652_v1  ;;  %v4441_v31 = vmul.f32 %v13658_v17, %v13658_v17 }
 0x6c2   :  { %16196 = vst [vmem:[#allocation175_spill] sm:$0xff] %v13655_v55  ;;  %v4438_v36 = vmul.f32 %v13655_v55, %v13655_v55  ;;  %v4612_v25 = vadd.f32 %v4611_v35, %v4434_v26  ;;  %v4333_v56 = vadd.f32 %v4332_v62, %v13655_v55  ;;  %v3942_v10 = vrot.slane %v16198_v21, %v16157_v6 }
 0x6c3   :  { %16197 = vst [vmem:[#allocation181_spill] sm:$0xff] %v13662_v11  ;;  %v4442_v51 = vmul.f32 %v13662_v11, %v13662_v11  ;;  %v4576_v0 = vadd.f32 %v4575_v41, %v4437_v37  ;;  %v4297_v47 = vadd.f32 %v4296_v34, %v13658_v17  ;;  %v3946_v2 = vrot.slane %v16198_v21, %v16161_v44 }
 0x6c4   :  { %v3958_v54 = vrot.slane %v16199_v45, %v16157_v6  ;;  %v4613_v61 = vadd.f32 %v4612_v25, %v4438_v36  ;;  %v4334_v35 = vadd.f32 %v4333_v56, %v13662_v11  ;;  %v13685_v26 = vadd.f32 %v3942_v10, %v13238_v30 }
 0x6c5   :  { %v13688_v62 = vadd.f32 %v3942_v10, %v13310_v43  ;;  %v4577_v5 = vadd.f32 %v4576_v0, %v4441_v31  ;;  %v13691_v41 = vadd.f32 %v3946_v2, %v13292_v58  ;;  %v13694_v34 = vadd.f32 %v3946_v2, %v13336_v12  ;;  %v3602_v0 = vpop.f32.mrf.mxu1 }
 0x6c6   :  { %v13697_v37 = vadd.f32 %v3958_v54, %v13386_v7  ;;  %v4614_v36 = vadd.f32 %v4613_v61, %v4442_v51  ;;  %v4298_v25 = vadd.f32 %v4297_v47, %v13685_v26  ;;  %v4445_v30 = vmul.f32 %v13685_v26, %v13685_v26  ;;  %v16202_v61 = vld [vmem:[#allocation91_spill] sm:$0xff] }
 0x6c7   :  { %16200 = vst [vmem:[#allocation176_spill] sm:$0xff] %v13691_v41  ;;  %16201 = vst [vmem:[#allocation182_spill] sm:$0xff] %v13694_v34  ;;  %v4449_v43 = vmul.f32 %v13688_v62, %v13688_v62  ;;  %v4335_v31 = vadd.f32 %v4334_v35, %v13691_v41  ;;  %v4446_v58 = vmul.f32 %v13691_v41, %v13691_v41 }
 0x6c8   :  { %v4450_v12 = vmul.f32 %v13694_v34, %v13694_v34  ;;  %v4453_v7 = vmul.f32 %v13697_v37, %v13697_v37  ;;  %v4578_v56 = vadd.f32 %v4577_v5, %v4445_v30  ;;  %v4299_v51 = vadd.f32 %v4298_v25, %v13688_v62 }
 0x6c9   :  { %v3962_v21 = vrot.slane %v16199_v45, %v16161_v44  ;;  %v13715_v10 = vadd.f32 %v3958_v54, %v13446_v19  ;;  %v4615_v47 = vadd.f32 %v4614_v36, %v4446_v58  ;;  %v4336_v2 = vadd.f32 %v4335_v31, %v13694_v34 }
 0x6ca   :  { %v3974_v35 = vrot.slane %v16202_v61, %v16157_v6  ;;  %v3978_v32 = vrot.slane %v16202_v61, %v16161_v44  ;;  %v4579_v29 = vadd.f32 %v4578_v56, %v4449_v43  ;;  %v4300_v5 = vadd.f32 %v4299_v51, %v13697_v37  ;;  %v3604_v56 = vpop.f32.mrf.mxu1  ;;  %v16207_v61 = vld [vmem:[#allocation161_spill] sm:$0xff] }
 0x6cb   :  { %v13724_v25 = vadd.f32 %v3962_v21, %v13428_v24  ;;  %v4457_v19 = vmul.f32 %v13715_v10, %v13715_v10  ;;  %v4616_v45 = vadd.f32 %v4615_v47, %v4450_v12  ;;  %v13729_v54 = vadd.f32 %v3962_v21, %v13468_v42 }
 0x6cc   :  { %v13732_v36 = vadd.f32 %v3974_v35, %v13502_v50  ;;  %v13735_v30 = vadd.f32 %v3978_v32, %v13528_v63  ;;  %v4580_v31 = vadd.f32 %v4579_v29, %v4453_v7  ;;  %v4301_v58 = vadd.f32 %v4300_v5, %v13715_v10 }
 0x6cd   :  { %16203 = vst [vmem:[#allocation132_spill] sm:$0xff] %v13724_v25  ;;  %16204 = vst [vmem:[#allocation179_spill] sm:$0xff] %v13729_v54  ;;  %v4337_v43 = vadd.f32 %v4336_v2, %v13724_v25  ;;  %v4454_v24 = vmul.f32 %v13724_v25, %v13724_v25  ;;  %v4458_v12 = vmul.f32 %v13729_v54, %v13729_v54 }
 0x6ce   :  { %16205 = vst [vmem:[#allocation180_spill] sm:$0xff] %v13735_v30  ;;  %v4461_v42 = vmul.f32 %v13732_v36, %v13732_v36  ;;  %v4462_v50 = vmul.f32 %v13735_v30, %v13735_v30  ;;  %v13748_v63 = vadd.f32 %v3974_v35, %v13554_v23  ;;  %v4581_v7 = vadd.f32 %v4580_v31, %v4457_v19  ;;  %v3606_v31 = vpop.f32.mrf.mxu1 }
 0x6cf   :  { %v4617_v29 = vadd.f32 %v4616_v45, %v4454_v24  ;;  %v4338_v51 = vadd.f32 %v4337_v43, %v13729_v54  ;;  %v4302_v21 = vadd.f32 %v4301_v58, %v13732_v36  ;;  %v13755_v2 = vadd.f32 %v3978_v32, %v13585_v59 }
 0x6d0   :  { %v4465_v47 = vmul.f32 %v13748_v63, %v13748_v63  ;;  %v3990_v5 = vrot.slane %v16207_v61, %v16157_v6  ;;  %v3994_v13 = vrot.slane %v16207_v61, %v16161_v44  ;;  %v4582_v35 = vadd.f32 %v4581_v7, %v4461_v42 }
 0x6d1   :  { %16206 = vst [vmem:[#allocation186_spill] sm:$0xff] %v13755_v2  ;;  %v4618_v23 = vadd.f32 %v4617_v29, %v4458_v12  ;;  %v4339_v19 = vadd.f32 %v4338_v51, %v13735_v30  ;;  %v4303_v45 = vadd.f32 %v4302_v21, %v13748_v63  ;;  %v4466_v43 = vmul.f32 %v13755_v2, %v13755_v2 }
 0x6d2   :  { %v13766_v24 = vadd.f32 %v3990_v5, %v13610_v3  ;;  %v13769_v32 = vadd.f32 %v3994_v13, %v13636_v22  ;;  %v13772_v59 = vadd.f32 %v3990_v5, %v13664_v39  ;;  %v4583_v12 = vadd.f32 %v4582_v35, %v4465_v47  ;;  %v3608_v47 = vpop.f32.mrf.mxu1 }
 0x6d3   :  { %v4619_v58 = vadd.f32 %v4618_v23, %v4462_v50  ;;  %v4340_v42 = vadd.f32 %v4339_v19, %v13755_v2  ;;  %v13775_v29 = vadd.f32 %v3994_v13, %v3598_v8  ;;  %v16210_v8 = vld [vmem:[#allocation162_spill] sm:$0xff] }
 0x6d4   :  { %16208 = vst [vmem:[#allocation189_spill] sm:$0xff] %v13769_v32  ;;  %v4304_v7 = vadd.f32 %v4303_v45, %v13766_v24  ;;  %v4469_v51 = vmul.f32 %v13766_v24, %v13766_v24  ;;  %v4470_v3 = vmul.f32 %v13769_v32, %v13769_v32  ;;  %v4473_v22 = vmul.f32 %v13772_v59, %v13772_v59  ;;  %v16243_v2 = vld [vmem:[#allocation110_spill] sm:$0xff] }
 0x6d5   :  { %16209 = vst [vmem:[#allocation95_spill] sm:$0xff] %v13775_v29  ;;  %v4620_v21 = vadd.f32 %v4619_v58, %v4466_v43  ;;  %v4341_v39 = vadd.f32 %v4340_v42, %v13769_v32  ;;  %v4474_v50 = vmul.f32 %v13775_v29, %v13775_v29  ;;  %v4006_v13 = vrot.slane %v16210_v8, %v16157_v6  ;;  %v16241_v32 = vld [vmem:[#allocation100_spill] sm:$0xff] }
 0x6d6   :  { %v4584_v61 = vadd.f32 %v4583_v12, %v4469_v51  ;;  %v4305_v5 = vadd.f32 %v4304_v7, %v13772_v59  ;;  %v4010_v23 = vrot.slane %v16210_v8, %v16161_v44 }
 0x6d7   :  { %v4621_v35 = vadd.f32 %v4620_v21, %v4470_v3  ;;  %v4342_v19 = vadd.f32 %v4341_v39, %v13775_v29  ;;  %v13793_v45 = vadd.f32 %v4006_v13, %v3602_v0  ;;  %v13795_v43 = vadd.f32 %v4006_v13, %v3606_v31 }
 0x6d8   :  { %v4585_v58 = vadd.f32 %v4584_v61, %v4473_v22  ;;  %v13797_v42 = vadd.f32 %v4010_v23, %v3604_v56  ;;  %v13799_v53 = vadd.f32 %v4010_v23, %v3608_v47 }
 0x6d9   :  { %v4622_v49 = vadd.f32 %v4621_v35, %v4474_v50  ;;  %v4306_v12 = vadd.f32 %v4305_v5, %v13793_v45  ;;  %v4477_v7 = vmul.f32 %v13793_v45, %v13793_v45  ;;  %v4481_v51 = vmul.f32 %v13795_v43, %v13795_v43 }
 0x6da   :  { %16211 = vst [vmem:[#allocation191_spill] sm:$0xff] %v13797_v42  ;;  %16212 = vst [vmem:[#allocation196_spill] sm:$0xff] %v13799_v53  ;;  %v4343_v3 = vadd.f32 %v4342_v19, %v13797_v42  ;;  %v4478_v0 = vmul.f32 %v13797_v42, %v13797_v42  ;;  %v4482_v56 = vmul.f32 %v13799_v53, %v13799_v53 }
 0x6db   :  { %v4586_v31 = vadd.f32 %v4585_v58, %v4477_v7  ;;  %v4307_v22 = vadd.f32 %v4306_v12, %v13795_v43 }
 0x6dc   :  { %v4623_v21 = vadd.f32 %v4622_v49, %v4478_v0  ;;  %v4344_v39 = vadd.f32 %v4343_v3, %v13799_v53 }
 0x6dd   :  { %v4308_v50 = vrot.slane %v4307_v22, 4  ;;  %v4587_v8 = vadd.f32 %v4586_v31, %v4481_v51 }
 0x6de   :  { %v4345_v13 = vrot.slane %v4344_v39, 4  ;;  %v4624_v47 = vadd.f32 %v4623_v21, %v4482_v56 }
 0x6df   :  { %v4309_v61 = vadd.f32 %v4308_v50, %v4307_v22  ;;  %v4588_v5 = vrot.slane %v4587_v8, 4 }
 0x6e0   :  { %v4346_v23 = vadd.f32 %v4345_v13, %v4344_v39  ;;  %v4625_v35 = vrot.slane %v4624_v47, 4 }
 0x6e1   :  { %v4310_v19 = vrot.slane %v4309_v61, 2  ;;  %v4589_v14 = vadd.f32 %v4588_v5, %v4587_v8 }
 0x6e2   :  { %v4347_v52 = vrot.slane %v4346_v23, 2  ;;  %v4626_v9 = vadd.f32 %v4625_v35, %v4624_v47  ;;  %v16218_v35 = vld [vmem:[#allocation169_spill] sm:$0xff] }
 0x6e3   :  { %v4311_v60 = vadd.f32 %v4310_v19, %v4309_v61  ;;  %v4590_v18 = vrot.slane %v4589_v14, 2 }
 0x6e4   :  { %v4348_v58 = vadd.f32 %v4347_v52, %v4346_v23  ;;  %v4627_v7 = vrot.slane %v4626_v9, 2  ;;  %v16242_v52 = vld [vmem:[#allocation171_spill] sm:$0xff] }
 0x6e5   :  { %v4312_v12 = vrot.slane %v4311_v60, 1  ;;  %v4591_v49 = vadd.f32 %v4590_v18, %v4589_v14 }
 0x6e6   :  { %v4349_v0 = vrot.slane %v4348_v58, 1  ;;  %v4628_v3 = vadd.f32 %v4627_v7, %v4626_v9 }
 0x6e7   :  { %v4313_v53 = vadd.f32 %v4312_v12, %v4311_v60  ;;  %v4592_v51 = vrot.slane %v4591_v49, 1 }
 0x6e8   :  { %v4350_v22 = vadd.f32 %v4349_v0, %v4348_v58  ;;  %v4629_v21 = vrot.slane %v4628_v3, 1  ;;  %v16217_v58 = vld [vmem:[#allocation163_spill] sm:$0xff] }
 0x6e9   :  { %v13813_v31 = vmul.f32 0.00390625, %v4313_v53  ;;  %v4593_v56 = vadd.f32 %v4592_v51, %v4591_v49  ;;  %v8981_v49 = vld [vmem:[#allocation18] sm:$0xf] }
 0x6ea   :  { %v13819_v13 = vmul.f32 0.00390625, %v4350_v22  ;;  %v4630_v18 = vadd.f32 %v4629_v21, %v4628_v3  ;;  %v13862_v0 = vrot.slane %v8981_v49, %v16157_v6  ;;  %v8982_v3 = vld [vmem:[#allocation20] sm:$0xf] }
 0x6eb   :  { %v4633_v39 = vmul.f32 0.00390625, %v4593_v56  ;;  %v4637_v50 = vmul.f32 %v13813_v31, %v13813_v31  ;;  %v13865_v12 = vrot.slane %v8982_v3, %v16157_v6  ;;  %v16213_v56 = vld [vmem:[#allocation131_spill] sm:$0xff]  ;;  %v4653_v19 = vsub.f32 %v16217_v58, %v13813_v31 }
 0x6ec   :  { %v4645_v7 = vsub.f32 %v16213_v56, %v13813_v31  ;;  %v16214_v22 = vld [vmem:[#allocation123_spill] sm:$0xff]  ;;  %v4657_v23 = vsub.f32 %v16218_v35, %v13813_v31  ;;  %v16220_v56 = vld [vmem:[#allocation168_spill] sm:$0xff]  ;;  %v16224_v35 = vld [vmem:[#allocation193_spill] sm:$0xff]  ;;  %v16244_v11 = vsub.f32 %v13522_v27, %v13813_v31  ;;  %v16245_v16 = vsub.f32 %v13537_v48, %v13813_v31 }
 0x6ed   :  { %v4641_v8 = vsub.f32 %v4633_v39, %v4637_v50  ;;  %v4634_v39 = vmul.f32 0.00390625, %v4630_v18  ;;  %v4638_v50 = vmul.f32 %v13819_v13, %v13819_v13  ;;  %v13872_v18 = vrot.slane %v8981_v49, %v16161_v44  ;;  %v16223_v58 = vld [vmem:[#allocation187_spill] sm:$0xff] }
 0x6ee   :  { %v4665_v5 = vsub.f32 %v16220_v56, %v13813_v31  ;;  %v4673_v47 = vsub.f32 %v16223_v58, %v13813_v31  ;;  %v4677_v9 = vsub.f32 %v16224_v35, %v13813_v31  ;;  %v16227_v56 = vld [vmem:[#allocation183_spill] sm:$0xff]  ;;  %v16230_v58 = vld [vmem:[#allocation164_spill] sm:$0xff]  ;;  %v16231_v35 = vld [vmem:[#allocation170_spill] sm:$0xff]  ;;  %v16249_v27 = vsub.f32 %v13595_v20, %v13813_v31 }
 0x6ef   :  { %v4773_v21 = vadd.f32 1e-05, %v4641_v8  ;;  %v4642_v51 = vsub.f32 %v4634_v39, %v4638_v50  ;;  %v4649_v8 = vsub.f32 %v16214_v22, %v13813_v31  ;;  %16215 = vst [vmem:[#allocation93_spill] sm:$0xff] %v13872_v18  ;;  %v16219_v39 = vld [vmem:[#allocation167_spill] sm:$0xff]  ;;  %v4689_v14 = vsub.f32 %v16227_v56, %v13813_v31  ;;  %v16228_v22 = vld [vmem:[#allocation166_spill] sm:$0xff] }
 0x6f0   :  { %v4661_v50 = vsub.f32 %v16219_v39, %v13813_v31  ;;  %v16226_v39 = vld [vmem:[#allocation113_spill] sm:$0xff]  ;;  %v16234_v56 = vld [vmem:[#allocation190_spill] sm:$0xff]  ;;  %v16250_v48 = vsub.f32 %v13616_v15, %v13813_v31  ;;  %v16254_v20 = vsub.f32 %v13685_v26, %v13813_v31  ;;  %v16255_v15 = vsub.f32 %v13688_v62, %v13813_v31 }
 0x6f1   :  { %8977 = vrsqrt.f32 %v4773_v21  ;;  %v13875_v21 = vrot.slane %v8982_v3, %v16161_v44  ;;  %v16222_v44 = vld [vmem:[#allocation184_spill] sm:$0xff]  ;;  %v16225_v3 = vld [vmem:[#allocation115_spill] sm:$0xff]  ;;  %v4685_v53 = vsub.f32 %v16226_v39, %v13813_v31  ;;  %v4774_v6 = vadd.f32 1e-05, %v4642_v51  ;;  %v16233_v39 = vld [vmem:[#allocation185_spill] sm:$0xff] }
 0x6f2   :  { %v4669_v61 = vsub.f32 %v16222_v44, %v13813_v31  ;;  %v4681_v60 = vsub.f32 %v16225_v3, %v13813_v31  ;;  %v16229_v44 = vld [vmem:[#allocation117_spill] sm:$0xff]  ;;  %v16232_v3 = vld [vmem:[#allocation174_spill] sm:$0xff]  ;;  %v16235_v51 = vld [vmem:[#allocation188_spill] sm:$0xff]  ;;  %v16259_v26 = vsub.f32 %v13748_v63, %v13813_v31  ;;  %v16260_v62 = vsub.f32 %v13766_v24, %v13813_v31 }
 0x6f3   :  { %16216 = vst [vmem:[#allocation195_spill] sm:$0xff] %v13875_v21  ;;  %8979 = vrsqrt.f32 %v4774_v6 }
 0x6fe   :  { %v8978_v41 = vpop.eup %8977 }
 0x6ff   :  { %v4781_v30 = vmul.f32 %v8978_v41, %v4645_v7  ;;  %v4785_v40 = vmul.f32 %v8978_v41, %v4649_v8  ;;  %v4789_v54 = vmul.f32 %v8978_v41, %v4653_v19  ;;  %v4793_v57 = vmul.f32 %v8978_v41, %v4657_v23 }
 0x700   :  { %v4797_v33 = vmul.f32 %v8978_v41, %v4661_v50  ;;  %v4801_v25 = vmul.f32 %v8978_v41, %v4665_v5  ;;  %v4805_v42 = vmul.f32 %v8978_v41, %v4669_v61  ;;  %v4809_v49 = vmul.f32 %v8978_v41, %v4673_v47 }
 0x701   :  { %v4813_v34 = vmul.f32 %v8978_v41, %v4677_v9  ;;  %v4817_v29 = vmul.f32 %v8978_v41, %v4681_v60  ;;  %v4821_v18 = vmul.f32 %v8978_v41, %v4685_v53  ;;  %v4825_v21 = vmul.f32 %v8978_v41, %v4689_v14 }
 0x702   :  { %v4829_v55 = vmul.f32 %v8978_v41, %v16244_v11  ;;  %v4833_v6 = vmul.f32 %v8978_v41, %v16245_v16  ;;  %v16246_v19 = vsub.f32 %v13562_v46, %v13813_v31  ;;  %v16247_v61 = vsub.f32 %v13568_v4, %v13813_v31 }
 0x703   :  { %v16248_v53 = vsub.f32 %v13590_v38, %v13813_v31  ;;  %v4849_v11 = vmul.f32 %v8978_v41, %v16249_v27  ;;  %v4853_v16 = vmul.f32 %v8978_v41, %v16250_v48  ;;  %v16251_v46 = vsub.f32 %v13632_v28, %v13813_v31 }
 0x704   :  { %v4837_v23 = vmul.f32 %v8978_v41, %v16246_v19  ;;  %v4841_v47 = vmul.f32 %v8978_v41, %v16247_v61  ;;  %v16252_v4 = vsub.f32 %v13652_v1, %v13813_v31  ;;  %v16253_v38 = vsub.f32 %v13658_v17, %v13813_v31 }
 0x705   :  { %v4845_v14 = vmul.f32 %v8978_v41, %v16248_v53  ;;  %v4857_v60 = vmul.f32 %v8978_v41, %v16251_v46  ;;  %v4869_v7 = vmul.f32 %v8978_v41, %v16254_v20  ;;  %v4873_v8 = vmul.f32 %v8978_v41, %v16255_v15 }
 0x706   :  { %v4861_v9 = vmul.f32 %v8978_v41, %v16252_v4  ;;  %v4865_v5 = vmul.f32 %v8978_v41, %v16253_v38  ;;  %v16256_v28 = vsub.f32 %v13697_v37, %v13813_v31  ;;  %v16257_v1 = vsub.f32 %v13715_v10, %v13813_v31 }
 0x707   :  { %v16258_v17 = vsub.f32 %v13732_v36, %v13813_v31  ;;  %v4889_v53 = vmul.f32 %v8978_v41, %v16259_v26  ;;  %v4893_v27 = vmul.f32 %v8978_v41, %v16260_v62  ;;  %v16261_v37 = vsub.f32 %v13772_v59, %v13813_v31 }
 0x708   :  { %v4877_v50 = vmul.f32 %v8978_v41, %v16256_v28  ;;  %v4881_v19 = vmul.f32 %v8978_v41, %v16257_v1  ;;  %v16262_v10 = vsub.f32 %v13793_v45, %v13813_v31  ;;  %v16263_v36 = vsub.f32 %v13795_v43, %v13813_v31  ;;  %v14037_v43 = vpop.eup %8979 }
 0x709   :  { %v4885_v61 = vmul.f32 %v8978_v41, %v16258_v17  ;;  %v4897_v48 = vmul.f32 %v8978_v41, %v16261_v37  ;;  %v4931_v38 = vmul.f32 %v13862_v0, %v4781_v30  ;;  %v4935_v63 = vmul.f32 %v13862_v0, %v4785_v40 }
 0x70a   :  { %v4901_v46 = vmul.f32 %v8978_v41, %v16262_v10  ;;  %v4905_v4 = vmul.f32 %v8978_v41, %v16263_v36  ;;  %v4939_v20 = vmul.f32 %v13862_v0, %v4789_v54  ;;  %v4943_v24 = vmul.f32 %v13862_v0, %v4793_v57 }
 0x70b   :  { %v4947_v15 = vmul.f32 %v13862_v0, %v4797_v33  ;;  %v4951_v59 = vmul.f32 %v13862_v0, %v4801_v25  ;;  %v4955_v28 = vmul.f32 %v13862_v0, %v4805_v42  ;;  %v4959_v45 = vmul.f32 %v13862_v0, %v4809_v49 }
 0x70c   :  { %v4963_v1 = vmul.f32 %v13862_v0, %v4813_v34  ;;  %v4967_v41 = vmul.f32 %v13862_v0, %v4817_v29  ;;  %v4971_v30 = vmul.f32 %v13862_v0, %v4821_v18  ;;  %v4975_v40 = vmul.f32 %v13862_v0, %v4825_v21 }
 0x70d   :  { %v4979_v54 = vmul.f32 %v13862_v0, %v4829_v55  ;;  %v4983_v57 = vmul.f32 %v13862_v0, %v4833_v6  ;;  %v4987_v33 = vmul.f32 %v13862_v0, %v4837_v23  ;;  %v4991_v25 = vmul.f32 %v13862_v0, %v4841_v47 }
 0x70e   :  { %v4995_v42 = vmul.f32 %v13862_v0, %v4845_v14  ;;  %v4999_v34 = vmul.f32 %v13862_v0, %v4849_v11  ;;  %v5003_v29 = vmul.f32 %v13862_v0, %v4853_v16  ;;  %v5007_v31 = vmul.f32 %v13862_v0, %v4857_v60 }
 0x70f   :  { %v5011_v18 = vmul.f32 %v13862_v0, %v4861_v9  ;;  %v5015_v55 = vmul.f32 %v13862_v0, %v4865_v5  ;;  %v5019_v21 = vmul.f32 %v13862_v0, %v4869_v7  ;;  %v5023_v49 = vmul.f32 %v13862_v0, %v4873_v8 }
 0x710   :  { %v5027_v6 = vmul.f32 %v13862_v0, %v4877_v50  ;;  %v5031_v23 = vmul.f32 %v13862_v0, %v4881_v19  ;;  %v5035_v47 = vmul.f32 %v13862_v0, %v4885_v61  ;;  %v5039_v14 = vmul.f32 %v13862_v0, %v4889_v53 }
 0x711   :  { %v5043_v11 = vmul.f32 %v13862_v0, %v4893_v27  ;;  %v5047_v16 = vmul.f32 %v13862_v0, %v4897_v48  ;;  %v5051_v60 = vmul.f32 %v13862_v0, %v4901_v46  ;;  %v5055_v9 = vmul.f32 %v13862_v0, %v4905_v4 }
 0x712   :  { %v14056_v5 = vadd.f32 %v13865_v12, %v4931_v38  ;;  %v14059_v7 = vadd.f32 %v13865_v12, %v4935_v63  ;;  %v14062_v8 = vadd.f32 %v13865_v12, %v4939_v20  ;;  %v14065_v50 = vadd.f32 %v13865_v12, %v4943_v24 }
 0x713   :  { %v14068_v19 = vadd.f32 %v13865_v12, %v4947_v15  ;;  %v14071_v17 = vadd.f32 %v13865_v12, %v4951_v59  ;;  %v14074_v0 = vadd.f32 %v13865_v12, %v4955_v28  ;;  %v14077_v61 = vadd.f32 %v13865_v12, %v4959_v45 }
 0x714   :  { %v14080_v26 = vadd.f32 %v13865_v12, %v4963_v1  ;;  %v14083_v53 = vadd.f32 %v13865_v12, %v4967_v41  ;;  %v14086_v62 = vadd.f32 %v13865_v12, %v4971_v30  ;;  %v14089_v27 = vadd.f32 %v13865_v12, %v4975_v40 }
 0x715   :  { %v14092_v37 = vadd.f32 %v13865_v12, %v4979_v54  ;;  %v14095_v48 = vadd.f32 %v13865_v12, %v4983_v57  ;;  %v14098_v10 = vadd.f32 %v13865_v12, %v4987_v33  ;;  %v14101_v46 = vadd.f32 %v13865_v12, %v4991_v25  ;;  %v16306_v25 = vld [vmem:[#allocation175_spill] sm:$0xff]  ;;  %v16308_v33 = vld [vmem:[#allocation181_spill] sm:$0xff] }
 0x716   :  { %v14104_v36 = vadd.f32 %v13865_v12, %v4995_v42  ;;  %v14107_v4 = vadd.f32 %v13865_v12, %v4999_v34  ;;  %v14110_v38 = vadd.f32 %v13865_v12, %v5003_v29  ;;  %v14113_v63 = vadd.f32 %v13865_v12, %v5007_v31  ;;  %v16298_v31 = vld [vmem:[#allocation177_spill] sm:$0xff]  ;;  %v16300_v29 = vld [vmem:[#allocation94_spill] sm:$0xff]  ;;  %v16302_v34 = vld [vmem:[#allocation172_spill] sm:$0xff] }
 0x717   :  { %v14116_v20 = vadd.f32 %v13865_v12, %v5011_v18  ;;  %v14119_v24 = vadd.f32 %v13865_v12, %v5015_v55  ;;  %v14122_v15 = vadd.f32 %v13865_v12, %v5019_v21  ;;  %v14125_v59 = vadd.f32 %v13865_v12, %v5023_v49  ;;  %v16289_v21 = vld [vmem:[#allocation173_spill] sm:$0xff]  ;;  %v16293_v18 = vld [vmem:[#allocation198_spill] sm:$0xff] }
 0x718   :  { %16264 = vst [vmem:[#allocation201_spill] sm:$0xff] %v14113_v63  ;;  %v14128_v28 = vadd.f32 %v13865_v12, %v5027_v6  ;;  %v14131_v45 = vadd.f32 %v13865_v12, %v5031_v23  ;;  %v14134_v1 = vadd.f32 %v13865_v12, %v5035_v47  ;;  %v14137_v41 = vadd.f32 %v13865_v12, %v5039_v14  ;;  %v16287_v14 = vld [vmem:[#allocation194_spill] sm:$0xff]  ;;  %v16291_v55 = vld [vmem:[#allocation197_spill] sm:$0xff] }
 0x719   :  { %16265 = vst [vmem:[#allocation202_spill] sm:$0xff] %v14116_v20  ;;  %16266 = vst [vmem:[#allocation199_spill] sm:$0xff] %v14119_v24  ;;  %v14140_v30 = vadd.f32 %v13865_v12, %v5043_v11  ;;  %v14143_v40 = vadd.f32 %v13865_v12, %v5047_v16  ;;  %v14146_v54 = vadd.f32 %v13865_v12, %v5051_v60  ;;  %v16304_v42 = vld [vmem:[#allocation178_spill] sm:$0xff]  ;;  %v16330_v24 = vld [vmem:[#allocation93_spill] sm:$0xff] }
 0x71a   :  { %16267 = vst [vmem:[#allocation148_spill] sm:$0xff] %v14122_v15  ;;  %16268 = vst [vmem:[#allocation151_spill] sm:$0xff] %v14125_v59  ;;  %v14149_v57 = vadd.f32 %v13865_v12, %v5055_v9  ;;  %v16277_v23 = vsub.f32 %v16228_v22, %v13819_v13  ;;  %v16278_v11 = vsub.f32 %v16229_v44, %v13819_v13  ;;  %v16285_v12 = vld [vmem:[#allocation192_spill] sm:$0xff]  ;;  %v16326_v59 = vld [vmem:[#allocation191_spill] sm:$0xff] }
 0x71b   :  { %16269 = vst [vmem:[#allocation81_spill] sm:$0xff] %v14128_v28  ;;  %16270 = vst [vmem:[#allocation150_spill] sm:$0xff] %v14131_v45  ;;  %v16279_v60 = vsub.f32 %v16230_v58, %v13819_v13  ;;  %v16280_v49 = vsub.f32 %v16231_v35, %v13819_v13  ;;  %v16281_v22 = vsub.f32 %v16232_v3, %v13819_v13  ;;  %v16322_v45 = vld [vmem:[#allocation189_spill] sm:$0xff]  ;;  %v16324_v28 = vld [vmem:[#allocation95_spill] sm:$0xff] }
 0x71c   :  { %16271 = vst [vmem:[#allocation91_spill] sm:$0xff] %v14134_v1  ;;  %16272 = vst [vmem:[#allocation161_spill] sm:$0xff] %v14137_v41  ;;  %v4782_v47 = vmul.f32 %v14037_v43, %v16277_v23  ;;  %v4786_v16 = vmul.f32 %v14037_v43, %v16278_v11  ;;  %v16282_v44 = vsub.f32 %v16233_v39, %v13819_v13  ;;  %v16318_v41 = vld [vmem:[#allocation180_spill] sm:$0xff]  ;;  %v16320_v1 = vld [vmem:[#allocation186_spill] sm:$0xff] }
 0x71d   :  { %16273 = vst [vmem:[#allocation162_spill] sm:$0xff] %v14140_v30  ;;  %16274 = vst [vmem:[#allocation131_spill] sm:$0xff] %v14143_v40  ;;  %v4790_v9 = vmul.f32 %v14037_v43, %v16279_v60  ;;  %v4794_v6 = vmul.f32 %v14037_v43, %v16280_v49  ;;  %v4798_v23 = vmul.f32 %v14037_v43, %v16281_v22  ;;  %v16314_v40 = vld [vmem:[#allocation132_spill] sm:$0xff]  ;;  %v16316_v30 = vld [vmem:[#allocation179_spill] sm:$0xff] }
 0x71e   :  { %16275 = vst [vmem:[#allocation123_spill] sm:$0xff] %v14146_v54  ;;  %16276 = vst [vmem:[#allocation163_spill] sm:$0xff] %v14149_v57  ;;  %v4802_v11 = vmul.f32 %v14037_v43, %v16282_v44  ;;  %v16283_v58 = vsub.f32 %v16234_v56, %v13819_v13  ;;  %v16284_v35 = vsub.f32 %v16235_v51, %v13819_v13  ;;  %v16310_v57 = vld [vmem:[#allocation176_spill] sm:$0xff]  ;;  %v16312_v54 = vld [vmem:[#allocation182_spill] sm:$0xff] }
 0x71f   :  { %v16286_v3 = vsub.f32 %v16285_v12, %v13819_v13  ;;  %v16288_v39 = vsub.f32 %v16287_v14, %v13819_v13  ;;  %v16290_v56 = vsub.f32 %v16289_v21, %v13819_v13  ;;  %v16292_v51 = vsub.f32 %v16291_v55, %v13819_v13  ;;  %v16328_v15 = vld [vmem:[#allocation196_spill] sm:$0xff] }
 0x720   :  { %v4806_v60 = vmul.f32 %v14037_v43, %v16283_v58  ;;  %v4810_v49 = vmul.f32 %v14037_v43, %v16284_v35  ;;  %v16294_v12 = vsub.f32 %v16293_v18, %v13819_v13  ;;  %v16295_v14 = vsub.f32 %v16241_v32, %v13819_v13 }
 0x721   :  { %v4814_v22 = vmul.f32 %v14037_v43, %v16286_v3  ;;  %v4818_v44 = vmul.f32 %v14037_v43, %v16288_v39  ;;  %v4822_v58 = vmul.f32 %v14037_v43, %v16290_v56  ;;  %v4826_v35 = vmul.f32 %v14037_v43, %v16292_v51 }
 0x722   :  { %v4830_v3 = vmul.f32 %v14037_v43, %v16294_v12  ;;  %v4834_v39 = vmul.f32 %v14037_v43, %v16295_v14  ;;  %v16296_v21 = vsub.f32 %v16242_v52, %v13819_v13  ;;  %v16297_v55 = vsub.f32 %v16243_v2, %v13819_v13 }
 0x723   :  { %v16299_v18 = vsub.f32 %v16298_v31, %v13819_v13  ;;  %v16301_v32 = vsub.f32 %v16300_v29, %v13819_v13  ;;  %v16303_v52 = vsub.f32 %v16302_v34, %v13819_v13  ;;  %v16305_v2 = vsub.f32 %v16304_v42, %v13819_v13 }
 0x724   :  { %v4838_v56 = vmul.f32 %v14037_v43, %v16296_v21  ;;  %v4842_v51 = vmul.f32 %v14037_v43, %v16297_v55  ;;  %v16307_v31 = vsub.f32 %v16306_v25, %v13819_v13  ;;  %v16309_v29 = vsub.f32 %v16308_v33, %v13819_v13 }
 0x725   :  { %v4846_v12 = vmul.f32 %v14037_v43, %v16299_v18  ;;  %v4850_v14 = vmul.f32 %v14037_v43, %v16301_v32  ;;  %v4854_v21 = vmul.f32 %v14037_v43, %v16303_v52  ;;  %v4858_v55 = vmul.f32 %v14037_v43, %v16305_v2 }
 0x726   :  { %v4862_v18 = vmul.f32 %v14037_v43, %v16307_v31  ;;  %v4866_v32 = vmul.f32 %v14037_v43, %v16309_v29  ;;  %v16311_v34 = vsub.f32 %v16310_v57, %v13819_v13  ;;  %v16313_v42 = vsub.f32 %v16312_v54, %v13819_v13 }
 0x727   :  { %v16315_v25 = vsub.f32 %v16314_v40, %v13819_v13  ;;  %v16317_v33 = vsub.f32 %v16316_v30, %v13819_v13  ;;  %v16319_v57 = vsub.f32 %v16318_v41, %v13819_v13  ;;  %v16321_v54 = vsub.f32 %v16320_v1, %v13819_v13 }
 0x728   :  { %v4870_v52 = vmul.f32 %v14037_v43, %v16311_v34  ;;  %v4874_v2 = vmul.f32 %v14037_v43, %v16313_v42  ;;  %v16323_v40 = vsub.f32 %v16322_v45, %v13819_v13  ;;  %v16325_v30 = vsub.f32 %v16324_v28, %v13819_v13 }
 0x729   :  { %v4878_v31 = vmul.f32 %v14037_v43, %v16315_v25  ;;  %v4882_v29 = vmul.f32 %v14037_v43, %v16317_v33  ;;  %v4886_v34 = vmul.f32 %v14037_v43, %v16319_v57  ;;  %v4890_v42 = vmul.f32 %v14037_v43, %v16321_v54 }
 0x72a   :  { %v4894_v25 = vmul.f32 %v14037_v43, %v16323_v40  ;;  %v4898_v33 = vmul.f32 %v14037_v43, %v16325_v30  ;;  %v16327_v41 = vsub.f32 %v16326_v59, %v13819_v13  ;;  %v16329_v1 = vsub.f32 %v16328_v15, %v13819_v13 }
 0x72b   :  { %v4932_v20 = vmul.f32 %v16330_v24, %v4782_v47  ;;  %v4936_v45 = vmul.f32 %v16330_v24, %v4786_v16  ;;  %v4940_v40 = vmul.f32 %v16330_v24, %v4790_v9  ;;  %v4944_v28 = vmul.f32 %v16330_v24, %v4794_v6 }
 0x72c   :  { %v4902_v57 = vmul.f32 %v14037_v43, %v16327_v41  ;;  %v4906_v54 = vmul.f32 %v14037_v43, %v16329_v1  ;;  %v4948_v30 = vmul.f32 %v16330_v24, %v4798_v23  ;;  %v4952_v63 = vmul.f32 %v16330_v24, %v4802_v11 }
 0x72d   :  { %v4956_v59 = vmul.f32 %v16330_v24, %v4806_v60  ;;  %v4960_v41 = vmul.f32 %v16330_v24, %v4810_v49  ;;  %v4964_v13 = vmul.f32 %v16330_v24, %v4814_v22  ;;  %v4968_v43 = vmul.f32 %v16330_v24, %v4818_v44 }
 0x72e   :  { %v4972_v15 = vmul.f32 %v16330_v24, %v4822_v58  ;;  %v4976_v47 = vmul.f32 %v16330_v24, %v4826_v35  ;;  %v4980_v16 = vmul.f32 %v16330_v24, %v4830_v3  ;;  %v4984_v6 = vmul.f32 %v16330_v24, %v4834_v39 }
 0x72f   :  { %v4988_v9 = vmul.f32 %v16330_v24, %v4838_v56  ;;  %v4992_v23 = vmul.f32 %v16330_v24, %v4842_v51  ;;  %v4996_v11 = vmul.f32 %v16330_v24, %v4846_v12  ;;  %v5000_v60 = vmul.f32 %v16330_v24, %v4850_v14 }
 0x730   :  { %v5004_v49 = vmul.f32 %v16330_v24, %v4854_v21  ;;  %v5008_v22 = vmul.f32 %v16330_v24, %v4858_v55  ;;  %v5012_v44 = vmul.f32 %v16330_v24, %v4862_v18  ;;  %v5016_v58 = vmul.f32 %v16330_v24, %v4866_v32  ;;  %v16331_v32 = vld [vmem:[#allocation195_spill] sm:$0xff] }
 0x731   :  { %v5020_v35 = vmul.f32 %v16330_v24, %v4870_v52  ;;  %v5024_v3 = vmul.f32 %v16330_v24, %v4874_v2  ;;  %v5028_v39 = vmul.f32 %v16330_v24, %v4878_v31  ;;  %v5032_v56 = vmul.f32 %v16330_v24, %v4882_v29 }
 0x732   :  { %v5036_v51 = vmul.f32 %v16330_v24, %v4886_v34  ;;  %v5040_v12 = vmul.f32 %v16330_v24, %v4890_v42  ;;  %v5044_v14 = vmul.f32 %v16330_v24, %v4894_v25  ;;  %v5048_v21 = vmul.f32 %v16330_v24, %v4898_v33 }
 0x733   :  { %v5052_v55 = vmul.f32 %v16330_v24, %v4902_v57  ;;  %v5056_v18 = vmul.f32 %v16330_v24, %v4906_v54  ;;  %v14344_v52 = vadd.f32 %v16331_v32, %v4932_v20  ;;  %v14347_v2 = vadd.f32 %v16331_v32, %v4936_v45 }
 0x734   :  { %v14350_v31 = vadd.f32 %v16331_v32, %v4940_v40  ;;  %v14353_v29 = vadd.f32 %v16331_v32, %v4944_v28  ;;  %v14356_v34 = vadd.f32 %v16331_v32, %v4948_v30  ;;  %v14359_v42 = vadd.f32 %v16331_v32, %v4952_v63 }
 0x735   :  { %v14362_v24 = vadd.f32 %v16331_v32, %v4956_v59  ;;  %v14365_v20 = vadd.f32 %v16331_v32, %v4960_v41  ;;  %v14368_v25 = vadd.f32 %v16331_v32, %v4964_v13  ;;  %v14371_v33 = vadd.f32 %v16331_v32, %v4968_v43 }
 0x736   :  { %v14374_v57 = vadd.f32 %v16331_v32, %v4972_v15  ;;  %v14377_v1 = vadd.f32 %v16331_v32, %v4976_v47  ;;  %v14380_v63 = vadd.f32 %v16331_v32, %v4980_v16  ;;  %v14383_v54 = vadd.f32 %v16331_v32, %v4984_v6 }
 0x737   :  { %v14386_v45 = vadd.f32 %v16331_v32, %v4988_v9  ;;  %v14389_v40 = vadd.f32 %v16331_v32, %v4992_v23  ;;  %v14392_v28 = vadd.f32 %v16331_v32, %v4996_v11  ;;  %v14395_v30 = vadd.f32 %v16331_v32, %v5000_v60 }
 0x738   :  { %v14398_v59 = vadd.f32 %v16331_v32, %v5004_v49  ;;  %v14401_v41 = vadd.f32 %v16331_v32, %v5008_v22  ;;  %v14404_v13 = vadd.f32 %v16331_v32, %v5012_v44  ;;  %v14407_v43 = vadd.f32 %v16331_v32, %v5016_v58 }
 0x739   :  { %v14410_v15 = vadd.f32 %v16331_v32, %v5020_v35  ;;  %v14413_v47 = vadd.f32 %v16331_v32, %v5024_v3  ;;  %v14416_v16 = vadd.f32 %v16331_v32, %v5028_v39  ;;  %v14419_v6 = vadd.f32 %v16331_v32, %v5032_v56 }
 0x73a   :  { %v14422_v9 = vadd.f32 %v16331_v32, %v5036_v51  ;;  %v14425_v23 = vadd.f32 %v16331_v32, %v5040_v12  ;;  %v14428_v11 = vadd.f32 %v16331_v32, %v5044_v14  ;;  %v14431_v60 = vadd.f32 %v16331_v32, %v5048_v21 }
 0x73b   :  { %v14434_v49 = vadd.f32 %v16331_v32, %v5052_v55  ;;  %v14437_v22 = vadd.f32 %v16331_v32, %v5056_v18  ;;  %v5210_v44 = vmax.f32 %v14344_v52, 0.0  ;;  %v5214_v58 = vmax.f32 %v14347_v2, 0.0 }
 0x73c   :  { %16332 = vst [vmem:[#allocation169_spill] sm:$0xff] %v14431_v60 }
 0x73d   :  { %16333 = vst [vmem:[#allocation167_spill] sm:$0xff] %v14434_v49  ;;  %16334 = vst [vmem:[#allocation168_spill] sm:$0xff] %v14437_v22 }
 0x73e   :  { %9565 = dma.done.wait [#allocation5 + $0x2], 4096 }
 0x73f   :  { %9566 = vsyncadd [#allocation5 + $0x2], 4294963200  ;;  %v16335_v32 = vld [vmem:[#allocation139_spill] sm:$0xff]  ;;  %v5342_v56 = vpack.c.bf16 %v5214_v58, %v5210_v44  ;;  %v16339_v35 = vmov 0   ;;  %v16340_v51 = vmov 2   ;;  %v8987_v14 = vld [vmem:[#allocation4 + $0x78] sm:$0xff]  }
 0x740   :  { %v16336_v52 = vmax.f32 %v16335_v32, 0.0  ;;  %v16337_v39 = vld [vmem:[#allocation135_spill] sm:$0xff]  ;;  %8983 = vset.pattern.permute.xlu0 %v16339_v35  ;;  %8985 = vset.pattern.permute.xlu1 %v16340_v51  ;;  %v8988_v21 = vld [vmem:[#allocation4 + $0xf8] sm:$0xff]   ;;  %v8991_v12 = vld [vmem:[#allocation4 + $0x70] sm:$0xff]   ;;  %s16341_s12 = sld [smem:[#allocation62_spill]]  ;;  %vm9634_vm7 = vmmov 0  }
 0x741   :  { %v16338_v2 = vmax.f32 %v16337_v39, 0.0  ;;  %5859 = vmatprep.mubr.bf16.mxu1 %v5342_v56  ;;  %8228 = vmatprep.subr.bf16.mxu0 %v8987_v14  ;;  %v8989_v55 = vld [vmem:[#allocation4 + $0x38] sm:$0xff]   ;;  %v8992_v32 = vld [vmem:[#allocation4 + $0xf0] sm:$0xff]   ;;  %v8995_v58 = vld [vmem:[#allocation4 + $0x68] sm:$0xff]   ;;  %vm6136_vm8 = vcmask 130048   ;;  %vm5988_vm9 = vcmask 261120  }
 0x742   :  { %8340 = vmatprep.subr.bf16.mxu1 %v8988_v21  ;;  %v8990_v18 = vld [vmem:[#allocation4 + $0xb8] sm:$0xff]   ;;  %8229 = vmatpush3.bf16.msra.mxu0 %v8989_v55  ;;  %v8993_v39 = vld [vmem:[#allocation4 + $0x30] sm:$0xff]   ;;  %v8996_v35 = vld [vmem:[#allocation4 + $0xe8] sm:$0xff]   ;;  %s16544_s5 = sld [smem:[#allocation71_spill]]  ;;  %s9635_s28 = smov 32  }
 0x743   :  { %v5340_v3 = vpack.c.bf16 %v16338_v2, %v16336_v52  ;;  %8341 = vmatpush3.bf16.msra.mxu1 %v8990_v18  ;;  %8230 = vmatprep.subr.bf16.mxu0 %v8991_v12  ;;  %v8994_v44 = vld [vmem:[#allocation4 + $0xb0] sm:$0xff]   ;;  %v8998_v56 = vld [vmem:[#allocation4 + $0xa8] sm:$0xff]   ;;  %v8999_v14 = vld [vmem:[#allocation4 + $0x60] sm:$0xff]   ;;  %s16550_s3 = sld [smem:[#allocation74_spill]]  ;;  %s9636_s1 = smov 96  }
 0x744   :  { %8342 = vmatprep.subr.bf16.mxu1 %v8992_v32  ;;  %v9000_v21 = vld [vmem:[#allocation4 + $0xe0] sm:$0xff]   ;;  %v9003_v12 = vld [vmem:[#allocation4 + $0x58] sm:$0xff]   ;;  %v16350_v22 = vld [vmem:[#allocation129_spill] sm:$0xff]  ;;  %s16551_s27 = sld [smem:[#allocation63_spill]]  ;;  %s9637_s2 = smov 64  }
 0x745   :  { %5698 = vmatprep.mubr.bf16.mxu0 %v5340_v3  ;;  %v8997_v3 = vld [vmem:[#allocation4 + $0x28] sm:$0xff]   ;;  %v9001_v55 = vld [vmem:[#allocation4 + $0x20] sm:$0xff]   ;;  %v9004_v52 = vld [vmem:[#allocation4 + $0xd8] sm:$0xff]   ;;  %v16351_v49 = vmax.f32 %v16350_v22, 0.0  ;;  %s16552_s30 = sld [smem:[#allocation64_spill]]  ;;  %s9638_s14 = smov [#allocation39]  }
 0x746   :  { %8231 = vmatpush3.bf16.msra.mxu0 %v8993_v39  ;;  %v9002_v18 = vld [vmem:[#allocation4 + $0xa0] sm:$0xff]   ;;  %v9005_v2 = vld [vmem:[#allocation4 + $0x18] sm:$0xff]   ;;  %v9007_v39 = vld [vmem:[#allocation4 + $0x50] sm:$0xff]   ;;  %s16553_s24 = sld [smem:[#allocation75_spill]]  ;;  %s7850_s10 = sshll.u32 %s9638_s14, 4  ;;  %s7851_s10 = int_to_ptr.vmem [resolvable:$true] %s7850_s10 }
 0x747   :  { %8343 = vmatpush3.bf16.msra.mxu1 %v8994_v44  ;;  %8232 = vmatprep.subr.bf16.mxu0 %v8995_v58  ;;  %v9006_v32 = vld [vmem:[#allocation4 + $0x98] sm:$0xff]   ;;  %v9008_v44 = vld [vmem:[#allocation4 + $0xd0] sm:$0xff]   ;;  %v16348_v51 = vld [vmem:[#allocation155_spill] sm:$0xff]  ;;  %s16554_s7 = sld [smem:[#allocation77_spill]]  ;;  %s9519_s21 = scalar_lea.vmem %s7851_s10, 128 }
 0x748   :  { %8344 = vmatprep.subr.bf16.mxu1 %v8996_v35  ;;  %v9009_v58 = vld [vmem:[#allocation4 + $0x10] sm:$0xff]   ;;  %v16356_v22 = vld [vmem:[#allocation134_spill] sm:$0xff]  ;;  %s16555_s0 = sld [smem:[#allocation79_spill]]  ;;  %p9520_p12 = scmp.ne.s32.totalorder %s7851_s10, %s9519_s21 }
 0x749   :  { %v9010_v35 = vld [vmem:[#allocation4 + $0x90] sm:$0xff]   ;;  %p9524_p13 = scmp.lt.s32.totalorder %s7851_s10, %s7851_s10  ;;  %p9525_p0 = scmp.lt.s32.totalorder %s9519_s21, %s9519_s21 }
 0x74a   :  { %8233 = vmatpush3.bf16.msra.mxu0 %v8997_v3  ;;  %v9011_v3 = vld [vmem:[#allocation4 + $0x48] sm:$0xff]  }
 0x74b   :  { %8345 = vmatpush3.bf16.msra.mxu1 %v8998_v56  ;;  %8234 = vmatprep.subr.bf16.mxu0 %v8999_v14  ;;  %v9012_v56 = vld [vmem:[#allocation4 + $0xc8] sm:$0xff]   ;;  %p9526_p1 = por %p9525_p0, %p9524_p13 }
 0x74c   :  { %8346 = vmatprep.subr.bf16.mxu1 %v9000_v21  ;;  %v9013_v14 = vld [vmem:[#allocation4 + $0x8] sm:$0xff]  }
 0x74d   :  { %v9014_v21 = vld [vmem:[#allocation4 + $0x88] sm:$0xff]   ;;  %p9527_p2 = pnand %p9526_p1, %p9520_p12 }
 0x74e   :  { %8235 = vmatpush3.bf16.msra.mxu0 %v9001_v55  ;;  %v9015_v55 = vld [vmem:[#allocation4 + $0x40] sm:$0xff]  }
 0x74f   :  { %8347 = vmatpush3.bf16.msra.mxu1 %v9002_v18  ;;  %8236 = vmatprep.subr.bf16.mxu0 %v9003_v12  ;;  %v9016_v18 = vld [vmem:[#allocation4 + $0xc0] sm:$0xff]  }
 0x750   :  { %8348 = vmatprep.subr.bf16.mxu1 %v9004_v52  ;;  %v9017_v12 = vld [vmem:[#allocation4] sm:$0xff]  }
 0x751   :  { %v9018_v52 = vld [vmem:[#allocation4 + $0x80] sm:$0xff]  }
 0x752   :  { %8237 = vmatpush3.bf16.msra.mxu0 %v9005_v2  ;;  %v16342_v2 = vld [vmem:[#allocation200_spill] sm:$0xff] }
 0x753   :  { %8349 = vmatpush3.bf16.msra.mxu1 %v9006_v32  ;;  %8238 = vmatprep.subr.bf16.mxu0 %v9007_v39  ;;  %v16343_v32 = vmax.f32 %v16342_v2, 0.0  ;;  %v16344_v39 = vld [vmem:[#allocation144_spill] sm:$0xff]  ;;  %v16353_v2 = vmax.f32 %v14353_v29, 0.0  ;;  %v16358_v29 = vmax.f32 %v14062_v8, 0.0  ;;  %v16366_v8 = vld [vmem:[#allocation101_spill] sm:$0xff] }
 0x754   :  { %8350 = vmatprep.subr.bf16.mxu1 %v9008_v44  ;;  %v16345_v44 = vmax.f32 %v16344_v39, 0.0  ;;  %v9633_v39 = vmov 0.0  }
 0x756   :  { %8239 = vmatpush3.bf16.msra.mxu0 %v9009_v58  ;;  %v5339_v58 = vpack.c.bf16 %v16345_v44, %v16343_v32  ;;  %v16360_v32 = vld [vmem:[#allocation125_spill] sm:$0xff] }
 0x757   :  { %8351 = vmatpush3.bf16.msra.mxu1 %v9010_v35  ;;  %8240 = vmatprep.subr.bf16.mxu0 %v9011_v3  ;;  %v16346_v35 = vmax.f32 %v14056_v5, 0.0  ;;  %v16347_v3 = vmax.f32 %v14059_v7, 0.0  ;;  %v6134_v5 = vld [vmem:[%s16341_s12] sm:$0xff]  ;;  %v16354_v7 = vld [vmem:[#allocation88_spill] sm:$0xff]  ;;  %v16361_v44 = vmax.f32 %v16360_v32, 0.0 }
 0x758   :  { %8352 = vmatprep.subr.bf16.mxu1 %v9012_v56 }
 0x759   :  { %v5341_v56 = vpack.c.bf16 %v16347_v3, %v16346_v35 }
 0x75a   :  { %8241 = vmatpush3.bf16.msra.mxu0 %v9013_v14  ;;  %v6135_v14 = vld [vmem:[%s16341_s12 + $0x8] sm:$0xff] }
 0x75b   :  { %8353 = vmatpush3.bf16.msra.mxu1 %v9014_v21  ;;  %8242 = vmatprep.subr.bf16.mxu0 %v9015_v55  ;;  %v16349_v21 = vmax.f32 %v16348_v51, 0.0 }
 0x75c   :  { %8354 = vmatprep.subr.bf16.mxu1 %v9016_v18  ;;  %v16352_v18 = vmax.f32 %v14350_v31, 0.0  ;;  %v16357_v31 = vmax.f32 %v16356_v22, 0.0 }
 0x75d   :  { %v5344_v55 = vpack.c.bf16 %v16351_v49, %v16349_v21  ;;  %v16355_v49 = vmax.f32 %v16354_v7, 0.0  ;;  %v16367_v21 = vmax.f32 %v16366_v8, 0.0  ;;  %v16388_v8 = vmax.f32 %v14368_v25, 0.0  ;;  %v16398_v25 = vld [vmem:[#allocation142_spill] sm:$0xff] }
 0x75e   :  { %8243 = vmatpush3.bf16.msra.mxu0 %v9017_v12  ;;  %v5346_v60 = vpack.c.bf16 %v16353_v2, %v16352_v18  ;;  %v16359_v12 = vmax.f32 %v14065_v50, 0.0  ;;  %v16368_v50 = vld [vmem:[#allocation136_spill] sm:$0xff]  ;;  %v16370_v2 = vmax.f32 %v14068_v19, 0.0  ;;  %v16380_v19 = vld [vmem:[#allocation126_spill] sm:$0xff] }
 0x75f   :  { %8355 = vmatpush3.bf16.msra.mxu1 %v9018_v52  ;;  %8540 = vmatprep.subr.bf16.mxu0 %v9633_v39  ;;  %v5343_v51 = vpack.c.bf16 %v16357_v31, %v16355_v49  ;;  %v16372_v49 = vld [vmem:[#allocation160_spill] sm:$0xff] }
 0x760   :  { %8533 = vmatprep.subr.mxu1 %v9633_v39  ;;  %v5345_v52 = vpack.c.bf16 %v16359_v12, %v16358_v29  ;;  %v16373_v22 = vmax.f32 %v16372_v49, 0.0  ;;  %v16377_v29 = vmax.f32 %v14365_v20, 0.0 }
 0x761   :  { %5699 = vmatmul.mubr.bf16.vlgmr.msra.gmra.mxu0 %v5339_v58  ;;  %v16362_v58 = vld [vmem:[#allocation159_spill] sm:$0xff] }
 0x762   :  { %5860 = vmatmul.mubr.bf16.vlgmr.msra.gmra.mxu1 %v5341_v56  ;;  %5706 = vmatprep.mubr.bf16.mxu0 %v5344_v55  ;;  %v16363_v35 = vmax.f32 %v16362_v58, 0.0  ;;  %v16365_v56 = vmax.f32 %v14359_v42, 0.0  ;;  %v16369_v55 = vmax.f32 %v16368_v50, 0.0  ;;  %v16382_v58 = vmax.f32 %v14074_v0, 0.0  ;;  %v16392_v0 = vld [vmem:[#allocation103_spill] sm:$0xff] }
 0x763   :  { %8534 = vmatpush3.msra.mxu1 %v6135_v14  ;;  %5867 = vmatprep.mubr.bf16.mxu1 %v5346_v60  ;;  %v16364_v60 = vmax.f32 %v14356_v34, 0.0  ;;  %v16374_v34 = vld [vmem:[#allocation98_spill] sm:$0xff] }
 0x764   :  { %8535 = vmatprep.subr.mxu1 %v9633_v39  ;;  %v5348_v3 = vpack.c.bf16 %v16363_v35, %v16361_v44  ;;  %v5347_v18 = vpack.c.bf16 %v16369_v55, %v16367_v21  ;;  %v16375_v31 = vmax.f32 %v16374_v34, 0.0  ;;  %v16381_v44 = vmax.f32 %v16380_v19, 0.0  ;;  %v16390_v55 = vld [vmem:[#allocation111_spill] sm:$0xff] }
 0x765   :  { %8536 = vmatpush3.msra.mxu1 %v6134_v5  ;;  %v5350_v14 = vpack.c.bf16 %v16365_v56, %v16364_v60  ;;  %v16371_v5 = vmax.f32 %v14071_v17, 0.0  ;;  %v16383_v35 = vmax.f32 %v14077_v61, 0.0  ;;  %v16384_v60 = vld [vmem:[#allocation165_spill] sm:$0xff]  ;;  %v16389_v21 = vmax.f32 %v14371_v33, 0.0 }
 0x766   :  { %8560 = vmatprep.subr.mxu1 %v9633_v39  ;;  %v5352_v42 = vpack.c.bf16 %v16375_v31, %v16373_v22  ;;  %v16385_v56 = vmax.f32 %v16384_v60, 0.0  ;;  %v16396_v22 = vld [vmem:[#allocation82_spill] sm:$0xff]  ;;  %v16399_v31 = vmax.f32 %v16398_v25, 0.0  ;;  %v16406_v19 = vmax.f32 %v14086_v62, 0.0  ;;  %v16416_v62 = vld [vmem:[#allocation96_spill] sm:$0xff] }
 0x767   :  { %v5349_v7 = vpack.c.bf16 %v16371_v5, %v16370_v2  ;;  %v5358_v50 = vpack.c.bf16 %v16389_v21, %v16388_v8  ;;  %v16393_v2 = vmax.f32 %v16392_v0, 0.0  ;;  %v16394_v5 = vmax.f32 %v14080_v26, 0.0  ;;  %v16404_v26 = vld [vmem:[#allocation108_spill] sm:$0xff] }
 0x768   :  { %v16397_v34 = vmax.f32 %v16396_v22, 0.0  ;;  %v16412_v60 = vmax.f32 %v14380_v63, 0.0  ;;  %v16417_v8 = vmax.f32 %v16416_v62, 0.0  ;;  %v16418_v21 = vmax.f32 %v14092_v37, 0.0  ;;  %v16422_v63 = vld [vmem:[#allocation120_spill] sm:$0xff] }
 0x769   :  { %5707 = vmatmul.mubr.bf16.gmra.mxu0 %v5343_v51  ;;  %v16376_v51 = vmax.f32 %v14362_v24, 0.0  ;;  %v16386_v24 = vld [vmem:[#allocation86_spill] sm:$0xff]  ;;  %v16428_v37 = vld [vmem:[#allocation84_spill] sm:$0xff]  ;;  %v16430_v25 = vmax.f32 %v14098_v10, 0.0  ;;  %v16454_v62 = vmax.f32 %v14110_v38, 0.0  ;;  %v16465_v38 = vld [vmem:[#allocation143_spill] sm:$0xff] }
 0x76a   :  { %5868 = vmatmul.mubr.bf16.gmra.mxu1 %v5345_v52  ;;  %5714 = vmatprep.mubr.bf16.mxu0 %v5348_v3  ;;  %v16378_v52 = vld [vmem:[#allocation130_spill] sm:$0xff]  ;;  %v5353_v3 = vpack.c.bf16 %v16383_v35, %v16382_v58  ;;  %v5360_v33 = vpack.c.bf16 %v16399_v31, %v16397_v34  ;;  %v16429_v34 = vmax.f32 %v16428_v37, 0.0  ;;  %v16431_v31 = vmax.f32 %v14101_v46, 0.0  ;;  %v16440_v10 = vld [vmem:[#allocation140_spill] sm:$0xff]  ;;  %v16469_v37 = vld [vmem:[#allocation199_spill] sm:$0xff] }
 0x76b   :  { %5875 = vmatprep.mubr.bf16.mxu1 %v5350_v14  ;;  %v5354_v12 = vpack.c.bf16 %v16377_v29, %v16376_v51  ;;  %v16379_v32 = vmax.f32 %v16378_v52, 0.0  ;;  %v16387_v14 = vmax.f32 %v16386_v24, 0.0  ;;  %v16401_v51 = vmax.f32 %v14377_v1, 0.0  ;;  %v16408_v58 = vld [vmem:[#allocation138_spill] sm:$0xff] }
 0x76c   :  { %v16409_v35 = vmax.f32 %v16408_v58, 0.0 }
 0x76d   :  { %v5351_v17 = vpack.c.bf16 %v16381_v44, %v16379_v32  ;;  %v5356_v20 = vpack.c.bf16 %v16387_v14, %v16385_v56  ;;  %v16405_v32 = vmax.f32 %v16404_v26, 0.0  ;;  %v16407_v44 = vmax.f32 %v14089_v27, 0.0  ;;  %v16414_v14 = vld [vmem:[#allocation102_spill] sm:$0xff] }
 0x76e   :  { %v16413_v56 = vmax.f32 %v14383_v54, 0.0 }
 0x770   :  { %v5366_v24 = vpack.c.bf16 %v16413_v56, %v16412_v60  ;;  %v16449_v60 = vmax.f32 %v14401_v41, 0.0 }
 0x771   :  { %5715 = vmatmul.mubr.bf16.gmra.mxu0 %v5347_v18  ;;  %v16391_v18 = vmax.f32 %v16390_v55, 0.0 }
 0x772   :  { %5876 = vmatmul.mubr.bf16.gmra.mxu1 %v5349_v7  ;;  %5722 = vmatprep.mubr.bf16.mxu0 %v5352_v42  ;;  %v16395_v7 = vmax.f32 %v14083_v53, 0.0  ;;  %v16400_v42 = vmax.f32 %v14374_v57, 0.0  ;;  %v16410_v57 = vld [vmem:[#allocation124_spill] sm:$0xff] }
 0x773   :  { %5883 = vmatprep.mubr.bf16.mxu1 %v5354_v12  ;;  %v5355_v61 = vpack.c.bf16 %v16393_v2, %v16391_v18  ;;  %v16402_v12 = vld [vmem:[#allocation106_spill] sm:$0xff]  ;;  %v16423_v2 = vmax.f32 %v16422_v63, 0.0  ;;  %v16462_v63 = vmax.f32 %v14407_v43, 0.0 }
 0x774   :  { %v5357_v49 = vpack.c.bf16 %v16395_v7, %v16394_v5  ;;  %v5362_v29 = vpack.c.bf16 %v16401_v51, %v16400_v42  ;;  %v16403_v52 = vmax.f32 %v16402_v12, 0.0  ;;  %v16420_v18 = vld [vmem:[#allocation122_spill] sm:$0xff]  ;;  %v16425_v5 = vmax.f32 %v14389_v40, 0.0 }
 0x775   :  { %v16421_v0 = vmax.f32 %v16420_v18, 0.0  ;;  %v16432_v42 = vld [vmem:[#allocation118_spill] sm:$0xff]  ;;  %v16436_v12 = vmax.f32 %v14392_v28, 0.0  ;;  %v16446_v28 = vld [vmem:[#allocation112_spill] sm:$0xff] }
 0x776   :  { %v5359_v53 = vpack.c.bf16 %v16405_v32, %v16403_v52  ;;  %v16433_v51 = vmax.f32 %v16432_v42, 0.0  ;;  %v16437_v52 = vmax.f32 %v14395_v30, 0.0  ;;  %v16438_v32 = vld [vmem:[#allocation80_spill] sm:$0xff]  ;;  %v16475_v42 = vmax.f32 %v14410_v15, 0.0  ;;  %v16487_v15 = vld [vmem:[#allocation149_spill] sm:$0xff] }
 0x777   :  { %v5368_v54 = vpack.c.bf16 %v16423_v2, %v16421_v0  ;;  %v16461_v0 = vmax.f32 %v14404_v13, 0.0  ;;  %v16473_v13 = vld [vmem:[#allocation89_spill] sm:$0xff] }
 0x778   :  { %v5374_v26 = vpack.c.bf16 %v16437_v52, %v16436_v12  ;;  %v16479_v12 = vld [vmem:[#allocation87_spill] sm:$0xff] }
 0x779   :  { %5723 = vmatmul.mubr.bf16.gmra.mxu0 %v5351_v17  ;;  %v5361_v17 = vpack.c.bf16 %v16407_v44, %v16406_v19  ;;  %v16441_v19 = vmax.f32 %v16440_v10, 0.0  ;;  %v16442_v44 = vmax.f32 %v14104_v36, 0.0  ;;  %v16452_v36 = vld [vmem:[#allocation97_spill] sm:$0xff]  ;;  %v5382_v2 = vpack.c.bf16 %v16462_v63, %v16461_v0  ;;  %v16483_v10 = vld [vmem:[#allocation151_spill] sm:$0xff] }
 0x77a   :  { %5884 = vmatmul.mubr.bf16.gmra.mxu1 %v5353_v3  ;;  %5730 = vmatprep.mubr.bf16.mxu0 %v5356_v20  ;;  %v16411_v3 = vmax.f32 %v16410_v57, 0.0  ;;  %v16415_v20 = vmax.f32 %v16414_v14, 0.0  ;;  %v16480_v52 = vmax.f32 %v16479_v12, 0.0 }
 0x77b   :  { %5891 = vmatprep.mubr.bf16.mxu1 %v5358_v50  ;;  %v16419_v50 = vmax.f32 %v14095_v48, 0.0 }
 0x77c   :  { %v5364_v1 = vpack.c.bf16 %v16411_v3, %v16409_v35  ;;  %v5363_v27 = vpack.c.bf16 %v16417_v8, %v16415_v20  ;;  %v16444_v35 = vld [vmem:[#allocation114_spill] sm:$0xff]  ;;  %v16447_v3 = vmax.f32 %v16446_v28, 0.0  ;;  %v16453_v20 = vmax.f32 %v16452_v36, 0.0  ;;  %v16455_v8 = vld [vmem:[#allocation201_spill] sm:$0xff] }
 0x77d   :  { %v5365_v55 = vpack.c.bf16 %v16419_v50, %v16418_v21  ;;  %v16445_v57 = vmax.f32 %v16444_v35, 0.0  ;;  %v16457_v50 = vld [vmem:[#allocation109_spill] sm:$0xff]  ;;  %v16489_v35 = vmax.f32 %v14416_v16, 0.0  ;;  %v16497_v36 = vld [vmem:[#allocation150_spill] sm:$0xff] }
 0x77e   :  { %v16501_v16 = vld [vmem:[#allocation154_spill] sm:$0xff] }
 0x77f   :  { %v5376_v30 = vpack.c.bf16 %v16447_v3, %v16445_v57  ;;  %v16490_v57 = vmax.f32 %v14419_v6, 0.0  ;;  %v16491_v3 = vld [vmem:[#allocation152_spill] sm:$0xff] }
 0x781   :  { %5731 = vmatmul.mubr.bf16.gmra.mxu0 %v5355_v61  ;;  %v16424_v61 = vmax.f32 %v14386_v45, 0.0  ;;  %v16434_v45 = vld [vmem:[#allocation116_spill] sm:$0xff]  ;;  %v5390_v28 = vpack.c.bf16 %v16490_v57, %v16489_v35 }
 0x782   :  { %5892 = vmatmul.mubr.bf16.gmra.mxu1 %v5357_v49  ;;  %5738 = vmatprep.mubr.bf16.mxu0 %v5360_v33  ;;  %v16426_v49 = vld [vmem:[#allocation90_spill] sm:$0xff]  ;;  %v5369_v33 = vpack.c.bf16 %v16431_v31, %v16430_v25  ;;  %v16471_v25 = vld [vmem:[#allocation105_spill] sm:$0xff] }
 0x783   :  { %5899 = vmatprep.mubr.bf16.mxu1 %v5362_v29  ;;  %v5370_v7 = vpack.c.bf16 %v16425_v5, %v16424_v61  ;;  %v16427_v22 = vmax.f32 %v16426_v49, 0.0  ;;  %v16435_v29 = vmax.f32 %v16434_v45, 0.0  ;;  %v16466_v5 = vmax.f32 %v16465_v38, 0.0  ;;  %v16467_v49 = vld [vmem:[#allocation202_spill] sm:$0xff] }
 0x784   :  { %v16472_v31 = vmax.f32 %v16471_v25, 0.0 }
 0x785   :  { %v5367_v48 = vpack.c.bf16 %v16429_v34, %v16427_v22  ;;  %v5372_v40 = vpack.c.bf16 %v16435_v29, %v16433_v51  ;;  %v16468_v22 = vmax.f32 %v16467_v49, 0.0  ;;  %v16470_v34 = vmax.f32 %v16469_v37, 0.0  ;;  %v16477_v29 = vld [vmem:[#allocation128_spill] sm:$0xff] }
 0x786   :  { %v16476_v51 = vmax.f32 %v14413_v47, 0.0  ;;  %v16517_v37 = vmax.f32 %v14428_v11, 0.0  ;;  %v16530_v11 = vld [vmem:[#allocation119_spill] sm:$0xff] }
 0x788   :  { %v5386_v45 = vpack.c.bf16 %v16476_v51, %v16475_v42  ;;  %v16524_v51 = vld [vmem:[#allocation162_spill] sm:$0xff] }
 0x789   :  { %5739 = vmatmul.mubr.bf16.gmra.mxu0 %v5359_v53  ;;  %v16439_v53 = vmax.f32 %v16438_v32, 0.0  ;;  %v16481_v32 = vld [vmem:[#allocation148_spill] sm:$0xff] }
 0x78a   :  { %5900 = vmatmul.mubr.bf16.gmra.mxu1 %v5361_v17  ;;  %5746 = vmatprep.mubr.bf16.mxu0 %v5364_v1  ;;  %v16443_v17 = vmax.f32 %v14107_v4, 0.0  ;;  %v16448_v1 = vmax.f32 %v14398_v59, 0.0  ;;  %v16459_v59 = vld [vmem:[#allocation107_spill] sm:$0xff] }
 0x78b   :  { %5907 = vmatprep.mubr.bf16.mxu1 %v5366_v24  ;;  %v5371_v46 = vpack.c.bf16 %v16441_v19, %v16439_v53  ;;  %v16450_v24 = vld [vmem:[#allocation99_spill] sm:$0xff]  ;;  %v16460_v18 = vmax.f32 %v16459_v59, 0.0  ;;  %v16482_v53 = vmax.f32 %v16481_v32, 0.0  ;;  %v16484_v19 = vmax.f32 %v16483_v10, 0.0  ;;  %v16505_v59 = vld [vmem:[#allocation137_spill] sm:$0xff] }
 0x78c   :  { %v5373_v58 = vpack.c.bf16 %v16443_v17, %v16442_v44  ;;  %v5378_v56 = vpack.c.bf16 %v16449_v60, %v16448_v1  ;;  %v16451_v14 = vmax.f32 %v16450_v24, 0.0  ;;  %v16485_v44 = vld [vmem:[#allocation85_spill] sm:$0xff]  ;;  %v16531_v32 = vmax.f32 %v16530_v11, 0.0  ;;  %v16532_v10 = vld [vmem:[#allocation167_spill] sm:$0xff] }
 0x78d   :  { %v16486_v17 = vmax.f32 %v16485_v44, 0.0  ;;  %v16493_v1 = vld [vmem:[#allocation141_spill] sm:$0xff] }
 0x78e   :  { %v5375_v4 = vpack.c.bf16 %v16453_v20, %v16451_v14  ;;  %v16494_v60 = vmax.f32 %v16493_v1, 0.0  ;;  %v16495_v24 = vld [vmem:[#allocation81_spill] sm:$0xff]  ;;  %v16498_v20 = vmax.f32 %v16497_v36, 0.0  ;;  %v14741_v36 = vld [vmem:[#allocation21] ss:$0 sm:$0xff] }
 0x78f   :  { %v16496_v14 = vmax.f32 %v16495_v24, 0.0 }
 0x791   :  { %5747 = vmatmul.mubr.bf16.gmra.mxu0 %v5363_v27  ;;  %v16456_v27 = vmax.f32 %v16455_v8, 0.0 }
 0x792   :  { %5908 = vmatmul.mubr.bf16.gmra.mxu1 %v5365_v55  ;;  %5754 = vmatprep.mubr.bf16.mxu0 %v5368_v54  ;;  %v16458_v55 = vmax.f32 %v16457_v50, 0.0  ;;  %v16463_v54 = vld [vmem:[#allocation157_spill] sm:$0xff]  ;;  %v16504_v50 = vmax.f32 %v14425_v23, 0.0 }
 0x793   :  { %5915 = vmatprep.mubr.bf16.mxu1 %v5370_v7  ;;  %v5377_v21 = vpack.c.bf16 %v16456_v27, %v16454_v62  ;;  %v16464_v61 = vmax.f32 %v16463_v54, 0.0  ;;  %v16499_v62 = vld [vmem:[#allocation153_spill] sm:$0xff]  ;;  %v16502_v27 = vmax.f32 %v16501_v16, 0.0 }
 0x794   :  { %v5380_v41 = vpack.c.bf16 %v16460_v18, %v16458_v55  ;;  %v16500_v8 = vmax.f32 %v16499_v62, 0.0  ;;  %v16506_v18 = vmax.f32 %v16505_v59, 0.0 }
 0x795   :  { %v5379_v7 = vpack.c.bf16 %v16466_v5, %v16464_v61  ;;  %v16511_v61 = vld [vmem:[#allocation161_spill] sm:$0xff] }
 0x796   :  { %v5392_v6 = vpack.c.bf16 %v16502_v27, %v16500_v8  ;;  %v16512_v38 = vmax.f32 %v16511_v61, 0.0 }
 0x799   :  { %5755 = vmatmul.mubr.bf16.gmra.mxu0 %v5367_v48  ;;  %v5381_v48 = vpack.c.bf16 %v16470_v34, %v16468_v22  ;;  %v16518_v34 = vld [vmem:[#allocation169_spill] sm:$0xff] }
 0x79a   :  { %5916 = vmatmul.mubr.bf16.gmra.mxu1 %v5369_v33  ;;  %5762 = vmatprep.mubr.bf16.mxu0 %v5372_v40  ;;  %v16474_v33 = vmax.f32 %v16473_v13, 0.0  ;;  %v16478_v40 = vmax.f32 %v16477_v29, 0.0  ;;  %v16526_v29 = vld [vmem:[#allocation131_spill] sm:$0xff] }
 0x79b   :  { %5923 = vmatprep.mubr.bf16.mxu1 %v5374_v26 }
 0x79c   :  { %v5384_v43 = vpack.c.bf16 %v16474_v33, %v16472_v31  ;;  %v5383_v26 = vpack.c.bf16 %v16480_v52, %v16478_v40  ;;  %v16520_v31 = vld [vmem:[#allocation156_spill] sm:$0xff]  ;;  %v16522_v33 = vld [vmem:[#allocation127_spill] sm:$0xff]  ;;  %v16527_v40 = vmax.f32 %v16526_v29, 0.0  ;;  %v16528_v52 = vld [vmem:[#allocation121_spill] sm:$0xff] }
 0x79d   :  { %v16521_v13 = vmax.f32 %v16520_v31, 0.0 }
 0x7a1   :  { %5763 = vmatmul.mubr.bf16.gmra.mxu0 %v5371_v46  ;;  %v5385_v46 = vpack.c.bf16 %v16484_v19, %v16482_v53  ;;  %v16533_v19 = vmax.f32 %v16532_v10, 0.0 }
 0x7a2   :  { %5924 = vmatmul.mubr.bf16.gmra.mxu1 %v5373_v58  ;;  %5770 = vmatprep.mubr.bf16.mxu0 %v5376_v30  ;;  %v16488_v58 = vmax.f32 %v16487_v15, 0.0  ;;  %v16492_v30 = vmax.f32 %v16491_v3, 0.0  ;;  %v16536_v15 = vld [vmem:[#allocation92_spill] sm:$0xff] }
 0x7a3   :  { %5931 = vmatprep.mubr.bf16.mxu1 %v5378_v56 }
 0x7a4   :  { %v5388_v47 = vpack.c.bf16 %v16488_v58, %v16486_v17  ;;  %v5387_v56 = vpack.c.bf16 %v16494_v60, %v16492_v30  ;;  %v16537_v58 = vmax.f32 %v16536_v15, 0.0  ;;  %v16542_v30 = vld [vmem:[#allocation163_spill] sm:$0xff] }
 0x7a5   :  { %v16543_v1 = vmax.f32 %v16542_v30, 0.0 }
 0x7a9   :  { %5771 = vmatmul.mubr.bf16.gmra.mxu0 %v5375_v4  ;;  %v5389_v4 = vpack.c.bf16 %v16498_v20, %v16496_v14 }
 0x7aa   :  { %5932 = vmatmul.mubr.bf16.gmra.mxu1 %v5377_v21  ;;  %5778 = vmatprep.mubr.bf16.mxu0 %v5380_v41  ;;  %v16503_v21 = vmax.f32 %v14422_v9, 0.0  ;;  %v16507_v41 = vld [vmem:[#allocation133_spill] sm:$0xff]  ;;  %v16515_v9 = vld [vmem:[#allocation158_spill] sm:$0xff] }
 0x7ab   :  { %5939 = vmatprep.mubr.bf16.mxu1 %v5382_v2  ;;  %v16508_v0 = vmax.f32 %v16507_v41, 0.0  ;;  %v16509_v2 = vld [vmem:[#allocation91_spill] sm:$0xff]  ;;  %v16516_v22 = vmax.f32 %v16515_v9, 0.0 }
 0x7ac   :  { %v5394_v55 = vpack.c.bf16 %v16504_v50, %v16503_v21  ;;  %v16510_v54 = vmax.f32 %v16509_v2, 0.0 }
 0x7ad   :  { %v5391_v63 = vpack.c.bf16 %v16508_v0, %v16506_v18 }
 0x7ae   :  { %v5393_v5 = vpack.c.bf16 %v16512_v38, %v16510_v54 }
 0x7b1   :  { %5779 = vmatmul.mubr.bf16.gmra.mxu0 %v5379_v7  ;;  %v16513_v7 = vld [vmem:[#allocation83_spill] sm:$0xff] }
 0x7b2   :  { %5940 = vmatmul.mubr.bf16.gmra.mxu1 %v5381_v48  ;;  %5786 = vmatprep.mubr.bf16.mxu0 %v5384_v43  ;;  %v16514_v49 = vmax.f32 %v16513_v7, 0.0  ;;  %v16519_v48 = vmax.f32 %v16518_v34, 0.0  ;;  %v16523_v43 = vmax.f32 %v16522_v33, 0.0 }
 0x7b3   :  { %5947 = vmatprep.mubr.bf16.mxu1 %v5386_v45  ;;  %v16525_v45 = vmax.f32 %v16524_v51, 0.0 }
 0x7b4   :  { %v5396_v23 = vpack.c.bf16 %v16516_v22, %v16514_v49  ;;  %v5398_v25 = vpack.c.bf16 %v16519_v48, %v16517_v37  ;;  %v5395_v42 = vpack.c.bf16 %v16523_v43, %v16521_v13 }
 0x7b5   :  { %v5397_v12 = vpack.c.bf16 %v16527_v40, %v16525_v45 }
 0x7b9   :  { %5787 = vmatmul.mubr.bf16.gmra.mxu0 %v5383_v26  ;;  %v16529_v26 = vmax.f32 %v16528_v52, 0.0 }
 0x7ba   :  { %5948 = vmatmul.mubr.bf16.gmra.mxu1 %v5385_v46  ;;  %5794 = vmatprep.mubr.bf16.mxu0 %v5388_v47  ;;  %v16534_v46 = vld [vmem:[#allocation168_spill] sm:$0xff] }
 0x7bb   :  { %5955 = vmatprep.mubr.bf16.mxu1 %v5390_v28  ;;  %v5400_v53 = vpack.c.bf16 %v16531_v32, %v16529_v26  ;;  %v16535_v44 = vmax.f32 %v16534_v46, 0.0  ;;  %v16538_v47 = vld [vmem:[#allocation104_spill] sm:$0xff]  ;;  %v16540_v28 = vld [vmem:[#allocation123_spill] sm:$0xff] }
 0x7bc   :  { %v16539_v35 = vmax.f32 %v16538_v47, 0.0  ;;  %v16541_v3 = vmax.f32 %v16540_v28, 0.0 }
 0x7bd   :  { %v5402_v17 = vpack.c.bf16 %v16535_v44, %v16533_v19 }
 0x7be   :  { %v5399_v57 = vpack.c.bf16 %v16539_v35, %v16537_v58  ;;  %v5401_v60 = vpack.c.bf16 %v16543_v1, %v16541_v3  ;;  %v9019_v35 = vld [vmem:[%s16544_s5 + $0x38] sm:$0xff]  }
 0x7bf   :  { %8541 = vmatpush3.bf16.msra.mxu0 %v9019_v35 }
 0x7c0   :  { %8542 = vmatprep.subr.bf16.mxu0 %v9633_v39 }
 0x7c1   :  { %5795 = vmatmul.mubr.bf16.gmra.mxu0 %v5387_v56  ;;  %v14735_v56 = vld [vmem:[#allocation6] sm:$0xff] }
 0x7c2   :  { %5956 = vmatmul.mubr.bf16.gmra.mxu1 %v5389_v4  ;;  %5802 = vmatprep.mubr.bf16.mxu0 %v5392_v6 }
 0x7c3   :  { %5963 = vmatprep.mubr.bf16.mxu1 %v5394_v55 }
 0x7c9   :  { %5803 = vmatmul.mubr.bf16.gmra.mxu0 %v5391_v63 }
 0x7ca   :  { %5964 = vmatmul.mubr.bf16.gmra.mxu1 %v5393_v5  ;;  %5810 = vmatprep.mubr.bf16.mxu0 %v5396_v23 }
 0x7cb   :  { %5971 = vmatprep.mubr.bf16.mxu1 %v5398_v25 }
 0x7d1   :  { %5811 = vmatmul.mubr.bf16.gmra.mxu0 %v5395_v42 }
 0x7d2   :  { %5972 = vmatmul.mubr.bf16.gmra.mxu1 %v5397_v12  ;;  %5818 = vmatprep.mubr.bf16.mxu0 %v5400_v53 }
 0x7d3   :  { %5979 = vmatprep.mubr.bf16.mxu1 %v5402_v17 }
 0x7d9   :  { %5819 = vmatmul.mubr.bf16.gmra.mxu0 %v5399_v57 }
 0x7da   :  { %5980 = vmatmul.mubr.bf16.gmra.mxu1 %v5401_v60  ;;  %8556 = vmatprep.mubr.msk.bf16.mxu0 %vm9634_vm7, %v9633_v39  ;;  %v9020_v60 = vld [vmem:[%s16544_s5 + $0x30] sm:$0xff]  }
 0x7db   :  { %8537 = vmatprep.mubr.msk.f32.mxu1 %vm9634_vm7, %v9633_v39  ;;  %8543 = vmatpush3.bf16.msra.mxu0 %v9020_v60 }
 0x7dc   :  { %8544 = vmatprep.subr.bf16.mxu0 %v9633_v39 }
 0x7e2   :  { %8538 = vmatmul.mubr.msk.f32.vlgmr.msra.gmra.mxu1 %vm6136_vm8, %v14735_v56 }
 0x7e3   :  { %8564 = vmatprep.mubr.msk.f32.mxu1 %vm9634_vm7, %v9633_v39 }
 0x821   :  { %v8244_v24 = vpop.f32.mrf.mxu0 }
 0x822   :  { %v8356_v14 = vpop.f32.mrf.mxu1 }
 0x823   :  { %v8245_v20 = vpop.f32.mrf.mxu0 }
 0x824   :  { %v8246_v4 = vadd.f32 %v8245_v20, %v8244_v24  ;;  %v8357_v62 = vpop.f32.mrf.mxu1 }
 0x825   :  { %v8358_v8 = vadd.f32 %v8357_v62, %v8356_v14  ;;  %v8247_v16 = vpop.f32.mrf.mxu0 }
 0x826   :  { %v5701_v27 = vadd.f32 %v8246_v4, %v14741_v36  ;;  %v8359_v6 = vpop.f32.mrf.mxu1 }
 0x827   :  { %v8248_v21 = vpop.f32.mrf.mxu0 }
 0x828   :  { %v5862_v50 = vadd.f32 %v8358_v8, %v5701_v27  ;;  %v8249_v55 = vadd.f32 %v8248_v21, %v8247_v16  ;;  %v8360_v59 = vpop.f32.mrf.mxu1 }
 0x829   :  { %v8361_v18 = vadd.f32 %v8360_v59, %v8359_v6  ;;  %v8250_v41 = vpop.f32.mrf.mxu0 }
 0x82a   :  { %v5704_v0 = vadd.f32 %v8249_v55, %v14741_v36  ;;  %v8362_v63 = vpop.f32.mrf.mxu1  ;;  %v5989_v49 = vsel %vm5988_vm9, %v5862_v50, -inf }
 0x82b   :  { %v8251_v2 = vpop.f32.mrf.mxu0 }
 0x82c   :  { %v5865_v54 = vadd.f32 %v8361_v18, %v5704_v0  ;;  %v8252_v61 = vadd.f32 %v8251_v2, %v8250_v41  ;;  %v8363_v38 = vpop.f32.mrf.mxu1  ;;  %v9021_v18 = vld [vmem:[%s16544_s5 + $0x28] sm:$0xff]  }
 0x82d   :  { %v8364_v5 = vadd.f32 %v8363_v38, %v8362_v63  ;;  %v8253_v7 = vpop.f32.mrf.mxu0  ;;  %8545 = vmatpush3.bf16.msra.mxu0 %v9021_v18 }
 0x82e   :  { %v5990_v9 = vsel %vm5988_vm9, %v5865_v54, -inf  ;;  %v5709_v22 = vadd.f32 %v8252_v61, %v14741_v36  ;;  %v8365_v23 = vpop.f32.mrf.mxu1  ;;  %8546 = vmatprep.subr.bf16.mxu0 %v9633_v39 }
 0x82f   :  { %v5991_v37 = vmax.f32 %v5989_v49, %v5990_v9  ;;  %v8254_v34 = vpop.f32.mrf.mxu0 }
 0x830   :  { %v5870_v48 = vadd.f32 %v8364_v5, %v5709_v22  ;;  %v8255_v25 = vadd.f32 %v8254_v34, %v8253_v7  ;;  %v8366_v31 = vpop.f32.mrf.mxu1 }
 0x831   :  { %v5992_v13 = vrot.slane %v5991_v37, 4  ;;  %v8367_v33 = vadd.f32 %v8366_v31, %v8365_v23  ;;  %v8256_v43 = vpop.f32.mrf.mxu0 }
 0x832   :  { %v5712_v42 = vadd.f32 %v8255_v25, %v14741_v36  ;;  %v8368_v51 = vpop.f32.mrf.mxu1  ;;  %v5998_v32 = vsel %vm5988_vm9, %v5870_v48, -inf }
 0x833   :  { %v5993_v45 = vmax.f32 %v5991_v37, %v5992_v13  ;;  %v8257_v29 = vpop.f32.mrf.mxu0  ;;  %v9022_v37 = vld [vmem:[%s16544_s5 + $0x20] sm:$0xff]  }
 0x834   :  { %v5873_v40 = vadd.f32 %v8367_v33, %v5712_v42  ;;  %v8258_v12 = vadd.f32 %v8257_v29, %v8256_v43  ;;  %v8369_v52 = vpop.f32.mrf.mxu1  ;;  %8547 = vmatpush3.bf16.msra.mxu0 %v9022_v37 }
 0x835   :  { %v8370_v26 = vadd.f32 %v8369_v52, %v8368_v51  ;;  %v8259_v11 = vpop.f32.mrf.mxu0  ;;  %v5994_v46 = vrot.slane %v5993_v45, 2  ;;  %8548 = vmatprep.subr.bf16.mxu0 %v9633_v39 }
 0x836   :  { %v5999_v53 = vsel %vm5988_vm9, %v5873_v40, -inf  ;;  %v5717_v10 = vadd.f32 %v8258_v12, %v14741_v36  ;;  %v8371_v19 = vpop.f32.mrf.mxu1 }
 0x837   :  { %v6000_v44 = vmax.f32 %v5998_v32, %v5999_v53  ;;  %v8260_v17 = vpop.f32.mrf.mxu0  ;;  %v5995_v24 = vmax.f32 %v5993_v45, %v5994_v46 }
 0x838   :  { %v5878_v15 = vadd.f32 %v8370_v26, %v5717_v10  ;;  %v8261_v58 = vadd.f32 %v8260_v17, %v8259_v11  ;;  %v8372_v47 = vpop.f32.mrf.mxu1  ;;  %v9023_v11 = vld [vmem:[%s16544_s5 + $0x18] sm:$0xff]  }
 0x839   :  { %v6001_v57 = vrot.slane %v6000_v44, 4  ;;  %v8373_v28 = vadd.f32 %v8372_v47, %v8371_v19  ;;  %v8262_v3 = vpop.f32.mrf.mxu0  ;;  %v5996_v41 = vrot.slane %v5995_v24, 1  ;;  %8549 = vmatpush3.bf16.msra.mxu0 %v9023_v11 }
 0x83a   :  { %v5720_v30 = vadd.f32 %v8261_v58, %v14741_v36  ;;  %v8374_v1 = vpop.f32.mrf.mxu1  ;;  %v6007_v21 = vsel %vm5988_vm9, %v5878_v15, -inf  ;;  %8550 = vmatprep.subr.bf16.mxu0 %v9633_v39 }
 0x83b   :  { %v6002_v14 = vmax.f32 %v6000_v44, %v6001_v57  ;;  %v8263_v20 = vpop.f32.mrf.mxu0  ;;  %v5997_v25 = vmax.f32 %v5995_v24, %v5996_v41 }
 0x83c   :  { %v5881_v4 = vadd.f32 %v8373_v28, %v5720_v30  ;;  %v8264_v62 = vadd.f32 %v8263_v20, %v8262_v3  ;;  %v8375_v8 = vpop.f32.mrf.mxu1  ;;  %v9024_v28 = vld [vmem:[%s16544_s5 + $0x10] sm:$0xff]  }
 0x83d   :  { %v6003_v16 = vrot.slane %v6002_v14, 2  ;;  %v8376_v27 = vadd.f32 %v8375_v8, %v8374_v1  ;;  %v8265_v6 = vpop.f32.mrf.mxu0  ;;  %8551 = vmatpush3.bf16.msra.mxu0 %v9024_v28 }
 0x83e   :  { %v6008_v50 = vsel %vm5988_vm9, %v5881_v4, -inf  ;;  %v5725_v55 = vadd.f32 %v8264_v62, %v14741_v36  ;;  %v8377_v59 = vpop.f32.mrf.mxu1  ;;  %8552 = vmatprep.subr.bf16.mxu0 %v9633_v39 }
 0x83f   :  { %v6004_v0 = vmax.f32 %v6002_v14, %v6003_v16  ;;  %v6009_v63 = vmax.f32 %v6007_v21, %v6008_v50  ;;  %v8266_v2 = vpop.f32.mrf.mxu0 }
 0x840   :  { %v5886_v54 = vadd.f32 %v8376_v27, %v5725_v55  ;;  %v8267_v61 = vadd.f32 %v8266_v2, %v8265_v6  ;;  %v8378_v38 = vpop.f32.mrf.mxu1 }
 0x841   :  { %v6005_v5 = vrot.slane %v6004_v0, 1  ;;  %v6010_v7 = vrot.slane %v6009_v63, 4  ;;  %v8379_v49 = vadd.f32 %v8378_v38, %v8377_v59  ;;  %v8268_v9 = vpop.f32.mrf.mxu0 }
 0x842   :  { %v5728_v22 = vadd.f32 %v8267_v61, %v14741_v36  ;;  %v8380_v23 = vpop.f32.mrf.mxu1  ;;  %v6016_v40 = vsel %vm5988_vm9, %v5886_v54, -inf }
 0x843   :  { %v6011_v34 = vmax.f32 %v6009_v63, %v6010_v7  ;;  %v8269_v48 = vpop.f32.mrf.mxu0  ;;  %v6006_v31 = vmax.f32 %v6004_v0, %v6005_v5 }
 0x844   :  { %v5889_v13 = vadd.f32 %v8379_v49, %v5728_v22  ;;  %v8270_v33 = vadd.f32 %v8269_v48, %v8268_v9  ;;  %v8381_v43 = vpop.f32.mrf.mxu1 }
 0x845   :  { %v6012_v42 = vrot.slane %v6011_v34, 2  ;;  %v8382_v51 = vadd.f32 %v8381_v43, %v8380_v23  ;;  %v8271_v45 = vpop.f32.mrf.mxu0  ;;  %v6395_v29 = vsel %vm2364_vm0, %v6006_v31, %v5997_v25 }
 0x846   :  { %v6017_v12 = vsel %vm5988_vm9, %v5889_v13, -inf  ;;  %v5733_v52 = vadd.f32 %v8270_v33, %v14741_v36  ;;  %v8383_v26 = vpop.f32.mrf.mxu1 }
 0x847   :  { %v6013_v32 = vmax.f32 %v6011_v34, %v6012_v42  ;;  %v6018_v53 = vmax.f32 %v6016_v40, %v6017_v12  ;;  %v8272_v10 = vpop.f32.mrf.mxu0 }
 0x848   :  { %v5894_v19 = vadd.f32 %v8382_v51, %v5733_v52  ;;  %v8273_v46 = vadd.f32 %v8272_v10, %v8271_v45  ;;  %v8384_v44 = vpop.f32.mrf.mxu1 }
 0x849   :  { %v6014_v17 = vrot.slane %v6013_v32, 1  ;;  %v6019_v15 = vrot.slane %v6018_v53, 4  ;;  %v8385_v58 = vadd.f32 %v8384_v44, %v8383_v26  ;;  %v8274_v47 = vpop.f32.mrf.mxu0 }
 0x84a   :  { %v5736_v35 = vadd.f32 %v8273_v46, %v14741_v36  ;;  %v8386_v57 = vpop.f32.mrf.mxu1  ;;  %v6025_v16 = vsel %vm5988_vm9, %v5894_v19, -inf }
 0x84b   :  { %v6020_v3 = vmax.f32 %v6018_v53, %v6019_v15  ;;  %v8275_v30 = vpop.f32.mrf.mxu0  ;;  %v6015_v1 = vmax.f32 %v6013_v32, %v6014_v17 }
 0x84c   :  { %v5897_v60 = vadd.f32 %v8385_v58, %v5736_v35  ;;  %v8276_v24 = vadd.f32 %v8275_v30, %v8274_v47  ;;  %v8387_v14 = vpop.f32.mrf.mxu1 }
 0x84d   :  { %v6021_v20 = vrot.slane %v6020_v3, 2  ;;  %v8388_v4 = vadd.f32 %v8387_v14, %v8386_v57  ;;  %v8277_v62 = vpop.f32.mrf.mxu0  ;;  %v6396_v8 = vsel %vm2366_vm1, %v6015_v1, %v6395_v29 }
 0x84e   :  { %v6026_v27 = vsel %vm5988_vm9, %v5897_v60, -inf  ;;  %v5741_v6 = vadd.f32 %v8276_v24, %v14741_v36  ;;  %v8389_v21 = vpop.f32.mrf.mxu1 }
 0x84f   :  { %v6022_v50 = vmax.f32 %v6020_v3, %v6021_v20  ;;  %v6027_v55 = vmax.f32 %v6025_v16, %v6026_v27  ;;  %v8278_v59 = vpop.f32.mrf.mxu0 }
 0x850   :  { %v5902_v18 = vadd.f32 %v8388_v4, %v5741_v6  ;;  %v8279_v41 = vadd.f32 %v8278_v59, %v8277_v62  ;;  %v8390_v0 = vpop.f32.mrf.mxu1 }
 0x851   :  { %v6028_v63 = vrot.slane %v6027_v55, 4  ;;  %v8391_v2 = vadd.f32 %v8390_v0, %v8389_v21  ;;  %v8280_v54 = vpop.f32.mrf.mxu0  ;;  %v6023_v61 = vrot.slane %v6022_v50, 1 }
 0x852   :  { %v5744_v38 = vadd.f32 %v8279_v41, %v14741_v36  ;;  %v8392_v5 = vpop.f32.mrf.mxu1  ;;  %v6034_v13 = vsel %vm5988_vm9, %v5902_v18, -inf }
 0x853   :  { %v6029_v7 = vmax.f32 %v6027_v55, %v6028_v63  ;;  %v8281_v49 = vpop.f32.mrf.mxu0  ;;  %v6024_v9 = vmax.f32 %v6022_v50, %v6023_v61 }
 0x854   :  { %v5905_v22 = vadd.f32 %v8391_v2, %v5744_v38  ;;  %v8282_v23 = vadd.f32 %v8281_v49, %v8280_v54  ;;  %v8393_v37 = vpop.f32.mrf.mxu1 }
 0x855   :  { %v6030_v34 = vrot.slane %v6029_v7, 2  ;;  %v8394_v48 = vadd.f32 %v8393_v37, %v8392_v5  ;;  %v8283_v25 = vpop.f32.mrf.mxu0  ;;  %v6397_v31 = vsel %vm2368_vm2, %v6024_v9, %v6396_v8 }
 0x856   :  { %v6035_v33 = vsel %vm5988_vm9, %v5905_v22, -inf  ;;  %v5749_v43 = vadd.f32 %v8282_v23, %v14741_v36  ;;  %v8395_v42 = vpop.f32.mrf.mxu1 }
 0x857   :  { %v6031_v51 = vmax.f32 %v6029_v7, %v6030_v34  ;;  %v6036_v45 = vmax.f32 %v6034_v13, %v6035_v33  ;;  %v8284_v29 = vpop.f32.mrf.mxu0 }
 0x858   :  { %v5910_v40 = vadd.f32 %v8394_v48, %v5749_v43  ;;  %v8285_v12 = vadd.f32 %v8284_v29, %v8283_v25  ;;  %v8396_v52 = vpop.f32.mrf.mxu1 }
 0x859   :  { %v6037_v26 = vrot.slane %v6036_v45, 4  ;;  %v8397_v11 = vadd.f32 %v8396_v52, %v8395_v42  ;;  %v8286_v32 = vpop.f32.mrf.mxu0  ;;  %v6032_v53 = vrot.slane %v6031_v51, 1 }
 0x85a   :  { %v5752_v10 = vadd.f32 %v8285_v12, %v14741_v36  ;;  %v8398_v19 = vpop.f32.mrf.mxu1  ;;  %v6043_v30 = vsel %vm5988_vm9, %v5910_v40, -inf }
 0x85b   :  { %v6038_v46 = vmax.f32 %v6036_v45, %v6037_v26  ;;  %v8287_v44 = vpop.f32.mrf.mxu0  ;;  %v6033_v17 = vmax.f32 %v6031_v51, %v6032_v53 }
 0x85c   :  { %v5913_v15 = vadd.f32 %v8397_v11, %v5752_v10  ;;  %v8288_v58 = vadd.f32 %v8287_v44, %v8286_v32  ;;  %v8399_v47 = vpop.f32.mrf.mxu1 }
 0x85d   :  { %v6039_v35 = vrot.slane %v6038_v46, 2  ;;  %v8400_v57 = vadd.f32 %v8399_v47, %v8398_v19  ;;  %v8289_v28 = vpop.f32.mrf.mxu0  ;;  %v6398_v3 = vsel %vm2370_vm3, %v6033_v17, %v6397_v31 }
 0x85e   :  { %v6044_v1 = vsel %vm5988_vm9, %v5913_v15, -inf  ;;  %v5757_v60 = vadd.f32 %v8288_v58, %v14741_v36  ;;  %v8401_v24 = vpop.f32.mrf.mxu1 }
 0x85f   :  { %v6045_v14 = vmax.f32 %v6043_v30, %v6044_v1  ;;  %v8290_v20 = vpop.f32.mrf.mxu0  ;;  %v6040_v4 = vmax.f32 %v6038_v46, %v6039_v35 }
 0x860   :  { %v5918_v62 = vadd.f32 %v8400_v57, %v5757_v60  ;;  %v8291_v8 = vadd.f32 %v8290_v20, %v8289_v28  ;;  %v8402_v16 = vpop.f32.mrf.mxu1 }
 0x861   :  { %v6046_v27 = vrot.slane %v6045_v14, 4  ;;  %v8403_v6 = vadd.f32 %v8402_v16, %v8401_v24  ;;  %v8292_v21 = vpop.f32.mrf.mxu0  ;;  %v6041_v50 = vrot.slane %v6040_v4, 1 }
 0x862   :  { %v5760_v55 = vadd.f32 %v8291_v8, %v14741_v36  ;;  %v14789_v59 = vpop.f32.mrf.mxu1  ;;  %v6052_v5 = vsel %vm5988_vm9, %v5918_v62, -inf }
 0x863   :  { %v6047_v18 = vmax.f32 %v6045_v14, %v6046_v27  ;;  %v8293_v41 = vpop.f32.mrf.mxu0  ;;  %v6042_v0 = vmax.f32 %v6040_v4, %v6041_v50 }
 0x864   :  { %v5921_v63 = vadd.f32 %v8403_v6, %v5760_v55  ;;  %v14791_v2 = vpop.f32.mrf.mxu1  ;;  %v8294_v55 = vadd.f32 %v8293_v41, %v8292_v21 }
 0x865   :  { %v6048_v54 = vrot.slane %v6047_v18, 2  ;;  %v8295_v61 = vpop.f32.mrf.mxu0  ;;  %v6399_v38 = vsel %vm2372_vm4, %v6042_v0, %v6398_v3 }
 0x866   :  { %v6053_v7 = vsel %vm5988_vm9, %v5921_v63, -inf  ;;  %v8407_v49 = vpop.f32.mrf.mxu1 }
 0x867   :  { %v6054_v9 = vmax.f32 %v6052_v5, %v6053_v7  ;;  %v8296_v22 = vpop.f32.mrf.mxu0  ;;  %v6049_v23 = vmax.f32 %v6047_v18, %v6048_v54 }
 0x868   :  { %v8408_v37 = vpop.f32.mrf.mxu1  ;;  %v8297_v20 = vadd.f32 %v8296_v22, %v8295_v61 }
 0x869   :  { %v6055_v34 = vrot.slane %v6054_v9, 4  ;;  %v8298_v48 = vpop.f32.mrf.mxu0  ;;  %v6050_v25 = vrot.slane %v6049_v23, 1  ;;  %v8409_v7 = vadd.f32 %v8408_v37, %v8407_v49 }
 0x86a   :  { %v8410_v31 = vpop.f32.mrf.mxu1  ;;  %v5768_v18 = vadd.f32 %v8297_v20, %v14741_v36 }
 0x86b   :  { %v6056_v13 = vmax.f32 %v6054_v9, %v6055_v34  ;;  %v8299_v33 = vpop.f32.mrf.mxu0  ;;  %v6051_v43 = vmax.f32 %v6049_v23, %v6050_v25  ;;  %v8406_v34 = vadd.f32 %v14791_v2, %v14789_v59 }
 0x86c   :  { %v8411_v42 = vpop.f32.mrf.mxu1  ;;  %v8300_v62 = vadd.f32 %v8299_v33, %v8298_v48  ;;  %v5929_v33 = vadd.f32 %v8409_v7, %v5768_v18 }
 0x86d   :  { %v8301_v51 = vpop.f32.mrf.mxu0  ;;  %v6057_v45 = vrot.slane %v6056_v13, 2  ;;  %v6400_v29 = vsel %vm2374_vm5, %v6051_v43, %v6399_v38  ;;  %v8412_v48 = vadd.f32 %v8411_v42, %v8410_v31 }
 0x86e   :  { %v8413_v40 = vpop.f32.mrf.mxu1  ;;  %v5773_v54 = vadd.f32 %v8300_v62, %v14741_v36  ;;  %v6062_v62 = vsel %vm5988_vm9, %v5929_v33, -inf }
 0x86f   :  { %v8302_v12 = vpop.f32.mrf.mxu0  ;;  %v6058_v52 = vmax.f32 %v6056_v13, %v6057_v45  ;;  %v5765_v13 = vadd.f32 %v8294_v55, %v14741_v36 }
 0x870   :  { %v8414_v26 = vpop.f32.mrf.mxu1  ;;  %v8303_v16 = vadd.f32 %v8302_v12, %v8301_v51  ;;  %v5934_v37 = vadd.f32 %v8412_v48, %v5773_v54 }
 0x871   :  { %v8304_v11 = vpop.f32.mrf.mxu0  ;;  %v6059_v32 = vrot.slane %v6058_v52, 1  ;;  %v8415_v43 = vadd.f32 %v8414_v26, %v8413_v40 }
 0x872   :  { %v8416_v53 = vpop.f32.mrf.mxu1  ;;  %v5776_v9 = vadd.f32 %v8303_v16, %v14741_v36 }
 0x873   :  { %v8305_v10 = vpop.f32.mrf.mxu0  ;;  %v6060_v19 = vmax.f32 %v6058_v52, %v6059_v32 }
 0x874   :  { %v8417_v46 = vpop.f32.mrf.mxu1  ;;  %v8306_v38 = vadd.f32 %v8305_v10, %v8304_v11  ;;  %v5937_v59 = vadd.f32 %v8415_v43, %v5776_v9 }
 0x875   :  { %v8307_v44 = vpop.f32.mrf.mxu0  ;;  %v14798_v17 = vsel %vm2376_vm6, %v6060_v19, %v6400_v29  ;;  %v8418_v32 = vadd.f32 %v8417_v46, %v8416_v53 }
 0x876   :  { %v8419_v15 = vpop.f32.mrf.mxu1  ;;  %v5781_v45 = vadd.f32 %v8306_v38, %v14741_v36 }
 0x877   :  { %v8308_v58 = vpop.f32.mrf.mxu0 }
 0x878   :  { %v8420_v47 = vpop.f32.mrf.mxu1  ;;  %v8309_v6 = vadd.f32 %v8308_v58, %v8307_v44 }
 0x879   :  { %v8310_v35 = vpop.f32.mrf.mxu0  ;;  %v8421_v29 = vadd.f32 %v8420_v47, %v8419_v15  ;;  %v5926_v47 = vadd.f32 %v8406_v34, %v5765_v13 }
 0x87a   :  { %v8422_v57 = vpop.f32.mrf.mxu1  ;;  %v5784_v21 = vadd.f32 %v8309_v6, %v14741_v36 }
 0x87b   :  { %v8311_v28 = vpop.f32.mrf.mxu0  ;;  %v6061_v18 = vsel %vm5988_vm9, %v5926_v47, -inf }
 0x87c   :  { %v8423_v3 = vpop.f32.mrf.mxu1  ;;  %v8312_v61 = vadd.f32 %v8311_v28, %v8310_v35  ;;  %v5945_v10 = vadd.f32 %v8421_v29, %v5784_v21  ;;  %v5942_v28 = vadd.f32 %v8418_v32, %v5781_v45 }
 0x87d   :  { %v8313_v30 = vpop.f32.mrf.mxu0  ;;  %v8424_v44 = vadd.f32 %v8423_v3, %v8422_v57 }
 0x87e   :  { %v8425_v1 = vpop.f32.mrf.mxu1  ;;  %v5789_v2 = vadd.f32 %v8312_v61, %v14741_v36  ;;  %v6080_v57 = vsel %vm5988_vm9, %v5945_v10, -inf }
 0x87f   :  { %v8314_v60 = vpop.f32.mrf.mxu0 }
 0x880   :  { %v8426_v24 = vpop.f32.mrf.mxu1  ;;  %v8315_v0 = vadd.f32 %v8314_v60, %v8313_v30 }
 0x881   :  { %v8316_v14 = vpop.f32.mrf.mxu0  ;;  %v8427_v31 = vadd.f32 %v8426_v24, %v8425_v1  ;;  %v6071_v1 = vsel %vm5988_vm9, %v5937_v59, -inf  ;;  %v5950_v24 = vadd.f32 %v8424_v44, %v5789_v2 }
 0x882   :  { %v8428_v4 = vpop.f32.mrf.mxu1  ;;  %v5792_v51 = vadd.f32 %v8315_v0, %v14741_v36 }
 0x883   :  { %v8317_v8 = vpop.f32.mrf.mxu0  ;;  %v6088_v7 = vsel %vm5988_vm9, %v5950_v24, -inf }
 0x884   :  { %v8429_v27 = vpop.f32.mrf.mxu1  ;;  %v8318_v41 = vadd.f32 %v8317_v8, %v8316_v14  ;;  %v5953_v58 = vadd.f32 %v8427_v31, %v5792_v51  ;;  %v6070_v8 = vsel %vm5988_vm9, %v5934_v37, -inf }
 0x885   :  { %v8319_v50 = vpop.f32.mrf.mxu0  ;;  %v8430_v30 = vadd.f32 %v8429_v27, %v8428_v4  ;;  %v6072_v0 = vmax.f32 %v6070_v8, %v6071_v1 }
 0x886   :  { %v8431_v63 = vpop.f32.mrf.mxu1  ;;  %v5797_v40 = vadd.f32 %v8318_v41, %v14741_v36  ;;  %v6089_v6 = vsel %vm5988_vm9, %v5953_v58, -inf }
 0x887   :  { %v8320_v5 = vpop.f32.mrf.mxu0  ;;  %v6090_v34 = vmax.f32 %v6088_v7, %v6089_v6  ;;  %v6073_v51 = vrot.slane %v6072_v0, 4 }
 0x888   :  { %v8321_v22 = vadd.f32 %v8320_v5, %v8319_v50  ;;  %v8432_v23 = vpop.f32.mrf.mxu1  ;;  %v5958_v3 = vadd.f32 %v8430_v30, %v5797_v40 }
 0x889   :  { %v8322_v25 = vpop.f32.mrf.mxu0  ;;  %v8433_v26 = vadd.f32 %v8432_v23, %v8431_v63  ;;  %v6079_v63 = vsel %vm5988_vm9, %v5942_v28, -inf  ;;  %v6063_v23 = vmax.f32 %v6061_v18, %v6062_v62  ;;  %v6091_v2 = vrot.slane %v6090_v34, 4 }
 0x88a   :  { %v8434_v49 = vpop.f32.mrf.mxu1  ;;  %v5800_v12 = vadd.f32 %v8321_v22, %v14741_v36  ;;  %v6081_v5 = vmax.f32 %v6079_v63, %v6080_v57  ;;  %v6097_v48 = vsel %vm5988_vm9, %v5958_v3, -inf }
 0x88b   :  { %v8323_v52 = vpop.f32.mrf.mxu0  ;;  %v6064_v59 = vrot.slane %v6063_v23, 4  ;;  %v6092_v30 = vmax.f32 %v6090_v34, %v6091_v2 }
 0x88c   :  { %v8324_v42 = vadd.f32 %v8323_v52, %v8322_v25  ;;  %v8435_v11 = vpop.f32.mrf.mxu1  ;;  %v5961_v60 = vadd.f32 %v8433_v26, %v5800_v12  ;;  %v6082_v45 = vrot.slane %v6081_v5, 4  ;;  %v6074_v26 = vmax.f32 %v6072_v0, %v6073_v51 }
 0x88d   :  { %v8325_v19 = vpop.f32.mrf.mxu0  ;;  %v8436_v20 = vadd.f32 %v8435_v11, %v8434_v49  ;;  %v6065_v28 = vmax.f32 %v6063_v23, %v6064_v59 }
 0x88e   :  { %v5805_v35 = vadd.f32 %v8324_v42, %v14741_v36  ;;  %v8437_v15 = vpop.f32.mrf.mxu1  ;;  %v6098_v54 = vsel %vm5988_vm9, %v5961_v60, -inf  ;;  %v6083_v58 = vmax.f32 %v6081_v5, %v6082_v45 }
 0x88f   :  { %v8326_v14 = vpop.f32.mrf.mxu0  ;;  %v6099_v41 = vmax.f32 %v6097_v48, %v6098_v54 }
 0x890   :  { %v8327_v53 = vadd.f32 %v8326_v14, %v8325_v19  ;;  %v8438_v46 = vpop.f32.mrf.mxu1  ;;  %v5966_v50 = vadd.f32 %v8436_v20, %v5805_v35  ;;  %v6084_v3 = vrot.slane %v6083_v58, 2 }
 0x891   :  { %v8328_v16 = vpop.f32.mrf.mxu0  ;;  %v8439_v27 = vadd.f32 %v8438_v46, %v8437_v15  ;;  %v6100_v42 = vrot.slane %v6099_v41, 4  ;;  %v6075_v46 = vrot.slane %v6074_v26, 2 }
 0x892   :  { %v5808_v4 = vadd.f32 %v8327_v53, %v14741_v36  ;;  %v8440_v55 = vpop.f32.mrf.mxu1  ;;  %v6106_v25 = vsel %vm5988_vm9, %v5966_v50, -inf }
 0x893   :  { %v8329_v38 = vpop.f32.mrf.mxu0  ;;  %v6101_v14 = vmax.f32 %v6099_v41, %v6100_v42  ;;  %v6076_v5 = vmax.f32 %v6074_v26, %v6075_v46  ;;  %v9026_v46 = vld [vmem:[%s16544_s5] sm:$0xff]  }
 0x894   :  { %v5969_v9 = vadd.f32 %v8439_v27, %v5808_v4  ;;  %v8330_v61 = vadd.f32 %v8329_v38, %v8328_v16  ;;  %v8441_v22 = vpop.f32.mrf.mxu1  ;;  %v6066_v4 = vrot.slane %v6065_v28, 2  ;;  %v6093_v27 = vrot.slane %v6092_v30, 2 }
 0x895   :  { %v8331_v21 = vpop.f32.mrf.mxu0  ;;  %v8442_v29 = vadd.f32 %v8441_v22, %v8440_v55  ;;  %v6102_v18 = vrot.slane %v6101_v14, 2 }
 0x896   :  { %v6107_v13 = vsel %vm5988_vm9, %v5969_v9, -inf  ;;  %v5813_v33 = vadd.f32 %v8330_v61, %v14741_v36  ;;  %v8443_v43 = vpop.f32.mrf.mxu1  ;;  %v6085_v61 = vmax.f32 %v6083_v58, %v6084_v3  ;;  %v6067_v34 = vmax.f32 %v6065_v28, %v6066_v4 }
 0x897   :  { %v6108_v49 = vmax.f32 %v6106_v25, %v6107_v13  ;;  %v8332_v37 = vpop.f32.mrf.mxu0  ;;  %v6094_v48 = vmax.f32 %v6092_v30, %v6093_v27  ;;  %v6103_v41 = vmax.f32 %v6101_v14, %v6102_v18 }
 0x898   :  { %v8333_v12 = vadd.f32 %v8332_v37, %v8331_v21  ;;  %v8444_v52 = vpop.f32.mrf.mxu1  ;;  %v5974_v11 = vadd.f32 %v8442_v29, %v5813_v33  ;;  %v6077_v33 = vrot.slane %v6076_v5, 1  ;;  %v6068_v45 = vrot.slane %v6067_v34, 1 }
 0x899   :  { %v8334_v31 = vpop.f32.mrf.mxu0  ;;  %v8445_v10 = vadd.f32 %v8444_v52, %v8443_v43  ;;  %v6109_v19 = vrot.slane %v6108_v49, 4  ;;  %v16545_v43 = vmov 1   ;;  %v6104_v52 = vrot.slane %v6103_v41, 1 }
 0x89a   :  { %v5816_v32 = vadd.f32 %v8333_v12, %v14741_v36  ;;  %v8446_v40 = vpop.f32.mrf.mxu1  ;;  %v6115_v1 = vsel %vm5988_vm9, %v5974_v11, -inf  ;;  %v6095_v12 = vrot.slane %v6094_v48, 1  ;;  %v6078_v2 = vmax.f32 %v6076_v5, %v6077_v33  ;;  %v8123_v33 = vld [vmem:[#allocation26] ss:$0 sm:$0xff] }
 0x89b   :  { %v8335_v44 = vpop.f32.mrf.mxu0  ;;  %v6110_v62 = vmax.f32 %v6108_v49, %v6109_v19  ;;  %v6086_v49 = vrot.slane %v6085_v61, 1  ;;  %v6105_v19 = vmax.f32 %v6103_v41, %v6104_v52 }
 0x89c   :  { %v5977_v35 = vadd.f32 %v8445_v10, %v5816_v32  ;;  %v8336_v15 = vadd.f32 %v8335_v44, %v8334_v31  ;;  %v8447_v47 = vpop.f32.mrf.mxu1  ;;  %v16546_v32 = vmov 2   ;;  %v6069_v10 = vmax.f32 %v6067_v34, %v6068_v45 }
 0x89d   :  { %v8337_v60 = vpop.f32.mrf.mxu0  ;;  %v8448_v16 = vadd.f32 %v8447_v47, %v8446_v40  ;;  %v6111_v7 = vrot.slane %v6110_v62, 2  ;;  %v6087_v42 = vmax.f32 %v6085_v61, %v6086_v49  ;;  %v6096_v40 = vmax.f32 %v6094_v48, %v6095_v12 }
 0x89e   :  { %v6116_v24 = vsel %vm5988_vm9, %v5977_v35, -inf  ;;  %v5821_v20 = vadd.f32 %v8336_v15, %v14741_v36  ;;  %v8449_v53 = vpop.f32.mrf.mxu1  ;;  %v6402_v35 = vsel %vm2364_vm0, %v6078_v2, %v6069_v10  ;;  %v6373_v10 = vld [vmem:[%s16551_s27 + $0x10] sm:$0xff] }
 0x89f   :  { %v6117_v8 = vmax.f32 %v6115_v1, %v6116_v24  ;;  %v8338_v57 = vpop.f32.mrf.mxu0  ;;  %v6112_v51 = vmax.f32 %v6110_v62, %v6111_v7  ;;  %v6403_v47 = vsel %vm2366_vm1, %v6087_v42, %v6402_v35  ;;  %v6210_v62 = vld [vmem:[#allocation23] sm:$0x7] }
 0x8a0   :  { %v8339_v6 = vadd.f32 %v8338_v57, %v8337_v60  ;;  %v8450_v50 = vpop.f32.mrf.mxu1  ;;  %v5982_v0 = vadd.f32 %v8448_v16, %v5821_v20  ;;  %v6404_v30 = vsel %vm2368_vm2, %v6096_v40, %v6403_v47  ;;  %v16547_v57 = vld [vmem:[#allocation146_spill] sm:$0xff]  ;;  %v9027_v42 = vld [vmem:[%s16550_s3 + $0x8] sm:$0xff]  }
 0x8a1   :  { %v6118_v55 = vrot.slane %v6117_v8, 4  ;;  %v8451_v54 = vadd.f32 %v8450_v50, %v8449_v53  ;;  %v6113_v31 = vrot.slane %v6112_v51, 1  ;;  %v6405_v60 = vsel %vm2370_vm3, %v6105_v19, %v6404_v30  ;;  %v9025_v53 = vld [vmem:[%s16544_s5 + $0x8] sm:$0xff]  }
 0x8a2   :  { %v5824_v63 = vadd.f32 %v8339_v6, %v14741_v36  ;;  %v6206_v38 = vpop.f32.mrf.mxu1  ;;  %v6124_v25 = vsel %vm5988_vm9, %v5982_v0, -inf  ;;  %8553 = vmatpush3.bf16.msra.mxu0 %v9025_v53  ;;  %v6219_v3 = vrot.slane %v6210_v62, %v16547_v57  ;;  %v16549_v6 = vld [vmem:[#allocation147_spill] sm:$0xff]  ;;  %v6372_v40 = vld [vmem:[%s16551_s27 + $0x8] sm:$0xff] }
 0x8a3   :  { %v6119_v9 = vmax.f32 %v6117_v8, %v6118_v55  ;;  %6213 = vperm.xlu0 %8983, %v6206_v38   ;;  %6232 = vperm.xlu1 %8985, %v6206_v38   ;;  %v6114_v44 = vmax.f32 %v6112_v51, %v6113_v31  ;;  %v6238_v50 = vrot.slane %v6210_v62, %v16549_v6 }
 0x8a4   :  { %v5985_v22 = vadd.f32 %v8451_v54, %v5824_v63  ;;  %v8539_v23 = vpop.f32.mrf.mxu1  ;;  %8554 = vmatprep.subr.bf16.mxu0 %v9633_v39  ;;  %v8122_v63 = vld [vmem:[#allocation24] ss:$0 sm:$0xff] }
 0x8a5   :  { %v6120_v21 = vrot.slane %v6119_v9, 2  ;;  %v6406_v1 = vsel %vm2372_vm4, %v6114_v44, %v6405_v60 }
 0x8a6   :  { %v6125_v13 = vsel %vm5988_vm9, %v5985_v22, -inf  ;;  %8555 = vmatpush3.bf16.msra.mxu0 %v9026_v46 }
 0x8a7   :  { %v6126_v36 = vmax.f32 %v6124_v25, %v6125_v13  ;;  %8984 = vset.pattern.permute.xlu0 %v16545_v43  ;;  %v6121_v37 = vmax.f32 %v6119_v9, %v6120_v21  ;;  %8567 = vmatprep.subr.bf16.mxu0 %v9633_v39 }
 0x8a8   :  { %6222 = vperm.xlu0 %8984, %v6206_v38  }
 0x8a9   :  { %v6127_v29 = vrot.slane %v6126_v36, 4  ;;  %v6122_v11 = vrot.slane %v6121_v37, 1 }
 0x8ab   :  { %v6128_v59 = vmax.f32 %v6126_v36, %v6127_v29  ;;  %v6123_v15 = vmax.f32 %v6121_v37, %v6122_v11  ;;  %v9028_v11 = vld [vmem:[%s16550_s3] sm:$0xff]  }
 0x8ac   :  { %8986 = vset.pattern.permute.xlu0 %v16546_v32  ;;  %v6374_v32 = vld [vmem:[%s16551_s27 + $0x18] sm:$0xff] }
 0x8ad   :  { %v6129_v26 = vrot.slane %v6128_v59, 2  ;;  %v6407_v24 = vsel %vm2374_vm5, %v6123_v15, %v6406_v1  ;;  %v8133_v15 = vld [vmem:[#allocation27] ss:$0 sm:$0xff] }
 0x8af   :  { %v6130_v58 = vmax.f32 %v6128_v59, %v6129_v26  ;;  %v6371_v26 = vld [vmem:[%s16551_s27] sm:$0xff] }
 0x8b1   :  { %v6131_v28 = vrot.slane %v6130_v58, 1 }
 0x8b3   :  { %v6132_v14 = vmax.f32 %v6130_v58, %v6131_v28  ;;  %v8134_v28 = vld [vmem:[#allocation29] ss:$0 sm:$0xff] }
 0x8b5   :  { %v6408_v20 = vsel %vm2376_vm6, %v6132_v14, %v6407_v24 }
 0x8b6   :  { %8561 = vmatpush3.msra.mxu1 %v6408_v20 }
 0x8b7   :  { %8562 = vmatprep.subr.mxu1 %v9633_v39 }
 0x8b8   :  { %8563 = vmatpush3.msra.mxu1 %v14798_v17  ;;  %v16548_v17 = vld [vmem:[#allocation145_spill] sm:$0xff] }
 0x8b9   :  { %8565 = vmatmul.mubr.msk.f32.vlgmr.msra.gmra.mxu1 %vm6136_vm8, %v14735_v56  ;;  %8575 = vmatprep.subr.mxu1 %v9633_v39  ;;  %v6228_v16 = vrot.slane %v6210_v62, %v16548_v17 }
 0x8ba   :  { %8583 = vmatprep.mubr.msk.f32.mxu1 %vm9634_vm7, %v9633_v39 }
 0x91e   :  { %v6214_v8 = vpop.permute.xlu0 %6213  ;;  %v6233_v4 = vpop.permute.xlu1 %6232 }
 0x91f   :  { %v6220_v55 = vmul.f32 %v6219_v3, %v6214_v8  ;;  %v6239_v18 = vmul.f32 %v6238_v50, %v6233_v4 }
 0x923   :  { %v6223_v27 = vpop.permute.xlu0 %6222 }
 0x924   :  { %v6229_v56 = vmul.f32 %v6228_v16, %v6223_v27 }
 0x926   :  { %v6230_v0 = vadd.f32 %v6229_v56, %v6220_v55 }
 0x928   :  { %v6240_v54 = vadd.f32 %v6239_v18, %v6230_v0 }
 0x92a   :  { %v6248_v38 = vadd.f32 %v8122_v63, %v6240_v54 }
 0x92c   :  { %v6249_v5 = vmul.f32 %v6248_v38, %v6248_v38 }
 0x92e   :  { %v6250_v7 = vmul.f32 %v6249_v5, %v6248_v38 }
 0x930   :  { %v6251_v9 = vmul.f32 0.044715, %v6250_v7 }
 0x932   :  { %v6252_v61 = vadd.f32 %v6251_v9, %v6248_v38  ;;  %v14926_v9 = vld [vmem:[#allocation9] sm:$0xff] }
 0x934   :  { %v6253_v22 = vmul.f32 0.7978846, %v6252_v61 }
 0x936   :  { %9055 = vtanh.f32 %v6253_v22 }
 0x943   :  { %v9056_v23 = vpop.eup %9055 }
 0x944   :  { %v6255_v34 = vadd.f32 1.0, %v9056_v23 }
 0x946   :  { %v6256_v48 = vmul.f32 0.5, %v6255_v34 }
 0x948   :  { %v6257_v21 = vmul.f32 %v6256_v48, %v6248_v38  ;;  %v14931_v48 = vld [vmem:[%s16552_s30 + $0x18] sm:$0xff] }
 0x94a   :  { %v6258_v41 = vpack.c.bf16 %v6257_v21, %v6257_v21  ;;  %v14934_v21 = vld [vmem:[%s16552_s30 + $0x10] sm:$0xff] }
 0x94c   :  { %8557 = vmatmul.mubr.bf16.vlgmr.msra.gmra.mxu0 %v6258_v41  ;;  %v14939_v41 = vld [vmem:[%s16552_s30 + $0x8] sm:$0xff] }
 0x94d   :  { %8571 = vmatprep.mubr.msk.bf16.mxu0 %vm9634_vm7, %v9633_v39  ;;  %8568 = vmatpush3.bf16.msra.mxu0 %v9027_v42 }
 0x94e   :  { %8569 = vmatprep.subr.bf16.mxu0 %v9633_v39 }
 0x951   :  { %8570 = vmatpush3.bf16.msra.mxu0 %v9028_v11  ;;  %v9030_v11 = vld [vmem:[%s16553_s24] sm:$0xff]  }
 0x952   :  { %8586 = vmatprep.subr.mxu0 %v9633_v39 }
 0x979   :  { %v6477_v25 = vpop.f32.mrf.mxu1 }
 0x97b   :  { %v8566_v13 = vpop.f32.mrf.mxu1 }
 0xa0c   :  { %v6364_v36 = vpop.f32.mrf.mxu0 }
 0xa0d   :  { %v14859_v43 = vadd.f32 %v8123_v33, %v6364_v36 }
 0xa0e   :  { %v8558_v51 = vpop.f32.mrf.mxu0 }
 0xa0f   :  { %v14862_v49 = vadd.f32 %v6477_v25, %v14859_v43  ;;  %v14944_v25 = vld [vmem:[%s16552_s30] sm:$0xff] }
 0xa10   :  { %v6367_v37 = vpop.f32.mrf.mxu0 }
 0xa11   :  { %v6483_v45 = vsel %vm5988_vm9, %v14862_v49, 0.0 }
 0xa12   :  { %v8559_v29 = vpop.f32.mrf.mxu0  ;;  %6484 = vadd.xlane.f32.xlu1 %v6483_v45 }
 0xa23   :  { %6581 = vrot.lane.b32.xlu1 %v6374_v32, %s9635_s28 }
 0xa27   :  { %6577 = vrot.lane.b32.xlu1 %v6372_v40, %s9635_s28 }
 0xa2b   :  { %6575 = vrot.lane.b32.xlu1 %v6371_v26, %s9635_s28 }
 0xa9b   :  { %v6485_v12 = vpop.xlane.xlu1 %6484 }
 0xa9c   :  { %v6487_v52 = vmul.f32 0.03125, %v6485_v12 }
 0xa9e   :  { %v6488_v59 = vsub.f32 %v14862_v49, %v6487_v52  ;;  %v9029_v52 = vld [vmem:[%s16553_s24 + $0x8] sm:$0xff]  }
 0xa9f   :  { %v14879_v1 = vpop.permute.xlu1 %6581 }
 0xaa0   :  { %v6489_v2 = vmul.f32 %v6488_v59, %v6488_v59 }
 0xaa2   :  { %v6490_v31 = vsel %vm5988_vm9, %v6489_v2, 0.0 }
 0xaa3   :  { %6491 = vadd.xlane.f32.xlu0 %v6490_v31  ;;  %v14881_v24 = vpop.permute.xlu1 %6577 }
 0xaa7   :  { %v14887_v8 = vpop.permute.xlu1 %6575 }
 0xab9   :  { %6579 = vrot.lane.b32.xlu0 %v6373_v10, %s9635_s28 }
 0xb2c   :  { %v6492_v19 = vpop.xlane.xlu0 %6491 }
 0xb2d   :  { %v6493_v44 = vmul.f32 0.03125, %v6492_v19 }
 0xb2f   :  { %v6494_v58 = vadd.f32 1e-05, %v6493_v44 }
 0xb30   :  { %v14883_v20 = vpop.permute.xlu0 %6579 }
 0xb31   :  { %9057 = vrsqrt.f32 %v6494_v58 }
 0xb3e   :  { %v9058_v35 = vpop.eup %9057 }
 0xb3f   :  { %v6496_v47 = vmul.f32 %v9058_v35, %v6488_v59 }
 0xb41   :  { %v6503_v30 = vmul.f32 %v8133_v15, %v6496_v47 }
 0xb43   :  { %v6510_v60 = vadd.f32 %v8134_v28, %v6503_v30 }
 0xb45   :  { %v6511_v14 = vpack.c.bf16 %v6510_v60, %v6510_v60 }
 0xb47   :  { %8572 = vmatmul.mubr.msk.bf16.vlgmr.msra.gmra.mxu0 %vm5988_vm9, %v6511_v14 }
 0xb48   :  { %8594 = vmatprep.mubr.msk.f32.mxu0 %vm9634_vm7, %v9633_v39  ;;  %8587 = vmatpush3.msra.mxu0 %v14931_v48 }
 0xb49   :  { %8588 = vmatprep.subr.mxu0 %v9633_v39 }
 0xb4a   :  { %8589 = vmatpush3.msra.mxu0 %v14934_v21 }
 0xb4b   :  { %8590 = vmatprep.subr.mxu0 %v9633_v39 }
 0xb4c   :  { %8591 = vmatpush3.msra.mxu0 %v14939_v41 }
 0xb4d   :  { %8592 = vmatprep.subr.mxu0 %v9633_v39 }
 0xb4e   :  { %8593 = vmatpush3.msra.mxu0 %v14944_v25 }
 0xb4f   :  { %8597 = vmatprep.subr.mxu0 %v9633_v39 }
 0xc07   :  { %v6565_v53 = vpop.f32.mrf.mxu0 }
 0xc08   :  { %v6589_v46 = vmul.f32 %v14883_v20, %v6565_v53  ;;  %v6590_v62 = vmul.f32 %v14879_v1, %v6565_v53  ;;  %v6587_v17 = vmul.f32 %v14887_v8, %v6565_v53  ;;  %v6588_v16 = vmul.f32 %v14881_v24, %v6565_v53 }
 0xc09   :  { %v8573_v57 = vpop.f32.mrf.mxu0 }
 0xc0a   :  { %6615 = vrot.lane.b32.xlu1 %v6589_v46, %s9636_s1  ;;  %6617 = vrot.lane.b32.xlu0 %v6590_v62, %s9636_s1  ;;  %v9031_v62 = vld [vmem:[%s16554_s7 + $0x8] sm:$0xff]   ;;  %v9032_v57 = vld [vmem:[%s16554_s7] sm:$0xff]  }
 0xc0b   :  { %v6568_v3 = vpop.f32.mrf.mxu0 }
 0xc0d   :  { %v8574_v6 = vpop.f32.mrf.mxu0 }
 0xc0e   :  { %6613 = vrot.lane.b32.xlu0 %v6588_v16, %s9636_s1  ;;  %6611 = vrot.lane.b32.xlu1 %v6587_v17, %s9636_s1  ;;  %v8149_v6 = vld [vmem:[#allocation32] ss:$0 sm:$0xff] }
 0xc12   :  { %6597 = vrot.lane.b32.xlu1 %v6374_v32, %s9637_s2 }
 0xc16   :  { %6595 = vrot.lane.b32.xlu1 %v6373_v10, %s9637_s2 }
 0xc1a   :  { %6593 = vrot.lane.b32.xlu1 %v6372_v40, %s9637_s2 }
 0xc1e   :  { %6591 = vrot.lane.b32.xlu1 %v6371_v26, %s9637_s2  ;;  %v8145_v26 = vld [vmem:[#allocation30] ss:$0 sm:$0xff] }
 0xc7c   :  { %v6618_v50 = vpop.permute.xlu0 %6617  ;;  %v6616_v4 = vpop.permute.xlu1 %6615 }
 0xc7d   :  { %8576 = vmatpush3.xpose.msk.msra.mxu1 %vm5988_vm9, %v6618_v50 }
 0xc7e   :  { %8577 = vmatprep.subr.mxu1 %v9633_v39 }
 0xc80   :  { %v6612_v27 = vpop.permute.xlu1 %6611  ;;  %v6614_v55 = vpop.permute.xlu0 %6613 }
 0xc81   :  { %8578 = vmatpush3.xpose.msk.msra.mxu1 %vm5988_vm9, %v6616_v4  ;;  %v8150_v4 = vld [vmem:[#allocation33] ss:$0 sm:$0xff] }
 0xc82   :  { %8579 = vmatprep.subr.mxu1 %v9633_v39 }
 0xc84   :  { %v14903_v56 = vpop.permute.xlu1 %6597 }
 0xc85   :  { %v6606_v18 = vmul.f32 %v14903_v56, %v6565_v53  ;;  %8580 = vmatpush3.xpose.msk.msra.mxu1 %vm5988_vm9, %v6614_v55 }
 0xc86   :  { %8581 = vmatprep.subr.mxu1 %v9633_v39 }
 0xc87   :  { %6791 = vrot.lane.b32.xlu1 %v6606_v18, %s9637_s2 }
 0xc88   :  { %v14909_v0 = vpop.permute.xlu1 %6595 }
 0xc89   :  { %v6605_v63 = vmul.f32 %v14909_v0, %v6565_v53  ;;  %8582 = vmatpush3.xpose.msk.msra.mxu1 %vm5988_vm9, %v6612_v27 }
 0xc8a   :  { %8608 = vmatprep.subr.bf16.mxu1 %v9633_v39 }
 0xc8b   :  { %6789 = vrot.lane.b32.xlu1 %v6605_v63, %s9637_s2  ;;  %v9033_v63 = vld [vmem:[%s16555_s0 + $0x38] sm:$0xff]  }
 0xc8c   :  { %8584 = vmatmul.mubr.msk.f32.vlgmr.msra.gmra.mxu1 %vm5988_vm9, %v6565_v53  ;;  %v14916_v54 = vpop.permute.xlu1 %6593 }
 0xc8d   :  { %v6604_v38 = vmul.f32 %v14916_v54, %v6565_v53  ;;  %8612 = vmatprep.mubr.msk.bf16.mxu1 %vm9634_vm7, %v9633_v39  ;;  %8609 = vmatpush3.bf16.msra.mxu1 %v9029_v52 }
 0xc8e   :  { %8610 = vmatprep.subr.bf16.mxu1 %v9633_v39 }
 0xc8f   :  { %6787 = vrot.lane.b32.xlu1 %v6604_v38, %s9637_s2  ;;  %v9034_v38 = vld [vmem:[%s16555_s0 + $0x30] sm:$0xff]  }
 0xc90   :  { %v14922_v5 = vpop.permute.xlu1 %6591 }
 0xc91   :  { %v6603_v7 = vmul.f32 %v14922_v5, %v6565_v53  ;;  %8611 = vmatpush3.bf16.msra.mxu1 %v9030_v11 }
 0xc92   :  { %8624 = vmatprep.subr.bf16.mxu1 %v9633_v39 }
 0xc93   :  { %6785 = vrot.lane.b32.xlu1 %v6603_v7, %s9637_s2  ;;  %v9035_v7 = vld [vmem:[%s16555_s0 + $0x28] sm:$0xff]  }
 0xcf9   :  { %v6792_v51 = vpop.permute.xlu1 %6791 }
 0xcfd   :  { %v6790_v37 = vpop.permute.xlu1 %6789 }
 0xd01   :  { %v6788_v29 = vpop.permute.xlu1 %6787 }
 0xd05   :  { %v6786_v12 = vpop.permute.xlu1 %6785 }
 0xd4c   :  { %v6696_v61 = vpop.f32.mrf.mxu1 }
 0xd4d   :  { %v6697_v22 = vadd.f32 %v6696_v61, %v14926_v9  ;;  %v9036_v61 = vld [vmem:[%s16555_s0 + $0x20] sm:$0xff]  }
 0xd4e   :  { %v8585_v23 = vpop.f32.mrf.mxu1 }
 0xd4f   :  { %v6700_v34 = vsel %vm5988_vm9, %v6697_v22, -inf  ;;  %v9038_v23 = vld [vmem:[%s16555_s0 + $0x10] sm:$0xff]  }
 0xd50   :  { %6701 = vmax.xlane.f32.xlu0 %v6700_v34  ;;  %v9039_v34 = vld [vmem:[%s16555_s0 + $0x8] sm:$0xff]  }
 0xdd9   :  { %v6702_v13 = vpop.xlane.xlu0 %6701 }
 0xdda   :  { %v6703_v33 = vsub.f32 %v6697_v22, %v6702_v13  ;;  %v9037_v22 = vld [vmem:[%s16555_s0 + $0x18] sm:$0xff]   ;;  %v9040_v13 = vld [vmem:[%s16555_s0] sm:$0xff]  }
 0xddc   :  { %v6704_v36 = vmul.f32 1.442695, %v6703_v33  ;;  %v8151_v33 = vld [vmem:[#allocation35] ss:$0 sm:$0xff] }
 0xdde   :  { %9059 = vpow2.f32 %v6704_v36 }
 0xdeb   :  { %v9060_v45 = vpop.eup %9059 }
 0xdec   :  { %8595 = vmatmul.mubr.msk.f32.vlgmr.msra.gmra.mxu0 %vm5988_vm9, %v9060_v45 }
 0xded   :  { %8598 = vmatpush3.msra.mxu0 %v6792_v51  ;;  %8605 = vmatprep.mubr.msk.f32.mxu0 %vm9634_vm7, %v9633_v39 }
 0xdee   :  { %8599 = vmatprep.subr.mxu0 %v9633_v39 }
 0xdef   :  { %8600 = vmatpush3.msra.mxu0 %v6790_v37 }
 0xdf0   :  { %8601 = vmatprep.subr.mxu0 %v9633_v39 }
 0xdf1   :  { %8602 = vmatpush3.msra.mxu0 %v6788_v29 }
 0xdf2   :  { %8603 = vmatprep.subr.mxu0 %v9633_v39 }
 0xdf3   :  { %8604 = vmatpush3.msra.mxu0 %v6786_v12 }
 0xdf4   :  { %8616 = vmatprep.subr.bf16.mxu0 %v9633_v39 }
 0xeac   :  { %v6775_v59 = vpop.f32.mrf.mxu0 }
 0xead   :  { %9061 = vrcp.f32 %v6775_v59 }
 0xeae   :  { %v8596_v2 = vpop.f32.mrf.mxu0 }
 0xeba   :  { %v9062_v31 = vpop.eup %9061 }
 0xebb   :  { %v6780_v42 = vmul.f32 %v9062_v31, %v9060_v45 }
 0xebd   :  { %8606 = vmatmul.mubr.msk.f32.vlgmr.msra.gmra.mxu0 %vm5988_vm9, %v6780_v42 }
 0xebe   :  { %8620 = vmatprep.mubr.msk.bf16.mxu0 %vm9634_vm7, %v9633_v39  ;;  %8617 = vmatpush3.bf16.msra.mxu0 %v9031_v62 }
 0xebf   :  { %8618 = vmatprep.subr.bf16.mxu0 %v9633_v39 }
 0xec2   :  { %8619 = vmatpush3.bf16.msra.mxu0 %v9032_v57 }
 0xec3   :  { %8644 = vmatprep.subr.bf16.mxu0 %v9633_v39 }
 0xf7d   :  { %v6866_v32 = vpop.f32.mrf.mxu0 }
 0xf7e   :  { %v6870_v10 = vpack.c.bf16 %v6866_v32, %v6866_v32 }
 0xf7f   :  { %v8607_v40 = vpop.f32.mrf.mxu0 }
 0xf80   :  { %8613 = vmatmul.mubr.msk.bf16.vlgmr.msra.gmra.mxu1 %vm5988_vm9, %v6870_v10 }
 0xf81   :  { %8640 = vmatprep.mubr.msk.bf16.mxu1 %vm9634_vm7, %v9633_v39  ;;  %8625 = vmatpush3.bf16.msra.mxu1 %v9033_v63 }
 0xf82   :  { %8626 = vmatprep.subr.bf16.mxu1 %v9633_v39 }
 0xf85   :  { %8627 = vmatpush3.bf16.msra.mxu1 %v9034_v38 }
 0xf86   :  { %8628 = vmatprep.subr.bf16.mxu1 %v9633_v39 }
 0xf89   :  { %8629 = vmatpush3.bf16.msra.mxu1 %v9035_v7 }
 0xf8a   :  { %8630 = vmatprep.subr.bf16.mxu1 %v9633_v39 }
 0xf8d   :  { %8631 = vmatpush3.bf16.msra.mxu1 %v9036_v61 }
 0xf8e   :  { %8632 = vmatprep.subr.bf16.mxu1 %v9633_v39 }
 0xf91   :  { %8633 = vmatpush3.bf16.msra.mxu1 %v9037_v22 }
 0xf92   :  { %8634 = vmatprep.subr.bf16.mxu1 %v9633_v39 }
 0xf95   :  { %8635 = vmatpush3.bf16.msra.mxu1 %v9038_v23 }
 0xf96   :  { %8636 = vmatprep.subr.bf16.mxu1 %v9633_v39 }
 0xf99   :  { %8637 = vmatpush3.bf16.msra.mxu1 %v9039_v34 }
 0xf9a   :  { %8638 = vmatprep.subr.bf16.mxu1 %v9633_v39 }
 0xf9d   :  { %8639 = vmatpush3.bf16.msra.mxu1 %v9040_v13 }
 0xf9e   :  { %8674 = vmatprep.subr.mxu1 %v9633_v39 }
0x1040   :  { %v6931_v19 = vpop.f32.mrf.mxu1 }
0x1041   :  { %v6932_v44 = vadd.f32 %v8145_v26, %v6931_v19  ;;  %v8155_v26 = vld [vmem:[#allocation36] ss:$0 sm:$0xff] }
0x1042   :  { %v8614_v58 = vpop.f32.mrf.mxu1 }
0x1043   :  { %v14968_v35 = vadd.f32 %v6932_v44, %v14862_v49 }
0x1044   :  { %v6934_v15 = vpop.f32.mrf.mxu1 }
0x1045   :  { %v6940_v47 = vsel %vm5988_vm9, %v14968_v35, 0.0 }
0x1046   :  { %6941 = vadd.xlane.f32.xlu0 %v6940_v47  ;;  %v8615_v28 = vpop.f32.mrf.mxu1 }
0x10cf   :  { %v6942_v30 = vpop.xlane.xlu0 %6941 }
0x10d0   :  { %v6943_v60 = vmul.f32 0.03125, %v6942_v30 }
0x10d2   :  { %v6944_v14 = vsub.f32 %v14968_v35, %v6943_v60 }
0x10d4   :  { %v6945_v53 = vmul.f32 %v6944_v14, %v6944_v14 }
0x10d6   :  { %v6946_v46 = vsel %vm5988_vm9, %v6945_v53, 0.0 }
0x10d7   :  { %6947 = vadd.xlane.f32.xlu1 %v6946_v46 }
0x1160   :  { %v6948_v49 = vpop.xlane.xlu1 %6947 }
0x1161   :  { %v6949_v3 = vmul.f32 0.03125, %v6948_v49  ;;  %v9041_v49 = vld [vmem:[%s16550_s3 + $0x18] sm:$0xff]  }
0x1163   :  { %v6950_v17 = vadd.f32 1e-05, %v6949_v3 }
0x1165   :  { %9063 = vrsqrt.f32 %v6950_v17 }
0x1172   :  { %v9064_v16 = vpop.eup %9063 }
0x1173   :  { %v6952_v50 = vmul.f32 %v9064_v16, %v6944_v14 }
0x1175   :  { %v6959_v27 = vmul.f32 %v8149_v6, %v6952_v50  ;;  %v8164_v6 = vld [vmem:[#allocation27 + $0x1] ss:$0 sm:$0xff] }
0x1177   :  { %v6966_v55 = vadd.f32 %v8150_v4, %v6959_v27  ;;  %v8165_v4 = vld [vmem:[#allocation29 + $0x1] ss:$0 sm:$0xff] }
0x1179   :  { %v6967_v18 = vpack.c.bf16 %v6966_v55, %v6966_v55 }
0x117b   :  { %8621 = vmatmul.mubr.msk.bf16.vlgmr.msra.gmra.mxu0 %vm5988_vm9, %v6967_v18 }
0x117c   :  { %8648 = vmatprep.mubr.msk.bf16.mxu0 %vm9634_vm7, %v9633_v39  ;;  %8645 = vmatpush3.bf16.msra.mxu0 %v9041_v49  ;;  %v9045_v49 = vld [vmem:[%s16554_s7 + $0x18] sm:$0xff]  }
0x117d   :  { %8646 = vmatprep.subr.bf16.mxu0 %v9633_v39 }
0x123b   :  { %v7028_v36 = vpop.f32.mrf.mxu0 }
0x123c   :  { %v7029_v51 = vadd.f32 %v8151_v33, %v7028_v36 }
0x123d   :  { %v8622_v37 = vpop.f32.mrf.mxu0 }
0x123e   :  { %v7034_v45 = vmul.f32 %v7029_v51, %v7029_v51 }
0x123f   :  { %v7031_v29 = vpop.f32.mrf.mxu0 }
0x1240   :  { %v7035_v12 = vmul.f32 %v7034_v45, %v7029_v51 }
0x1241   :  { %v8623_v52 = vpop.f32.mrf.mxu0 }
0x1242   :  { %v7036_v59 = vmul.f32 0.044715, %v7035_v12 }
0x1244   :  { %v7037_v2 = vadd.f32 %v7036_v59, %v7029_v51 }
0x1246   :  { %v7038_v31 = vmul.f32 0.7978846, %v7037_v2 }
0x1248   :  { %9065 = vtanh.f32 %v7038_v31 }
0x1255   :  { %v9066_v42 = vpop.eup %9065 }
0x1256   :  { %v7040_v11 = vadd.f32 1.0, %v9066_v42 }
0x1258   :  { %v7041_v32 = vmul.f32 0.5, %v7040_v11  ;;  %v9044_v11 = vld [vmem:[%s16553_s24 + $0x10] sm:$0xff]  }
0x125a   :  { %v7042_v10 = vmul.f32 %v7041_v32, %v7029_v51 }
0x125c   :  { %v7043_v40 = vpack.c.bf16 %v7042_v10, %v7042_v10 }
0x125e   :  { %8641 = vmatmul.mubr.bf16.vlgmr.msra.gmra.mxu1 %v7043_v40 }
0x125f   :  { %8682 = vmatprep.mubr.msk.f32.mxu1 %vm9634_vm7, %v9633_v39 }
0x131e   :  { %v7149_v19 = vpop.f32.mrf.mxu1 }
0x131f   :  { %v7150_v44 = vadd.f32 %v8155_v26, %v7149_v19  ;;  %v8184_v26 = vld [vmem:[#allocation30 + $0x1] ss:$0 sm:$0xff] }
0x1320   :  { %v8642_v58 = vpop.f32.mrf.mxu1 }
0x1321   :  { %v7155_v15 = vadd.f32 %v7150_v44, %v14968_v35  ;;  %v9042_v35 = vld [vmem:[%s16550_s3 + $0x10] sm:$0xff]  }
0x1322   :  { %v7152_v47 = vpop.f32.mrf.mxu1  ;;  %8647 = vmatpush3.bf16.msra.mxu0 %v9042_v35  ;;  %v9046_v35 = vld [vmem:[%s16554_s7 + $0x10] sm:$0xff]  }
0x1323   :  { %v15001_v28 = vadd.f32 %v7155_v15, %v14859_v43  ;;  %8652 = vmatprep.subr.mxu0 %v9633_v39 }
0x1324   :  { %v8643_v30 = vpop.f32.mrf.mxu1 }
0x1325   :  { %v7161_v60 = vsel %vm5988_vm9, %v15001_v28, 0.0 }
0x1326   :  { %7162 = vadd.xlane.f32.xlu0 %v7161_v60 }
0x13af   :  { %v7163_v14 = vpop.xlane.xlu0 %7162 }
0x13b0   :  { %v7164_v53 = vmul.f32 0.03125, %v7163_v14 }
0x13b2   :  { %v7165_v46 = vsub.f32 %v15001_v28, %v7164_v53 }
0x13b4   :  { %v7166_v62 = vmul.f32 %v7165_v46, %v7165_v46 }
0x13b6   :  { %v7167_v57 = vsel %vm5988_vm9, %v7166_v62, 0.0 }
0x13b7   :  { %7168 = vadd.xlane.f32.xlu0 %v7167_v57 }
0x1440   :  { %v7169_v43 = vpop.xlane.xlu0 %7168 }
0x1441   :  { %v7170_v3 = vmul.f32 0.03125, %v7169_v43 }
0x1443   :  { %v7171_v17 = vadd.f32 1e-05, %v7170_v3 }
0x1445   :  { %9067 = vrsqrt.f32 %v7171_v17 }
0x1452   :  { %v9068_v16 = vpop.eup %9067 }
0x1453   :  { %v7173_v50 = vmul.f32 %v9068_v16, %v7165_v46  ;;  %v8188_v16 = vld [vmem:[#allocation32 + $0x1] ss:$0 sm:$0xff] }
0x1455   :  { %v7180_v27 = vmul.f32 %v8164_v6, %v7173_v50  ;;  %v8189_v50 = vld [vmem:[#allocation33 + $0x1] ss:$0 sm:$0xff] }
0x1457   :  { %v7187_v55 = vadd.f32 %v8165_v4, %v7180_v27 }
0x1459   :  { %v7188_v18 = vpack.c.bf16 %v7187_v55, %v7187_v55 }
0x145b   :  { %8649 = vmatmul.mubr.msk.bf16.vlgmr.msra.gmra.mxu0 %vm5988_vm9, %v7188_v18  ;;  %v9047_v18 = vld [vmem:[%s16555_s0 + $0x78] sm:$0xff]  }
0x145c   :  { %8660 = vmatprep.mubr.msk.f32.mxu0 %vm9634_vm7, %v9633_v39 }
0x151b   :  { %v7243_v63 = vpop.f32.mrf.mxu0 }
0x151c   :  { %v7252_v38 = vmul.f32 %v7243_v63, %v14879_v1  ;;  %v7250_v7 = vmul.f32 %v7243_v63, %v14881_v24  ;;  %v7251_v23 = vmul.f32 %v7243_v63, %v14883_v20  ;;  %v7256_v34 = vmul.f32 %v7243_v63, %v14903_v56 }
0x151d   :  { %v8650_v61 = vpop.f32.mrf.mxu0  ;;  %v7255_v33 = vmul.f32 %v7243_v63, %v14909_v0  ;;  %v7249_v1 = vmul.f32 %v7243_v63, %v14887_v8  ;;  %v7254_v24 = vmul.f32 %v7243_v63, %v14916_v54  ;;  %v7253_v20 = vmul.f32 %v7243_v63, %v14922_v5 }
0x151e   :  { %7267 = vrot.lane.b32.xlu0 %v7252_v38, %s9636_s1  ;;  %7263 = vrot.lane.b32.xlu1 %v7250_v7, %s9636_s1  ;;  %v9049_v38 = vld [vmem:[%s16555_s0 + $0x68] sm:$0xff]   ;;  %v9050_v7 = vld [vmem:[%s16555_s0 + $0x60] sm:$0xff]  }
0x151f   :  { %v7246_v22 = vpop.f32.mrf.mxu0  ;;  %v9051_v61 = vld [vmem:[%s16555_s0 + $0x58] sm:$0xff]  }
0x1520   :  { %v9052_v22 = vld [vmem:[%s16555_s0 + $0x50] sm:$0xff]  }
0x1521   :  { %v8651_v13 = vpop.f32.mrf.mxu0 }
0x1522   :  { %7265 = vrot.lane.b32.xlu0 %v7251_v23, %s9636_s1  ;;  %7441 = vrot.lane.b32.xlu1 %v7256_v34, %s9637_s2  ;;  %v9053_v23 = vld [vmem:[%s16555_s0 + $0x48] sm:$0xff]   ;;  %v9054_v34 = vld [vmem:[%s16555_s0 + $0x40] sm:$0xff]   ;;  %v8194_v13 = vld [vmem:[#allocation35 + $0x1] ss:$0 sm:$0xff] }
0x1526   :  { %7439 = vrot.lane.b32.xlu1 %v7255_v33, %s9637_s2  ;;  %7261 = vrot.lane.b32.xlu0 %v7249_v1, %s9636_s1 }
0x152a   :  { %7437 = vrot.lane.b32.xlu1 %v7254_v24, %s9637_s2 }
0x152e   :  { %7435 = vrot.lane.b32.xlu1 %v7253_v20, %s9637_s2 }
0x1590   :  { %v7268_v56 = vpop.permute.xlu0 %7267  ;;  %v7264_v36 = vpop.permute.xlu1 %7263 }
0x1591   :  { %8653 = vmatpush3.xpose.msk.msra.mxu0 %vm5988_vm9, %v7268_v56 }
0x1592   :  { %8654 = vmatprep.subr.mxu0 %v9633_v39 }
0x1594   :  { %v7266_v0 = vpop.permute.xlu0 %7265  ;;  %v7442_v8 = vpop.permute.xlu1 %7441 }
0x1595   :  { %8655 = vmatpush3.xpose.msk.msra.mxu0 %vm5988_vm9, %v7266_v0  ;;  %8675 = vmatpush3.msra.mxu1 %v7442_v8 }
0x1596   :  { %8656 = vmatprep.subr.mxu0 %v9633_v39  ;;  %8676 = vmatprep.subr.mxu1 %v9633_v39 }
0x1598   :  { %v7440_v54 = vpop.permute.xlu1 %7439  ;;  %v7262_v5 = vpop.permute.xlu0 %7261 }
0x1599   :  { %8657 = vmatpush3.xpose.msk.msra.mxu0 %vm5988_vm9, %v7264_v36  ;;  %8677 = vmatpush3.msra.mxu1 %v7440_v54 }
0x159a   :  { %8658 = vmatprep.subr.mxu0 %v9633_v39  ;;  %8678 = vmatprep.subr.mxu1 %v9633_v39 }
0x159c   :  { %v7438_v51 = vpop.permute.xlu1 %7437 }
0x159d   :  { %8659 = vmatpush3.xpose.msk.msra.mxu0 %vm5988_vm9, %v7262_v5  ;;  %8679 = vmatpush3.msra.mxu1 %v7438_v51 }
0x159e   :  { %8680 = vmatprep.subr.mxu1 %v9633_v39  ;;  %8663 = vmatprep.subr.mxu0 %v9633_v39 }
0x15a0   :  { %v7436_v37 = vpop.permute.xlu1 %7435  ;;  %8661 = vmatmul.mubr.msk.f32.vlgmr.msra.gmra.mxu0 %vm5988_vm9, %v7243_v63  ;;  %v9048_v63 = vld [vmem:[%s16555_s0 + $0x70] sm:$0xff]  }
0x15a1   :  { %8681 = vmatpush3.msra.mxu1 %v7436_v37  ;;  %8664 = vmatpush3.msra.mxu0 %v14931_v48 }
0x15a2   :  { %8665 = vmatprep.subr.mxu0 %v9633_v39  ;;  %8671 = vmatprep.mubr.msk.f32.mxu0 %vm9634_vm7, %v9633_v39 }
0x15a3   :  { %8666 = vmatpush3.msra.mxu0 %v14934_v21  ;;  %8693 = vmatprep.subr.bf16.mxu1 %v9633_v39 }
0x15a4   :  { %8667 = vmatprep.subr.mxu0 %v9633_v39 }
0x15a5   :  { %8668 = vmatpush3.msra.mxu0 %v14939_v41 }
0x15a6   :  { %8669 = vmatprep.subr.mxu0 %v9633_v39 }
0x15a7   :  { %8670 = vmatpush3.msra.mxu0 %v14944_v25  ;;  %v9043_v25 = vld [vmem:[%s16553_s24 + $0x18] sm:$0xff]  }
0x15a8   :  { %8685 = vmatprep.subr.bf16.mxu0 %v9633_v39 }
0x1660   :  { %v7346_v48 = vpop.f32.mrf.mxu0 }
0x1661   :  { %v7347_v45 = vadd.f32 %v7346_v48, %v14926_v9 }
0x1662   :  { %v8662_v29 = vpop.f32.mrf.mxu0 }
0x1663   :  { %v7350_v12 = vsel %vm5988_vm9, %v7347_v45, -inf }
0x1664   :  { %7351 = vmax.xlane.f32.xlu0 %v7350_v12 }
0x16ed   :  { %v7352_v21 = vpop.xlane.xlu0 %7351 }
0x16ee   :  { %v7353_v52 = vsub.f32 %v7347_v45, %v7352_v21 }
0x16f0   :  { %v7354_v59 = vmul.f32 1.442695, %v7353_v52 }
0x16f2   :  { %9069 = vpow2.f32 %v7354_v59 }
0x16ff   :  { %v9070_v41 = vpop.eup %9069 }
0x1700   :  { %8672 = vmatmul.mubr.msk.f32.vlgmr.msra.gmra.mxu0 %vm5988_vm9, %v9070_v41 }
0x1701   :  { %8689 = vmatprep.mubr.msk.bf16.mxu0 %vm9634_vm7, %v9633_v39  ;;  %8686 = vmatpush3.bf16.msra.mxu0 %v9043_v25 }
0x1702   :  { %8687 = vmatprep.subr.bf16.mxu0 %v9633_v39 }
0x1705   :  { %8688 = vmatpush3.bf16.msra.mxu0 %v9044_v11 }
0x1706   :  { %8701 = vmatprep.subr.bf16.mxu0 %v9633_v39 }
0x17c0   :  { %v7425_v9 = vpop.f32.mrf.mxu0 }
0x17c1   :  { %9071 = vrcp.f32 %v7425_v9 }
0x17c2   :  { %v8673_v2 = vpop.f32.mrf.mxu0 }
0x17ce   :  { %v9072_v31 = vpop.eup %9071 }
0x17cf   :  { %v7430_v42 = vmul.f32 %v9072_v31, %v9070_v41 }
0x17d1   :  { %8683 = vmatmul.mubr.msk.f32.vlgmr.msra.gmra.mxu1 %vm5988_vm9, %v7430_v42 }
0x17d2   :  { %8697 = vmatprep.mubr.msk.bf16.mxu1 %vm9634_vm7, %v9633_v39  ;;  %8694 = vmatpush3.bf16.msra.mxu1 %v9045_v49 }
0x17d3   :  { %8695 = vmatprep.subr.bf16.mxu1 %v9633_v39 }
0x17d6   :  { %8696 = vmatpush3.bf16.msra.mxu1 %v9046_v35 }
0x1891   :  { %v7516_v32 = vpop.f32.mrf.mxu1 }
0x1892   :  { %v7520_v10 = vpack.c.bf16 %v7516_v32, %v7516_v32 }
0x1893   :  { %v8684_v40 = vpop.f32.mrf.mxu1 }
0x1894   :  { %8690 = vmatmul.mubr.msk.bf16.vlgmr.msra.gmra.mxu0 %vm5988_vm9, %v7520_v10 }
0x1895   :  { %8717 = vmatprep.mubr.msk.bf16.mxu0 %vm9634_vm7, %v9633_v39  ;;  %8702 = vmatpush3.bf16.msra.mxu0 %v9047_v18 }
0x1896   :  { %8703 = vmatprep.subr.bf16.mxu0 %v9633_v39 }
0x1899   :  { %8704 = vmatpush3.bf16.msra.mxu0 %v9048_v63 }
0x189a   :  { %8705 = vmatprep.subr.bf16.mxu0 %v9633_v39 }
0x189d   :  { %8706 = vmatpush3.bf16.msra.mxu0 %v9049_v38 }
0x189e   :  { %8707 = vmatprep.subr.bf16.mxu0 %v9633_v39 }
0x18a1   :  { %8708 = vmatpush3.bf16.msra.mxu0 %v9050_v7 }
0x18a2   :  { %8709 = vmatprep.subr.bf16.mxu0 %v9633_v39 }
0x18a5   :  { %8710 = vmatpush3.bf16.msra.mxu0 %v9051_v61 }
0x18a6   :  { %8711 = vmatprep.subr.bf16.mxu0 %v9633_v39 }
0x18a9   :  { %8712 = vmatpush3.bf16.msra.mxu0 %v9052_v22 }
0x18aa   :  { %8713 = vmatprep.subr.bf16.mxu0 %v9633_v39 }
0x18ad   :  { %8714 = vmatpush3.bf16.msra.mxu0 %v9053_v23 }
0x18ae   :  { %8715 = vmatprep.subr.bf16.mxu0 %v9633_v39  ;;  %v8214_v39 = vld [vmem:[#allocation36 + $0x1] ss:$0 sm:$0xff] }
0x18b1   :  { %8716 = vmatpush3.bf16.msra.mxu0 %v9054_v34 }
0x1954   :  { %v7583_v19 = vpop.f32.mrf.mxu0 }
0x1955   :  { %v7584_v44 = vadd.f32 %v8184_v26, %v7583_v19 }
0x1956   :  { %v8691_v58 = vpop.f32.mrf.mxu0 }
0x1957   :  { %v15069_v15 = vadd.f32 %v7584_v44, %v15001_v28  ;;  %v8223_v44 = vld [vmem:[#allocation38] ss:$0 sm:$0xff] }
0x1958   :  { %v7586_v47 = vpop.f32.mrf.mxu0 }
0x1959   :  { %v7594_v30 = vsel %vm5988_vm9, %v15069_v15, 0.0 }
0x195a   :  { %7595 = vadd.xlane.f32.xlu1 %v7594_v30  ;;  %v8692_v60 = vpop.f32.mrf.mxu0 }
0x19e3   :  { %v7596_v14 = vpop.xlane.xlu1 %7595 }
0x19e4   :  { %v7597_v53 = vmul.f32 0.03125, %v7596_v14 }
0x19e6   :  { %v7598_v46 = vsub.f32 %v15069_v15, %v7597_v53 }
0x19e8   :  { %v7599_v62 = vmul.f32 %v7598_v46, %v7598_v46 }
0x19ea   :  { %v7600_v57 = vsel %vm5988_vm9, %v7599_v62, 0.0 }
0x19eb   :  { %7601 = vadd.xlane.f32.xlu0 %v7600_v57 }
0x1a74   :  { %v7602_v28 = vpop.xlane.xlu0 %7601 }
0x1a75   :  { %v7603_v43 = vmul.f32 0.03125, %v7602_v28 }
0x1a77   :  { %v7604_v3 = vadd.f32 1e-05, %v7603_v43 }
0x1a79   :  { %9073 = vrsqrt.f32 %v7604_v3 }
0x1a86   :  { %v9074_v17 = vpop.eup %9073 }
0x1a87   :  { %v7606_v6 = vmul.f32 %v9074_v17, %v7598_v46 }
0x1a89   :  { %v7613_v4 = vmul.f32 %v8188_v16, %v7606_v6 }
0x1a8b   :  { %v7620_v27 = vadd.f32 %v8189_v50, %v7613_v4 }
0x1a8d   :  { %v7621_v55 = vpack.c.bf16 %v7620_v27, %v7620_v27 }
0x1a8f   :  { %8698 = vmatmul.mubr.msk.bf16.vlgmr.msra.gmra.mxu1 %vm5988_vm9, %v7621_v55 }
0x1b4f   :  { %v7684_v33 = vpop.f32.mrf.mxu1 }
0x1b50   :  { %v7685_v1 = vadd.f32 %v8194_v13, %v7684_v33 }
0x1b51   :  { %v8699_v24 = vpop.f32.mrf.mxu1 }
0x1b52   :  { %v7690_v20 = vmul.f32 %v7685_v1, %v7685_v1 }
0x1b53   :  { %v7687_v56 = vpop.f32.mrf.mxu1 }
0x1b54   :  { %v7691_v36 = vmul.f32 %v7690_v20, %v7685_v1 }
0x1b55   :  { %v8700_v0 = vpop.f32.mrf.mxu1 }
0x1b56   :  { %v7692_v8 = vmul.f32 0.044715, %v7691_v36 }
0x1b58   :  { %v7693_v54 = vadd.f32 %v7692_v8, %v7685_v1 }
0x1b5a   :  { %v7694_v5 = vmul.f32 0.7978846, %v7693_v54 }
0x1b5c   :  { %9075 = vtanh.f32 %v7694_v5 }
0x1b69   :  { %v9076_v51 = vpop.eup %9075 }
0x1b6a   :  { %v7696_v37 = vadd.f32 1.0, %v9076_v51 }
0x1b6c   :  { %v7697_v48 = vmul.f32 0.5, %v7696_v37 }
0x1b6e   :  { %v7698_v45 = vmul.f32 %v7697_v48, %v7685_v1 }
0x1b70   :  { %v7699_v29 = vpack.c.bf16 %v7698_v45, %v7698_v45 }
0x1b72   :  { %8718 = vmatmul.mubr.bf16.vlgmr.msra.gmra.mxu0 %v7699_v29 }
0x1c32   :  { %v7807_v12 = vpop.f32.mrf.mxu0 }
0x1c33   :  { %v7808_v21 = vadd.f32 %v8214_v39, %v7807_v12 }
0x1c34   :  { %v8719_v52 = vpop.f32.mrf.mxu0 }
0x1c35   :  { %v7813_v59 = vadd.f32 %v7808_v21, %v15069_v15  ;;  %v8224_v15 = vld [vmem:[%s9822_s19] ss:$0 sm:$0xff] }
0x1c36   :  { %v7810_v41 = vpop.f32.mrf.mxu0 }
0x1c37   :  { %v7816_v25 = vsel %vm5988_vm9, %v7813_v59, 0.0 }
0x1c38   :  { %7817 = vadd.xlane.f32.xlu0 %v7816_v25  ;;  %v8720_v9 = vpop.f32.mrf.mxu0 }
0x1cc1   :  { %v7818_v2 = vpop.xlane.xlu0 %7817 }
0x1cc2   :  { %v7819_v31 = vmul.f32 0.03125, %v7818_v2 }
0x1cc4   :  { %v7820_v42 = vsub.f32 %v7813_v59, %v7819_v31 }
0x1cc6   :  { %v7821_v11 = vmul.f32 %v7820_v42, %v7820_v42 }
0x1cc8   :  { %v7822_v32 = vsel %vm5988_vm9, %v7821_v11, 0.0 }
0x1cc9   :  { %7823 = vadd.xlane.f32.xlu0 %v7822_v32 }
0x1d52   :  { %v7824_v10 = vpop.xlane.xlu0 %7823 }
0x1d53   :  { %v7825_v40 = vmul.f32 0.03125, %v7824_v10 }
0x1d55   :  { %v7826_v26 = vadd.f32 1e-05, %v7825_v40 }
0x1d57   :  { %9077 = vrsqrt.f32 %v7826_v26 }
0x1d64   :  { %v9078_v19 = vpop.eup %9077 }
0x1d65   :  { %v7828_v58 = vmul.f32 %v9078_v19, %v7820_v42 }
0x1d67   :  { %v7835_v47 = vmul.f32 %v8223_v44, %v7828_v58 }
0x1d69   :  { %v7842_v30 = vadd.f32 %v8224_v15, %v7835_v47 }
0x1d6b   :  { %7843 = vst.msk [vmem:[#allocation39] sm:$0xff] %vm5988_vm9, %v7842_v30 }
0x1d6c   :  { %9530 = shalt.err (!%p9527_p2)
}
0x1d6d   :  { %7853 = dma.vmem_to_hbm [thread:$0]  %s7851_s10, 128, %s9827_s6, [#allocation8]  }
0x1d6e   :  { %9567 = dma.done.wait [#allocation8], 128  }
0x1d6f   :  { %9568 = vsyncadd [#allocation8], 4294967168 }
0x1d70   :  { %7857 = vsyncpa [#allocation7], 1 }
0x1d71   :  { %7858 = vsyncpa [#allocation10], 1 }
0x1d72   :  { %7859 = vsyncpa [#allocation13], 1 }
0x1d73   :  { %7860 = vsyncpa [#allocation16], 1 }
0x1d74   :  { %7861 = vsyncpa [#allocation19], 1 }
0x1d75   :  { %7862 = vsyncpa [#allocation22], 1 }
0x1d76   :  { %7863 = vsyncpa [#allocation25], 1 }
0x1d77   :  { %7864 = vsyncpa [#allocation28], 1 }
0x1d78   :  { %7865 = vsyncpa [#allocation31], 1 }
0x1d79   :  { %7866 = vsyncpa [#allocation34], 1 }
0x1d7a   :  { %7867 = vsyncpa [#allocation37], 1 }
0x1d7b   :  { %7868 = vsyncpa [#allocation8], 1 }
0x1d7c   :  { %7869 = vsyncmov [#allocation5] }
0x1d7f   :  { %s7870_s19 = vpop.sfrf %7869 }
0x1d80   :  { %p8225_p3 = scmp.ne.s32.totalorder %s7870_s19, 0 }
0x1d82   :  { %7874 = shalt.err (%p8225_p3)  }
0x1d83   :  { %7876 = vsyncmov [#allocation5 + $0x1] }
0x1d86   :  { %s7877_s6 = vpop.sfrf %7876 }
0x1d87   :  { %p8226_p4 = scmp.ne.s32.totalorder %s7877_s6, 0 }
0x1d89   :  { %7881 = shalt.err (%p8226_p4)  }
0x1d8a   :  { %7883 = vsyncmov [#allocation5 + $0x2] }
0x1d8d   :  { %s7884_s20 = vpop.sfrf %7883 }
0x1d8e   :  { %p8227_p5 = scmp.ne.s32.totalorder %s7884_s20, 0 }
0x1d90   :  { %7888 = shalt.err (%p8227_p5)  }

</bundles_post_ra>
